<compile_context>
chip_gen: v7x
topology: tpu7x:2x2x1
jax: 0.10.0
libtpu: 0.0.40
codegen_flags: <defaults>
</compile_context>

<pallas_src>
import math
import functools

import numpy as np
import jax
import jax.numpy as jnp
from jax import lax
from jax.experimental import pallas as pl
from jax.experimental.pallas import tpu as pltpu

EPS = 1e-5
NEG_INF = -1e30


def _layernorm(y, w, b):
    mu = jnp.mean(y, axis=-1, keepdims=True)
    var = jnp.mean((y - mu) ** 2, axis=-1, keepdims=True)
    return (y - mu) * lax.rsqrt(var + EPS) * w + b


# --------------------------------------------------------------- kernel -----
def _encoder_kernel(x_ref, sig_ref, mask_ref, edge_ref,
                    c_lnw, c_lnb, c_dw, c_pw, c_pwb,
                    a_lnw, a_lnb, wq, bq, wk, bk, wv, bv, wo, bo,
                    f_lnw, f_lnb, f_w, f_b,
                    o_ref, *, ksize, num_heads, conv_num, ff_depth,
                    b_blk, seq_len, matmul_dtype):
    """Fused encoder block for b_blk sequences; activation stays in VMEM.

    x_ref / o_ref are the flattened [M, H] row-blocks with M = b_blk * seq_len,
    so every matmul presents M rows to the MXU.
    """
    L = seq_len
    M, H = x_ref.shape                       # M = b_blk * L
    pad = ksize // 2
    mdt = matmul_dtype
    exact_div = jnp.dtype(mdt) == jnp.dtype(jnp.float32)

    def mm(a, b):
        # Operands are already in matmul dtype; accumulate in f32 on the MXU.
        return jnp.dot(a, b, preferred_element_type=jnp.float32)

    x = x_ref[...] + sig_ref[...]            # [M, H] + tiled positional signal

    # ---------------- depthwise-separable conv blocks (residual) ------------
    for i in range(conv_num):
        y = _layernorm(x, c_lnw[i], c_lnb[i])
        dw = c_dw[i]                          # [ksize, H] per-channel taps
        acc = y * dw[pad][None, :]            # start from center tap
        for k in range(ksize):                # small static tap loop
            if k == pad:
                continue
            off = k - pad                     # output[l] += dw[k] * y[l + off]
            # XLU rotation of the flattened rows; edge_ref[k] zeroes rows whose
            # source falls outside the owning sequence (zero-padding, and it
            # also kills cross-sequence wrap-around).
            shifted = pltpu.roll(y, shift=(-off) % M, axis=0)
            acc = acc + (shifted * edge_ref[k]) * dw[k][None, :]
        z = mm(acc.astype(mdt), c_pw[i]) + c_pwb[i]    # pointwise conv
        x = x + jnp.maximum(z, 0.0)                    # ReLU + residual

    # ---------------- multi-head self-attention (residual) ------------------
    y = _layernorm(x, a_lnw[...], a_lnb[...])
    y_c = y.astype(mdt)                       # cast once for q/k/v matmuls
    d = H // num_heads
    scale = 1.0 / math.sqrt(d)
    q = mm(y_c, wq[...]) + bq[...]            # [M, H] f32
    k_ = mm(y_c, wk[...]) + bk[...]
    v = mm(y_c, wv[...]) + bv[...]
    q_c = q.astype(mdt)                       # cast once, sliced per (b, head)
    k_c = k_.astype(mdt)
    v_c = v.astype(mdt)

    ctx_rows = []
    for b in range(b_blk):                    # static per-sequence loop
        rows = slice(b * L, (b + 1) * L)
        key_bias = jnp.where(mask_ref[b] > 0, 0.0, NEG_INF)   # [1, L]
        head_ctx = []
        for h in range(num_heads):            # static head loop
            cols = slice(h * d, (h + 1) * d)
            qh = q_c[rows, cols]
            kh = k_c[rows, cols]
            vh = v_c[rows, cols]
            s = lax.dot_general(qh, kh, (((1,), (1,)), ((), ())),
                                preferred_element_type=jnp.float32)  # [L, L]
            s = s * scale + key_bias          # scale applied in f32 (exact)
            p = jnp.exp(s - jnp.max(s, axis=-1, keepdims=True))
            denom = jnp.sum(p, axis=-1, keepdims=True)
            if exact_div:
                p = p / denom                 # exact on the f32 validation path
            else:
                p = p * pl.reciprocal(denom, approx=True)   # EUP slot
            head_ctx.append(mm(p.astype(mdt), vh))          # [L, d] f32
        ctx_rows.append(jnp.concatenate(head_ctx, axis=-1))  # [L, H]
    ctx = jnp.concatenate(ctx_rows, axis=0) if b_blk > 1 else ctx_rows[0]
    # Single K=H output projection over all M rows (MXU-native contraction).
    x = x + mm(ctx.astype(mdt), wo[...]) + bo[...]

    # ---------------- feed-forward blocks (residual) -------------------------
    for i in range(ff_depth):
        y = _layernorm(x, f_lnw[i], f_lnb[i])
        z = mm(y.astype(mdt), f_w[i]) + f_b[i]
        x = x + jnp.maximum(z, 0.0)

    o_ref[...] = x


# -------------------------------------------------------------- wrapper -----
def _pick_b_blk(batch, seq_len, target_rows=256, max_rows=2048):
    """Smallest divisor of `batch` whose flattened row count reaches
    target_rows (keeps the grid long for pipelining / v7x megacore); falls
    back to the largest divisor fitting max_rows."""
    divisors = [c for c in range(1, batch + 1) if batch % c == 0]
    fitting = [c for c in divisors if c * seq_len <= max_rows]
    if not fitting:
        return 1
    for c in fitting:
        if c * seq_len >= target_rows:
            return c
    return fitting[-1]


def encoder_block_forward(params, x_bhl, mask, *, ksize, num_heads,
                          matmul_dtype=jnp.bfloat16):
    """x_bhl: [B, H, L] (torch conv layout), mask: [B, L] with 1.0 = valid."""
    x = jnp.transpose(x_bhl, (0, 2, 1)).astype(jnp.float32)   # -> [B, L, H]
    B, L, H = x.shape
    b_blk = _pick_b_blk(B, L)
    M = b_blk * L

    x_flat = x.reshape(B * L, H)                               # rows flattened
    sig_flat = jnp.tile(params["signal"][:L].astype(jnp.float32), (b_blk, 1))
    mask3 = mask.astype(jnp.float32).reshape(B, 1, L)

    # Precomputed conv edge multipliers: edge[k, m, 0] = 1 iff the tap offset
    # (k - pad) keeps row m inside its own sequence (zero-padding semantics).
    pad = ksize // 2
    pos = np.arange(L)
    edge_np = np.ones((ksize, M, 1), np.float32)
    for k in range(ksize):
        off = k - pad
        valid = ((pos + off) >= 0) & ((pos + off) <= L - 1)
        edge_np[k, :, 0] = np.tile(valid.astype(np.float32), b_blk)
    edge = jnp.asarray(edge_np)

    cv, ap, ff = params["conv"], params["attn"], params["ff"]
    conv_num = cv["pw"].shape[0]
    ff_depth = ff["w"].shape[0]
    mdt = matmul_dtype

    # Matmul weights shipped already in the matmul dtype (halves DMA/VMEM for
    # bf16); LayerNorm params, biases and depthwise taps stay f32.
    weights = [cv["ln_w"], cv["ln_b"], cv["dw"],
               cv["pw"].astype(mdt), cv["pw_b"],
               ap["ln_w"], ap["ln_b"],
               ap["wq"].astype(mdt), ap["bq"], ap["wk"].astype(mdt), ap["bk"],
               ap["wv"].astype(mdt), ap["bv"], ap["wo"].astype(mdt), ap["bo"],
               ff["ln_w"], ff["ln_b"], ff["w"].astype(mdt), ff["b"]]

    def full_spec(a):
        nd = a.ndim
        return pl.BlockSpec(a.shape, lambda g, _nd=nd: (0,) * _nd)

    kernel = functools.partial(_encoder_kernel, ksize=ksize,
                               num_heads=num_heads, conv_num=conv_num,
                               ff_depth=ff_depth, b_blk=b_blk, seq_len=L,
                               matmul_dtype=mdt)

    out = pl.pallas_call(
        kernel,
        out_shape=jax.ShapeDtypeStruct((B * L, H), jnp.float32),
        grid=(B // b_blk,),
        in_specs=[pl.BlockSpec((M, H), lambda g: (g, 0)),          # x rows
                  pl.BlockSpec((M, H), lambda g: (0, 0)),          # pos signal
                  pl.BlockSpec((b_blk, 1, L), lambda g: (g, 0, 0)),  # key mask
                  full_spec(edge)]                                 # conv edges
                 + [full_spec(w) for w in weights],
        out_specs=pl.BlockSpec((M, H), lambda g: (g, 0)),
        compiler_params=pltpu.CompilerParams(
            dimension_semantics=("parallel",),
            vmem_limit_bytes=48 * 1024 * 1024),
    )(x_flat, sig_flat, mask3, edge, *weights)
    return jnp.transpose(out.reshape(B, L, H), (0, 2, 1))          # -> [B, H, L]


# ------------------------------------------------------ params / buffers ----
def make_position_signal(hidden_size, max_length=512,
                         min_timescale=1.0, max_timescale=10000.0):
    assert hidden_size % 2 == 0
    position = jnp.arange(max_length, dtype=jnp.float32)
    num_timescales = hidden_size // 2
    log_inc = math.log(max_timescale / min_timescale) / (num_timescales - 1)
    inv = min_timescale * jnp.exp(
        jnp.arange(num_timescales, dtype=jnp.float32) * -log_inc)
    scaled = position[:, None] * inv[None, :]
    return jnp.concatenate([jnp.sin(scaled), jnp.cos(scaled)], axis=1)  # [maxL, H]


def init_params(key, hidden, ksize, conv_num, ff_depth):
    keys = iter(jax.random.split(key, 32))

    def nrm(shape, scale):
        return jax.random.normal(next(keys), shape, jnp.float32) * scale

    conv = dict(
        ln_w=jnp.ones((conv_num, 1, hidden), jnp.float32),
        ln_b=jnp.zeros((conv_num, 1, hidden), jnp.float32),
        dw=nrm((conv_num, ksize, hidden), 1.0 / math.sqrt(ksize)),
        pw=nrm((conv_num, hidden, hidden), 1.0 / math.sqrt(hidden)),
        pw_b=nrm((conv_num, 1, hidden), 0.02))

    attn = dict(
        ln_w=jnp.ones((1, hidden), jnp.float32),
        ln_b=jnp.zeros((1, hidden), jnp.float32),
        wq=nrm((hidden, hidden), 1.0 / math.sqrt(hidden)),
        bq=nrm((1, hidden), 0.02),
        wk=nrm((hidden, hidden), 1.0 / math.sqrt(hidden)),
        bk=nrm((1, hidden), 0.02),
        wv=nrm((hidden, hidden), 1.0 / math.sqrt(hidden)),
        bv=nrm((1, hidden), 0.02),
        wo=nrm((hidden, hidden), 1.0 / math.sqrt(hidden)),
        bo=nrm((1, hidden), 0.02))

    ff = dict(
        ln_w=jnp.ones((ff_depth, 1, hidden), jnp.float32),
        ln_b=jnp.zeros((ff_depth, 1, hidden), jnp.float32),
        w=nrm((ff_depth, hidden, hidden), math.sqrt(2.0 / hidden)),
        b=nrm((ff_depth, 1, hidden), 0.02))

    return dict(conv=conv, attn=attn, ff=ff, signal=make_position_signal(hidden))


# ----------------------------------------------------- pure-JAX reference ---
def reference_forward(params, x_bhl, mask, *, ksize, num_heads):
    hi = lax.Precision.HIGHEST
    x = jnp.transpose(x_bhl, (0, 2, 1)).astype(jnp.float32)
    B, L, H = x.shape
    x = x + params["signal"][:L][None]

    def ref_ln(y, w, b):
        mu = jnp.mean(y, axis=-1, keepdims=True)
        var = jnp.mean((y - mu) ** 2, axis=-1, keepdims=True)
        return (y - mu) * lax.rsqrt(var + EPS) * w + b

    cv = params["conv"]
    pad = ksize // 2
    for i in range(cv["pw"].shape[0]):
        raw = x
        y = ref_ln(x, cv["ln_w"][i], cv["ln_b"][i])
        yp = jnp.pad(y, ((0, 0), (pad, pad), (0, 0)))
        acc = jnp.zeros_like(y)
        for k in range(ksize):
            acc = acc + yp[:, k:k + L, :] * cv["dw"][i, k][None, None, :]
        z = jnp.einsum("blh,ho->blo", acc, cv["pw"][i], precision=hi) + cv["pw_b"][i]
        x = raw + jnp.maximum(z, 0.0)

    ap = params["attn"]
    raw = x
    y = ref_ln(x, ap["ln_w"], ap["ln_b"])
    q = jnp.einsum("blh,ho->blo", y, ap["wq"], precision=hi) + ap["bq"]
    k = jnp.einsum("blh,ho->blo", y, ap["wk"], precision=hi) + ap["bk"]
    v = jnp.einsum("blh,ho->blo", y, ap["wv"], precision=hi) + ap["bv"]
    d = H // num_heads
    qh = q.reshape(B, L, num_heads, d)
    kh = k.reshape(B, L, num_heads, d)
    vh = v.reshape(B, L, num_heads, d)
    s = jnp.einsum("blnd,bmnd->bnlm", qh, kh, precision=hi) / math.sqrt(d)
    s = s + jnp.where(mask > 0, 0.0, NEG_INF)[:, None, None, :]
    p = jax.nn.softmax(s, axis=-1)
    ctx = jnp.einsum("bnlm,bmnd->blnd", p, vh, precision=hi).reshape(B, L, H)
    out = jnp.einsum("blh,ho->blo", ctx, ap["wo"], precision=hi) + ap["bo"]
    x = raw + out

    fv = params["ff"]
    for i in range(fv["w"].shape[0]):
        raw = x
        y = ref_ln(x, fv["ln_w"][i], fv["ln_b"][i])
        z = jnp.einsum("blh,ho->blo", y, fv["w"][i], precision=hi) + fv["b"][i]
        x = raw + jnp.maximum(z, 0.0)
    return jnp.transpose(x, (0, 2, 1))


if __name__ == "__main__":
    jax.config.update("jax_default_matmul_precision", "highest")

    # hidden=128 keeps the lane dim dense (multiple of 128).
    B, H, L = 2, 128, 16          # batch, hidden_size, seq length
    K, CONV_NUM, HEADS, FF_DEPTH = 7, 2, 4, 2

    key = jax.random.PRNGKey(0)
    k_x, k_p = jax.random.split(key)
    x = jax.random.normal(k_x, (B, H, L), jnp.float32)        # torch layout [B, H, L]
    mask = jnp.ones((B, L), jnp.float32).at[1, 12:].set(0.0)  # 1 = valid token

    params = init_params(k_p, H, K, CONV_NUM, FF_DEPTH)
    ref = reference_forward(params, x, mask, ksize=K, num_heads=HEADS)

    # f32-matmul path: strict validation against the pure-JAX reference.
    out_f32 = encoder_block_forward(params, x, mask, ksize=K, num_heads=HEADS,
                                    matmul_dtype=jnp.float32)
    out_f32 = jax.block_until_ready(out_f32)
    assert out_f32.shape == (B, H, L)
    err_f32 = float(jnp.max(jnp.abs(out_f32 - ref)))
    assert jnp.allclose(out_f32, ref, atol=5e-3, rtol=5e-3), \
        f"f32 max abs err {err_f32}"

    # Default bf16-MXU path (recommended on v5e/v6e/v7x): bf16 operands,
    # f32 accumulation, element-wise math in f32. Looser tolerance.
    out_bf16 = encoder_block_forward(params, x, mask, ksize=K, num_heads=HEADS)
    out_bf16 = jax.block_until_ready(out_bf16)
    assert out_bf16.shape == (B, H, L)
    assert bool(jnp.isfinite(out_bf16).all())
    err_bf16 = float(jnp.max(jnp.abs(out_bf16 - ref)))
    assert err_bf16 < 0.5, f"bf16 max abs err {err_bf16}"

    print("KERNEL_OK")
</pallas_src>

<mosaic_0001>
module attributes {stable_mosaic.version = 11 : i64} {
  func.func @_encoder_kernel(%arg0: i32, %arg1: memref<32x128xf32, #tpu.memory_space<vmem>>, %arg2: memref<32x128xf32, #tpu.memory_space<vmem>>, %arg3: memref<2x1x16xf32, #tpu.memory_space<vmem>>, %arg4: memref<7x32x1xf32, #tpu.memory_space<vmem>>, %arg5: memref<2x1x128xf32, #tpu.memory_space<vmem>>, %arg6: memref<2x1x128xf32, #tpu.memory_space<vmem>>, %arg7: memref<2x7x128xf32, #tpu.memory_space<vmem>>, %arg8: memref<2x128x128xf32, #tpu.memory_space<vmem>>, %arg9: memref<2x1x128xf32, #tpu.memory_space<vmem>>, %arg10: memref<1x128xf32, #tpu.memory_space<vmem>>, %arg11: memref<1x128xf32, #tpu.memory_space<vmem>>, %arg12: memref<128x128xf32, #tpu.memory_space<vmem>>, %arg13: memref<1x128xf32, #tpu.memory_space<vmem>>, %arg14: memref<128x128xf32, #tpu.memory_space<vmem>>, %arg15: memref<1x128xf32, #tpu.memory_space<vmem>>, %arg16: memref<128x128xf32, #tpu.memory_space<vmem>>, %arg17: memref<1x128xf32, #tpu.memory_space<vmem>>, %arg18: memref<128x128xf32, #tpu.memory_space<vmem>>, %arg19: memref<1x128xf32, #tpu.memory_space<vmem>>, %arg20: memref<2x1x128xf32, #tpu.memory_space<vmem>>, %arg21: memref<2x1x128xf32, #tpu.memory_space<vmem>>, %arg22: memref<2x128x128xf32, #tpu.memory_space<vmem>>, %arg23: memref<2x1x128xf32, #tpu.memory_space<vmem>>, %arg24: memref<32x128xf32, #tpu.memory_space<vmem>>) attributes {dimension_semantics = [#tpu.dimension_semantics<parallel>], iteration_bounds = array<i64: 1>, scalar_prefetch = 0 : i64, scratch_operands = 0 : i64, tpu.core_type = #tpu.core_type<tc>, window_params = [{transform_indices = @transform_0, window_bounds = array<i64: 32, 128>}, {pipeline_mode = #tpu.pipeline_mode<synchronous>, transform_indices = @transform_1, window_bounds = array<i64: 32, 128>}, {transform_indices = @transform_2, window_bounds = array<i64: 2, 1, 16>}, {pipeline_mode = #tpu.pipeline_mode<synchronous>, transform_indices = @transform_3, window_bounds = array<i64: 7, 32, 1>}, {pipeline_mode = #tpu.pipeline_mode<synchronous>, transform_indices = @transform_4, window_bounds = array<i64: 2, 1, 128>}, {pipeline_mode = #tpu.pipeline_mode<synchronous>, transform_indices = @transform_5, window_bounds = array<i64: 2, 1, 128>}, {pipeline_mode = #tpu.pipeline_mode<synchronous>, transform_indices = @transform_6, window_bounds = array<i64: 2, 7, 128>}, {pipeline_mode = #tpu.pipeline_mode<synchronous>, transform_indices = @transform_7, window_bounds = array<i64: 2, 128, 128>}, {pipeline_mode = #tpu.pipeline_mode<synchronous>, transform_indices = @transform_8, window_bounds = array<i64: 2, 1, 128>}, {pipeline_mode = #tpu.pipeline_mode<synchronous>, transform_indices = @transform_9, window_bounds = array<i64: 1, 128>}, {pipeline_mode = #tpu.pipeline_mode<synchronous>, transform_indices = @transform_10, window_bounds = array<i64: 1, 128>}, {pipeline_mode = #tpu.pipeline_mode<synchronous>, transform_indices = @transform_11, window_bounds = array<i64: 128, 128>}, {pipeline_mode = #tpu.pipeline_mode<synchronous>, transform_indices = @transform_12, window_bounds = array<i64: 1, 128>}, {pipeline_mode = #tpu.pipeline_mode<synchronous>, transform_indices = @transform_13, window_bounds = array<i64: 128, 128>}, {pipeline_mode = #tpu.pipeline_mode<synchronous>, transform_indices = @transform_14, window_bounds = array<i64: 1, 128>}, {pipeline_mode = #tpu.pipeline_mode<synchronous>, transform_indices = @transform_15, window_bounds = array<i64: 128, 128>}, {pipeline_mode = #tpu.pipeline_mode<synchronous>, transform_indices = @transform_16, window_bounds = array<i64: 1, 128>}, {pipeline_mode = #tpu.pipeline_mode<synchronous>, transform_indices = @transform_17, window_bounds = array<i64: 128, 128>}, {pipeline_mode = #tpu.pipeline_mode<synchronous>, transform_indices = @transform_18, window_bounds = array<i64: 1, 128>}, {pipeline_mode = #tpu.pipeline_mode<synchronous>, transform_indices = @transform_19, window_bounds = array<i64: 2, 1, 128>}, {pipeline_mode = #tpu.pipeline_mode<synchronous>, transform_indices = @transform_20, window_bounds = array<i64: 2, 1, 128>}, {pipeline_mode = #tpu.pipeline_mode<synchronous>, transform_indices = @transform_21, window_bounds = array<i64: 2, 128, 128>}, {pipeline_mode = #tpu.pipeline_mode<synchronous>, transform_indices = @transform_22, window_bounds = array<i64: 2, 1, 128>}, {transform_indices = @transform_23, window_bounds = array<i64: 32, 128>}]} {
    %c0 = arith.constant 0 : index
    %c0_0 = arith.constant 0 : index
    %0 = vector.load %arg1[%c0, %c0_0] : memref<32x128xf32, #tpu.memory_space<vmem>>, vector<32x128xf32>
    %c0_1 = arith.constant 0 : index
    %c0_2 = arith.constant 0 : index
    %1 = vector.load %arg2[%c0_1, %c0_2] : memref<32x128xf32, #tpu.memory_space<vmem>>, vector<32x128xf32>
    %2 = arith.addf %0, %1 : vector<32x128xf32>
    %c0_3 = arith.constant 0 : index
    %c0_4 = arith.constant 0 : index
    %c0_5 = arith.constant 0 : index
    %3 = vector.load %arg5[%c0_3, %c0_4, %c0_5] : memref<2x1x128xf32, #tpu.memory_space<vmem>>, vector<1x1x128xf32>
    %4 = vector.shape_cast %3 : vector<1x1x128xf32> to vector<1x128xf32>
    %c0_6 = arith.constant 0 : index
    %c0_7 = arith.constant 0 : index
    %c0_8 = arith.constant 0 : index
    %5 = vector.load %arg6[%c0_6, %c0_7, %c0_8] : memref<2x1x128xf32, #tpu.memory_space<vmem>>, vector<1x1x128xf32>
    %6 = vector.shape_cast %5 : vector<1x1x128xf32> to vector<1x128xf32>
    %cst = arith.constant dense<0.000000e+00> : vector<32xf32>
    %7 = vector.multi_reduction <add>, %2, %cst [1] : vector<32x128xf32> to vector<32xf32>
    %8 = vector.shape_cast %7 : vector<32xf32> to vector<32x1xf32>
    %cst_9 = arith.constant 1.280000e+02 : f32
    %9 = vector.broadcast %cst_9 : f32 to vector<32x1xf32>
    %10 = arith.divf %8, %9 : vector<32x1xf32>
    %11 = vector.broadcast %10 : vector<32x1xf32> to vector<32x128xf32>
    %12 = arith.subf %2, %11 : vector<32x128xf32>
    %13 = arith.mulf %12, %12 : vector<32x128xf32>
    %cst_10 = arith.constant dense<0.000000e+00> : vector<32xf32>
    %14 = vector.multi_reduction <add>, %13, %cst_10 [1] : vector<32x128xf32> to vector<32xf32>
    %15 = vector.shape_cast %14 : vector<32xf32> to vector<32x1xf32>
    %cst_11 = arith.constant 1.280000e+02 : f32
    %16 = vector.broadcast %cst_11 : f32 to vector<32x1xf32>
    %17 = arith.divf %15, %16 : vector<32x1xf32>
    %18 = vector.broadcast %10 : vector<32x1xf32> to vector<32x128xf32>
    %19 = arith.subf %2, %18 : vector<32x128xf32>
    %cst_12 = arith.constant 9.99999974E-6 : f32
    %20 = vector.broadcast %cst_12 : f32 to vector<32x1xf32>
    %21 = arith.addf %17, %20 : vector<32x1xf32>
    %22 = math.rsqrt %21 : vector<32x1xf32>
    %23 = vector.broadcast %22 : vector<32x1xf32> to vector<32x128xf32>
    %24 = arith.mulf %19, %23 : vector<32x128xf32>
    %25 = vector.broadcast %4 : vector<1x128xf32> to vector<32x128xf32>
    %26 = arith.mulf %24, %25 : vector<32x128xf32>
    %27 = vector.broadcast %6 : vector<1x128xf32> to vector<32x128xf32>
    %28 = arith.addf %26, %27 : vector<32x128xf32>
    %c0_13 = arith.constant 0 : index
    %c0_14 = arith.constant 0 : index
    %c0_15 = arith.constant 0 : index
    %29 = vector.load %arg7[%c0_13, %c0_14, %c0_15] : memref<2x7x128xf32, #tpu.memory_space<vmem>>, vector<1x7x128xf32>
    %30 = vector.shape_cast %29 : vector<1x7x128xf32> to vector<7x128xf32>
    %31 = vector.extract_strided_slice %30 {offsets = [3, 0], sizes = [1, 128], strides = [1, 1]} : vector<7x128xf32> to vector<1x128xf32>
    %32 = vector.shape_cast %31 : vector<1x128xf32> to vector<128xf32>
    %33 = vector.shape_cast %32 : vector<128xf32> to vector<1x128xf32>
    %34 = vector.broadcast %33 : vector<1x128xf32> to vector<32x128xf32>
    %35 = arith.mulf %28, %34 : vector<32x128xf32>
    %c3_i32 = arith.constant 3 : i32
    %36 = tpu.dynamic_rotate %28 by %c3_i32 dim 0 : vector<32x128xf32>, i32 -> vector<32x128xf32>
    %c0_16 = arith.constant 0 : index
    %c0_17 = arith.constant 0 : index
    %c0_18 = arith.constant 0 : index
    %37 = vector.load %arg4[%c0_16, %c0_17, %c0_18] : memref<7x32x1xf32, #tpu.memory_space<vmem>>, vector<1x32x1xf32>
    %38 = vector.shape_cast %37 : vector<1x32x1xf32> to vector<32x1xf32>
    %39 = vector.broadcast %38 : vector<32x1xf32> to vector<32x128xf32>
    %40 = arith.mulf %36, %39 : vector<32x128xf32>
    %41 = vector.extract_strided_slice %30 {offsets = [0, 0], sizes = [1, 128], strides = [1, 1]} : vector<7x128xf32> to vector<1x128xf32>
    %42 = vector.shape_cast %41 : vector<1x128xf32> to vector<128xf32>
    %43 = vector.shape_cast %42 : vector<128xf32> to vector<1x128xf32>
    %44 = vector.broadcast %43 : vector<1x128xf32> to vector<32x128xf32>
    %45 = arith.mulf %40, %44 : vector<32x128xf32>
    %46 = arith.addf %35, %45 : vector<32x128xf32>
    %c2_i32 = arith.constant 2 : i32
    %47 = tpu.dynamic_rotate %28 by %c2_i32 dim 0 : vector<32x128xf32>, i32 -> vector<32x128xf32>
    %c1 = arith.constant 1 : index
    %c0_19 = arith.constant 0 : index
    %c0_20 = arith.constant 0 : index
    %48 = vector.load %arg4[%c1, %c0_19, %c0_20] : memref<7x32x1xf32, #tpu.memory_space<vmem>>, vector<1x32x1xf32>
    %49 = vector.shape_cast %48 : vector<1x32x1xf32> to vector<32x1xf32>
    %50 = vector.broadcast %49 : vector<32x1xf32> to vector<32x128xf32>
    %51 = arith.mulf %47, %50 : vector<32x128xf32>
    %52 = vector.extract_strided_slice %30 {offsets = [1, 0], sizes = [1, 128], strides = [1, 1]} : vector<7x128xf32> to vector<1x128xf32>
    %53 = vector.shape_cast %52 : vector<1x128xf32> to vector<128xf32>
    %54 = vector.shape_cast %53 : vector<128xf32> to vector<1x128xf32>
    %55 = vector.broadcast %54 : vector<1x128xf32> to vector<32x128xf32>
    %56 = arith.mulf %51, %55 : vector<32x128xf32>
    %57 = arith.addf %46, %56 : vector<32x128xf32>
    %c1_i32 = arith.constant 1 : i32
    %58 = tpu.dynamic_rotate %28 by %c1_i32 dim 0 : vector<32x128xf32>, i32 -> vector<32x128xf32>
    %c2 = arith.constant 2 : index
    %c0_21 = arith.constant 0 : index
    %c0_22 = arith.constant 0 : index
    %59 = vector.load %arg4[%c2, %c0_21, %c0_22] : memref<7x32x1xf32, #tpu.memory_space<vmem>>, vector<1x32x1xf32>
    %60 = vector.shape_cast %59 : vector<1x32x1xf32> to vector<32x1xf32>
    %61 = vector.broadcast %60 : vector<32x1xf32> to vector<32x128xf32>
    %62 = arith.mulf %58, %61 : vector<32x128xf32>
    %63 = vector.extract_strided_slice %30 {offsets = [2, 0], sizes = [1, 128], strides = [1, 1]} : vector<7x128xf32> to vector<1x128xf32>
    %64 = vector.shape_cast %63 : vector<1x128xf32> to vector<128xf32>
    %65 = vector.shape_cast %64 : vector<128xf32> to vector<1x128xf32>
    %66 = vector.broadcast %65 : vector<1x128xf32> to vector<32x128xf32>
    %67 = arith.mulf %62, %66 : vector<32x128xf32>
    %68 = arith.addf %57, %67 : vector<32x128xf32>
    %c31_i32 = arith.constant 31 : i32
    %69 = tpu.dynamic_rotate %28 by %c31_i32 dim 0 : vector<32x128xf32>, i32 -> vector<32x128xf32>
    %c4 = arith.constant 4 : index
    %c0_23 = arith.constant 0 : index
    %c0_24 = arith.constant 0 : index
    %70 = vector.load %arg4[%c4, %c0_23, %c0_24] : memref<7x32x1xf32, #tpu.memory_space<vmem>>, vector<1x32x1xf32>
    %71 = vector.shape_cast %70 : vector<1x32x1xf32> to vector<32x1xf32>
    %72 = vector.broadcast %71 : vector<32x1xf32> to vector<32x128xf32>
    %73 = arith.mulf %69, %72 : vector<32x128xf32>
    %74 = vector.extract_strided_slice %30 {offsets = [4, 0], sizes = [1, 128], strides = [1, 1]} : vector<7x128xf32> to vector<1x128xf32>
    %75 = vector.shape_cast %74 : vector<1x128xf32> to vector<128xf32>
    %76 = vector.shape_cast %75 : vector<128xf32> to vector<1x128xf32>
    %77 = vector.broadcast %76 : vector<1x128xf32> to vector<32x128xf32>
    %78 = arith.mulf %73, %77 : vector<32x128xf32>
    %79 = arith.addf %68, %78 : vector<32x128xf32>
    %c30_i32 = arith.constant 30 : i32
    %80 = tpu.dynamic_rotate %28 by %c30_i32 dim 0 : vector<32x128xf32>, i32 -> vector<32x128xf32>
    %c5 = arith.constant 5 : index
    %c0_25 = arith.constant 0 : index
    %c0_26 = arith.constant 0 : index
    %81 = vector.load %arg4[%c5, %c0_25, %c0_26] : memref<7x32x1xf32, #tpu.memory_space<vmem>>, vector<1x32x1xf32>
    %82 = vector.shape_cast %81 : vector<1x32x1xf32> to vector<32x1xf32>
    %83 = vector.broadcast %82 : vector<32x1xf32> to vector<32x128xf32>
    %84 = arith.mulf %80, %83 : vector<32x128xf32>
    %85 = vector.extract_strided_slice %30 {offsets = [5, 0], sizes = [1, 128], strides = [1, 1]} : vector<7x128xf32> to vector<1x128xf32>
    %86 = vector.shape_cast %85 : vector<1x128xf32> to vector<128xf32>
    %87 = vector.shape_cast %86 : vector<128xf32> to vector<1x128xf32>
    %88 = vector.broadcast %87 : vector<1x128xf32> to vector<32x128xf32>
    %89 = arith.mulf %84, %88 : vector<32x128xf32>
    %90 = arith.addf %79, %89 : vector<32x128xf32>
    %c29_i32 = arith.constant 29 : i32
    %91 = tpu.dynamic_rotate %28 by %c29_i32 dim 0 : vector<32x128xf32>, i32 -> vector<32x128xf32>
    %c6 = arith.constant 6 : index
    %c0_27 = arith.constant 0 : index
    %c0_28 = arith.constant 0 : index
    %92 = vector.load %arg4[%c6, %c0_27, %c0_28] : memref<7x32x1xf32, #tpu.memory_space<vmem>>, vector<1x32x1xf32>
    %93 = vector.shape_cast %92 : vector<1x32x1xf32> to vector<32x1xf32>
    %94 = vector.broadcast %93 : vector<32x1xf32> to vector<32x128xf32>
    %95 = arith.mulf %91, %94 : vector<32x128xf32>
    %96 = vector.extract_strided_slice %30 {offsets = [6, 0], sizes = [1, 128], strides = [1, 1]} : vector<7x128xf32> to vector<1x128xf32>
    %97 = vector.shape_cast %96 : vector<1x128xf32> to vector<128xf32>
    %98 = vector.shape_cast %97 : vector<128xf32> to vector<1x128xf32>
    %99 = vector.broadcast %98 : vector<1x128xf32> to vector<32x128xf32>
    %100 = arith.mulf %95, %99 : vector<32x128xf32>
    %101 = arith.addf %90, %100 : vector<32x128xf32>
    %c0_29 = arith.constant 0 : index
    %c0_30 = arith.constant 0 : index
    %c0_31 = arith.constant 0 : index
    %102 = vector.load %arg8[%c0_29, %c0_30, %c0_31] : memref<2x128x128xf32, #tpu.memory_space<vmem>>, vector<1x128x128xf32>
    %103 = vector.shape_cast %102 : vector<1x128x128xf32> to vector<128x128xf32>
    %cst_32 = arith.constant dense<0.000000e+00> : vector<32x128xf32>
    %104 = tpu.matmul %101, %103, %cst_32 {dimension_numbers = #tpu.dot_dimension_numbers<[1], [0], [0], [1], [0, 0, 1, 1], [], []>, precision = #tpu.contract_precision<fp32>} : vector<32x128xf32>, vector<128x128xf32>, vector<32x128xf32> -> vector<32x128xf32>
    %c0_33 = arith.constant 0 : index
    %c0_34 = arith.constant 0 : index
    %c0_35 = arith.constant 0 : index
    %105 = vector.load %arg9[%c0_33, %c0_34, %c0_35] : memref<2x1x128xf32, #tpu.memory_space<vmem>>, vector<1x1x128xf32>
    %106 = vector.shape_cast %105 : vector<1x1x128xf32> to vector<1x128xf32>
    %107 = vector.broadcast %106 : vector<1x128xf32> to vector<32x128xf32>
    %108 = arith.addf %104, %107 : vector<32x128xf32>
    %cst_36 = arith.constant 0.000000e+00 : f32
    %109 = vector.broadcast %cst_36 : f32 to vector<32x128xf32>
    %110 = arith.maximumf %108, %109 : vector<32x128xf32>
    %111 = arith.addf %2, %110 : vector<32x128xf32>
    %c1_37 = arith.constant 1 : index
    %c0_38 = arith.constant 0 : index
    %c0_39 = arith.constant 0 : index
    %112 = vector.load %arg5[%c1_37, %c0_38, %c0_39] : memref<2x1x128xf32, #tpu.memory_space<vmem>>, vector<1x1x128xf32>
    %113 = vector.shape_cast %112 : vector<1x1x128xf32> to vector<1x128xf32>
    %c1_40 = arith.constant 1 : index
    %c0_41 = arith.constant 0 : index
    %c0_42 = arith.constant 0 : index
    %114 = vector.load %arg6[%c1_40, %c0_41, %c0_42] : memref<2x1x128xf32, #tpu.memory_space<vmem>>, vector<1x1x128xf32>
    %115 = vector.shape_cast %114 : vector<1x1x128xf32> to vector<1x128xf32>
    %cst_43 = arith.constant dense<0.000000e+00> : vector<32xf32>
    %116 = vector.multi_reduction <add>, %111, %cst_43 [1] : vector<32x128xf32> to vector<32xf32>
    %117 = vector.shape_cast %116 : vector<32xf32> to vector<32x1xf32>
    %cst_44 = arith.constant 1.280000e+02 : f32
    %118 = vector.broadcast %cst_44 : f32 to vector<32x1xf32>
    %119 = arith.divf %117, %118 : vector<32x1xf32>
    %120 = vector.broadcast %119 : vector<32x1xf32> to vector<32x128xf32>
    %121 = arith.subf %111, %120 : vector<32x128xf32>
    %122 = arith.mulf %121, %121 : vector<32x128xf32>
    %cst_45 = arith.constant dense<0.000000e+00> : vector<32xf32>
    %123 = vector.multi_reduction <add>, %122, %cst_45 [1] : vector<32x128xf32> to vector<32xf32>
    %124 = vector.shape_cast %123 : vector<32xf32> to vector<32x1xf32>
    %cst_46 = arith.constant 1.280000e+02 : f32
    %125 = vector.broadcast %cst_46 : f32 to vector<32x1xf32>
    %126 = arith.divf %124, %125 : vector<32x1xf32>
    %127 = vector.broadcast %119 : vector<32x1xf32> to vector<32x128xf32>
    %128 = arith.subf %111, %127 : vector<32x128xf32>
    %cst_47 = arith.constant 9.99999974E-6 : f32
    %129 = vector.broadcast %cst_47 : f32 to vector<32x1xf32>
    %130 = arith.addf %126, %129 : vector<32x1xf32>
    %131 = math.rsqrt %130 : vector<32x1xf32>
    %132 = vector.broadcast %131 : vector<32x1xf32> to vector<32x128xf32>
    %133 = arith.mulf %128, %132 : vector<32x128xf32>
    %134 = vector.broadcast %113 : vector<1x128xf32> to vector<32x128xf32>
    %135 = arith.mulf %133, %134 : vector<32x128xf32>
    %136 = vector.broadcast %115 : vector<1x128xf32> to vector<32x128xf32>
    %137 = arith.addf %135, %136 : vector<32x128xf32>
    %c1_48 = arith.constant 1 : index
    %c0_49 = arith.constant 0 : index
    %c0_50 = arith.constant 0 : index
    %138 = vector.load %arg7[%c1_48, %c0_49, %c0_50] : memref<2x7x128xf32, #tpu.memory_space<vmem>>, vector<1x7x128xf32>
    %139 = vector.shape_cast %138 : vector<1x7x128xf32> to vector<7x128xf32>
    %140 = vector.extract_strided_slice %139 {offsets = [3, 0], sizes = [1, 128], strides = [1, 1]} : vector<7x128xf32> to vector<1x128xf32>
    %141 = vector.shape_cast %140 : vector<1x128xf32> to vector<128xf32>
    %142 = vector.shape_cast %141 : vector<128xf32> to vector<1x128xf32>
    %143 = vector.broadcast %142 : vector<1x128xf32> to vector<32x128xf32>
    %144 = arith.mulf %137, %143 : vector<32x128xf32>
    %c3_i32_51 = arith.constant 3 : i32
    %145 = tpu.dynamic_rotate %137 by %c3_i32_51 dim 0 : vector<32x128xf32>, i32 -> vector<32x128xf32>
    %c0_52 = arith.constant 0 : index
    %c0_53 = arith.constant 0 : index
    %c0_54 = arith.constant 0 : index
    %146 = vector.load %arg4[%c0_52, %c0_53, %c0_54] : memref<7x32x1xf32, #tpu.memory_space<vmem>>, vector<1x32x1xf32>
    %147 = vector.shape_cast %146 : vector<1x32x1xf32> to vector<32x1xf32>
    %148 = vector.broadcast %147 : vector<32x1xf32> to vector<32x128xf32>
    %149 = arith.mulf %145, %148 : vector<32x128xf32>
    %150 = vector.extract_strided_slice %139 {offsets = [0, 0], sizes = [1, 128], strides = [1, 1]} : vector<7x128xf32> to vector<1x128xf32>
    %151 = vector.shape_cast %150 : vector<1x128xf32> to vector<128xf32>
    %152 = vector.shape_cast %151 : vector<128xf32> to vector<1x128xf32>
    %153 = vector.broadcast %152 : vector<1x128xf32> to vector<32x128xf32>
    %154 = arith.mulf %149, %153 : vector<32x128xf32>
    %155 = arith.addf %144, %154 : vector<32x128xf32>
    %c2_i32_55 = arith.constant 2 : i32
    %156 = tpu.dynamic_rotate %137 by %c2_i32_55 dim 0 : vector<32x128xf32>, i32 -> vector<32x128xf32>
    %c1_56 = arith.constant 1 : index
    %c0_57 = arith.constant 0 : index
    %c0_58 = arith.constant 0 : index
    %157 = vector.load %arg4[%c1_56, %c0_57, %c0_58] : memref<7x32x1xf32, #tpu.memory_space<vmem>>, vector<1x32x1xf32>
    %158 = vector.shape_cast %157 : vector<1x32x1xf32> to vector<32x1xf32>
    %159 = vector.broadcast %158 : vector<32x1xf32> to vector<32x128xf32>
    %160 = arith.mulf %156, %159 : vector<32x128xf32>
    %161 = vector.extract_strided_slice %139 {offsets = [1, 0], sizes = [1, 128], strides = [1, 1]} : vector<7x128xf32> to vector<1x128xf32>
    %162 = vector.shape_cast %161 : vector<1x128xf32> to vector<128xf32>
    %163 = vector.shape_cast %162 : vector<128xf32> to vector<1x128xf32>
    %164 = vector.broadcast %163 : vector<1x128xf32> to vector<32x128xf32>
    %165 = arith.mulf %160, %164 : vector<32x128xf32>
    %166 = arith.addf %155, %165 : vector<32x128xf32>
    %c1_i32_59 = arith.constant 1 : i32
    %167 = tpu.dynamic_rotate %137 by %c1_i32_59 dim 0 : vector<32x128xf32>, i32 -> vector<32x128xf32>
    %c2_60 = arith.constant 2 : index
    %c0_61 = arith.constant 0 : index
    %c0_62 = arith.constant 0 : index
    %168 = vector.load %arg4[%c2_60, %c0_61, %c0_62] : memref<7x32x1xf32, #tpu.memory_space<vmem>>, vector<1x32x1xf32>
    %169 = vector.shape_cast %168 : vector<1x32x1xf32> to vector<32x1xf32>
    %170 = vector.broadcast %169 : vector<32x1xf32> to vector<32x128xf32>
    %171 = arith.mulf %167, %170 : vector<32x128xf32>
    %172 = vector.extract_strided_slice %139 {offsets = [2, 0], sizes = [1, 128], strides = [1, 1]} : vector<7x128xf32> to vector<1x128xf32>
    %173 = vector.shape_cast %172 : vector<1x128xf32> to vector<128xf32>
    %174 = vector.shape_cast %173 : vector<128xf32> to vector<1x128xf32>
    %175 = vector.broadcast %174 : vector<1x128xf32> to vector<32x128xf32>
    %176 = arith.mulf %171, %175 : vector<32x128xf32>
    %177 = arith.addf %166, %176 : vector<32x128xf32>
    %c31_i32_63 = arith.constant 31 : i32
    %178 = tpu.dynamic_rotate %137 by %c31_i32_63 dim 0 : vector<32x128xf32>, i32 -> vector<32x128xf32>
    %c4_64 = arith.constant 4 : index
    %c0_65 = arith.constant 0 : index
    %c0_66 = arith.constant 0 : index
    %179 = vector.load %arg4[%c4_64, %c0_65, %c0_66] : memref<7x32x1xf32, #tpu.memory_space<vmem>>, vector<1x32x1xf32>
    %180 = vector.shape_cast %179 : vector<1x32x1xf32> to vector<32x1xf32>
    %181 = vector.broadcast %180 : vector<32x1xf32> to vector<32x128xf32>
    %182 = arith.mulf %178, %181 : vector<32x128xf32>
    %183 = vector.extract_strided_slice %139 {offsets = [4, 0], sizes = [1, 128], strides = [1, 1]} : vector<7x128xf32> to vector<1x128xf32>
    %184 = vector.shape_cast %183 : vector<1x128xf32> to vector<128xf32>
    %185 = vector.shape_cast %184 : vector<128xf32> to vector<1x128xf32>
    %186 = vector.broadcast %185 : vector<1x128xf32> to vector<32x128xf32>
    %187 = arith.mulf %182, %186 : vector<32x128xf32>
    %188 = arith.addf %177, %187 : vector<32x128xf32>
    %c30_i32_67 = arith.constant 30 : i32
    %189 = tpu.dynamic_rotate %137 by %c30_i32_67 dim 0 : vector<32x128xf32>, i32 -> vector<32x128xf32>
    %c5_68 = arith.constant 5 : index
    %c0_69 = arith.constant 0 : index
    %c0_70 = arith.constant 0 : index
    %190 = vector.load %arg4[%c5_68, %c0_69, %c0_70] : memref<7x32x1xf32, #tpu.memory_space<vmem>>, vector<1x32x1xf32>
    %191 = vector.shape_cast %190 : vector<1x32x1xf32> to vector<32x1xf32>
    %192 = vector.broadcast %191 : vector<32x1xf32> to vector<32x128xf32>
    %193 = arith.mulf %189, %192 : vector<32x128xf32>
    %194 = vector.extract_strided_slice %139 {offsets = [5, 0], sizes = [1, 128], strides = [1, 1]} : vector<7x128xf32> to vector<1x128xf32>
    %195 = vector.shape_cast %194 : vector<1x128xf32> to vector<128xf32>
    %196 = vector.shape_cast %195 : vector<128xf32> to vector<1x128xf32>
    %197 = vector.broadcast %196 : vector<1x128xf32> to vector<32x128xf32>
    %198 = arith.mulf %193, %197 : vector<32x128xf32>
    %199 = arith.addf %188, %198 : vector<32x128xf32>
    %c29_i32_71 = arith.constant 29 : i32
    %200 = tpu.dynamic_rotate %137 by %c29_i32_71 dim 0 : vector<32x128xf32>, i32 -> vector<32x128xf32>
    %c6_72 = arith.constant 6 : index
    %c0_73 = arith.constant 0 : index
    %c0_74 = arith.constant 0 : index
    %201 = vector.load %arg4[%c6_72, %c0_73, %c0_74] : memref<7x32x1xf32, #tpu.memory_space<vmem>>, vector<1x32x1xf32>
    %202 = vector.shape_cast %201 : vector<1x32x1xf32> to vector<32x1xf32>
    %203 = vector.broadcast %202 : vector<32x1xf32> to vector<32x128xf32>
    %204 = arith.mulf %200, %203 : vector<32x128xf32>
    %205 = vector.extract_strided_slice %139 {offsets = [6, 0], sizes = [1, 128], strides = [1, 1]} : vector<7x128xf32> to vector<1x128xf32>
    %206 = vector.shape_cast %205 : vector<1x128xf32> to vector<128xf32>
    %207 = vector.shape_cast %206 : vector<128xf32> to vector<1x128xf32>
    %208 = vector.broadcast %207 : vector<1x128xf32> to vector<32x128xf32>
    %209 = arith.mulf %204, %208 : vector<32x128xf32>
    %210 = arith.addf %199, %209 : vector<32x128xf32>
    %c1_75 = arith.constant 1 : index
    %c0_76 = arith.constant 0 : index
    %c0_77 = arith.constant 0 : index
    %211 = vector.load %arg8[%c1_75, %c0_76, %c0_77] : memref<2x128x128xf32, #tpu.memory_space<vmem>>, vector<1x128x128xf32>
    %212 = vector.shape_cast %211 : vector<1x128x128xf32> to vector<128x128xf32>
    %cst_78 = arith.constant dense<0.000000e+00> : vector<32x128xf32>
    %213 = tpu.matmul %210, %212, %cst_78 {dimension_numbers = #tpu.dot_dimension_numbers<[1], [0], [0], [1], [0, 0, 1, 1], [], []>, precision = #tpu.contract_precision<fp32>} : vector<32x128xf32>, vector<128x128xf32>, vector<32x128xf32> -> vector<32x128xf32>
    %c1_79 = arith.constant 1 : index
    %c0_80 = arith.constant 0 : index
    %c0_81 = arith.constant 0 : index
    %214 = vector.load %arg9[%c1_79, %c0_80, %c0_81] : memref<2x1x128xf32, #tpu.memory_space<vmem>>, vector<1x1x128xf32>
    %215 = vector.shape_cast %214 : vector<1x1x128xf32> to vector<1x128xf32>
    %216 = vector.broadcast %215 : vector<1x128xf32> to vector<32x128xf32>
    %217 = arith.addf %213, %216 : vector<32x128xf32>
    %cst_82 = arith.constant 0.000000e+00 : f32
    %218 = vector.broadcast %cst_82 : f32 to vector<32x128xf32>
    %219 = arith.maximumf %217, %218 : vector<32x128xf32>
    %220 = arith.addf %111, %219 : vector<32x128xf32>
    %c0_83 = arith.constant 0 : index
    %c0_84 = arith.constant 0 : index
    %221 = vector.load %arg10[%c0_83, %c0_84] : memref<1x128xf32, #tpu.memory_space<vmem>>, vector<1x128xf32>
    %c0_85 = arith.constant 0 : index
    %c0_86 = arith.constant 0 : index
    %222 = vector.load %arg11[%c0_85, %c0_86] : memref<1x128xf32, #tpu.memory_space<vmem>>, vector<1x128xf32>
    %cst_87 = arith.constant dense<0.000000e+00> : vector<32xf32>
    %223 = vector.multi_reduction <add>, %220, %cst_87 [1] : vector<32x128xf32> to vector<32xf32>
    %224 = vector.shape_cast %223 : vector<32xf32> to vector<32x1xf32>
    %cst_88 = arith.constant 1.280000e+02 : f32
    %225 = vector.broadcast %cst_88 : f32 to vector<32x1xf32>
    %226 = arith.divf %224, %225 : vector<32x1xf32>
    %227 = vector.broadcast %226 : vector<32x1xf32> to vector<32x128xf32>
    %228 = arith.subf %220, %227 : vector<32x128xf32>
    %229 = arith.mulf %228, %228 : vector<32x128xf32>
    %cst_89 = arith.constant dense<0.000000e+00> : vector<32xf32>
    %230 = vector.multi_reduction <add>, %229, %cst_89 [1] : vector<32x128xf32> to vector<32xf32>
    %231 = vector.shape_cast %230 : vector<32xf32> to vector<32x1xf32>
    %cst_90 = arith.constant 1.280000e+02 : f32
    %232 = vector.broadcast %cst_90 : f32 to vector<32x1xf32>
    %233 = arith.divf %231, %232 : vector<32x1xf32>
    %234 = vector.broadcast %226 : vector<32x1xf32> to vector<32x128xf32>
    %235 = arith.subf %220, %234 : vector<32x128xf32>
    %cst_91 = arith.constant 9.99999974E-6 : f32
    %236 = vector.broadcast %cst_91 : f32 to vector<32x1xf32>
    %237 = arith.addf %233, %236 : vector<32x1xf32>
    %238 = math.rsqrt %237 : vector<32x1xf32>
    %239 = vector.broadcast %238 : vector<32x1xf32> to vector<32x128xf32>
    %240 = arith.mulf %235, %239 : vector<32x128xf32>
    %241 = vector.broadcast %221 : vector<1x128xf32> to vector<32x128xf32>
    %242 = arith.mulf %240, %241 : vector<32x128xf32>
    %243 = vector.broadcast %222 : vector<1x128xf32> to vector<32x128xf32>
    %244 = arith.addf %242, %243 : vector<32x128xf32>
    %c0_92 = arith.constant 0 : index
    %c0_93 = arith.constant 0 : index
    %245 = vector.load %arg12[%c0_92, %c0_93] : memref<128x128xf32, #tpu.memory_space<vmem>>, vector<128x128xf32>
    %cst_94 = arith.constant dense<0.000000e+00> : vector<32x128xf32>
    %246 = tpu.matmul %244, %245, %cst_94 {dimension_numbers = #tpu.dot_dimension_numbers<[1], [0], [0], [1], [0, 0, 1, 1], [], []>, precision = #tpu.contract_precision<fp32>} : vector<32x128xf32>, vector<128x128xf32>, vector<32x128xf32> -> vector<32x128xf32>
    %c0_95 = arith.constant 0 : index
    %c0_96 = arith.constant 0 : index
    %247 = vector.load %arg13[%c0_95, %c0_96] : memref<1x128xf32, #tpu.memory_space<vmem>>, vector<1x128xf32>
    %248 = vector.broadcast %247 : vector<1x128xf32> to vector<32x128xf32>
    %249 = arith.addf %246, %248 : vector<32x128xf32>
    %c0_97 = arith.constant 0 : index
    %c0_98 = arith.constant 0 : index
    %250 = vector.load %arg14[%c0_97, %c0_98] : memref<128x128xf32, #tpu.memory_space<vmem>>, vector<128x128xf32>
    %cst_99 = arith.constant dense<0.000000e+00> : vector<32x128xf32>
    %251 = tpu.matmul %244, %250, %cst_99 {dimension_numbers = #tpu.dot_dimension_numbers<[1], [0], [0], [1], [0, 0, 1, 1], [], []>, precision = #tpu.contract_precision<fp32>} : vector<32x128xf32>, vector<128x128xf32>, vector<32x128xf32> -> vector<32x128xf32>
    %c0_100 = arith.constant 0 : index
    %c0_101 = arith.constant 0 : index
    %252 = vector.load %arg15[%c0_100, %c0_101] : memref<1x128xf32, #tpu.memory_space<vmem>>, vector<1x128xf32>
    %253 = vector.broadcast %252 : vector<1x128xf32> to vector<32x128xf32>
    %254 = arith.addf %251, %253 : vector<32x128xf32>
    %c0_102 = arith.constant 0 : index
    %c0_103 = arith.constant 0 : index
    %255 = vector.load %arg16[%c0_102, %c0_103] : memref<128x128xf32, #tpu.memory_space<vmem>>, vector<128x128xf32>
    %cst_104 = arith.constant dense<0.000000e+00> : vector<32x128xf32>
    %256 = tpu.matmul %244, %255, %cst_104 {dimension_numbers = #tpu.dot_dimension_numbers<[1], [0], [0], [1], [0, 0, 1, 1], [], []>, precision = #tpu.contract_precision<fp32>} : vector<32x128xf32>, vector<128x128xf32>, vector<32x128xf32> -> vector<32x128xf32>
    %c0_105 = arith.constant 0 : index
    %c0_106 = arith.constant 0 : index
    %257 = vector.load %arg17[%c0_105, %c0_106] : memref<1x128xf32, #tpu.memory_space<vmem>>, vector<1x128xf32>
    %258 = vector.broadcast %257 : vector<1x128xf32> to vector<32x128xf32>
    %259 = arith.addf %256, %258 : vector<32x128xf32>
    %c0_107 = arith.constant 0 : index
    %c0_108 = arith.constant 0 : index
    %c0_109 = arith.constant 0 : index
    %260 = vector.load %arg3[%c0_107, %c0_108, %c0_109] : memref<2x1x16xf32, #tpu.memory_space<vmem>>, vector<1x1x16xf32>
    %261 = vector.shape_cast %260 : vector<1x1x16xf32> to vector<1x16xf32>
    %cst_110 = arith.constant 0.000000e+00 : f32
    %262 = vector.broadcast %cst_110 : f32 to vector<1x16xf32>
    %263 = arith.cmpf ogt, %261, %262 : vector<1x16xf32>
    %cst_111 = arith.constant 0.000000e+00 : f32
    %cst_112 = arith.constant -1.000000e+30 : f32
    %264 = vector.broadcast %cst_111 : f32 to vector<1x16xf32>
    %265 = vector.broadcast %cst_112 : f32 to vector<1x16xf32>
    %266 = arith.select %263, %264, %265 : vector<1x16xi1>, vector<1x16xf32>
    %267 = vector.extract_strided_slice %249 {offsets = [0, 0], sizes = [16, 32], strides = [1, 1]} : vector<32x128xf32> to vector<16x32xf32>
    %268 = vector.extract_strided_slice %254 {offsets = [0, 0], sizes = [16, 32], strides = [1, 1]} : vector<32x128xf32> to vector<16x32xf32>
    %269 = vector.extract_strided_slice %259 {offsets = [0, 0], sizes = [16, 32], strides = [1, 1]} : vector<32x128xf32> to vector<16x32xf32>
    %cst_113 = arith.constant dense<0.000000e+00> : vector<16x16xf32>
    %270 = tpu.matmul %267, %268, %cst_113 {dimension_numbers = #tpu.dot_dimension_numbers<[1], [1], [0], [0], [0, 0, 1, 0], [], []>, precision = #tpu.contract_precision<fp32>} : vector<16x32xf32>, vector<16x32xf32>, vector<16x16xf32> -> vector<16x16xf32>
    %cst_114 = arith.constant 0.176776692 : f32
    %271 = vector.broadcast %cst_114 : f32 to vector<16x16xf32>
    %272 = arith.mulf %270, %271 : vector<16x16xf32>
    %273 = vector.broadcast %266 : vector<1x16xf32> to vector<16x16xf32>
    %274 = arith.addf %272, %273 : vector<16x16xf32>
    %cst_115 = arith.constant dense<0xFF800000> : vector<16xf32>
    %275 = vector.multi_reduction <maximumf>, %274, %cst_115 [1] : vector<16x16xf32> to vector<16xf32>
    %276 = vector.shape_cast %275 : vector<16xf32> to vector<16x1xf32>
    %277 = vector.broadcast %276 : vector<16x1xf32> to vector<16x16xf32>
    %278 = arith.subf %274, %277 : vector<16x16xf32>
    %279 = math.exp %278 : vector<16x16xf32>
    %cst_116 = arith.constant dense<0.000000e+00> : vector<16xf32>
    %280 = vector.multi_reduction <add>, %279, %cst_116 [1] : vector<16x16xf32> to vector<16xf32>
    %281 = vector.shape_cast %280 : vector<16xf32> to vector<16x1xf32>
    %282 = vector.broadcast %281 : vector<16x1xf32> to vector<16x16xf32>
    %283 = arith.divf %279, %282 : vector<16x16xf32>
    %cst_117 = arith.constant dense<0.000000e+00> : vector<16x32xf32>
    %284 = tpu.matmul %283, %269, %cst_117 {dimension_numbers = #tpu.dot_dimension_numbers<[1], [0], [0], [1], [0, 0, 1, 1], [], []>, precision = #tpu.contract_precision<fp32>} : vector<16x16xf32>, vector<16x32xf32>, vector<16x32xf32> -> vector<16x32xf32>
    %285 = vector.extract_strided_slice %249 {offsets = [0, 32], sizes = [16, 32], strides = [1, 1]} : vector<32x128xf32> to vector<16x32xf32>
    %286 = vector.extract_strided_slice %254 {offsets = [0, 32], sizes = [16, 32], strides = [1, 1]} : vector<32x128xf32> to vector<16x32xf32>
    %287 = vector.extract_strided_slice %259 {offsets = [0, 32], sizes = [16, 32], strides = [1, 1]} : vector<32x128xf32> to vector<16x32xf32>
    %cst_118 = arith.constant dense<0.000000e+00> : vector<16x16xf32>
    %288 = tpu.matmul %285, %286, %cst_118 {dimension_numbers = #tpu.dot_dimension_numbers<[1], [1], [0], [0], [0, 0, 1, 0], [], []>, precision = #tpu.contract_precision<fp32>} : vector<16x32xf32>, vector<16x32xf32>, vector<16x16xf32> -> vector<16x16xf32>
    %cst_119 = arith.constant 0.176776692 : f32
    %289 = vector.broadcast %cst_119 : f32 to vector<16x16xf32>
    %290 = arith.mulf %288, %289 : vector<16x16xf32>
    %291 = vector.broadcast %266 : vector<1x16xf32> to vector<16x16xf32>
    %292 = arith.addf %290, %291 : vector<16x16xf32>
    %cst_120 = arith.constant dense<0xFF800000> : vector<16xf32>
    %293 = vector.multi_reduction <maximumf>, %292, %cst_120 [1] : vector<16x16xf32> to vector<16xf32>
    %294 = vector.shape_cast %293 : vector<16xf32> to vector<16x1xf32>
    %295 = vector.broadcast %294 : vector<16x1xf32> to vector<16x16xf32>
    %296 = arith.subf %292, %295 : vector<16x16xf32>
    %297 = math.exp %296 : vector<16x16xf32>
    %cst_121 = arith.constant dense<0.000000e+00> : vector<16xf32>
    %298 = vector.multi_reduction <add>, %297, %cst_121 [1] : vector<16x16xf32> to vector<16xf32>
    %299 = vector.shape_cast %298 : vector<16xf32> to vector<16x1xf32>
    %300 = vector.broadcast %299 : vector<16x1xf32> to vector<16x16xf32>
    %301 = arith.divf %297, %300 : vector<16x16xf32>
    %cst_122 = arith.constant dense<0.000000e+00> : vector<16x32xf32>
    %302 = tpu.matmul %301, %287, %cst_122 {dimension_numbers = #tpu.dot_dimension_numbers<[1], [0], [0], [1], [0, 0, 1, 1], [], []>, precision = #tpu.contract_precision<fp32>} : vector<16x16xf32>, vector<16x32xf32>, vector<16x32xf32> -> vector<16x32xf32>
    %303 = vector.extract_strided_slice %249 {offsets = [0, 64], sizes = [16, 32], strides = [1, 1]} : vector<32x128xf32> to vector<16x32xf32>
    %304 = vector.extract_strided_slice %254 {offsets = [0, 64], sizes = [16, 32], strides = [1, 1]} : vector<32x128xf32> to vector<16x32xf32>
    %305 = vector.extract_strided_slice %259 {offsets = [0, 64], sizes = [16, 32], strides = [1, 1]} : vector<32x128xf32> to vector<16x32xf32>
    %cst_123 = arith.constant dense<0.000000e+00> : vector<16x16xf32>
    %306 = tpu.matmul %303, %304, %cst_123 {dimension_numbers = #tpu.dot_dimension_numbers<[1], [1], [0], [0], [0, 0, 1, 0], [], []>, precision = #tpu.contract_precision<fp32>} : vector<16x32xf32>, vector<16x32xf32>, vector<16x16xf32> -> vector<16x16xf32>
    %cst_124 = arith.constant 0.176776692 : f32
    %307 = vector.broadcast %cst_124 : f32 to vector<16x16xf32>
    %308 = arith.mulf %306, %307 : vector<16x16xf32>
    %309 = vector.broadcast %266 : vector<1x16xf32> to vector<16x16xf32>
    %310 = arith.addf %308, %309 : vector<16x16xf32>
    %cst_125 = arith.constant dense<0xFF800000> : vector<16xf32>
    %311 = vector.multi_reduction <maximumf>, %310, %cst_125 [1] : vector<16x16xf32> to vector<16xf32>
    %312 = vector.shape_cast %311 : vector<16xf32> to vector<16x1xf32>
    %313 = vector.broadcast %312 : vector<16x1xf32> to vector<16x16xf32>
    %314 = arith.subf %310, %313 : vector<16x16xf32>
    %315 = math.exp %314 : vector<16x16xf32>
    %cst_126 = arith.constant dense<0.000000e+00> : vector<16xf32>
    %316 = vector.multi_reduction <add>, %315, %cst_126 [1] : vector<16x16xf32> to vector<16xf32>
    %317 = vector.shape_cast %316 : vector<16xf32> to vector<16x1xf32>
    %318 = vector.broadcast %317 : vector<16x1xf32> to vector<16x16xf32>
    %319 = arith.divf %315, %318 : vector<16x16xf32>
    %cst_127 = arith.constant dense<0.000000e+00> : vector<16x32xf32>
    %320 = tpu.matmul %319, %305, %cst_127 {dimension_numbers = #tpu.dot_dimension_numbers<[1], [0], [0], [1], [0, 0, 1, 1], [], []>, precision = #tpu.contract_precision<fp32>} : vector<16x16xf32>, vector<16x32xf32>, vector<16x32xf32> -> vector<16x32xf32>
    %321 = vector.extract_strided_slice %249 {offsets = [0, 96], sizes = [16, 32], strides = [1, 1]} : vector<32x128xf32> to vector<16x32xf32>
    %322 = vector.extract_strided_slice %254 {offsets = [0, 96], sizes = [16, 32], strides = [1, 1]} : vector<32x128xf32> to vector<16x32xf32>
    %323 = vector.extract_strided_slice %259 {offsets = [0, 96], sizes = [16, 32], strides = [1, 1]} : vector<32x128xf32> to vector<16x32xf32>
    %cst_128 = arith.constant dense<0.000000e+00> : vector<16x16xf32>
    %324 = tpu.matmul %321, %322, %cst_128 {dimension_numbers = #tpu.dot_dimension_numbers<[1], [1], [0], [0], [0, 0, 1, 0], [], []>, precision = #tpu.contract_precision<fp32>} : vector<16x32xf32>, vector<16x32xf32>, vector<16x16xf32> -> vector<16x16xf32>
    %cst_129 = arith.constant 0.176776692 : f32
    %325 = vector.broadcast %cst_129 : f32 to vector<16x16xf32>
    %326 = arith.mulf %324, %325 : vector<16x16xf32>
    %327 = vector.broadcast %266 : vector<1x16xf32> to vector<16x16xf32>
    %328 = arith.addf %326, %327 : vector<16x16xf32>
    %cst_130 = arith.constant dense<0xFF800000> : vector<16xf32>
    %329 = vector.multi_reduction <maximumf>, %328, %cst_130 [1] : vector<16x16xf32> to vector<16xf32>
    %330 = vector.shape_cast %329 : vector<16xf32> to vector<16x1xf32>
    %331 = vector.broadcast %330 : vector<16x1xf32> to vector<16x16xf32>
    %332 = arith.subf %328, %331 : vector<16x16xf32>
    %333 = math.exp %332 : vector<16x16xf32>
    %cst_131 = arith.constant dense<0.000000e+00> : vector<16xf32>
    %334 = vector.multi_reduction <add>, %333, %cst_131 [1] : vector<16x16xf32> to vector<16xf32>
    %335 = vector.shape_cast %334 : vector<16xf32> to vector<16x1xf32>
    %336 = vector.broadcast %335 : vector<16x1xf32> to vector<16x16xf32>
    %337 = arith.divf %333, %336 : vector<16x16xf32>
    %cst_132 = arith.constant dense<0.000000e+00> : vector<16x32xf32>
    %338 = tpu.matmul %337, %323, %cst_132 {dimension_numbers = #tpu.dot_dimension_numbers<[1], [0], [0], [1], [0, 0, 1, 1], [], []>, precision = #tpu.contract_precision<fp32>} : vector<16x16xf32>, vector<16x32xf32>, vector<16x32xf32> -> vector<16x32xf32>
    %339 = tpu.concatenate %284, %302, %320, %338 in 1 : vector<16x32xf32>, vector<16x32xf32>, vector<16x32xf32>, vector<16x32xf32> -> vector<16x128xf32>
    %c1_133 = arith.constant 1 : index
    %c0_134 = arith.constant 0 : index
    %c0_135 = arith.constant 0 : index
    %340 = vector.load %arg3[%c1_133, %c0_134, %c0_135] : memref<2x1x16xf32, #tpu.memory_space<vmem>>, vector<1x1x16xf32>
    %341 = vector.shape_cast %340 : vector<1x1x16xf32> to vector<1x16xf32>
    %cst_136 = arith.constant 0.000000e+00 : f32
    %342 = vector.broadcast %cst_136 : f32 to vector<1x16xf32>
    %343 = arith.cmpf ogt, %341, %342 : vector<1x16xf32>
    %cst_137 = arith.constant 0.000000e+00 : f32
    %cst_138 = arith.constant -1.000000e+30 : f32
    %344 = vector.broadcast %cst_137 : f32 to vector<1x16xf32>
    %345 = vector.broadcast %cst_138 : f32 to vector<1x16xf32>
    %346 = arith.select %343, %344, %345 : vector<1x16xi1>, vector<1x16xf32>
    %347 = vector.extract_strided_slice %249 {offsets = [16, 0], sizes = [16, 32], strides = [1, 1]} : vector<32x128xf32> to vector<16x32xf32>
    %348 = vector.extract_strided_slice %254 {offsets = [16, 0], sizes = [16, 32], strides = [1, 1]} : vector<32x128xf32> to vector<16x32xf32>
    %349 = vector.extract_strided_slice %259 {offsets = [16, 0], sizes = [16, 32], strides = [1, 1]} : vector<32x128xf32> to vector<16x32xf32>
    %cst_139 = arith.constant dense<0.000000e+00> : vector<16x16xf32>
    %350 = tpu.matmul %347, %348, %cst_139 {dimension_numbers = #tpu.dot_dimension_numbers<[1], [1], [0], [0], [0, 0, 1, 0], [], []>, precision = #tpu.contract_precision<fp32>} : vector<16x32xf32>, vector<16x32xf32>, vector<16x16xf32> -> vector<16x16xf32>
    %cst_140 = arith.constant 0.176776692 : f32
    %351 = vector.broadcast %cst_140 : f32 to vector<16x16xf32>
    %352 = arith.mulf %350, %351 : vector<16x16xf32>
    %353 = vector.broadcast %346 : vector<1x16xf32> to vector<16x16xf32>
    %354 = arith.addf %352, %353 : vector<16x16xf32>
    %cst_141 = arith.constant dense<0xFF800000> : vector<16xf32>
    %355 = vector.multi_reduction <maximumf>, %354, %cst_141 [1] : vector<16x16xf32> to vector<16xf32>
    %356 = vector.shape_cast %355 : vector<16xf32> to vector<16x1xf32>
    %357 = vector.broadcast %356 : vector<16x1xf32> to vector<16x16xf32>
    %358 = arith.subf %354, %357 : vector<16x16xf32>
    %359 = math.exp %358 : vector<16x16xf32>
    %cst_142 = arith.constant dense<0.000000e+00> : vector<16xf32>
    %360 = vector.multi_reduction <add>, %359, %cst_142 [1] : vector<16x16xf32> to vector<16xf32>
    %361 = vector.shape_cast %360 : vector<16xf32> to vector<16x1xf32>
    %362 = vector.broadcast %361 : vector<16x1xf32> to vector<16x16xf32>
    %363 = arith.divf %359, %362 : vector<16x16xf32>
    %cst_143 = arith.constant dense<0.000000e+00> : vector<16x32xf32>
    %364 = tpu.matmul %363, %349, %cst_143 {dimension_numbers = #tpu.dot_dimension_numbers<[1], [0], [0], [1], [0, 0, 1, 1], [], []>, precision = #tpu.contract_precision<fp32>} : vector<16x16xf32>, vector<16x32xf32>, vector<16x32xf32> -> vector<16x32xf32>
    %365 = vector.extract_strided_slice %249 {offsets = [16, 32], sizes = [16, 32], strides = [1, 1]} : vector<32x128xf32> to vector<16x32xf32>
    %366 = vector.extract_strided_slice %254 {offsets = [16, 32], sizes = [16, 32], strides = [1, 1]} : vector<32x128xf32> to vector<16x32xf32>
    %367 = vector.extract_strided_slice %259 {offsets = [16, 32], sizes = [16, 32], strides = [1, 1]} : vector<32x128xf32> to vector<16x32xf32>
    %cst_144 = arith.constant dense<0.000000e+00> : vector<16x16xf32>
    %368 = tpu.matmul %365, %366, %cst_144 {dimension_numbers = #tpu.dot_dimension_numbers<[1], [1], [0], [0], [0, 0, 1, 0], [], []>, precision = #tpu.contract_precision<fp32>} : vector<16x32xf32>, vector<16x32xf32>, vector<16x16xf32> -> vector<16x16xf32>
    %cst_145 = arith.constant 0.176776692 : f32
    %369 = vector.broadcast %cst_145 : f32 to vector<16x16xf32>
    %370 = arith.mulf %368, %369 : vector<16x16xf32>
    %371 = vector.broadcast %346 : vector<1x16xf32> to vector<16x16xf32>
    %372 = arith.addf %370, %371 : vector<16x16xf32>
    %cst_146 = arith.constant dense<0xFF800000> : vector<16xf32>
    %373 = vector.multi_reduction <maximumf>, %372, %cst_146 [1] : vector<16x16xf32> to vector<16xf32>
    %374 = vector.shape_cast %373 : vector<16xf32> to vector<16x1xf32>
    %375 = vector.broadcast %374 : vector<16x1xf32> to vector<16x16xf32>
    %376 = arith.subf %372, %375 : vector<16x16xf32>
    %377 = math.exp %376 : vector<16x16xf32>
    %cst_147 = arith.constant dense<0.000000e+00> : vector<16xf32>
    %378 = vector.multi_reduction <add>, %377, %cst_147 [1] : vector<16x16xf32> to vector<16xf32>
    %379 = vector.shape_cast %378 : vector<16xf32> to vector<16x1xf32>
    %380 = vector.broadcast %379 : vector<16x1xf32> to vector<16x16xf32>
    %381 = arith.divf %377, %380 : vector<16x16xf32>
    %cst_148 = arith.constant dense<0.000000e+00> : vector<16x32xf32>
    %382 = tpu.matmul %381, %367, %cst_148 {dimension_numbers = #tpu.dot_dimension_numbers<[1], [0], [0], [1], [0, 0, 1, 1], [], []>, precision = #tpu.contract_precision<fp32>} : vector<16x16xf32>, vector<16x32xf32>, vector<16x32xf32> -> vector<16x32xf32>
    %383 = vector.extract_strided_slice %249 {offsets = [16, 64], sizes = [16, 32], strides = [1, 1]} : vector<32x128xf32> to vector<16x32xf32>
    %384 = vector.extract_strided_slice %254 {offsets = [16, 64], sizes = [16, 32], strides = [1, 1]} : vector<32x128xf32> to vector<16x32xf32>
    %385 = vector.extract_strided_slice %259 {offsets = [16, 64], sizes = [16, 32], strides = [1, 1]} : vector<32x128xf32> to vector<16x32xf32>
    %cst_149 = arith.constant dense<0.000000e+00> : vector<16x16xf32>
    %386 = tpu.matmul %383, %384, %cst_149 {dimension_numbers = #tpu.dot_dimension_numbers<[1], [1], [0], [0], [0, 0, 1, 0], [], []>, precision = #tpu.contract_precision<fp32>} : vector<16x32xf32>, vector<16x32xf32>, vector<16x16xf32> -> vector<16x16xf32>
    %cst_150 = arith.constant 0.176776692 : f32
    %387 = vector.broadcast %cst_150 : f32 to vector<16x16xf32>
    %388 = arith.mulf %386, %387 : vector<16x16xf32>
    %389 = vector.broadcast %346 : vector<1x16xf32> to vector<16x16xf32>
    %390 = arith.addf %388, %389 : vector<16x16xf32>
    %cst_151 = arith.constant dense<0xFF800000> : vector<16xf32>
    %391 = vector.multi_reduction <maximumf>, %390, %cst_151 [1] : vector<16x16xf32> to vector<16xf32>
    %392 = vector.shape_cast %391 : vector<16xf32> to vector<16x1xf32>
    %393 = vector.broadcast %392 : vector<16x1xf32> to vector<16x16xf32>
    %394 = arith.subf %390, %393 : vector<16x16xf32>
    %395 = math.exp %394 : vector<16x16xf32>
    %cst_152 = arith.constant dense<0.000000e+00> : vector<16xf32>
    %396 = vector.multi_reduction <add>, %395, %cst_152 [1] : vector<16x16xf32> to vector<16xf32>
    %397 = vector.shape_cast %396 : vector<16xf32> to vector<16x1xf32>
    %398 = vector.broadcast %397 : vector<16x1xf32> to vector<16x16xf32>
    %399 = arith.divf %395, %398 : vector<16x16xf32>
    %cst_153 = arith.constant dense<0.000000e+00> : vector<16x32xf32>
    %400 = tpu.matmul %399, %385, %cst_153 {dimension_numbers = #tpu.dot_dimension_numbers<[1], [0], [0], [1], [0, 0, 1, 1], [], []>, precision = #tpu.contract_precision<fp32>} : vector<16x16xf32>, vector<16x32xf32>, vector<16x32xf32> -> vector<16x32xf32>
    %401 = vector.extract_strided_slice %249 {offsets = [16, 96], sizes = [16, 32], strides = [1, 1]} : vector<32x128xf32> to vector<16x32xf32>
    %402 = vector.extract_strided_slice %254 {offsets = [16, 96], sizes = [16, 32], strides = [1, 1]} : vector<32x128xf32> to vector<16x32xf32>
    %403 = vector.extract_strided_slice %259 {offsets = [16, 96], sizes = [16, 32], strides = [1, 1]} : vector<32x128xf32> to vector<16x32xf32>
    %cst_154 = arith.constant dense<0.000000e+00> : vector<16x16xf32>
    %404 = tpu.matmul %401, %402, %cst_154 {dimension_numbers = #tpu.dot_dimension_numbers<[1], [1], [0], [0], [0, 0, 1, 0], [], []>, precision = #tpu.contract_precision<fp32>} : vector<16x32xf32>, vector<16x32xf32>, vector<16x16xf32> -> vector<16x16xf32>
    %cst_155 = arith.constant 0.176776692 : f32
    %405 = vector.broadcast %cst_155 : f32 to vector<16x16xf32>
    %406 = arith.mulf %404, %405 : vector<16x16xf32>
    %407 = vector.broadcast %346 : vector<1x16xf32> to vector<16x16xf32>
    %408 = arith.addf %406, %407 : vector<16x16xf32>
    %cst_156 = arith.constant dense<0xFF800000> : vector<16xf32>
    %409 = vector.multi_reduction <maximumf>, %408, %cst_156 [1] : vector<16x16xf32> to vector<16xf32>
    %410 = vector.shape_cast %409 : vector<16xf32> to vector<16x1xf32>
    %411 = vector.broadcast %410 : vector<16x1xf32> to vector<16x16xf32>
    %412 = arith.subf %408, %411 : vector<16x16xf32>
    %413 = math.exp %412 : vector<16x16xf32>
    %cst_157 = arith.constant dense<0.000000e+00> : vector<16xf32>
    %414 = vector.multi_reduction <add>, %413, %cst_157 [1] : vector<16x16xf32> to vector<16xf32>
    %415 = vector.shape_cast %414 : vector<16xf32> to vector<16x1xf32>
    %416 = vector.broadcast %415 : vector<16x1xf32> to vector<16x16xf32>
    %417 = arith.divf %413, %416 : vector<16x16xf32>
    %cst_158 = arith.constant dense<0.000000e+00> : vector<16x32xf32>
    %418 = tpu.matmul %417, %403, %cst_158 {dimension_numbers = #tpu.dot_dimension_numbers<[1], [0], [0], [1], [0, 0, 1, 1], [], []>, precision = #tpu.contract_precision<fp32>} : vector<16x16xf32>, vector<16x32xf32>, vector<16x32xf32> -> vector<16x32xf32>
    %419 = tpu.concatenate %364, %382, %400, %418 in 1 : vector<16x32xf32>, vector<16x32xf32>, vector<16x32xf32>, vector<16x32xf32> -> vector<16x128xf32>
    %420 = tpu.concatenate %339, %419 in 0 : vector<16x128xf32>, vector<16x128xf32> -> vector<32x128xf32>
    %c0_159 = arith.constant 0 : index
    %c0_160 = arith.constant 0 : index
    %421 = vector.load %arg18[%c0_159, %c0_160] : memref<128x128xf32, #tpu.memory_space<vmem>>, vector<128x128xf32>
    %cst_161 = arith.constant dense<0.000000e+00> : vector<32x128xf32>
    %422 = tpu.matmul %420, %421, %cst_161 {dimension_numbers = #tpu.dot_dimension_numbers<[1], [0], [0], [1], [0, 0, 1, 1], [], []>, precision = #tpu.contract_precision<fp32>} : vector<32x128xf32>, vector<128x128xf32>, vector<32x128xf32> -> vector<32x128xf32>
    %423 = arith.addf %220, %422 : vector<32x128xf32>
    %c0_162 = arith.constant 0 : index
    %c0_163 = arith.constant 0 : index
    %424 = vector.load %arg19[%c0_162, %c0_163] : memref<1x128xf32, #tpu.memory_space<vmem>>, vector<1x128xf32>
    %425 = vector.broadcast %424 : vector<1x128xf32> to vector<32x128xf32>
    %426 = arith.addf %423, %425 : vector<32x128xf32>
    %c0_164 = arith.constant 0 : index
    %c0_165 = arith.constant 0 : index
    %c0_166 = arith.constant 0 : index
    %427 = vector.load %arg20[%c0_164, %c0_165, %c0_166] : memref<2x1x128xf32, #tpu.memory_space<vmem>>, vector<1x1x128xf32>
    %428 = vector.shape_cast %427 : vector<1x1x128xf32> to vector<1x128xf32>
    %c0_167 = arith.constant 0 : index
    %c0_168 = arith.constant 0 : index
    %c0_169 = arith.constant 0 : index
    %429 = vector.load %arg21[%c0_167, %c0_168, %c0_169] : memref<2x1x128xf32, #tpu.memory_space<vmem>>, vector<1x1x128xf32>
    %430 = vector.shape_cast %429 : vector<1x1x128xf32> to vector<1x128xf32>
    %cst_170 = arith.constant dense<0.000000e+00> : vector<32xf32>
    %431 = vector.multi_reduction <add>, %426, %cst_170 [1] : vector<32x128xf32> to vector<32xf32>
    %432 = vector.shape_cast %431 : vector<32xf32> to vector<32x1xf32>
    %cst_171 = arith.constant 1.280000e+02 : f32
    %433 = vector.broadcast %cst_171 : f32 to vector<32x1xf32>
    %434 = arith.divf %432, %433 : vector<32x1xf32>
    %435 = vector.broadcast %434 : vector<32x1xf32> to vector<32x128xf32>
    %436 = arith.subf %426, %435 : vector<32x128xf32>
    %437 = arith.mulf %436, %436 : vector<32x128xf32>
    %cst_172 = arith.constant dense<0.000000e+00> : vector<32xf32>
    %438 = vector.multi_reduction <add>, %437, %cst_172 [1] : vector<32x128xf32> to vector<32xf32>
    %439 = vector.shape_cast %438 : vector<32xf32> to vector<32x1xf32>
    %cst_173 = arith.constant 1.280000e+02 : f32
    %440 = vector.broadcast %cst_173 : f32 to vector<32x1xf32>
    %441 = arith.divf %439, %440 : vector<32x1xf32>
    %442 = vector.broadcast %434 : vector<32x1xf32> to vector<32x128xf32>
    %443 = arith.subf %426, %442 : vector<32x128xf32>
    %cst_174 = arith.constant 9.99999974E-6 : f32
    %444 = vector.broadcast %cst_174 : f32 to vector<32x1xf32>
    %445 = arith.addf %441, %444 : vector<32x1xf32>
    %446 = math.rsqrt %445 : vector<32x1xf32>
    %447 = vector.broadcast %446 : vector<32x1xf32> to vector<32x128xf32>
    %448 = arith.mulf %443, %447 : vector<32x128xf32>
    %449 = vector.broadcast %428 : vector<1x128xf32> to vector<32x128xf32>
    %450 = arith.mulf %448, %449 : vector<32x128xf32>
    %451 = vector.broadcast %430 : vector<1x128xf32> to vector<32x128xf32>
    %452 = arith.addf %450, %451 : vector<32x128xf32>
    %c0_175 = arith.constant 0 : index
    %c0_176 = arith.constant 0 : index
    %c0_177 = arith.constant 0 : index
    %453 = vector.load %arg22[%c0_175, %c0_176, %c0_177] : memref<2x128x128xf32, #tpu.memory_space<vmem>>, vector<1x128x128xf32>
    %454 = vector.shape_cast %453 : vector<1x128x128xf32> to vector<128x128xf32>
    %cst_178 = arith.constant dense<0.000000e+00> : vector<32x128xf32>
    %455 = tpu.matmul %452, %454, %cst_178 {dimension_numbers = #tpu.dot_dimension_numbers<[1], [0], [0], [1], [0, 0, 1, 1], [], []>, precision = #tpu.contract_precision<fp32>} : vector<32x128xf32>, vector<128x128xf32>, vector<32x128xf32> -> vector<32x128xf32>
    %c0_179 = arith.constant 0 : index
    %c0_180 = arith.constant 0 : index
    %c0_181 = arith.constant 0 : index
    %456 = vector.load %arg23[%c0_179, %c0_180, %c0_181] : memref<2x1x128xf32, #tpu.memory_space<vmem>>, vector<1x1x128xf32>
    %457 = vector.shape_cast %456 : vector<1x1x128xf32> to vector<1x128xf32>
    %458 = vector.broadcast %457 : vector<1x128xf32> to vector<32x128xf32>
    %459 = arith.addf %455, %458 : vector<32x128xf32>
    %cst_182 = arith.constant 0.000000e+00 : f32
    %460 = vector.broadcast %cst_182 : f32 to vector<32x128xf32>
    %461 = arith.maximumf %459, %460 : vector<32x128xf32>
    %462 = arith.addf %426, %461 : vector<32x128xf32>
    %c1_183 = arith.constant 1 : index
    %c0_184 = arith.constant 0 : index
    %c0_185 = arith.constant 0 : index
    %463 = vector.load %arg20[%c1_183, %c0_184, %c0_185] : memref<2x1x128xf32, #tpu.memory_space<vmem>>, vector<1x1x128xf32>
    %464 = vector.shape_cast %463 : vector<1x1x128xf32> to vector<1x128xf32>
    %c1_186 = arith.constant 1 : index
    %c0_187 = arith.constant 0 : index
    %c0_188 = arith.constant 0 : index
    %465 = vector.load %arg21[%c1_186, %c0_187, %c0_188] : memref<2x1x128xf32, #tpu.memory_space<vmem>>, vector<1x1x128xf32>
    %466 = vector.shape_cast %465 : vector<1x1x128xf32> to vector<1x128xf32>
    %cst_189 = arith.constant dense<0.000000e+00> : vector<32xf32>
    %467 = vector.multi_reduction <add>, %462, %cst_189 [1] : vector<32x128xf32> to vector<32xf32>
    %468 = vector.shape_cast %467 : vector<32xf32> to vector<32x1xf32>
    %cst_190 = arith.constant 1.280000e+02 : f32
    %469 = vector.broadcast %cst_190 : f32 to vector<32x1xf32>
    %470 = arith.divf %468, %469 : vector<32x1xf32>
    %471 = vector.broadcast %470 : vector<32x1xf32> to vector<32x128xf32>
    %472 = arith.subf %462, %471 : vector<32x128xf32>
    %473 = arith.mulf %472, %472 : vector<32x128xf32>
    %cst_191 = arith.constant dense<0.000000e+00> : vector<32xf32>
    %474 = vector.multi_reduction <add>, %473, %cst_191 [1] : vector<32x128xf32> to vector<32xf32>
    %475 = vector.shape_cast %474 : vector<32xf32> to vector<32x1xf32>
    %cst_192 = arith.constant 1.280000e+02 : f32
    %476 = vector.broadcast %cst_192 : f32 to vector<32x1xf32>
    %477 = arith.divf %475, %476 : vector<32x1xf32>
    %478 = vector.broadcast %470 : vector<32x1xf32> to vector<32x128xf32>
    %479 = arith.subf %462, %478 : vector<32x128xf32>
    %cst_193 = arith.constant 9.99999974E-6 : f32
    %480 = vector.broadcast %cst_193 : f32 to vector<32x1xf32>
    %481 = arith.addf %477, %480 : vector<32x1xf32>
    %482 = math.rsqrt %481 : vector<32x1xf32>
    %483 = vector.broadcast %482 : vector<32x1xf32> to vector<32x128xf32>
    %484 = arith.mulf %479, %483 : vector<32x128xf32>
    %485 = vector.broadcast %464 : vector<1x128xf32> to vector<32x128xf32>
    %486 = arith.mulf %484, %485 : vector<32x128xf32>
    %487 = vector.broadcast %466 : vector<1x128xf32> to vector<32x128xf32>
    %488 = arith.addf %486, %487 : vector<32x128xf32>
    %c1_194 = arith.constant 1 : index
    %c0_195 = arith.constant 0 : index
    %c0_196 = arith.constant 0 : index
    %489 = vector.load %arg22[%c1_194, %c0_195, %c0_196] : memref<2x128x128xf32, #tpu.memory_space<vmem>>, vector<1x128x128xf32>
    %490 = vector.shape_cast %489 : vector<1x128x128xf32> to vector<128x128xf32>
    %cst_197 = arith.constant dense<0.000000e+00> : vector<32x128xf32>
    %491 = tpu.matmul %488, %490, %cst_197 {dimension_numbers = #tpu.dot_dimension_numbers<[1], [0], [0], [1], [0, 0, 1, 1], [], []>, precision = #tpu.contract_precision<fp32>} : vector<32x128xf32>, vector<128x128xf32>, vector<32x128xf32> -> vector<32x128xf32>
    %c1_198 = arith.constant 1 : index
    %c0_199 = arith.constant 0 : index
    %c0_200 = arith.constant 0 : index
    %492 = vector.load %arg23[%c1_198, %c0_199, %c0_200] : memref<2x1x128xf32, #tpu.memory_space<vmem>>, vector<1x1x128xf32>
    %493 = vector.shape_cast %492 : vector<1x1x128xf32> to vector<1x128xf32>
    %494 = vector.broadcast %493 : vector<1x128xf32> to vector<32x128xf32>
    %495 = arith.addf %491, %494 : vector<32x128xf32>
    %cst_201 = arith.constant 0.000000e+00 : f32
    %496 = vector.broadcast %cst_201 : f32 to vector<32x128xf32>
    %497 = arith.maximumf %495, %496 : vector<32x128xf32>
    %498 = arith.addf %462, %497 : vector<32x128xf32>
    %c0_202 = arith.constant 0 : index
    %c0_203 = arith.constant 0 : index
    %499 = vector.load %arg24[%c0_202, %c0_203] : memref<32x128xf32, #tpu.memory_space<vmem>>, vector<32x128xf32>
    tpu.vector_store %arg24[%c0_202, %c0_203], %498 {strides = array<i32>} : memref<32x128xf32, #tpu.memory_space<vmem>>, vector<32x128xf32>,
    return
  }
  func.func @transform_0(%arg0: i32) -> (i32, i32) {
    %c0_i32 = arith.constant 0 : i32
    %c0_i32_0 = arith.constant 0 : i32
    return %arg0, %c0_i32 : i32, i32
  }
  func.func @transform_1(%arg0: i32) -> (i32, i32) {
    %c0_i32 = arith.constant 0 : i32
    %c0_i32_0 = arith.constant 0 : i32
    %c0_i32_1 = arith.constant 0 : i32
    return %c0_i32, %c0_i32_0 : i32, i32
  }
  func.func @transform_2(%arg0: i32) -> (i32, i32, i32) {
    %c0_i32 = arith.constant 0 : i32
    %c0_i32_0 = arith.constant 0 : i32
    %c0_i32_1 = arith.constant 0 : i32
    return %arg0, %c0_i32, %c0_i32_0 : i32, i32, i32
  }
  func.func @transform_3(%arg0: i32) -> (i32, i32, i32) {
    %c0_i32 = arith.constant 0 : i32
    %c0_i32_0 = arith.constant 0 : i32
    %c0_i32_1 = arith.constant 0 : i32
    %c0_i32_2 = arith.constant 0 : i32
    return %c0_i32, %c0_i32_0, %c0_i32_1 : i32, i32, i32
  }
  func.func @transform_4(%arg0: i32) -> (i32, i32, i32) {
    %c0_i32 = arith.constant 0 : i32
    %c0_i32_0 = arith.constant 0 : i32
    %c0_i32_1 = arith.constant 0 : i32
    %c0_i32_2 = arith.constant 0 : i32
    return %c0_i32, %c0_i32_0, %c0_i32_1 : i32, i32, i32
  }
  func.func @transform_5(%arg0: i32) -> (i32, i32, i32) {
    %c0_i32 = arith.constant 0 : i32
    %c0_i32_0 = arith.constant 0 : i32
    %c0_i32_1 = arith.constant 0 : i32
    %c0_i32_2 = arith.constant 0 : i32
    return %c0_i32, %c0_i32_0, %c0_i32_1 : i32, i32, i32
  }
  func.func @transform_6(%arg0: i32) -> (i32, i32, i32) {
    %c0_i32 = arith.constant 0 : i32
    %c0_i32_0 = arith.constant 0 : i32
    %c0_i32_1 = arith.constant 0 : i32
    %c0_i32_2 = arith.constant 0 : i32
    return %c0_i32, %c0_i32_0, %c0_i32_1 : i32, i32, i32
  }
  func.func @transform_7(%arg0: i32) -> (i32, i32, i32) {
    %c0_i32 = arith.constant 0 : i32
    %c0_i32_0 = arith.constant 0 : i32
    %c0_i32_1 = arith.constant 0 : i32
    %c0_i32_2 = arith.constant 0 : i32
    return %c0_i32, %c0_i32_0, %c0_i32_1 : i32, i32, i32
  }
  func.func @transform_8(%arg0: i32) -> (i32, i32, i32) {
    %c0_i32 = arith.constant 0 : i32
    %c0_i32_0 = arith.constant 0 : i32
    %c0_i32_1 = arith.constant 0 : i32
    %c0_i32_2 = arith.constant 0 : i32
    return %c0_i32, %c0_i32_0, %c0_i32_1 : i32, i32, i32
  }
  func.func @transform_9(%arg0: i32) -> (i32, i32) {
    %c0_i32 = arith.constant 0 : i32
    %c0_i32_0 = arith.constant 0 : i32
    %c0_i32_1 = arith.constant 0 : i32
    return %c0_i32, %c0_i32_0 : i32, i32
  }
  func.func @transform_10(%arg0: i32) -> (i32, i32) {
    %c0_i32 = arith.constant 0 : i32
    %c0_i32_0 = arith.constant 0 : i32
    %c0_i32_1 = arith.constant 0 : i32
    return %c0_i32, %c0_i32_0 : i32, i32
  }
  func.func @transform_11(%arg0: i32) -> (i32, i32) {
    %c0_i32 = arith.constant 0 : i32
    %c0_i32_0 = arith.constant 0 : i32
    %c0_i32_1 = arith.constant 0 : i32
    return %c0_i32, %c0_i32_0 : i32, i32
  }
  func.func @transform_12(%arg0: i32) -> (i32, i32) {
    %c0_i32 = arith.constant 0 : i32
    %c0_i32_0 = arith.constant 0 : i32
    %c0_i32_1 = arith.constant 0 : i32
    return %c0_i32, %c0_i32_0 : i32, i32
  }
  func.func @transform_13(%arg0: i32) -> (i32, i32) {
    %c0_i32 = arith.constant 0 : i32
    %c0_i32_0 = arith.constant 0 : i32
    %c0_i32_1 = arith.constant 0 : i32
    return %c0_i32, %c0_i32_0 : i32, i32
  }
  func.func @transform_14(%arg0: i32) -> (i32, i32) {
    %c0_i32 = arith.constant 0 : i32
    %c0_i32_0 = arith.constant 0 : i32
    %c0_i32_1 = arith.constant 0 : i32
    return %c0_i32, %c0_i32_0 : i32, i32
  }
  func.func @transform_15(%arg0: i32) -> (i32, i32) {
    %c0_i32 = arith.constant 0 : i32
    %c0_i32_0 = arith.constant 0 : i32
    %c0_i32_1 = arith.constant 0 : i32
    return %c0_i32, %c0_i32_0 : i32, i32
  }
  func.func @transform_16(%arg0: i32) -> (i32, i32) {
    %c0_i32 = arith.constant 0 : i32
    %c0_i32_0 = arith.constant 0 : i32
    %c0_i32_1 = arith.constant 0 : i32
    return %c0_i32, %c0_i32_0 : i32, i32
  }
  func.func @transform_17(%arg0: i32) -> (i32, i32) {
    %c0_i32 = arith.constant 0 : i32
    %c0_i32_0 = arith.constant 0 : i32
    %c0_i32_1 = arith.constant 0 : i32
    return %c0_i32, %c0_i32_0 : i32, i32
  }
  func.func @transform_18(%arg0: i32) -> (i32, i32) {
    %c0_i32 = arith.constant 0 : i32
    %c0_i32_0 = arith.constant 0 : i32
    %c0_i32_1 = arith.constant 0 : i32
    return %c0_i32, %c0_i32_0 : i32, i32
  }
  func.func @transform_19(%arg0: i32) -> (i32, i32, i32) {
    %c0_i32 = arith.constant 0 : i32
    %c0_i32_0 = arith.constant 0 : i32
    %c0_i32_1 = arith.constant 0 : i32
    %c0_i32_2 = arith.constant 0 : i32
    return %c0_i32, %c0_i32_0, %c0_i32_1 : i32, i32, i32
  }
  func.func @transform_20(%arg0: i32) -> (i32, i32, i32) {
    %c0_i32 = arith.constant 0 : i32
    %c0_i32_0 = arith.constant 0 : i32
    %c0_i32_1 = arith.constant 0 : i32
    %c0_i32_2 = arith.constant 0 : i32
    return %c0_i32, %c0_i32_0, %c0_i32_1 : i32, i32, i32
  }
  func.func @transform_21(%arg0: i32) -> (i32, i32, i32) {
    %c0_i32 = arith.constant 0 : i32
    %c0_i32_0 = arith.constant 0 : i32
    %c0_i32_1 = arith.constant 0 : i32
    %c0_i32_2 = arith.constant 0 : i32
    return %c0_i32, %c0_i32_0, %c0_i32_1 : i32, i32, i32
  }
  func.func @transform_22(%arg0: i32) -> (i32, i32, i32) {
    %c0_i32 = arith.constant 0 : i32
    %c0_i32_0 = arith.constant 0 : i32
    %c0_i32_1 = arith.constant 0 : i32
    %c0_i32_2 = arith.constant 0 : i32
    return %c0_i32, %c0_i32_0, %c0_i32_1 : i32, i32, i32
  }
  func.func @transform_23(%arg0: i32) -> (i32, i32) {
    %c0_i32 = arith.constant 0 : i32
    %c0_i32_0 = arith.constant 0 : i32
    return %arg0, %c0_i32 : i32, i32
  }
}

</mosaic_0001>

<bundles_post_ra>
// kernel: tpu_custom_call.1
= control target key start
LH: loop header
LB: loop body
LE: loop exit
PB: predicated region body
PF: predicated region fallthrough
CT: control target
= control target key end

     0   :  { %s27173_s0 = inlined_call_operand.hbm [shape: f32[32,128], index: 0, kind: input, shape index: {}]   ;;  %s27174_s1 = inlined_call_operand.hbm [shape: f32[32,128], index: 1, kind: input, shape index: {}]   ;;  %s27175_s2 = inlined_call_operand.vmem [shape: f32[2,1,16], index: 2, kind: input, shape index: {}]   ;;  %s27176_s3 = inlined_call_operand.vmem [shape: f32[7,32,1], index: 3, kind: input, shape index: {}]   ;;  %s27177_s4 = inlined_call_operand.vmem [shape: f32[2,1,128], index: 4, kind: input, shape index: {}]   ;;  %s27178_s5 = inlined_call_operand.vmem [shape: f32[2,1,128], index: 5, kind: input, shape index: {}]   ;;  %s27179_s6 = inlined_call_operand.vmem [shape: f32[2,7,128], index: 6, kind: input, shape index: {}]   ;;  %s27180_s7 = inlined_call_operand.vmem [shape: f32[2,128,128], index: 7, kind: input, shape index: {}]   ;;  %s27181_s8 = inlined_call_operand.vmem [shape: f32[2,1,128], index: 8, kind: input, shape index: {}]   ;;  %s27182_s9 = inlined_call_operand.vmem [shape: f32[1,128], index: 9, kind: input, shape index: {}]   ;;  %s27183_s10 = inlined_call_operand.vmem [shape: f32[1,128], index: 10, kind: input, shape index: {}]   ;;  %s27184_s11 = inlined_call_operand.hbm [shape: f32[128,128], index: 11, kind: input, shape index: {}]   ;;  %s27185_s12 = inlined_call_operand.vmem [shape: f32[1,128], index: 12, kind: input, shape index: {}]   ;;  %s27186_s13 = inlined_call_operand.hbm [shape: f32[128,128], index: 13, kind: input, shape index: {}]   ;;  %s27187_s14 = inlined_call_operand.vmem [shape: f32[1,128], index: 14, kind: input, shape index: {}]   ;;  %s27188_s15 = inlined_call_operand.hbm [shape: f32[128,128], index: 15, kind: input, shape index: {}]   ;;  %s27189_s16 = inlined_call_operand.vmem [shape: f32[1,128], index: 16, kind: input, shape index: {}]   ;;  %s27190_s17 = inlined_call_operand.hbm [shape: f32[128,128], index: 17, kind: input, shape index: {}]   ;;  %s27191_s18 = inlined_call_operand.vmem [shape: f32[1,128], index: 18, kind: input, shape index: {}]   ;;  %s27192_s19 = inlined_call_operand.vmem [shape: f32[2,1,128], index: 19, kind: input, shape index: {}]   ;;  %s27193_s20 = inlined_call_operand.vmem [shape: f32[2,1,128], index: 20, kind: input, shape index: {}]   ;;  %s27194_s21 = inlined_call_operand.hbm [shape: f32[2,128,128], index: 21, kind: input, shape index: {}]   ;;  %s27195_s22 = inlined_call_operand.vmem [shape: f32[2,1,128], index: 22, kind: input, shape index: {}]   ;;  %s27196_s23 = inlined_call_operand.hbm [shape: f32[32,128], index: 23, kind: output, shape index: {}]  }
   0x1   :  { %27481 = sst [smem:[#allocation66_spill]] %s27173_s0 }
   0x2   :  { %27482 = sst [smem:[#allocation67_spill]] %s27174_s1 }
   0x3   :  { %27483 = sst [smem:[#allocation68_spill]] %s27175_s2 }
   0x4   :  { %27484 = sst [smem:[#allocation69_spill]] %s27176_s3 }
   0x5   :  { %27485 = sst [smem:[#allocation70_spill]] %s27177_s4 }
   0x6   :  { %27486 = sst [smem:[#allocation71_spill]] %s27178_s5 }
   0x7   :  { %27487 = sst [smem:[#allocation72_spill]] %s27179_s6 }
   0x8   :  { %27488 = sst [smem:[#allocation73_spill]] %s27180_s7 }
   0x9   :  { %27489 = sst [smem:[#allocation74_spill]] %s27196_s23 }
   0xa   :  { %28 = vsyncpa [#allocation3], 0 }
   0xb   :  { %29 = vsyncpa [#allocation6], 0 }
   0xc   :  { %30 = vsyncpa [#allocation9], 0 }
   0xd   :  { %31 = vsyncpa [#allocation12], 0 }
   0xe   :  { %32 = vsyncpa [#allocation4], 0  ;;  %s22401_s4 = smov [#allocation5]   ;;  %s22402_s24 = smov [#allocation8]  }
   0xf   :  { %s50_s30 = sshll.u32 %s22401_s4, 4  ;;  %s94_s25 = sshll.u32 %s22402_s24, 4  ;;  %s51_s30 = int_to_ptr.vmem [resolvable:$true] %s50_s30  ;;  %s22536_s25 = int_to_ptr.vmem [resolvable:$true] %s94_s25 }
  0x10   :  { %s27490_s26 = sld [smem:[#allocation67_spill]] }
  0x16   :  { %s22215_s2 = scalar_lea.hbm %s27490_s26, 512 }
  0x17   :  { %p22216_p0 = scmp.ne.s32.totalorder %s27490_s26, %s22215_s2  ;;  %p22219_p1 = scmp.lt.u32.totalorder %s22215_s2, %s27490_s26 }
  0x19   :  { %p22221_p2 = pnand %p22219_p1, %p22216_p0 }
  0x1b   :  { %22224 = shalt.err (!%p22221_p2)
}
  0x1c   :  { %s22225_s29 = scalar_lea.vmem %s51_s30, 512  ;;  %p22230_p4 = scmp.lt.s32.totalorder %s51_s30, %s51_s30 }
  0x1d   :  { %p22226_p3 = scmp.ne.s32.totalorder %s51_s30, %s22225_s29  ;;  %p22231_p5 = scmp.lt.s32.totalorder %s22225_s29, %s22225_s29 }
  0x1f   :  { %p22232_p6 = por %p22231_p5, %p22230_p4 }
  0x21   :  { %p22233_p7 = pnand %p22232_p6, %p22226_p3 }
  0x23   :  { %22236 = shalt.err (!%p22233_p7)
}
  0x24   :  { %s22403_s3 = smov 128   ;;  %s22404_s0 = smov 8  }
  0x25   :  { %56 = dma.hbm_to_vmem [thread:$0]  %s27490_s26, 512, %s51_s30, [#allocation6], %s22403_s3, %s22403_s3, %s22404_s0  }
  0x26   :  { %s22237_s2 = scalar_lea.hbm %s27186_s13, 2048 }
  0x27   :  { %p22238_p8 = scmp.ne.s32.totalorder %s27186_s13, %s22237_s2  ;;  %p22241_p9 = scmp.lt.u32.totalorder %s22237_s2, %s27186_s13 }
  0x29   :  { %p22243_p10 = pnand %p22241_p9, %p22238_p8 }
  0x2b   :  { %22246 = shalt.err (!%p22243_p10)
}
  0x2c   :  { %s22247_s29 = scalar_lea.vmem %s22536_s25, 2048  ;;  %p22252_p12 = scmp.lt.s32.totalorder %s22536_s25, %s22536_s25 }
  0x2d   :  { %p22248_p11 = scmp.ne.s32.totalorder %s22536_s25, %s22247_s29  ;;  %p22253_p13 = scmp.lt.s32.totalorder %s22247_s29, %s22247_s29 }
  0x2f   :  { %p22254_p0 = por %p22253_p13, %p22252_p12 }
  0x31   :  { %p22255_p1 = pnand %p22254_p0, %p22248_p11 }
  0x33   :  { %22258 = shalt.err (!%p22255_p1)
}
  0x34   :  { %100 = dma.hbm_to_vmem [thread:$0]  %s27186_s13, 2048, %s22536_s25, [#allocation9], %s22403_s3, %s22403_s3, %s22404_s0  }
  0x35   :  { %s22405_s4 = smov [#allocation11]   ;;  %s22406_s5 = smov [#allocation2]  }
  0x36   :  { %s122_s24 = sshll.u32 %s22405_s4, 4  ;;  %s38_s1 = sshll.u32 %s22406_s5, 4  ;;  %s123_s24 = int_to_ptr.vmem [resolvable:$true] %s122_s24  ;;  %s22573_s1 = int_to_ptr.vmem [resolvable:$true] %s38_s1 }
  0x37   :  { %s22259_s27 = scalar_lea.hbm %s27190_s17, 2048 }
  0x38   :  { %p22260_p2 = scmp.ne.s32.totalorder %s27190_s17, %s22259_s27  ;;  %p22263_p3 = scmp.lt.u32.totalorder %s22259_s27, %s27190_s17 }
  0x3a   :  { %p22265_p4 = pnand %p22263_p3, %p22260_p2 }
  0x3c   :  { %22268 = shalt.err (!%p22265_p4)
}
  0x3d   :  { %s22269_s13 = scalar_lea.vmem %s123_s24, 2048  ;;  %p22274_p6 = scmp.lt.s32.totalorder %s123_s24, %s123_s24 }
  0x3e   :  { %p22270_p5 = scmp.ne.s32.totalorder %s123_s24, %s22269_s13  ;;  %p22275_p7 = scmp.lt.s32.totalorder %s22269_s13, %s22269_s13 }
  0x40   :  { %p22276_p8 = por %p22275_p7, %p22274_p6 }
  0x42   :  { %p22277_p9 = pnand %p22276_p8, %p22270_p5 }
  0x44   :  { %22280 = shalt.err (!%p22277_p9)
}
  0x45   :  { %128 = dma.hbm_to_vmem [thread:$0]  %s27190_s17, 2048, %s123_s24, [#allocation12], %s22403_s3, %s22403_s3, %s22404_s0  }
  0x46   :  { %s27491_s23 = sld [smem:[#allocation66_spill]] }
  0x4c   :  { %s22281_s5 = scalar_lea.hbm %s27491_s23, 512 }
  0x4d   :  { %p22282_p10 = scmp.ne.s32.totalorder %s27491_s23, %s22281_s5  ;;  %p22285_p11 = scmp.lt.u32.totalorder %s22281_s5, %s27491_s23 }
  0x4f   :  { %p22287_p12 = pnand %p22285_p11, %p22282_p10 }
  0x51   :  { %22290 = shalt.err (!%p22287_p12)
}
  0x52   :  { %s22291_s28 = scalar_lea.vmem %s22573_s1, 512  ;;  %p22296_p0 = scmp.lt.s32.totalorder %s22573_s1, %s22573_s1 }
  0x53   :  { %p22292_p13 = scmp.ne.s32.totalorder %s22573_s1, %s22291_s28  ;;  %p22297_p1 = scmp.lt.s32.totalorder %s22291_s28, %s22291_s28 }
  0x55   :  { %p22298_p2 = por %p22297_p1, %p22296_p0 }
  0x57   :  { %p22299_p3 = pnand %p22298_p2, %p22292_p13 }
  0x59   :  { %22302 = shalt.err (!%p22299_p3)
}
  0x5a   :  { %44 = dma.hbm_to_vmem [thread:$0]  %s27491_s23, 512, %s22573_s1, [#allocation3], %s22403_s3, %s22403_s3, %s22404_s0  }
  0x5b   :  { %s22407_s29 = smov [#allocation7]   ;;  %s22408_s25 = smov [#allocation10]  }
  0x5c   :  { %s80_s13 = sshll.u32 %s22407_s29, 4  ;;  %s108_s30 = sshll.u32 %s22408_s25, 4  ;;  %s81_s13 = int_to_ptr.vmem [resolvable:$true] %s80_s13  ;;  %s22610_s30 = int_to_ptr.vmem [resolvable:$true] %s108_s30 }
  0x5d   :  { %s22303_s5 = scalar_lea.hbm %s27184_s11, 2048 }
  0x5e   :  { %p22304_p4 = scmp.ne.s32.totalorder %s27184_s11, %s22303_s5  ;;  %p22307_p5 = scmp.lt.u32.totalorder %s22303_s5, %s27184_s11 }
  0x60   :  { %p22309_p6 = pnand %p22307_p5, %p22304_p4 }
  0x62   :  { %22312 = shalt.err (!%p22309_p6)
}
  0x63   :  { %s22313_s1 = scalar_lea.vmem %s81_s13, 2048  ;;  %p22318_p8 = scmp.lt.s32.totalorder %s81_s13, %s81_s13 }
  0x64   :  { %p22314_p7 = scmp.ne.s32.totalorder %s81_s13, %s22313_s1  ;;  %p22319_p9 = scmp.lt.s32.totalorder %s22313_s1, %s22313_s1 }
  0x66   :  { %p22320_p10 = por %p22319_p9, %p22318_p8 }
  0x68   :  { %p22321_p11 = pnand %p22320_p10, %p22314_p7 }
  0x6a   :  { %22324 = shalt.err (!%p22321_p11)
}
  0x6b   :  { %86 = dma.hbm_to_vmem [thread:$0]  %s27184_s11, 2048, %s81_s13, [#allocation6], %s22403_s3, %s22403_s3, %s22404_s0  }
  0x6c   :  { %s22325_s29 = scalar_lea.hbm %s27188_s15, 2048 }
  0x6d   :  { %p22326_p12 = scmp.ne.s32.totalorder %s27188_s15, %s22325_s29  ;;  %p22329_p13 = scmp.lt.u32.totalorder %s22325_s29, %s27188_s15 }
  0x6f   :  { %p22331_p0 = pnand %p22329_p13, %p22326_p12 }
  0x71   :  { %22334 = shalt.err (!%p22331_p0)
}
  0x72   :  { %s22335_s2 = scalar_lea.vmem %s22610_s30, 2048  ;;  %p22340_p2 = scmp.lt.s32.totalorder %s22610_s30, %s22610_s30 }
  0x73   :  { %p22336_p1 = scmp.ne.s32.totalorder %s22610_s30, %s22335_s2  ;;  %p22341_p3 = scmp.lt.s32.totalorder %s22335_s2, %s22335_s2 }
  0x75   :  { %p22342_p4 = por %p22341_p3, %p22340_p2 }
  0x77   :  { %p22343_p5 = pnand %p22342_p4, %p22336_p1 }
  0x79   :  { %22346 = shalt.err (!%p22343_p5)
}
  0x7a   :  { %114 = dma.hbm_to_vmem [thread:$0]  %s27188_s15, 2048, %s22610_s30, [#allocation9], %s22403_s3, %s22403_s3, %s22404_s0  }
  0x7b   :  { %s22409_s6 = smov [#allocation13]   ;;  %s22347_s23 = scalar_lea.hbm %s27194_s21, 4096 }
  0x7c   :  { %s140_s27 = sshll.u32 %s22409_s6, 4  ;;  %p22348_p6 = scmp.ne.s32.totalorder %s27194_s21, %s22347_s23  ;;  %s141_s27 = int_to_ptr.vmem [resolvable:$true] %s140_s27 }
  0x7d   :  { %p22351_p7 = scmp.lt.u32.totalorder %s22347_s23, %s27194_s21 }
  0x7f   :  { %p22353_p8 = pnand %p22351_p7, %p22348_p6 }
  0x81   :  { %22356 = shalt.err (!%p22353_p8)
}
  0x82   :  { %s22357_s25 = scalar_lea.vmem %s141_s27, 4096  ;;  %p22362_p10 = scmp.lt.s32.totalorder %s141_s27, %s141_s27 }
  0x83   :  { %p22358_p9 = scmp.ne.s32.totalorder %s141_s27, %s22357_s25  ;;  %p22363_p11 = scmp.lt.s32.totalorder %s22357_s25, %s22357_s25 }
  0x85   :  { %p22364_p12 = por %p22363_p11, %p22362_p10 }
  0x87   :  { %p22365_p13 = pnand %p22364_p12, %p22358_p9 }
  0x89   :  { %22368 = shalt.err (!%p22365_p13)
}
  0x8a   :  { %146 = dma.hbm_to_vmem [thread:$0]  %s27194_s21, 4096, %s141_s27, [#allocation12], %s22403_s3, %s22403_s3, %s22404_s0  }
  0x8b   :  { %22391 = dma.done.wait [#allocation3], 512  }
  0x8c   :  { %22392 = vsyncadd [#allocation3], 4294966784 }
  0x8d   :  { %22393 = dma.done.wait [#allocation6], 2560  }
  0x8e   :  { %22394 = vsyncadd [#allocation6], 4294964736 }
  0x8f   :  { %22395 = dma.done.wait [#allocation9], 4096  }
  0x90   :  { %22396 = vsyncadd [#allocation9], 4294963200 }
  0x91   :  { %22397 = dma.done.wait [#allocation12], 6144  }
  0x92   :  { %22398 = vsyncadd [#allocation12], 4294961152  ;;  %v170_v0 = vld [vmem:[#allocation2] sm:$0xff]  ;;  %v171_v2 = vld [vmem:[#allocation2 + $0x8] sm:$0xff]  ;;  %v22410_v12 = vmov 0   ;;  %s27496_s4 = sld [smem:[#allocation69_spill]]  ;;  %v250_v33 = vlaneseq }
  0x93   :  { %v174_v1 = vld [vmem:[#allocation5] sm:$0xff]  ;;  %v175_v4 = vld [vmem:[#allocation5 + $0x8] sm:$0xff]  ;;  %v173_v5 = vld [vmem:[#allocation2 + $0x18] sm:$0xff]  ;;  %22110 = vset.pattern.permute.xlu1 %v22410_v12  ;;  %22109 = vset.pattern.permute.xlu0 %v22410_v12  ;;  %s27497_s6 = sld [smem:[#allocation68_spill]]  ;;  %v27206_v40 = vmov -1e+30  }
  0x94   :  { %v22662_v3 = vadd.f32 %v174_v1, %v170_v0  ;;  %v177_v6 = vld [vmem:[#allocation5 + $0x18] sm:$0xff]  ;;  %v22664_v7 = vadd.f32 %v175_v4, %v171_v2  ;;  %v172_v8 = vld [vmem:[#allocation2 + $0x10] sm:$0xff]  ;;  %v22719_v36 = vshrl.u32 %v250_v33, 7  ;;  %s27500_s23 = sld [smem:[#allocation73_spill]]  ;;  %s27518_s30 = sld [smem:[#allocation70_spill]]  ;;  %vm4833_vm7 = vcmask 261120  }
  0x95   :  { %v176_v9 = vld [vmem:[#allocation5 + $0x10] sm:$0xff]  ;;  %v22667_v10 = vadd.f32 %v177_v6, %v173_v5  ;;  %s27520_s5 = sld [smem:[#allocation71_spill]]  ;;  %s27526_s13 = sld [smem:[#allocation72_spill]]  ;;  %vm5358_vm9 = vcmask 130048   ;;  %vm9091_vm10 = vcmask 523264   ;;  %vm9094_vm11 = vcmask 785408  }
  0x96   :  { %27492 = vst [vmem:[#allocation20_spill] sm:$0xff] %v22662_v3  ;;  %27493 = vst [vmem:[#allocation21_spill] sm:$0xff] %v22664_v7  ;;  %184 = vadd.xlane.f32.xlu0 %v22662_v3  ;;  %186 = vadd.xlane.f32.xlu1 %v22664_v7  ;;  %v22670_v11 = vadd.f32 %v176_v9, %v172_v8  ;;  %v22728_v39 = vsub.s32 0, %v22719_v36  ;;  %vm264_vm1 = vcmp.lt.s32.totalorder %v22719_v36, 3  ;;  %vm313_vm2 = vcmp.lt.s32.totalorder %v22719_v36, 2  ;;  %s22413_s1 = smov 64  }
  0x97   :  { %27494 = vst [vmem:[#allocation22_spill] sm:$0xff] %v22667_v10  ;;  %vm363_vm3 = vcmp.lt.s32.totalorder %v22719_v36, 1  ;;  %vm413_vm4 = vcmp.lt.s32.totalorder %v22719_v36, 7  ;;  %vm463_vm5 = vcmp.lt.s32.totalorder %v22719_v36, 6  ;;  %vm513_vm6 = vcmp.lt.s32.totalorder %v22719_v36, 5  ;;  %s22414_s28 = smov 32  }
  0x98   :  { %27495 = vst [vmem:[#allocation23_spill] sm:$0xff] %v22670_v11  ;;  %v270_v25 = vld [vmem:[%s27496_s4 + $0x8] sm:$0xff]  ;;  %v15926_v26 = vld [vmem:[%s27496_s4 + $0x20] sm:$0xff]  ;;  %v272_v34 = vld [vmem:[%s27496_s4 + $0x18] sm:$0xff] }
  0x99   :  { %v269_v27 = vld [vmem:[%s27496_s4] sm:$0xff]  ;;  %v15927_v28 = vld [vmem:[%s27496_s4 + $0x28] sm:$0xff]  ;;  %v15929_v37 = vld [vmem:[%s27496_s4 + $0x38] sm:$0xff]  ;;  %27498 = vst [vmem:[#allocation24_spill] sm:$0xff] %v22728_v39 }
  0x9a   :  { %190 = vadd.xlane.f32.xlu0 %v22667_v10  ;;  %188 = vadd.xlane.f32.xlu1 %v22670_v11  ;;  %v15939_v29 = vld [vmem:[%s27496_s4 + $0xa8] sm:$0xff]  ;;  %v15930_v30 = vld [vmem:[%s27496_s4 + $0x40] sm:$0xff]  ;;  %v15933_v44 = vld [vmem:[%s27496_s4 + $0x58] sm:$0xff] }
  0x9b   :  { %v15943_v31 = vld [vmem:[%s27496_s4 + $0xc8] sm:$0xff]  ;;  %v15934_v35 = vld [vmem:[%s27496_s4 + $0x80] sm:$0xff]  ;;  %v15937_v46 = vld [vmem:[%s27496_s4 + $0x98] sm:$0xff] }
  0x9c   :  { %v15931_v32 = vld [vmem:[%s27496_s4 + $0x48] sm:$0xff]  ;;  %v15975_v38 = vld [vmem:[%s27497_s6 + $0x1] sm:$0x1]  ;;  %v15941_v47 = vld [vmem:[%s27496_s4 + $0xb8] sm:$0xff] }
  0x9d   :  { %vm9099_vm0 = vcmp.gt.f32.partialorder %v15975_v38, 0.0  ;;  %v15935_v42 = vld [vmem:[%s27496_s4 + $0x88] sm:$0xff]  ;;  %v15938_v45 = vld [vmem:[%s27496_s4 + $0xa0] sm:$0xff]  ;;  %v15945_v48 = vld [vmem:[%s27496_s4 + $0xd8] sm:$0xff] }
  0x9e   :  { %v9100_v41 = vsel %vm9099_vm0, 0.0, %v27206_v40  ;;  %v15942_v53 = vld [vmem:[%s27496_s4 + $0xc0] sm:$0xff]  ;;  %v271_v54 = vld [vmem:[%s27496_s4 + $0x10] sm:$0xff]  ;;  %v22774_v57 = vld [vmem:[%s27500_s23 + $0x8] sm:$0xff] }
  0x9f   :  { %v22735_v43 = vrot.slane %v9100_v41, %v22728_v39  ;;  %v15928_v55 = vld [vmem:[%s27496_s4 + $0x30] sm:$0xff]  ;;  %v22769_v56 = vld [vmem:[%s27500_s23] sm:$0xff]  ;;  %v586_v60 = vand.u32 4294901760, %v22774_v57  ;;  %v22795_v63 = vld [vmem:[%s27500_s23 + $0x18] sm:$0xff] }
  0xa0   :  { %v15932_v58 = vld [vmem:[%s27496_s4 + $0x50] sm:$0xff]  ;;  %v583_v59 = vand.u32 4294901760, %v22769_v56  ;;  %v592_v2 = vand.u32 4294901760, %v22795_v63  ;;  %v22815_v5 = vld [vmem:[%s27500_s23 + $0x20] sm:$0xff]  ;;  %v22820_v6 = vld [vmem:[%s27500_s23 + $0x28] sm:$0xff] }
  0xa1   :  { %27499 = vst [vmem:[#allocation25_spill] sm:$0xff] %v22735_v43  ;;  %v22790_v62 = vld [vmem:[%s27500_s23 + $0x10] sm:$0xff]  ;;  %v595_v9 = vand.u32 4294901760, %v22815_v5  ;;  %v598_v12 = vand.u32 4294901760, %v22820_v6  ;;  %v22909_v33 = vld [vmem:[%s27500_s23 + $0x60] sm:$0xff] }
  0xa2   :  { %v22785_v61 = vpack.c.bf16 %v586_v60, %v583_v59  ;;  %v15936_v0 = vld [vmem:[%s27496_s4 + $0x90] sm:$0xff]  ;;  %v589_v1 = vand.u32 4294901760, %v22790_v62 }
  0xa3   :  { %v15940_v8 = vld [vmem:[%s27496_s4 + $0xb0] sm:$0xff] }
  0xa4   :  { %27501 = vst [vmem:[#allocation26_spill] sm:$0xff] %v22785_v61  ;;  %19923 = vmatprep.subr.bf16.mxu0 %v22785_v61  ;;  %19827 = vmatprep.subr.bf16.mxu1 %v22785_v61  ;;  %v22810_v4 = vpack.c.bf16 %v592_v2, %v589_v1  ;;  %v22931_v41 = vld [vmem:[%s27500_s23 + $0x70] sm:$0xff] }
  0xa5   :  { %19925 = vmatpush3.bf16.msra.mxu0 %v22785_v61  ;;  %19829 = vmatpush3.bf16.msra.mxu1 %v22785_v61 }
  0xa6   :  { %27502 = vst [vmem:[#allocation27_spill] sm:$0xff] %v22810_v4  ;;  %19927 = vmatprep.subr.bf16.mxu0 %v22810_v4  ;;  %19831 = vmatprep.subr.bf16.mxu1 %v22810_v4 }
  0xa9   :  { %19929 = vmatpush3.bf16.msra.mxu0 %v22810_v4  ;;  %19833 = vmatpush3.bf16.msra.mxu1 %v22810_v4 }
 0x123   :  { %v185_v13 = vpop.xlane.xlu0 %184  ;;  %v187_v15 = vpop.xlane.xlu1 %186 }
 0x124   :  { %v193_v14 = vmul.f32 0.0078125, %v185_v13  ;;  %v194_v16 = vmul.f32 0.0078125, %v187_v15  ;;  %v22835_v13 = vpack.c.bf16 %v598_v12, %v595_v9  ;;  %v22845_v15 = vld [vmem:[%s27500_s23 + $0x38] sm:$0xff] }
 0x126   :  { %v22675_v17 = vsub.f32 %v22662_v3, %v193_v14  ;;  %v22678_v19 = vsub.f32 %v22664_v7, %v194_v16  ;;  %27503 = vst [vmem:[#allocation28_spill] sm:$0xff] %v22835_v13  ;;  %v22840_v14 = vld [vmem:[%s27500_s23 + $0x30] sm:$0xff]  ;;  %19931 = vmatprep.subr.bf16.mxu0 %v22835_v13  ;;  %19835 = vmatprep.subr.bf16.mxu1 %v22835_v13 }
 0x127   :  { %v191_v18 = vpop.xlane.xlu0 %190  ;;  %v189_v49 = vpop.xlane.xlu1 %188  ;;  %v15944_v16 = vld [vmem:[%s27496_s4 + $0xd0] sm:$0xff]  ;;  %19933 = vmatpush3.bf16.msra.mxu0 %v22835_v13  ;;  %19837 = vmatpush3.bf16.msra.mxu1 %v22835_v13 }
 0x128   :  { %v196_v20 = vmul.f32 0.0078125, %v191_v18  ;;  %v201_v21 = vmul.f32 %v22675_v17, %v22675_v17  ;;  %v202_v22 = vmul.f32 %v22678_v19, %v22678_v19  ;;  %v195_v50 = vmul.f32 0.0078125, %v189_v49 }
 0x129   :  { %v601_v18 = vand.u32 4294901760, %v22840_v14 }
 0x12a   :  { %205 = vadd.xlane.f32.xlu0 %v201_v21  ;;  %v22685_v23 = vsub.f32 %v22667_v10, %v196_v20  ;;  %v22753_v51 = vsub.f32 %v22670_v11, %v195_v50  ;;  %v604_v20 = vand.u32 4294901760, %v22845_v15 }
 0x12c   :  { %v204_v24 = vmul.f32 %v22685_v23, %v22685_v23  ;;  %v203_v52 = vmul.f32 %v22753_v51, %v22753_v51  ;;  %v22860_v21 = vpack.c.bf16 %v604_v20, %v601_v18 }
 0x12e   :  { %207 = vadd.xlane.f32.xlu0 %v202_v22  ;;  %211 = vadd.xlane.f32.xlu1 %v204_v24  ;;  %27504 = vst [vmem:[#allocation29_spill] sm:$0xff] %v22860_v21  ;;  %v22865_v22 = vld [vmem:[%s27500_s23 + $0x40] sm:$0xff]  ;;  %v22870_v24 = vld [vmem:[%s27500_s23 + $0x48] sm:$0xff] }
 0x12f   :  { %19935 = vmatprep.subr.bf16.mxu0 %v22860_v21  ;;  %19839 = vmatprep.subr.bf16.mxu1 %v22860_v21 }
 0x130   :  { %19937 = vmatpush3.bf16.msra.mxu0 %v22860_v21  ;;  %19841 = vmatpush3.bf16.msra.mxu1 %v22860_v21 }
 0x13f   :  { %280 = vperm.xlu1 %22110, %v270_v25   ;;  %v607_v25 = vand.u32 4294901760, %v22865_v22 }
 0x143   :  { %325 = vperm.xlu1 %22110, %v15926_v26   ;;  %v610_v26 = vand.u32 4294901760, %v22870_v24 }
 0x144   :  { %275 = vperm.xlu0 %22109, %v269_v27  }
 0x145   :  { %v22882_v27 = vpack.c.bf16 %v610_v26, %v607_v25 }
 0x147   :  { %330 = vperm.xlu1 %22110, %v15927_v28   ;;  %27505 = vst [vmem:[#allocation30_spill] sm:$0xff] %v22882_v27  ;;  %v22887_v28 = vld [vmem:[%s27500_s23 + $0x50] sm:$0xff]  ;;  %19939 = vmatprep.subr.bf16.mxu0 %v22882_v27 }
 0x148   :  { %480 = vperm.xlu0 %22109, %v15939_v29   ;;  %v22892_v29 = vld [vmem:[%s27500_s23 + $0x58] sm:$0xff]  ;;  %19843 = vmatprep.subr.bf16.mxu1 %v22882_v27 }
 0x149   :  { %19941 = vmatpush3.bf16.msra.mxu0 %v22882_v27  ;;  %19845 = vmatpush3.bf16.msra.mxu1 %v22882_v27 }
 0x14b   :  { %375 = vperm.xlu1 %22110, %v15930_v30   ;;  %v613_v30 = vand.u32 4294901760, %v22887_v28 }
 0x14c   :  { %530 = vperm.xlu0 %22109, %v15943_v31   ;;  %v616_v31 = vand.u32 4294901760, %v22892_v29 }
 0x14f   :  { %380 = vperm.xlu1 %22110, %v15931_v32   ;;  %v22904_v32 = vpack.c.bf16 %v616_v31, %v613_v30 }
 0x150   :  { %290 = vperm.xlu0 %22109, %v272_v34   ;;  %v22914_v34 = vld [vmem:[%s27500_s23 + $0x68] sm:$0xff] }
 0x151   :  { %27506 = vst [vmem:[#allocation31_spill] sm:$0xff] %v22904_v32  ;;  %19943 = vmatprep.subr.bf16.mxu0 %v22904_v32  ;;  %19847 = vmatprep.subr.bf16.mxu1 %v22904_v32 }
 0x152   :  { %19945 = vmatpush3.bf16.msra.mxu0 %v22904_v32  ;;  %19849 = vmatpush3.bf16.msra.mxu1 %v22904_v32 }
 0x153   :  { %425 = vperm.xlu1 %22110, %v15934_v35   ;;  %v619_v35 = vand.u32 4294901760, %v22909_v33 }
 0x154   :  { %340 = vperm.xlu0 %22109, %v15929_v37   ;;  %v622_v37 = vand.u32 4294901760, %v22914_v34 }
 0x156   :  { %v22926_v38 = vpack.c.bf16 %v622_v37, %v619_v35 }
 0x157   :  { %430 = vperm.xlu1 %22110, %v15935_v42   ;;  %v22936_v42 = vld [vmem:[%s27500_s23 + $0x78] sm:$0xff] }
 0x158   :  { %390 = vperm.xlu0 %22109, %v15933_v44   ;;  %27507 = vst [vmem:[#allocation32_spill] sm:$0xff] %v22926_v38  ;;  %19947 = vmatprep.subr.bf16.mxu0 %v22926_v38  ;;  %v625_v44 = vand.u32 4294901760, %v22931_v41 }
 0x159   :  { %19851 = vmatprep.subr.bf16.mxu1 %v22926_v38  ;;  %19949 = vmatpush3.bf16.msra.mxu0 %v22926_v38 }
 0x15a   :  { %19853 = vmatpush3.bf16.msra.mxu1 %v22926_v38 }
 0x15b   :  { %475 = vperm.xlu1 %22110, %v15938_v45   ;;  %v628_v45 = vand.u32 4294901760, %v22936_v42 }
 0x15c   :  { %440 = vperm.xlu0 %22109, %v15937_v46   ;;  %v22945_v46 = vsub.f32 %v22769_v56, %v583_v59  ;;  %v22979_v56 = vsub.f32 %v22795_v63, %v592_v2  ;;  %v22997_v63 = vsub.f32 %v22820_v6, %v598_v12  ;;  %v23012_v6 = vsub.f32 %v22845_v15, %v604_v20 }
 0x15d   :  { %v23029_v20 = vsub.f32 %v22865_v22, %v607_v25 }
 0x15e   :  { %v706_v49 = vand.u32 4294901760, %v22945_v46 }
 0x160   :  { %490 = vperm.xlu0 %22109, %v15941_v47   ;;  %v22950_v47 = vsub.f32 %v22774_v57, %v586_v60  ;;  %v727_v60 = vand.u32 4294901760, %v22979_v56 }
 0x162   :  { %v713_v50 = vand.u32 4294901760, %v22950_v47 }
 0x164   :  { %540 = vperm.xlu0 %22109, %v15945_v48   ;;  %v22958_v48 = vpack.c.bf16 %v628_v45, %v625_v44 }
 0x166   :  { %27508 = vst [vmem:[#allocation33_spill] sm:$0xff] %v22958_v48  ;;  %19951 = vmatprep.subr.bf16.mxu0 %v22958_v48  ;;  %19855 = vmatprep.subr.bf16.mxu1 %v22958_v48 }
 0x167   :  { %19953 = vmatpush3.bf16.msra.mxu0 %v22958_v48  ;;  %19857 = vmatpush3.bf16.msra.mxu1 %v22958_v48 }
 0x17f   :  { %209 = vadd.xlane.f32.xlu1 %v203_v52  ;;  %v22964_v52 = vpack.c.bf16 %v713_v50, %v706_v49 }
 0x181   :  { %19955 = vmatprep.subr.bf16.mxu0 %v22964_v52 }
 0x190   :  { %525 = vperm.xlu1 %22110, %v15942_v53   ;;  %v707_v53 = vsub.f32 %v22945_v46, %v706_v49 }
 0x192   :  { %v708_v57 = vand.u32 4294901760, %v707_v53  ;;  %v741_v53 = vand.u32 4294901760, %v22997_v63 }
 0x194   :  { %285 = vperm.xlu1 %22110, %v271_v54   ;;  %v714_v54 = vsub.f32 %v22950_v47, %v713_v50 }
 0x198   :  { %335 = vperm.xlu1 %22110, %v15928_v55   ;;  %v22974_v55 = vsub.f32 %v22790_v62, %v589_v1  ;;  %v728_v62 = vsub.f32 %v22979_v56, %v727_v60  ;;  %v22992_v1 = vsub.f32 %v22815_v5, %v595_v9  ;;  %v23007_v5 = vsub.f32 %v22840_v14, %v601_v18 }
 0x19a   :  { %v720_v59 = vand.u32 4294901760, %v22974_v55  ;;  %v729_v49 = vand.u32 4294901760, %v728_v62  ;;  %v734_v50 = vand.u32 4294901760, %v22992_v1 }
 0x19c   :  { %385 = vperm.xlu1 %22110, %v15932_v58   ;;  %v715_v58 = vand.u32 4294901760, %v714_v54  ;;  %v23014_v9 = vpack.c.bf16 %v741_v53, %v734_v50  ;;  %v735_v12 = vsub.f32 %v22992_v1, %v734_v50 }
 0x1a0   :  { %435 = vperm.xlu1 %22110, %v15936_v0   ;;  %v22983_v0 = vpack.c.bf16 %v715_v58, %v708_v57  ;;  %v742_v57 = vsub.f32 %v22997_v63, %v741_v53  ;;  %v748_v58 = vand.u32 4294901760, %v23007_v5  ;;  %v762_v53 = vand.u32 4294901760, %v23029_v20 }
 0x1a2   :  { %19859 = vmatprep.subr.bf16.mxu1 %v22983_v0  ;;  %v749_v14 = vsub.f32 %v23007_v5, %v748_v58 }
 0x1a4   :  { %485 = vperm.xlu1 %22110, %v15940_v8   ;;  %v22985_v8 = vpack.c.bf16 %v727_v60, %v720_v59  ;;  %v736_v60 = vand.u32 4294901760, %v735_v12 }
 0x1a8   :  { %535 = vperm.xlu1 %22110, %v15944_v16   ;;  %v721_v16 = vsub.f32 %v22974_v55, %v720_v59  ;;  %v755_v59 = vand.u32 4294901760, %v23012_v6 }
 0x1aa   :  { %v722_v2 = vand.u32 4294901760, %v721_v16  ;;  %v743_v16 = vand.u32 4294901760, %v742_v57  ;;  %v23020_v62 = vpack.c.bf16 %v755_v59, %v748_v58  ;;  %v756_v18 = vsub.f32 %v23012_v6, %v755_v59 }
 0x1ab   :  { %v23043_v58 = vsub.f32 %v22887_v28, %v613_v30 }
 0x1ac   :  { %v23002_v54 = vpack.c.bf16 %v729_v49, %v722_v2  ;;  %v23024_v15 = vpack.c.bf16 %v743_v16, %v736_v60  ;;  %v23034_v2 = vsub.f32 %v22870_v24, %v610_v26  ;;  %v750_v49 = vand.u32 4294901760, %v749_v14 }
 0x1ad   :  { %v757_v50 = vand.u32 4294901760, %v756_v18  ;;  %v23050_v24 = vsub.f32 %v22892_v29, %v616_v31  ;;  %v23055_v26 = vsub.f32 %v22909_v33, %v619_v35  ;;  %v763_v16 = vsub.f32 %v23029_v20, %v762_v53 }
 0x1ae   :  { %v769_v12 = vand.u32 4294901760, %v23034_v2  ;;  %v776_v40 = vand.u32 4294901760, %v23043_v58 }
 0x1af   :  { %v23038_v57 = vpack.c.bf16 %v757_v50, %v750_v49  ;;  %v764_v18 = vand.u32 4294901760, %v763_v16  ;;  %v783_v31 = vand.u32 4294901760, %v23050_v24  ;;  %v790_v35 = vand.u32 4294901760, %v23055_v26 }
 0x1b0   :  { %v23045_v22 = vpack.c.bf16 %v769_v12, %v762_v53  ;;  %v770_v28 = vsub.f32 %v23034_v2, %v769_v12  ;;  %v777_v33 = vsub.f32 %v23043_v58, %v776_v40  ;;  %v796_v12 = vsub.f32 %v22914_v34, %v622_v37 }
 0x1b1   :  { %v784_v16 = vsub.f32 %v23050_v24, %v783_v31 }
 0x1b2   :  { %v771_v49 = vand.u32 4294901760, %v770_v28  ;;  %v791_v28 = vsub.f32 %v23055_v26, %v790_v35 }
 0x1b4   :  { %v23060_v29 = vpack.c.bf16 %v771_v49, %v764_v18  ;;  %v785_v49 = vand.u32 4294901760, %v784_v16  ;;  %v792_v37 = vand.u32 4294901760, %v791_v28 }
 0x1b7   :  { %v206_v59 = vpop.xlane.xlu0 %205 }
 0x1b8   :  { %v213_v30 = vmul.f32 0.0078125, %v206_v59  ;;  %v23070_v59 = vpack.c.bf16 %v783_v31, %v776_v40  ;;  %v23082_v40 = vpack.c.bf16 %v22950_v47, %v22945_v46 }
 0x1ba   :  { %v217_v50 = vadd.f32 1e-05, %v213_v30  ;;  %v797_v30 = vand.u32 4294901760, %v796_v12  ;;  %27510 = vst [vmem:[#allocation35_spill] sm:$0xff] %v23082_v40 }
 0x1bb   :  { %v212_v25 = vpop.xlane.xlu1 %211  ;;  %v208_v53 = vpop.xlane.xlu0 %207 }
 0x1bc   :  { %v216_v60 = vmul.f32 0.0078125, %v212_v25  ;;  %v214_v18 = vmul.f32 0.0078125, %v208_v53  ;;  %v23084_v34 = vpack.c.bf16 %v797_v30, %v790_v35  ;;  %v798_v31 = vsub.f32 %v796_v12, %v797_v30 }
 0x1be   :  { %v220_v14 = vadd.f32 1e-05, %v216_v60  ;;  %v778_v60 = vand.u32 4294901760, %v777_v33  ;;  %v799_v53 = vand.u32 4294901760, %v798_v31  ;;  %v218_v47 = vadd.f32 1e-05, %v214_v18 }
 0x1bf   :  { %v23065_v25 = vpop.permute.xlu1 %280 }
 0x1c0   :  { %22111 = vrsqrt.f32 %v220_v14  ;;  %27509 = vst [vmem:[#allocation34_spill] sm:$0xff] %v23065_v25  ;;  %v803_v14 = vsub.f32 %v22931_v41, %v625_v44  ;;  %v23086_v43 = vpack.c.bf16 %v785_v49, %v778_v60  ;;  %v23090_v41 = vpack.c.bf16 %v22979_v56, %v22974_v55 }
 0x1c1   :  { %22113 = vrsqrt.f32 %v217_v50  ;;  %v810_v50 = vsub.f32 %v22936_v42, %v628_v45  ;;  %v23096_v45 = vpack.c.bf16 %v22997_v63, %v22992_v1  ;;  %v23100_v60 = vpack.c.bf16 %v799_v53, %v792_v37 }
 0x1c2   :  { %v804_v33 = vand.u32 4294901760, %v803_v14  ;;  %27511 = vst [vmem:[#allocation36_spill] sm:$0xff] %v23090_v41  ;;  %v23105_v56 = vpack.c.bf16 %v23012_v6, %v23007_v5  ;;  %22115 = vrsqrt.f32 %v218_v47  ;;  %v23126_v6 = vld [vmem:[%s27520_s5] ss:$0 sm:$0xff] }
 0x1c3   :  { %v811_v7 = vand.u32 4294901760, %v810_v50  ;;  %v23092_v44 = vpop.permute.xlu1 %325  ;;  %27513 = vst [vmem:[#allocation38_spill] sm:$0xff] %v23096_v45 }
 0x1c4   :  { %27512 = vst [vmem:[#allocation37_spill] sm:$0xff] %v23092_v44  ;;  %v805_v42 = vsub.f32 %v803_v14, %v804_v33  ;;  %27515 = vst [vmem:[#allocation40_spill] sm:$0xff] %v23105_v56 }
 0x1c5   :  { %v23098_v35 = vpack.c.bf16 %v811_v7, %v804_v33  ;;  %v812_v16 = vsub.f32 %v810_v50, %v811_v7  ;;  %v23115_v7 = vld [vmem:[%s27518_s30] ss:$0 sm:$0xff]  ;;  %v23135_v33 = vpack.c.bf16 %v23050_v24, %v23043_v58  ;;  %v23155_v24 = vpack.c.bf16 %v810_v50, %v803_v14 }
 0x1c6   :  { %v806_v28 = vand.u32 4294901760, %v805_v42  ;;  %v23142_v42 = vpack.c.bf16 %v796_v12, %v23055_v26  ;;  %v27209_v26 = vsub.s32 3, %v22719_v36 }
 0x1c7   :  { %27514 = vst [vmem:[#allocation39_spill] sm:$0xff] %v23098_v35  ;;  %v813_v49 = vand.u32 4294901760, %v812_v16  ;;  %v23110_v63 = vpop.permute.xlu1 %330  ;;  %27522 = vst [vmem:[#allocation45_spill] sm:$0xff] %v23135_v33 }
 0x1c8   :  { %27517 = vst [vmem:[#allocation42_spill] sm:$0xff] %v23110_v63  ;;  %27523 = vst [vmem:[#allocation46_spill] sm:$0xff] %v23142_v42 }
 0x1c9   :  { %v23107_v31 = vpack.c.bf16 %v813_v49, %v806_v28  ;;  %27525 = vst [vmem:[#allocation48_spill] sm:$0xff] %v23155_v24 }
 0x1ca   :  { %v22112_v46 = vpop.eup %22111 }
 0x1cb   :  { %v22114_v30 = vpop.eup %22113  ;;  %v228_v55 = vmul.f32 %v22112_v46, %v22685_v23  ;;  %27516 = vst [vmem:[#allocation41_spill] sm:$0xff] %v23107_v31  ;;  %v23120_v23 = vpack.c.bf16 %v23034_v2, %v23029_v20  ;;  %v23131_v37 = vpop.permute.xlu1 %375 }
 0x1cc   :  { %v225_v1 = vmul.f32 %v22114_v30, %v22675_v17  ;;  %27521 = vst [vmem:[#allocation44_spill] sm:$0xff] %v23131_v37  ;;  %v22116_v20 = vpop.eup %22115  ;;  %v23163_v30 = vpop.permute.xlu0 %275 }
 0x1cd   :  { %v238_v18 = vmul.f32 %v23115_v7, %v228_v55  ;;  %27519 = vst [vmem:[#allocation43_spill] sm:$0xff] %v23120_v23  ;;  %v226_v46 = vmul.f32 %v22116_v20, %v22678_v19  ;;  %v249_v19 = vld [vmem:[%s27526_s13] sm:$0x7f]  ;;  %27527 = vst [vmem:[#allocation49_spill] sm:$0xff] %v23163_v30 }
 0x1ce   :  { %v235_v5 = vmul.f32 %v23115_v7, %v225_v1  ;;  %v23166_v49 = vrot.slane %v249_v19, %v22728_v39  ;;  %v23175_v1 = vrot.slane %v249_v19, %v27209_v26 }
 0x1cf   :  { %v23129_v17 = vadd.f32 %v23126_v6, %v238_v18  ;;  %v23147_v16 = vpop.permute.xlu1 %380  ;;  %v236_v12 = vmul.f32 %v23115_v7, %v226_v46  ;;  %v27217_v18 = vsub.s32 1, %v22719_v36 }
 0x1d0   :  { %v23138_v53 = vadd.f32 %v23126_v6, %v235_v5  ;;  %27524 = vst [vmem:[#allocation47_spill] sm:$0xff] %v23147_v16 }
 0x1d1   :  { %v27210_v2 = vrot.slane %v23129_v17, 5  ;;  %v27213_v28 = vrot.slane %v23129_v17, 6  ;;  %v23179_v5 = vadd.f32 %v23126_v6, %v236_v12  ;;  %v27222_v46 = vrot.slane %v23129_v17, 7 }
 0x1d2   :  { %v27211_v47 = vrot.slane %v23138_v53, 5  ;;  %v27214_v50 = vrot.slane %v23138_v53, 6  ;;  %v359_v26 = vrot.slane %v23138_v53, 7  ;;  %v462_v45 = vrot.slane %v23129_v17, 2 }
 0x1d3   :  { %v23171_v55 = vpop.permute.xlu1 %425  ;;  %v259_v33 = vrot.slane %v23179_v5, 5  ;;  %v310_v32 = vrot.slane %v23179_v5, 6  ;;  %v27541_v40 = vrot.slane %v23129_v17, 6 }
 0x1d4   :  { %v268_v58 = vsel %vm264_vm1, %v27210_v2, %v27211_v47  ;;  %27528 = vst [vmem:[#allocation50_spill] sm:$0xff] %v23171_v55  ;;  %v317_v20 = vsel %vm313_vm2, %v27213_v28, %v27214_v50  ;;  %v23193_v2 = vrot.slane %v249_v19, %v27217_v18  ;;  %v254_v47 = vmul.f32 %v23175_v1, %v23138_v53  ;;  %v23199_v28 = vpop.permute.xlu0 %480 }
 0x1d5   :  { %v293_v14 = vmul.f32 %v23163_v30, %v268_v58  ;;  %v343_v12 = vmul.f32 %v23092_v44, %v317_v20  ;;  %v27223_v30 = vsub.s32 2, %v22719_v36  ;;  %v27228_v50 = vrot.slane %v23179_v5, 1 }
 0x1d6   :  { %v27229_v20 = vrot.slane %v23138_v53, 1 }
 0x1d7   :  { %v301_v58 = vmul.f32 %v23166_v49, %v293_v14  ;;  %v367_v14 = vsel %vm363_vm3, %v27222_v46, %v359_v26  ;;  %v23206_v39 = vpop.permute.xlu1 %430  ;;  %v351_v44 = vmul.f32 %v23193_v2, %v343_v12  ;;  %v23213_v11 = vrot.slane %v249_v19, %v27223_v30 }
 0x1d8   :  { %v393_v10 = vmul.f32 %v23131_v37, %v367_v14  ;;  %v27236_v12 = vsub.s32 5, %v22719_v36  ;;  %v23226_v30 = vpop.permute.xlu0 %530  ;;  %v27237_v14 = vrot.slane %v23138_v53, 2  ;;  %v27530_v37 = vsub.s32 4, %v22719_v36 }
 0x1d9   :  { %v305_v18 = vadd.f32 %v301_v58, %v254_v47  ;;  %v416_v47 = vsel %vm413_vm4, %v27229_v20, %v27228_v50  ;;  %v27235_v58 = vrot.slane %v23179_v5, 2 }
 0x1da   :  { %v401_v3 = vmul.f32 %v23213_v11, %v393_v10  ;;  %v23234_v48 = vrot.slane %v249_v19, %v27530_v37  ;;  %v443_v50 = vmul.f32 %v23171_v55, %v416_v47  ;;  %v23245_v20 = vrot.slane %v249_v19, %v27236_v12 }
 0x1db   :  { %v355_v46 = vadd.f32 %v351_v44, %v305_v18  ;;  %v23228_v24 = vpop.permute.xlu1 %475  ;;  %v466_v44 = vsel %vm463_vm5, %v27237_v14, %v27235_v58  ;;  %v27244_v37 = vrot.slane %v23179_v5, 3  ;;  %v27243_v47 = vsub.s32 6, %v22719_v36 }
 0x1dc   :  { %27529 = vst [vmem:[#allocation51_spill] sm:$0xff] %v23228_v24  ;;  %v493_v10 = vmul.f32 %v23228_v24, %v466_v44  ;;  %v451_v38 = vmul.f32 %v23234_v48, %v443_v50  ;;  %v23253_v58 = vpop.permute.xlu0 %290 }
 0x1dd   :  { %v405_v18 = vadd.f32 %v401_v3, %v355_v46  ;;  %27531 = vst [vmem:[#allocation52_spill] sm:$0xff] %v23253_v58  ;;  %v27242_v3 = vrot.slane %v23138_v53, 3 }
 0x1de   :  { %v501_v12 = vmul.f32 %v23245_v20, %v493_v10 }
 0x1df   :  { %v455_v46 = vadd.f32 %v451_v38, %v405_v18  ;;  %v516_v50 = vsel %vm513_vm6, %v27242_v3, %v27244_v37  ;;  %v27533_v38 = vrot.slane %v23138_v53, 5  ;;  %v27535_v37 = vrot.slane %v23138_v53, 6 }
 0x1e0   :  { %v23276_v23 = vpop.permute.xlu0 %340 }
 0x1e1   :  { %v505_v18 = vadd.f32 %v501_v12, %v455_v46  ;;  %27534 = vst [vmem:[#allocation54_spill] sm:$0xff] %v23276_v23  ;;  %v316_v12 = vsel %vm313_vm2, %v27535_v37, %v310_v32 }
 0x20c   :  { %v210_v42 = vpop.xlane.xlu1 %209 }
 0x20d   :  { %v215_v55 = vmul.f32 0.0078125, %v210_v42  ;;  %v23267_v42 = vrot.slane %v249_v19, %v27243_v47 }
 0x20f   :  { %v219_v44 = vadd.f32 1e-05, %v215_v55  ;;  %v267_v55 = vsel %vm264_vm1, %v27533_v38, %v259_v33 }
 0x210   :  { %v23257_v14 = vpop.permute.xlu1 %525  ;;  %v294_v19 = vmul.f32 %v23065_v25, %v267_v55  ;;  %v23296_v55 = vpop.permute.xlu0 %390  ;;  %v344_v25 = vmul.f32 %v23110_v63, %v316_v12 }
 0x211   :  { %27532 = vst [vmem:[#allocation53_spill] sm:$0xff] %v23257_v14  ;;  %22117 = vrsqrt.f32 %v219_v44  ;;  %v543_v24 = vmul.f32 %v23257_v14, %v516_v50  ;;  %v360_v44 = vrot.slane %v23179_v5, 7 }
 0x212   :  { %v352_v12 = vmul.f32 %v23193_v2, %v344_v25  ;;  %v257_v25 = vmul.f32 %v23175_v1, %v23129_v17 }
 0x213   :  { %v551_v10 = vmul.f32 %v23267_v42, %v543_v24  ;;  %v302_v24 = vmul.f32 %v23166_v49, %v294_v19  ;;  %v366_v38 = vsel %vm363_vm3, %v359_v26, %v360_v44 }
 0x214   :  { %v23278_v3 = vpop.permute.xlu1 %285  ;;  %v394_v27 = vmul.f32 %v23147_v16, %v366_v38  ;;  %v23312_v38 = vpop.permute.xlu0 %440  ;;  %v512_v16 = vrot.slane %v23129_v17, 3 }
 0x215   :  { %v555_v47 = vadd.f32 %v551_v10, %v505_v18  ;;  %v255_v10 = vmul.f32 %v23175_v1, %v23179_v5  ;;  %27537 = vst [vmem:[#allocation56_spill] sm:$0xff] %v23312_v38 }
 0x216   :  { %v402_v41 = vmul.f32 %v23213_v11, %v394_v27 }
 0x217   :  { %v23282_v50 = vand.u32 4294901760, %v555_v47  ;;  %v306_v26 = vadd.f32 %v302_v24, %v255_v10  ;;  %v27538_v10 = vrot.slane %v23138_v53, 1 }
 0x218   :  { %v23288_v46 = vpop.permute.xlu1 %335  ;;  %v23348_v35 = vpop.permute.xlu0 %490 }
 0x219   :  { %v23294_v14 = vsub.f32 %v555_v47, %v23282_v50  ;;  %v412_v47 = vrot.slane %v23129_v17, 1  ;;  %v356_v24 = vadd.f32 %v352_v12, %v306_v26 }
 0x21b   :  { %27536 = vst [vmem:[#allocation55_spill] sm:$0xff] %v23294_v14  ;;  %v22118_v18 = vpop.eup %22117  ;;  %v665_v37 = vand.u32 4294901760, %v23294_v14 }
 0x21c   :  { %v227_v19 = vmul.f32 %v22118_v18, %v22753_v51  ;;  %v23304_v56 = vpop.permute.xlu1 %385 }
 0x21d   :  { %17476 = vmatprep.mubr.f32.mxu0 %v665_v37  ;;  %v666_v21 = vsub.f32 %v23294_v14, %v665_v37  ;;  %v417_v37 = vsel %vm413_vm4, %v412_v47, %v27538_v10  ;;  %v27540_v14 = vrot.slane %v23129_v17, 5 }
 0x21e   :  { %v237_v13 = vmul.f32 %v23115_v7, %v227_v19  ;;  %v446_v19 = vmul.f32 %v23312_v38, %v417_v37 }
 0x21f   :  { %v667_v63 = vand.u32 4294901760, %v666_v21  ;;  %v27539_v21 = vrot.slane %v23138_v53, 2 }
 0x220   :  { %v247_v51 = vadd.f32 %v23126_v6, %v237_v13  ;;  %v23315_v18 = vpop.permute.xlu1 %435 }
 0x221   :  { %17362 = vmatprep.mubr.f32.mxu1 %v667_v63  ;;  %v467_v27 = vsel %vm463_vm5, %v462_v45, %v27539_v21 }
 0x222   :  { %v260_v13 = vrot.slane %v247_v51, 5  ;;  %v311_v7 = vrot.slane %v247_v51, 6  ;;  %v361_v6 = vrot.slane %v247_v51, 7  ;;  %v256_v26 = vmul.f32 %v23175_v1, %v247_v51 }
 0x223   :  { %v411_v12 = vrot.slane %v247_v51, 1  ;;  %v461_v10 = vrot.slane %v247_v51, 2 }
 0x224   :  { %v265_v4 = vsel %vm264_vm1, %v260_v13, %v27540_v14  ;;  %v266_v63 = vsel %vm264_vm1, %v259_v33, %v260_v13  ;;  %v314_v21 = vsel %vm313_vm2, %v311_v7, %v27541_v40  ;;  %v315_v37 = vsel %vm313_vm2, %v310_v32, %v311_v7  ;;  %v23342_v38 = vpop.permute.xlu1 %485 }
 0x225   :  { %v295_v1 = vmul.f32 %v23278_v3, %v266_v63  ;;  %v296_v61 = vmul.f32 %v23253_v58, %v265_v4  ;;  %v345_v31 = vmul.f32 %v23288_v46, %v315_v37  ;;  %v346_v14 = vmul.f32 %v23276_v23, %v314_v21 }
 0x226   :  { %v27542_v33 = vrot.slane %v23129_v17, 7  ;;  %v365_v32 = vsel %vm363_vm3, %v360_v44, %v361_v6  ;;  %v414_v13 = vsel %vm413_vm4, %v411_v12, %v412_v47  ;;  %v27543_v7 = vrot.slane %v23179_v5, 1 }
 0x227   :  { %v303_v63 = vmul.f32 %v23166_v49, %v295_v1  ;;  %v304_v21 = vmul.f32 %v23166_v49, %v296_v61  ;;  %v353_v17 = vmul.f32 %v23193_v2, %v345_v31  ;;  %v511_v37 = vrot.slane %v247_v51, 3 }
 0x228   :  { %v364_v40 = vsel %vm363_vm3, %v361_v6, %v27542_v33  ;;  %v415_v4 = vsel %vm413_vm4, %v27543_v7, %v411_v12  ;;  %v395_v33 = vmul.f32 %v23304_v56, %v365_v32  ;;  %v445_v47 = vmul.f32 %v23315_v18, %v414_v13  ;;  %v23378_v32 = vpop.permute.xlu1 %535 }
 0x229   :  { %v396_v23 = vmul.f32 %v23296_v55, %v364_v40  ;;  %v444_v44 = vmul.f32 %v23206_v39, %v415_v4  ;;  %v307_v6 = vadd.f32 %v303_v63, %v256_v26  ;;  %v308_v58 = vadd.f32 %v304_v21, %v257_v25 }
 0x22a   :  { %v464_v12 = vsel %vm463_vm5, %v461_v10, %v462_v45  ;;  %v27544_v1 = vrot.slane %v23179_v5, 2  ;;  %v406_v31 = vadd.f32 %v402_v41, %v356_v24  ;;  %v496_v49 = vmul.f32 %v23348_v35, %v467_v27 }
 0x22b   :  { %v354_v51 = vmul.f32 %v23193_v2, %v346_v14  ;;  %v357_v13 = vadd.f32 %v353_v17, %v307_v6  ;;  %v403_v25 = vmul.f32 %v23213_v11, %v395_v33  ;;  %v495_v26 = vmul.f32 %v23342_v38, %v464_v12 }
 0x22c   :  { %v465_v61 = vsel %vm463_vm5, %v27544_v1, %v461_v10  ;;  %v27545_v45 = vrot.slane %v23179_v5, 3  ;;  %v23386_v10 = vpop.permute.xlu0 %540  ;;  %v404_v41 = vmul.f32 %v23213_v11, %v396_v23  ;;  %v514_v2 = vsel %vm513_vm6, %v511_v37, %v512_v16 }
 0x22d   :  { %v494_v40 = vmul.f32 %v23199_v28, %v465_v61  ;;  %v452_v24 = vmul.f32 %v23234_v48, %v444_v44  ;;  %v407_v14 = vadd.f32 %v403_v25, %v357_v13  ;;  %v453_v4 = vmul.f32 %v23234_v48, %v445_v47 }
 0x22e   :  { %v515_v7 = vsel %vm513_vm6, %v27545_v45, %v511_v37  ;;  %v545_v63 = vmul.f32 %v23378_v32, %v514_v2  ;;  %v358_v5 = vadd.f32 %v354_v51, %v308_v58  ;;  %v454_v21 = vmul.f32 %v23234_v48, %v446_v19 }
 0x22f   :  { %v544_v27 = vmul.f32 %v23226_v30, %v515_v7  ;;  %v27546_v17 = vrot.slane %v23138_v53, 3  ;;  %v456_v23 = vadd.f32 %v452_v24, %v406_v31  ;;  %v502_v37 = vmul.f32 %v23245_v20, %v494_v40 }
 0x230   :  { %v457_v44 = vadd.f32 %v453_v4, %v407_v14  ;;  %v503_v6 = vmul.f32 %v23245_v20, %v495_v26  ;;  %v408_v12 = vadd.f32 %v404_v41, %v358_v5  ;;  %v504_v58 = vmul.f32 %v23245_v20, %v496_v49  ;;  %v27562_v5 = vld [vmem:[#allocation32_spill] sm:$0xff] }
 0x231   :  { %v517_v11 = vsel %vm513_vm6, %v512_v16, %v27546_v17  ;;  %v506_v47 = vadd.f32 %v502_v37, %v456_v23  ;;  %v552_v1 = vmul.f32 %v23267_v42, %v544_v27  ;;  %v553_v53 = vmul.f32 %v23267_v42, %v545_v63  ;;  %v27564_v17 = vld [vmem:[#allocation33_spill] sm:$0xff] }
 0x232   :  { %v546_v33 = vmul.f32 %v23386_v10, %v517_v11  ;;  %v507_v48 = vadd.f32 %v503_v6, %v457_v44  ;;  %v458_v19 = vadd.f32 %v454_v21, %v408_v12  ;;  %v27563_v21 = vld [vmem:[#allocation46_spill] sm:$0xff]  ;;  %v27565_v11 = vld [vmem:[#allocation48_spill] sm:$0xff] }
 0x233   :  { %v556_v61 = vadd.f32 %v552_v1, %v506_v47 }
 0x234   :  { %v554_v16 = vmul.f32 %v23267_v42, %v546_v33  ;;  %v557_v31 = vadd.f32 %v553_v53, %v507_v48  ;;  %v508_v51 = vadd.f32 %v504_v58, %v458_v19  ;;  %v15946_v33 = vld [vmem:[%s27181_s8] ss:$0 sm:$0xff] }
 0x235   :  { %v23407_v40 = vand.u32 4294901760, %v556_v61 }
 0x236   :  { %v23409_v13 = vand.u32 4294901760, %v557_v31  ;;  %v558_v25 = vadd.f32 %v554_v16, %v508_v51 }
 0x237   :  { %v23412_v26 = vsub.f32 %v556_v61, %v23407_v40 }
 0x238   :  { %v23415_v45 = vsub.f32 %v557_v31, %v23409_v13  ;;  %v23417_v20 = vand.u32 4294901760, %v558_v25 }
 0x239   :  { %v675_v49 = vand.u32 4294901760, %v23412_v26 }
 0x23a   :  { %v685_v7 = vand.u32 4294901760, %v23415_v45  ;;  %v23422_v42 = vsub.f32 %v558_v25, %v23417_v20  ;;  %v27566_v25 = vld [vmem:[#allocation20_spill] sm:$0xff] }
 0x23b   :  { %17477 = vmatmul.mubr.f32.vlgmr.msra.gmra.mrb[0].mxu0 %v675_v49  ;;  %v676_v41 = vsub.f32 %v23412_v26, %v675_v49 }
 0x23c   :  { %19957 = vmatpush3.bf16.msra.mxu0 %v22964_v52  ;;  %17479 = vmatprep.mubr.f32.mxu0 %v685_v7  ;;  %v695_v2 = vand.u32 4294901760, %v23422_v42  ;;  %v686_v24 = vsub.f32 %v23415_v45, %v685_v7  ;;  %v27547_v52 = vld [vmem:[#allocation39_spill] sm:$0xff]  ;;  %v27568_v7 = vld [vmem:[#allocation22_spill] sm:$0xff] }
 0x23d   :  { %19959 = vmatprep.subr.bf16.mxu0 %v22985_v8  ;;  %v677_v27 = vand.u32 4294901760, %v676_v41  ;;  %v27570_v41 = vld [vmem:[#allocation23_spill] sm:$0xff] }
 0x23e   :  { %v687_v14 = vand.u32 4294901760, %v686_v24  ;;  %v696_v4 = vsub.f32 %v23422_v42, %v695_v2  ;;  %v27572_v24 = vld [vmem:[#allocation21_spill] sm:$0xff] }
 0x23f   :  { %17363 = vmatmul.mubr.f32.vlgmr.msra.gmra.mrb[0].mxu1 %v677_v27  ;;  %17480 = vmatmul.mubr.f32.gmra.mrb[2].mxu0 %v695_v2 }
 0x240   :  { %19861 = vmatpush3.bf16.msra.mxu1 %v22983_v0  ;;  %19961 = vmatpush3.bf16.msra.mxu0 %v22985_v8  ;;  %v697_v63 = vand.u32 4294901760, %v696_v4  ;;  %v27548_v0 = vld [vmem:[#allocation41_spill] sm:$0xff]  ;;  %v27549_v8 = vld [vmem:[#allocation26_spill] sm:$0xff] }
 0x241   :  { %19863 = vmatprep.subr.bf16.mxu1 %v23002_v54  ;;  %19963 = vmatprep.subr.bf16.mxu0 %v23014_v9 }
 0x242   :  { %17514 = vmatprep.mubr.f32.mxu0 %v23282_v50  ;;  %17365 = vmatprep.mubr.f32.mxu1 %v687_v14 }
 0x243   :  { %17366 = vmatmul.mubr.f32.gmra.mrb[2].mxu1 %v697_v63 }
 0x244   :  { %19865 = vmatpush3.bf16.msra.mxu1 %v23002_v54  ;;  %19965 = vmatpush3.bf16.msra.mxu0 %v23014_v9  ;;  %v27551_v54 = vld [vmem:[#allocation27_spill] sm:$0xff]  ;;  %v27552_v9 = vld [vmem:[#allocation36_spill] sm:$0xff] }
 0x245   :  { %19867 = vmatprep.subr.bf16.mxu1 %v23024_v15  ;;  %19967 = vmatprep.subr.bf16.mxu0 %v23020_v62 }
 0x246   :  { %17400 = vmatprep.mubr.f32.mxu1 %v23282_v50 }
 0x248   :  { %19869 = vmatpush3.bf16.msra.mxu1 %v23024_v15  ;;  %19969 = vmatpush3.bf16.msra.mxu0 %v23020_v62  ;;  %v27553_v62 = vld [vmem:[#allocation28_spill] sm:$0xff]  ;;  %v27554_v15 = vld [vmem:[#allocation55_spill] sm:$0xff] }
 0x249   :  { %19871 = vmatprep.subr.bf16.mxu1 %v23038_v57  ;;  %19971 = vmatprep.subr.bf16.mxu0 %v23045_v22 }
 0x24c   :  { %19873 = vmatpush3.bf16.msra.mxu1 %v23038_v57  ;;  %19973 = vmatpush3.bf16.msra.mxu0 %v23045_v22  ;;  %v27555_v57 = vld [vmem:[#allocation38_spill] sm:$0xff]  ;;  %v27556_v22 = vld [vmem:[#allocation29_spill] sm:$0xff] }
 0x24d   :  { %19875 = vmatprep.subr.bf16.mxu1 %v23060_v29  ;;  %19975 = vmatprep.subr.bf16.mxu0 %v23070_v59 }
 0x250   :  { %19877 = vmatpush3.bf16.msra.mxu1 %v23060_v29  ;;  %19977 = vmatpush3.bf16.msra.mxu0 %v23070_v59  ;;  %v27557_v29 = vld [vmem:[#allocation40_spill] sm:$0xff]  ;;  %v27558_v59 = vld [vmem:[#allocation30_spill] sm:$0xff] }
 0x251   :  { %19879 = vmatprep.subr.bf16.mxu1 %v23086_v43  ;;  %19979 = vmatprep.subr.bf16.mxu0 %v23084_v34 }
 0x254   :  { %19881 = vmatpush3.bf16.msra.mxu1 %v23086_v43  ;;  %19981 = vmatpush3.bf16.msra.mxu0 %v23084_v34  ;;  %v27550_v43 = vld [vmem:[#allocation35_spill] sm:$0xff] }
 0x255   :  { %19883 = vmatprep.subr.bf16.mxu1 %v23100_v60  ;;  %19983 = vmatprep.subr.bf16.mxu0 %v27547_v52  ;;  %v27559_v34 = vld [vmem:[#allocation43_spill] sm:$0xff] }
 0x258   :  { %19885 = vmatpush3.bf16.msra.mxu1 %v23100_v60  ;;  %19985 = vmatpush3.bf16.msra.mxu0 %v27547_v52  ;;  %v27560_v60 = vld [vmem:[#allocation31_spill] sm:$0xff] }
 0x259   :  { %19887 = vmatprep.subr.bf16.mxu1 %v27548_v0  ;;  %19987 = vmatprep.subr.bf16.mxu0 %v27549_v8 }
 0x25b   :  { %17515 = vmatmul.mubr.f32.vlgmr.msra.gmra.mrb[0].mxu0 %v23407_v40 }
 0x25c   :  { %19889 = vmatpush3.bf16.msra.mxu1 %v27548_v0  ;;  %17517 = vmatprep.mubr.f32.mxu0 %v23409_v13 }
 0x25d   :  { %19989 = vmatpush3.bf16.msra.mxu0 %v27549_v8  ;;  %19891 = vmatprep.subr.bf16.mxu1 %v27550_v43 }
 0x25e   :  { %19991 = vmatprep.subr.bf16.mxu0 %v27551_v54 }
 0x25f   :  { %17401 = vmatmul.mubr.f32.vlgmr.msra.gmra.mrb[0].mxu1 %v23407_v40  ;;  %17518 = vmatmul.mubr.f32.gmra.mrb[2].mxu0 %v23417_v20 }
 0x260   :  { %17403 = vmatprep.mubr.f32.mxu1 %v23409_v13  ;;  %19893 = vmatpush3.bf16.msra.mxu1 %v27550_v43 }
 0x261   :  { %19993 = vmatpush3.bf16.msra.mxu0 %v27551_v54  ;;  %17552 = vmatprep.mubr.f32.mxu0 %v23282_v50  ;;  %v27561_v50 = vld [vmem:[#allocation45_spill] sm:$0xff] }
 0x262   :  { %19895 = vmatprep.subr.bf16.mxu1 %v27552_v9  ;;  %19995 = vmatprep.subr.bf16.mxu0 %v27553_v62 }
 0x263   :  { %17404 = vmatmul.mubr.f32.gmra.mrb[2].mxu1 %v23417_v20 }
 0x264   :  { %19897 = vmatpush3.bf16.msra.mxu1 %v27552_v9  ;;  %17438 = vmatprep.mubr.f32.mxu1 %v27554_v15 }
 0x265   :  { %19997 = vmatpush3.bf16.msra.mxu0 %v27553_v62  ;;  %19899 = vmatprep.subr.bf16.mxu1 %v27555_v57 }
 0x266   :  { %19999 = vmatprep.subr.bf16.mxu0 %v27556_v22 }
 0x268   :  { %19901 = vmatpush3.bf16.msra.mxu1 %v27555_v57 }
 0x269   :  { %20001 = vmatpush3.bf16.msra.mxu0 %v27556_v22  ;;  %19903 = vmatprep.subr.bf16.mxu1 %v27557_v29 }
 0x26a   :  { %20003 = vmatprep.subr.bf16.mxu0 %v27558_v59 }
 0x26c   :  { %19905 = vmatpush3.bf16.msra.mxu1 %v27557_v29 }
 0x26d   :  { %20005 = vmatpush3.bf16.msra.mxu0 %v27558_v59  ;;  %19907 = vmatprep.subr.bf16.mxu1 %v27559_v34 }
 0x26e   :  { %20007 = vmatprep.subr.bf16.mxu0 %v27560_v60 }
 0x270   :  { %19909 = vmatpush3.bf16.msra.mxu1 %v27559_v34 }
 0x271   :  { %20009 = vmatpush3.bf16.msra.mxu0 %v27560_v60  ;;  %19911 = vmatprep.subr.bf16.mxu1 %v27561_v50  ;;  %v15952_v60 = vld [vmem:[%s27500_s23 + $0x80] sm:$0xff] }
 0x272   :  { %20011 = vmatprep.subr.bf16.mxu0 %v27562_v5 }
 0x274   :  { %19913 = vmatpush3.bf16.msra.mxu1 %v27561_v50  ;;  %v15953_v50 = vld [vmem:[%s27500_s23 + $0x88] sm:$0xff] }
 0x275   :  { %20013 = vmatpush3.bf16.msra.mxu0 %v27562_v5  ;;  %19915 = vmatprep.subr.bf16.mxu1 %v27563_v21  ;;  %v1608_v5 = vand.u32 4294901760, %v15952_v60 }
 0x276   :  { %20015 = vmatprep.subr.bf16.mxu0 %v27564_v17 }
 0x278   :  { %19917 = vmatpush3.bf16.msra.mxu1 %v27563_v21  ;;  %v1611_v21 = vand.u32 4294901760, %v15953_v50 }
 0x279   :  { %20017 = vmatpush3.bf16.msra.mxu0 %v27564_v17  ;;  %19919 = vmatprep.subr.bf16.mxu1 %v27565_v11 }
 0x27a   :  { %v23551_v17 = vpack.c.bf16 %v1611_v21, %v1608_v5 }
 0x27c   :  { %17553 = vmatmul.mubr.f32.vlgmr.msra.gmra.mrb[0].mxu0 %v23407_v40  ;;  %19921 = vmatpush3.bf16.msra.mxu1 %v27565_v11  ;;  %27574 = vst [vmem:[#allocation27_spill] sm:$0xff] %v23551_v17  ;;  %v15954_v11 = vld [vmem:[%s27500_s23 + $0x90] sm:$0xff] }
 0x27d   :  { %17555 = vmatprep.mubr.f32.mxu0 %v23409_v13  ;;  %20019 = vmatprep.subr.bf16.mxu1 %v23551_v17 }
 0x27f   :  { %17439 = vmatmul.mubr.f32.vlgmr.msra.gmra.mrb[0].mxu1 %v23412_v26 }
 0x280   :  { %17556 = vmatmul.mubr.f32.gmra.mrb[2].mxu0 %v23417_v20  ;;  %17441 = vmatprep.mubr.f32.mxu1 %v23415_v45 }
 0x281   :  { %20021 = vmatpush3.bf16.msra.mxu1 %v23551_v17  ;;  %v27621_v17 = vld [vmem:[#allocation53_spill] sm:$0xff] }
 0x283   :  { %17442 = vmatmul.mubr.f32.gmra.mrb[2].mxu1 %v23422_v42 }
 0x34f   :  { %v17554_v23 = vpop.f32.mrb[0].mxu0 }
 0x350   :  { %v1330_v37 = vpop.f32.mrb[1].mxu0 }
 0x352   :  { %v17440_v44 = vpop.f32.mrb[0].mxu1 }
 0x353   :  { %v21746_v6 = vadd.f32 %v17440_v44, %v15946_v33  ;;  %v17557_v12 = vpop.f32.mrb[2].mxu0  ;;  %v972_v47 = vpop.f32.mrb[1].mxu1  ;;  %v23563_v44 = vld [vmem:[%s27500_s23 + $0xa0] sm:$0xff] }
 0x354   :  { %v21748_v1 = vadd.f32 %v15946_v33, %v972_v47  ;;  %v1342_v58 = vpop.f32.mrb[3].mxu0  ;;  %v1620_v47 = vand.u32 4294901760, %v23563_v44 }
 0x355   :  { %v21747_v48 = vadd.f32 %v21746_v6, %v17554_v23  ;;  %v15955_v23 = vld [vmem:[%s27500_s23 + $0x98] sm:$0xff]  ;;  %v23568_v6 = vld [vmem:[%s27500_s23 + $0xa8] sm:$0xff] }
 0x356   :  { %v21749_v53 = vadd.f32 %v21748_v1, %v1330_v37  ;;  %v17443_v19 = vpop.f32.mrb[2].mxu1  ;;  %v1614_v37 = vand.u32 4294901760, %v15954_v11  ;;  %v1623_v1 = vand.u32 4294901760, %v23568_v6 }
 0x357   :  { %v21750_v61 = vadd.f32 %v17443_v19, %v15946_v33  ;;  %v986_v16 = vpop.f32.mrb[3].mxu1  ;;  %v1353_v49 = vmax.f32 %v21747_v48, 0.0 }
 0x358   :  { %v1352_v31 = vmax.f32 %v21749_v53, 0.0  ;;  %v21752_v51 = vadd.f32 %v15946_v33, %v986_v16  ;;  %v1617_v33 = vand.u32 4294901760, %v15955_v23  ;;  %v15960_v16 = vld [vmem:[%s27500_s23 + $0xc0] sm:$0xff] }
 0x359   :  { %v21751_v40 = vadd.f32 %v21750_v61, %v17557_v12  ;;  %v23522_v27 = vadd.f32 %v1353_v49, %v27572_v24  ;;  %v23573_v12 = vld [vmem:[%s27500_s23 + $0xb0] sm:$0xff]  ;;  %v23584_v61 = vpack.c.bf16 %v1623_v1, %v1620_v47  ;;  %v23615_v24 = vld [vmem:[%s27500_s23 + $0xe8] sm:$0xff] }
 0x35a   :  { %v21753_v13 = vadd.f32 %v21752_v51, %v1342_v58  ;;  %v23510_v26 = vadd.f32 %v1352_v31, %v27566_v25  ;;  %v15959_v58 = vld [vmem:[%s27500_s23 + $0xb8] sm:$0xff]  ;;  %v23581_v48 = vpack.c.bf16 %v1617_v33, %v1614_v37  ;;  %v1626_v53 = vand.u32 4294901760, %v23573_v12  ;;  %v15961_v31 = vld [vmem:[%s27500_s23 + $0xc8] sm:$0xff]  ;;  %v15962_v25 = vld [vmem:[%s27500_s23 + $0xd0] sm:$0xff] }
 0x35b   :  { %v1355_v45 = vmax.f32 %v21751_v40, 0.0  ;;  %27573 = vst [vmem:[#allocation35_spill] sm:$0xff] %v23522_v27  ;;  %v1629_v19 = vand.u32 4294901760, %v15959_v58  ;;  %27576 = vst [vmem:[#allocation28_spill] sm:$0xff] %v23584_v61  ;;  %v1632_v40 = vand.u32 4294901760, %v15960_v16  ;;  %v1638_v49 = vand.u32 4294901760, %v15962_v25 }
 0x35c   :  { %27567 = vst [vmem:[#allocation39_spill] sm:$0xff] %v23510_v26  ;;  %v1354_v20 = vmax.f32 %v21753_v13, 0.0  ;;  %1364 = vadd.xlane.f32.xlu1 %v23510_v26  ;;  %27575 = vst [vmem:[#allocation36_spill] sm:$0xff] %v23581_v48  ;;  %20023 = vmatprep.subr.bf16.mxu1 %v23581_v48  ;;  %v1635_v13 = vand.u32 4294901760, %v15961_v31 }
 0x35d   :  { %v23514_v42 = vadd.f32 %v1355_v45, %v27568_v7  ;;  %20025 = vmatpush3.bf16.msra.mxu1 %v23581_v48  ;;  %v23595_v51 = vpack.c.bf16 %v1629_v19, %v1626_v53  ;;  %v15963_v45 = vld [vmem:[%s27500_s23 + $0xd8] sm:$0xff] }
 0x35e   :  { %v23517_v2 = vadd.f32 %v1354_v20, %v27570_v41  ;;  %20027 = vmatprep.subr.bf16.mxu1 %v23584_v61  ;;  %v23605_v20 = vpack.c.bf16 %v1635_v13, %v1632_v40  ;;  %v1641_v7 = vand.u32 4294901760, %v15963_v45  ;;  %v23610_v41 = vld [vmem:[%s27500_s23 + $0xe0] sm:$0xff] }
 0x35f   :  { %27569 = vst [vmem:[#allocation41_spill] sm:$0xff] %v23514_v42  ;;  %1370 = vadd.xlane.f32.xlu0 %v23514_v42  ;;  %27577 = vst [vmem:[#allocation55_spill] sm:$0xff] %v23595_v51 }
 0x360   :  { %27571 = vst [vmem:[#allocation26_spill] sm:$0xff] %v23517_v2  ;;  %1368 = vadd.xlane.f32.xlu1 %v23517_v2  ;;  %27578 = vst [vmem:[#allocation38_spill] sm:$0xff] %v23605_v20 }
 0x361   :  { %20029 = vmatpush3.bf16.msra.mxu1 %v23584_v61  ;;  %v27620_v61 = vld [vmem:[#allocation51_spill] sm:$0xff] }
 0x362   :  { %20031 = vmatprep.subr.bf16.mxu1 %v23595_v51 }
 0x363   :  { %1366 = vadd.xlane.f32.xlu0 %v23522_v27 }
 0x365   :  { %20033 = vmatpush3.bf16.msra.mxu1 %v23595_v51  ;;  %v27615_v51 = vld [vmem:[#allocation44_spill] sm:$0xff] }
 0x366   :  { %20035 = vmatprep.subr.bf16.mxu1 %v23605_v20 }
 0x369   :  { %20037 = vmatpush3.bf16.msra.mxu1 %v23605_v20 }
 0x3e9   :  { %v1365_v14 = vpop.xlane.xlu1 %1364 }
 0x3ea   :  { %v1372_v4 = vmul.f32 0.0078125, %v1365_v14  ;;  %v23619_v14 = vpack.c.bf16 %v1641_v7, %v1638_v49 }
 0x3ec   :  { %v1371_v63 = vpop.xlane.xlu0 %1370  ;;  %v23526_v52 = vsub.f32 %v23510_v26, %v1372_v4  ;;  %27579 = vst [vmem:[#allocation29_spill] sm:$0xff] %v23619_v14  ;;  %v27270_v4 = vand.u32 4294901760, %v23610_v41  ;;  %20039 = vmatprep.subr.bf16.mxu1 %v23619_v14 }
 0x3ed   :  { %v1375_v0 = vmul.f32 0.0078125, %v1371_v63  ;;  %v1369_v8 = vpop.xlane.xlu1 %1368  ;;  %v27269_v63 = vand.u32 4294901760, %v23615_v24  ;;  %20041 = vmatpush3.bf16.msra.mxu1 %v23619_v14 }
 0x3ee   :  { %v1374_v43 = vmul.f32 0.0078125, %v1369_v8  ;;  %v1380_v54 = vmul.f32 %v23526_v52, %v23526_v52  ;;  %v23631_v8 = vld [vmem:[%s27500_s23 + $0xf8] sm:$0xff] }
 0x3ef   :  { %v23531_v9 = vsub.f32 %v23514_v42, %v1375_v0  ;;  %v23626_v0 = vld [vmem:[%s27500_s23 + $0xf0] sm:$0xff]  ;;  %v23696_v42 = vsub.f32 %v15961_v31, %v1635_v13 }
 0x3f0   :  { %1384 = vadd.xlane.f32.xlu0 %v1380_v54  ;;  %v1367_v62 = vpop.xlane.xlu0 %1366  ;;  %v23536_v22 = vsub.f32 %v23517_v2, %v1374_v43  ;;  %v23639_v43 = vpack.c.bf16 %v27269_v63, %v27270_v4  ;;  %v27272_v54 = vand.u32 4294901760, %v23626_v0 }
 0x3f1   :  { %v1373_v15 = vmul.f32 0.0078125, %v1367_v62  ;;  %v1383_v57 = vmul.f32 %v23531_v9, %v23531_v9  ;;  %v27271_v62 = vand.u32 4294901760, %v23631_v8  ;;  %27591 = vst [vmem:[#allocation23_spill] sm:$0xff] %v23696_v42 }
 0x3f2   :  { %v1382_v34 = vmul.f32 %v23536_v22, %v23536_v22  ;;  %27580 = vst [vmem:[#allocation40_spill] sm:$0xff] %v23639_v43  ;;  %20043 = vmatprep.subr.bf16.mxu1 %v23639_v43 }
 0x3f3   :  { %1390 = vadd.xlane.f32.xlu1 %v1383_v57  ;;  %v23539_v29 = vsub.f32 %v23522_v27, %v1373_v15  ;;  %v23649_v15 = vpack.c.bf16 %v27271_v62, %v27272_v54  ;;  %v23651_v57 = vsub.f32 %v15952_v60, %v1608_v5  ;;  %20045 = vmatpush3.bf16.msra.mxu1 %v23639_v43 }
 0x3f4   :  { %v23671_v54 = vsub.f32 %v15955_v23, %v1617_v33  ;;  %v23687_v23 = vsub.f32 %v23568_v6, %v1623_v1  ;;  %v23692_v33 = vsub.f32 %v15959_v58, %v1629_v19  ;;  %v23706_v1 = vsub.f32 %v15963_v45, %v1641_v7 }
 0x3f5   :  { %v1381_v59 = vmul.f32 %v23539_v29, %v23539_v29  ;;  %27581 = vst [vmem:[#allocation30_spill] sm:$0xff] %v23649_v15  ;;  %27582 = vst [vmem:[#allocation43_spill] sm:$0xff] %v23651_v57  ;;  %20047 = vmatprep.subr.bf16.mxu1 %v23649_v15 }
 0x3f6   :  { %27585 = vst [vmem:[#allocation32_spill] sm:$0xff] %v23671_v54  ;;  %27587 = vst [vmem:[#allocation33_spill] sm:$0xff] %v23687_v23 }
 0x3f7   :  { %1386 = vadd.xlane.f32.xlu0 %v1381_v59  ;;  %1388 = vadd.xlane.f32.xlu1 %v1382_v34  ;;  %v23653_v59 = vsub.f32 %v15953_v50, %v1611_v21  ;;  %v27274_v34 = vand.u32 4294901760, %v23651_v57  ;;  %v23669_v21 = vsub.f32 %v15954_v11, %v1614_v37  ;;  %v23684_v11 = vsub.f32 %v23563_v44, %v1620_v47 }
 0x3f8   :  { %20049 = vmatpush3.bf16.msra.mxu1 %v23649_v15  ;;  %v23690_v37 = vsub.f32 %v23573_v12, %v1626_v53  ;;  %27589 = vst [vmem:[#allocation20_spill] sm:$0xff] %v23692_v33  ;;  %v27280_v44 = vand.u32 4294901760, %v23692_v33  ;;  %v27283_v47 = vand.u32 4294901760, %v23696_v42  ;;  %v23704_v12 = vsub.f32 %v15962_v25, %v1638_v49  ;;  %27593 = vst [vmem:[#allocation57_spill] sm:$0xff] %v23706_v1 }
 0x3f9   :  { %27583 = vst [vmem:[#allocation31_spill] sm:$0xff] %v23653_v59  ;;  %v27275_v63 = vand.u32 4294901760, %v23653_v59  ;;  %v1732_v4 = vsub.f32 %v23651_v57, %v27274_v34  ;;  %27584 = vst [vmem:[#allocation45_spill] sm:$0xff] %v23669_v21  ;;  %v27276_v2 = vand.u32 4294901760, %v23669_v21  ;;  %v27284_v34 = vand.u32 4294901760, %v23671_v54 }
 0x3fa   :  { %27586 = vst [vmem:[#allocation46_spill] sm:$0xff] %v23684_v11  ;;  %27588 = vst [vmem:[#allocation48_spill] sm:$0xff] %v23690_v37  ;;  %v27290_v13 = vand.u32 4294901760, %v23704_v12  ;;  %v27285_v25 = vand.u32 4294901760, %v23706_v1 }
 0x3fb   :  { %v1739_v62 = vsub.f32 %v23653_v59, %v27275_v63  ;;  %v1733_v60 = vand.u32 4294901760, %v1732_v4  ;;  %v1746_v63 = vsub.f32 %v23669_v21, %v27276_v2  ;;  %v1753_v4 = vsub.f32 %v23671_v54, %v27284_v34  ;;  %27592 = vst [vmem:[#allocation21_spill] sm:$0xff] %v23704_v12 }
 0x3fc   :  { %v23694_v2 = vsub.f32 %v15960_v16, %v1632_v40  ;;  %v1781_v16 = vsub.f32 %v23692_v33, %v27280_v44  ;;  %v1795_v40 = vsub.f32 %v23696_v42, %v27283_v47  ;;  %v1802_v44 = vsub.f32 %v23704_v12, %v27290_v13 }
 0x3fd   :  { %v1740_v5 = vand.u32 4294901760, %v1739_v62  ;;  %v1747_v62 = vand.u32 4294901760, %v1746_v63  ;;  %v27282_v63 = vand.u32 4294901760, %v23684_v11  ;;  %v27594_v34 = vand.u32 4294901760, %v23610_v41 }
 0x3fe   :  { %27590 = vst [vmem:[#allocation22_spill] sm:$0xff] %v23694_v2  ;;  %v27281_v6 = vand.u32 4294901760, %v23694_v2 }
 0x3ff   :  { %v23666_v50 = vpack.c.bf16 %v1740_v5, %v1733_v60  ;;  %v1754_v60 = vand.u32 4294901760, %v1753_v4  ;;  %v27279_v4 = vand.u32 4294901760, %v23687_v23  ;;  %v1760_v58 = vsub.f32 %v23684_v11, %v27282_v63 }
 0x400   :  { %v1788_v31 = vsub.f32 %v23694_v2, %v27281_v6  ;;  %v1809_v6 = vsub.f32 %v23706_v1, %v27285_v25 }
 0x401   :  { %20051 = vmatprep.subr.bf16.mxu1 %v23666_v50  ;;  %v23681_v5 = vpack.c.bf16 %v1754_v60, %v1747_v62  ;;  %v27278_v62 = vand.u32 4294901760, %v23690_v37  ;;  %v1767_v53 = vsub.f32 %v23687_v23, %v27279_v4  ;;  %v1761_v45 = vand.u32 4294901760, %v1760_v58 }
 0x402   :  { %v1782_v60 = vand.u32 4294901760, %v1781_v16  ;;  %v1796_v4 = vand.u32 4294901760, %v1795_v40  ;;  %v23741_v58 = vsub.f32 %v23610_v41, %v27594_v34  ;;  %v1810_v40 = vand.u32 4294901760, %v1809_v6 }
 0x403   :  { %v1774_v19 = vsub.f32 %v23690_v37, %v27278_v62  ;;  %v1768_v49 = vand.u32 4294901760, %v1767_v53  ;;  %v1789_v62 = vand.u32 4294901760, %v1788_v31  ;;  %v27596_v53 = vand.u32 4294901760, %v23615_v24 }
 0x404   :  { %27595 = vst [vmem:[#allocation58_spill] sm:$0xff] %v23741_v58  ;;  %v1803_v31 = vand.u32 4294901760, %v1802_v44  ;;  %v27289_v25 = vand.u32 4294901760, %v23741_v58  ;;  %v27600_v41 = vand.u32 4294901760, %v23631_v8 }
 0x405   :  { %v1775_v7 = vand.u32 4294901760, %v1774_v19  ;;  %v23734_v63 = vpack.c.bf16 %v1768_v49, %v1761_v45  ;;  %v23746_v19 = vsub.f32 %v23615_v24, %v27596_v53  ;;  %v23748_v16 = vpack.c.bf16 %v1796_v4, %v1789_v62 }
 0x406   :  { %v27598_v49 = vand.u32 4294901760, %v23626_v0  ;;  %v23760_v34 = vsub.f32 %v23631_v8, %v27600_v41  ;;  %v23762_v24 = vpack.c.bf16 %v1810_v40, %v1803_v31  ;;  %v1816_v4 = vsub.f32 %v23741_v58, %v27289_v25 }
 0x407   :  { %v23736_v47 = vpack.c.bf16 %v1782_v60, %v1775_v7  ;;  %27597 = vst [vmem:[#allocation59_spill] sm:$0xff] %v23746_v19  ;;  %v27286_v45 = vand.u32 4294901760, %v23746_v19  ;;  %v23782_v41 = vpack.c.bf16 %v23653_v59, %v23651_v57 }
 0x408   :  { %v23755_v7 = vsub.f32 %v23626_v0, %v27598_v49  ;;  %27601 = vst [vmem:[#allocation61_spill] sm:$0xff] %v23760_v34  ;;  %v27287_v0 = vand.u32 4294901760, %v23760_v34  ;;  %v1817_v6 = vand.u32 4294901760, %v1816_v4  ;;  %v23788_v4 = vpack.c.bf16 %v23671_v54, %v23669_v21 }
 0x409   :  { %v1823_v62 = vsub.f32 %v23746_v19, %v27286_v45 }
 0x40a   :  { %27599 = vst [vmem:[#allocation60_spill] sm:$0xff] %v23755_v7  ;;  %v27288_v44 = vand.u32 4294901760, %v23755_v7  ;;  %v1837_v53 = vsub.f32 %v23760_v34, %v27287_v0 }
 0x40b   :  { %v1824_v60 = vand.u32 4294901760, %v1823_v62  ;;  %v23792_v62 = vpack.c.bf16 %v23687_v23, %v23684_v11 }
 0x40c   :  { %v1830_v8 = vsub.f32 %v23755_v7, %v27288_v44  ;;  %v1838_v49 = vand.u32 4294901760, %v1837_v53  ;;  %v23808_v53 = vpack.c.bf16 %v23746_v19, %v23741_v58  ;;  %v27609_v58 = vsub.s32 2, %v22719_v36 }
 0x40d   :  { %v23778_v31 = vpack.c.bf16 %v1824_v60, %v1817_v6  ;;  %v23796_v6 = vpack.c.bf16 %v23692_v33, %v23690_v37  ;;  %v23800_v60 = vpack.c.bf16 %v23696_v42, %v23694_v2 }
 0x40e   :  { %v1831_v40 = vand.u32 4294901760, %v1830_v8  ;;  %v23804_v8 = vpack.c.bf16 %v23706_v1, %v23704_v12  ;;  %27604 = vst [vmem:[#allocation64_spill] sm:$0xff] %v23808_v53 }
 0x40f   :  { %27602 = vst [vmem:[#allocation62_spill] sm:$0xff] %v23800_v60 }
 0x410   :  { %v23784_v45 = vpack.c.bf16 %v1838_v49, %v1831_v40  ;;  %27603 = vst [vmem:[#allocation63_spill] sm:$0xff] %v23804_v8  ;;  %v23812_v40 = vpack.c.bf16 %v23760_v34, %v23755_v7  ;;  %v15949_v34 = vld [vmem:[%s27518_s30 + $0x1] ss:$0 sm:$0xff] }
 0x412   :  { %27605 = vst [vmem:[#allocation65_spill] sm:$0xff] %v23812_v40 }
 0x47d   :  { %v1385_v49 = vpop.xlane.xlu0 %1384 }
 0x47e   :  { %v1392_v0 = vmul.f32 0.0078125, %v1385_v49  ;;  %v27608_v49 = vsub.s32 1, %v22719_v36 }
 0x480   :  { %v1396_v44 = vadd.f32 1e-05, %v1392_v0  ;;  %v1391_v25 = vpop.xlane.xlu1 %1390 }
 0x481   :  { %v1395_v13 = vmul.f32 0.0078125, %v1391_v25  ;;  %v15951_v25 = vld [vmem:[%s27526_s13 + $0x8] sm:$0x7f]  ;;  %s22415_s13 = smov [#allocation14]  }
 0x482   :  { %22119 = vrsqrt.f32 %v1396_v44  ;;  %v27607_v44 = vld [vmem:[#allocation24_spill] sm:$0xff]  ;;  %s15909_s26 = sshll.u32 %s22415_s13, 4  ;;  %s15910_s26 = int_to_ptr.vmem [resolvable:$true] %s15909_s26 }
 0x483   :  { %v1399_v26 = vadd.f32 1e-05, %v1395_v13  ;;  %v23832_v0 = vrot.slane %v15951_v25, %v27607_v44  ;;  %p22374_p1 = scmp.lt.s32.totalorder %s15910_s26, %s15910_s26 }
 0x484   :  { %v1387_v27 = vpop.xlane.xlu0 %1386  ;;  %v1389_v42 = vpop.xlane.xlu1 %1388 }
 0x485   :  { %22121 = vrsqrt.f32 %v1399_v26  ;;  %v1393_v1 = vmul.f32 0.0078125, %v1387_v27  ;;  %v1394_v12 = vmul.f32 0.0078125, %v1389_v42  ;;  %v15950_v26 = vld [vmem:[%s27520_s5 + $0x1] ss:$0 sm:$0xff] }
 0x487   :  { %v1397_v2 = vadd.f32 1e-05, %v1393_v1  ;;  %v1398_v33 = vadd.f32 1e-05, %v1394_v12 }
 0x489   :  { %22123 = vrsqrt.f32 %v1397_v2  ;;  %v27606_v2 = vsub.s32 3, %v22719_v36 }
 0x48a   :  { %22125 = vrsqrt.f32 %v1398_v33 }
 0x48b   :  { %v23826_v33 = vrot.slane %v15951_v25, %v27606_v2  ;;  %v27610_v2 = vsub.s32 4, %v22719_v36 }
 0x48c   :  { %v22120_v19 = vpop.eup %22119 }
 0x48d   :  { %v1404_v13 = vmul.f32 %v22120_v19, %v23526_v52  ;;  %v23836_v52 = vrot.slane %v15951_v25, %v27608_v49  ;;  %v23844_v37 = vrot.slane %v15951_v25, %v27610_v2 }
 0x48f   :  { %v22122_v42 = vpop.eup %22121  ;;  %v1414_v27 = vmul.f32 %v15949_v34, %v1404_v13  ;;  %v23840_v13 = vrot.slane %v15951_v25, %v27609_v58 }
 0x490   :  { %v1407_v12 = vmul.f32 %v22122_v42, %v23531_v9  ;;  %v27611_v9 = vsub.s32 5, %v22719_v36 }
 0x491   :  { %v23829_v1 = vadd.f32 %v15950_v26, %v1414_v27  ;;  %v27612_v27 = vsub.s32 6, %v22719_v36 }
 0x492   :  { %v1417_v19 = vmul.f32 %v15949_v34, %v1407_v12  ;;  %v23848_v42 = vrot.slane %v15951_v25, %v27611_v9 }
 0x493   :  { %v22124_v7 = vpop.eup %22123  ;;  %v23852_v44 = vrot.slane %v15951_v25, %v27612_v27  ;;  %v1434_v58 = vmul.f32 %v23826_v33, %v23829_v1  ;;  %v1438_v11 = vrot.slane %v23829_v1, 5  ;;  %v1462_v54 = vrot.slane %v23829_v1, 6 }
 0x494   :  { %v22126_v49 = vpop.eup %22125  ;;  %v23854_v23 = vadd.f32 %v15950_v26, %v1417_v19  ;;  %v1405_v12 = vmul.f32 %v22124_v7, %v23539_v29  ;;  %v1486_v9 = vrot.slane %v23829_v1, 7  ;;  %v27618_v15 = vrot.slane %v23829_v1, 3 }
 0x495   :  { %v1406_v2 = vmul.f32 %v22126_v49, %v23536_v22  ;;  %v27614_v22 = vld [vmem:[#allocation37_spill] sm:$0xff] }
 0x496   :  { %v1415_v25 = vmul.f32 %v15949_v34, %v1405_v12  ;;  %v27313_v27 = vrot.slane %v23854_v23, 5  ;;  %v27316_v19 = vrot.slane %v23854_v23, 6  ;;  %v27319_v29 = vrot.slane %v23854_v23, 7 }
 0x497   :  { %v1416_v7 = vmul.f32 %v15949_v34, %v1406_v2  ;;  %v27613_v2 = vld [vmem:[#allocation49_spill] sm:$0xff] }
 0x498   :  { %v23870_v49 = vadd.f32 %v15950_v26, %v1415_v25  ;;  %v1445_v12 = vsel %vm264_vm1, %v27313_v27, %v1438_v11  ;;  %v1469_v21 = vsel %vm313_vm2, %v27316_v19, %v1462_v54  ;;  %v1493_v34 = vsel %vm363_vm3, %v27319_v29, %v1486_v9 }
 0x499   :  { %v1446_v57 = vmul.f32 %v1445_v12, %v27613_v2  ;;  %v1470_v25 = vmul.f32 %v1469_v21, %v27614_v22  ;;  %v23888_v43 = vadd.f32 %v15950_v26, %v1416_v7  ;;  %v1494_v12 = vmul.f32 %v1493_v34, %v27615_v51  ;;  %v27619_v34 = vld [vmem:[#allocation50_spill] sm:$0xff] }
 0x49a   :  { %v1511_v27 = vrot.slane %v23870_v49, 1  ;;  %v1535_v14 = vrot.slane %v23870_v49, 2  ;;  %v1559_v19 = vrot.slane %v23870_v49, 3  ;;  %v1439_v21 = vrot.slane %v23870_v49, 5 }
 0x49b   :  { %v1454_v20 = vmul.f32 %v23832_v0, %v1446_v57  ;;  %v1478_v29 = vmul.f32 %v23836_v52, %v1470_v25  ;;  %v27616_v22 = vrot.slane %v23829_v1, 1  ;;  %v27617_v7 = vrot.slane %v23829_v1, 2 }
 0x49c   :  { %v1564_v57 = vsel %vm513_vm6, %v27618_v15, %v1559_v19  ;;  %v1463_v25 = vrot.slane %v23870_v49, 6  ;;  %v1487_v53 = vrot.slane %v23870_v49, 7  ;;  %v1512_v8 = vrot.slane %v23888_v43, 1 }
 0x49d   :  { %v1516_v26 = vsel %vm413_vm4, %v27616_v22, %v1511_v27  ;;  %v1540_v2 = vsel %vm463_vm5, %v27617_v7, %v1535_v14  ;;  %v1458_v51 = vadd.f32 %v1454_v20, %v1434_v58  ;;  %v1566_v40 = vmul.f32 %v1564_v57, %v27621_v17  ;;  %v27622_v58 = vld [vmem:[#allocation34_spill] sm:$0xff] }
 0x49e   :  { %v1518_v59 = vmul.f32 %v1516_v26, %v27619_v34  ;;  %v1542_v48 = vmul.f32 %v1540_v2, %v27620_v61  ;;  %v1444_v22 = vsel %vm264_vm1, %v1438_v11, %v1439_v21  ;;  %v1468_v7 = vsel %vm313_vm2, %v1462_v54, %v1463_v25  ;;  %v27623_v26 = vld [vmem:[#allocation42_spill] sm:$0xff] }
 0x49f   :  { %v1482_v15 = vadd.f32 %v1478_v29, %v1458_v51  ;;  %v1502_v60 = vmul.f32 %v23840_v13, %v1494_v12  ;;  %v1435_v61 = vmul.f32 %v23826_v33, %v23870_v49  ;;  %v1447_v17 = vmul.f32 %v1444_v22, %v27622_v58  ;;  %v27624_v51 = vld [vmem:[#allocation47_spill] sm:$0xff] }
 0x4a0   :  { %v1526_v20 = vmul.f32 %v23844_v37, %v1518_v59  ;;  %v1471_v2 = vmul.f32 %v1468_v7, %v27623_v26  ;;  %v1492_v11 = vsel %vm363_vm3, %v1486_v9, %v1487_v53  ;;  %v1515_v54 = vsel %vm413_vm4, %v1511_v27, %v1512_v8 }
 0x4a1   :  { %v1506_v57 = vadd.f32 %v1502_v60, %v1482_v15  ;;  %v1550_v29 = vmul.f32 %v23848_v42, %v1542_v48  ;;  %v1495_v12 = vmul.f32 %v1492_v11, %v27624_v51  ;;  %v1536_v59 = vrot.slane %v23888_v43, 2 }
 0x4a2   :  { %v1574_v34 = vmul.f32 %v23852_v44, %v1566_v40  ;;  %v1455_v49 = vmul.f32 %v23832_v0, %v1447_v17  ;;  %v1519_v22 = vmul.f32 %v1515_v54, %v23206_v39  ;;  %v1560_v7 = vrot.slane %v23888_v43, 3 }
 0x4a3   :  { %v1530_v58 = vadd.f32 %v1526_v20, %v1506_v57  ;;  %v1479_v9 = vmul.f32 %v23836_v52, %v1471_v2  ;;  %v1539_v60 = vsel %vm463_vm5, %v1535_v14, %v1536_v59  ;;  %v1436_v48 = vmul.f32 %v23826_v33, %v23888_v43 }
 0x4a4   :  { %v1459_v27 = vadd.f32 %v1455_v49, %v1435_v61  ;;  %v1503_v15 = vmul.f32 %v23840_v13, %v1495_v12  ;;  %v1563_v40 = vsel %vm513_vm6, %v1559_v19, %v1560_v7  ;;  %v1440_v17 = vrot.slane %v23888_v43, 5 }
 0x4a5   :  { %v1554_v39 = vadd.f32 %v1550_v29, %v1530_v58  ;;  %v1543_v26 = vmul.f32 %v1539_v60, %v23199_v28  ;;  %v1464_v20 = vrot.slane %v23888_v43, 6  ;;  %v1488_v2 = vrot.slane %v23888_v43, 7 }
 0x4a6   :  { %v1483_v11 = vadd.f32 %v1479_v9, %v1459_v27  ;;  %v1567_v14 = vmul.f32 %v1563_v40, %v23226_v30  ;;  %v1443_v61 = vsel %vm264_vm1, %v1439_v21, %v1440_v17  ;;  %v27625_v54 = vrot.slane %v23854_v23, 1 }
 0x4a7   :  { %v1578_v57 = vadd.f32 %v1574_v34, %v1554_v39  ;;  %v1527_v29 = vmul.f32 %v23844_v37, %v1519_v22  ;;  %v1448_v28 = vmul.f32 %v1443_v61, %v23278_v3  ;;  %v1467_v51 = vsel %vm313_vm2, %v1463_v25, %v1464_v20 }
 0x4a8   :  { %v1514_v19 = vsel %vm413_vm4, %v1512_v8, %v27625_v54  ;;  %v1507_v43 = vadd.f32 %v1503_v15, %v1483_v11  ;;  %v1472_v12 = vmul.f32 %v1467_v51, %v23288_v46  ;;  %v1491_v30 = vsel %vm363_vm3, %v1487_v53, %v1488_v2 }
 0x4a9   :  { %v1520_v21 = vmul.f32 %v1514_v19, %v23315_v18  ;;  %v23963_v49 = vand.u32 4294901760, %v1578_v57  ;;  %v1456_v8 = vmul.f32 %v23832_v0, %v1448_v28  ;;  %v1496_v34 = vmul.f32 %v1491_v30, %v23304_v56  ;;  %v27630_v19 = vld [vmem:[#allocation52_spill] sm:$0xff] }
 0x4aa   :  { %v27626_v22 = vrot.slane %v23854_v23, 2  ;;  %v1531_v25 = vadd.f32 %v1527_v29, %v1507_v43  ;;  %v1551_v58 = vmul.f32 %v23848_v42, %v1543_v26  ;;  %v1575_v46 = vmul.f32 %v23852_v44, %v1567_v14  ;;  %v27631_v29 = vld [vmem:[#allocation54_spill] sm:$0xff] }
 0x4ab   :  { %v23974_v53 = vsub.f32 %v1578_v57, %v23963_v49  ;;  %v1460_v18 = vadd.f32 %v1456_v8, %v1436_v48  ;;  %v1480_v9 = vmul.f32 %v23836_v52, %v1472_v12  ;;  %v27627_v60 = vrot.slane %v23854_v23, 3 }
 0x4ac   :  { %v1538_v3 = vsel %vm463_vm5, %v1536_v59, %v27626_v22  ;;  %v1555_v27 = vadd.f32 %v1551_v58, %v1531_v25  ;;  %v1504_v15 = vmul.f32 %v23840_v13, %v1496_v34  ;;  %v1528_v59 = vmul.f32 %v23844_v37, %v1520_v21 }
 0x4ad   :  { %v1562_v56 = vsel %vm513_vm6, %v1560_v7, %v27627_v60  ;;  %v1544_v40 = vmul.f32 %v1538_v3, %v23342_v38  ;;  %v1690_v39 = vand.u32 4294901760, %v23974_v53  ;;  %v1484_v26 = vadd.f32 %v1480_v9, %v1460_v18 }
 0x4ae   :  { %v27628_v11 = vrot.slane %v23854_v23, 5  ;;  %v27629_v14 = vrot.slane %v23854_v23, 6  ;;  %v1579_v61 = vadd.f32 %v1575_v46, %v1555_v27  ;;  %v1568_v54 = vmul.f32 %v1562_v56, %v23378_v32 }
 0x4af   :  { %v1691_v28 = vsub.f32 %v23974_v53, %v1690_v39  ;;  %v1508_v51 = vadd.f32 %v1504_v15, %v1484_v26  ;;  %v27632_v43 = vrot.slane %v23854_v23, 7  ;;  %v27633_v12 = vrot.slane %v23829_v1, 1 }
 0x4b0   :  { %v1442_v48 = vsel %vm264_vm1, %v1440_v17, %v27628_v11  ;;  %v1466_v7 = vsel %vm313_vm2, %v1464_v20, %v27629_v14  ;;  %v27634_v20 = vrot.slane %v23854_v23, 1  ;;  %v24009_v30 = vand.u32 4294901760, %v1579_v61 }
 0x4b1   :  { %v1449_v57 = vmul.f32 %v1442_v48, %v27630_v19  ;;  %v1473_v38 = vmul.f32 %v1466_v7, %v27631_v29  ;;  %v1490_v17 = vsel %vm363_vm3, %v1488_v2, %v27632_v43  ;;  %v1437_v21 = vmul.f32 %v23826_v33, %v23854_v23 }
 0x4b2   :  { %v1517_v32 = vsel %vm413_vm4, %v27634_v20, %v27633_v12  ;;  %v1497_v34 = vmul.f32 %v1490_v17, %v23296_v55  ;;  %v1692_v22 = vand.u32 4294901760, %v1691_v28  ;;  %v1532_v3 = vadd.f32 %v1528_v59, %v1508_v51  ;;  %v27654_v17 = vld [vmem:[#allocation31_spill] sm:$0xff] }
 0x4b3   :  { %v1457_v8 = vmul.f32 %v23832_v0, %v1449_v57  ;;  %v1552_v2 = vmul.f32 %v23848_v42, %v1544_v40  ;;  %v27635_v25 = vrot.slane %v23829_v1, 2  ;;  %v27636_v58 = vrot.slane %v23854_v23, 2  ;;  %v27637_v0 = vld [vmem:[#allocation56_spill] sm:$0xff] }
 0x4b4   :  { %v24023_v18 = vsub.f32 %v1579_v61, %v24009_v30  ;;  %v1481_v33 = vmul.f32 %v23836_v52, %v1473_v38  ;;  %v1521_v60 = vmul.f32 %v1517_v32, %v27637_v0  ;;  %17590 = vmatprep.mubr.f32.mxu1 %v1692_v22  ;;  %v1576_v56 = vmul.f32 %v23852_v44, %v1568_v54  ;;  %v27656_v32 = vld [vmem:[#allocation45_spill] sm:$0xff] }
 0x4b5   :  { %v1541_v46 = vsel %vm463_vm5, %v27636_v58, %v27635_v25  ;;  %v1461_v9 = vadd.f32 %v1457_v8, %v1437_v21  ;;  %v1556_v55 = vadd.f32 %v1552_v2, %v1532_v3  ;;  %v27638_v27 = vrot.slane %v23829_v1, 3  ;;  %v27658_v8 = vld [vmem:[#allocation32_spill] sm:$0xff]  ;;  %v27660_v3 = vld [vmem:[#allocation46_spill] sm:$0xff]  ;;  %v27662_v25 = vld [vmem:[#allocation33_spill] sm:$0xff] }
 0x4b6   :  { %v27639_v15 = vrot.slane %v23854_v23, 3  ;;  %v1700_v40 = vand.u32 4294901760, %v24023_v18  ;;  %v1505_v11 = vmul.f32 %v23840_v13, %v1497_v34  ;;  %v1545_v52 = vmul.f32 %v1541_v46, %v23348_v35 }
 0x4b7   :  { %v1485_v26 = vadd.f32 %v1481_v33, %v1461_v9  ;;  %v1580_v48 = vadd.f32 %v1576_v56, %v1556_v55  ;;  %v1529_v1 = vmul.f32 %v23844_v37, %v1521_v60  ;;  %v27655_v12 = vand.u32 4294901760, %v27654_v17  ;;  %v27664_v9 = vld [vmem:[#allocation48_spill] sm:$0xff]  ;;  %v27668_v55 = vld [vmem:[#allocation22_spill] sm:$0xff] }
 0x4b8   :  { %v1565_v59 = vsel %vm513_vm6, %v27639_v15, %v27638_v27  ;;  %v1701_v14 = vsub.f32 %v24023_v18, %v1700_v40  ;;  %v1553_v19 = vmul.f32 %v23848_v42, %v1545_v52  ;;  %v27657_v21 = vand.u32 4294901760, %v27656_v32  ;;  %v27666_v33 = vld [vmem:[#allocation20_spill] sm:$0xff]  ;;  %v27670_v27 = vld [vmem:[#allocation23_spill] sm:$0xff] }
 0x4b9   :  { %v1509_v7 = vadd.f32 %v1505_v11, %v1485_v26  ;;  %v1569_v23 = vmul.f32 %v1565_v59, %v23386_v10  ;;  %v24042_v61 = vand.u32 4294901760, %v1580_v48  ;;  %v27659_v34 = vand.u32 4294901760, %v27658_v8  ;;  %v27674_v11 = vld [vmem:[#allocation57_spill] sm:$0xff] }
 0x4ba   :  { %v1702_v36 = vand.u32 4294901760, %v1701_v14  ;;  %v27661_v2 = vand.u32 4294901760, %v27660_v3  ;;  %v27663_v58 = vand.u32 4294901760, %v27662_v25  ;;  %v27667_v0 = vand.u32 4294901760, %v27666_v33  ;;  %v27676_v14 = vld [vmem:[#allocation58_spill] sm:$0xff] }
 0x4bb   :  { %v1533_v54 = vadd.f32 %v1529_v1, %v1509_v7  ;;  %v24046_v13 = vsub.f32 %v1580_v48, %v24042_v61  ;;  %v1577_v57 = vmul.f32 %v23852_v44, %v1569_v23  ;;  %v20150_v22 = vpack.c.bf16 %v27659_v34, %v27657_v21  ;;  %v27678_v1 = vld [vmem:[#allocation59_spill] sm:$0xff] }
 0x4bc   :  { %17591 = vmatmul.mubr.f32.vlgmr.msra.gmra.mrb[4].mxu1 %v1702_v36  ;;  %v20154_v46 = vpack.c.bf16 %v27663_v58, %v27661_v2  ;;  %v27669_v56 = vand.u32 4294901760, %v27668_v55  ;;  %v27671_v15 = vand.u32 4294901760, %v27670_v27  ;;  %v27675_v52 = vand.u32 4294901760, %v27674_v11  ;;  %v24220_v58 = vld [vmem:[#allocation7] sm:$0xff] }
 0x4bd   :  { %v1557_v35 = vadd.f32 %v1553_v19, %v1533_v54  ;;  %20053 = vmatpush3.bf16.msra.mxu1 %v23666_v50  ;;  %v1710_v29 = vand.u32 4294901760, %v24046_v13  ;;  %v27677_v7 = vand.u32 4294901760, %v27676_v14  ;;  %v27679_v23 = vand.u32 4294901760, %v27678_v1  ;;  %v27680_v54 = vld [vmem:[#allocation60_spill] sm:$0xff] }
 0x4be   :  { %20055 = vmatprep.subr.bf16.mxu1 %v23681_v5  ;;  %v20162_v59 = vpack.c.bf16 %v27671_v15, %v27669_v56  ;;  %v27681_v19 = vand.u32 4294901760, %v27680_v54  ;;  %v24244_v15 = vld [vmem:[#allocation7 + $0x10] sm:$0xff]  ;;  %v24276_v54 = vld [vmem:[#allocation8 + $0x20] sm:$0xff] }
 0x4bf   :  { %v1581_v10 = vadd.f32 %v1577_v57, %v1557_v35  ;;  %v1711_v37 = vsub.f32 %v24046_v13, %v1710_v29  ;;  %v20170_v36 = vpack.c.bf16 %v27679_v23, %v27677_v7  ;;  %v24272_v23 = vld [vmem:[#allocation7 + $0x20] sm:$0xff] }
 0x4c1   :  { %v24055_v38 = vand.u32 4294901760, %v1581_v10  ;;  %v1712_v42 = vand.u32 4294901760, %v1711_v37  ;;  %20057 = vmatpush3.bf16.msra.mxu1 %v23681_v5  ;;  %v27640_v5 = vld [vmem:[#allocation62_spill] sm:$0xff] }
 0x4c2   :  { %20059 = vmatprep.subr.bf16.mxu1 %v23734_v63 }
 0x4c3   :  { %v24059_v28 = vsub.f32 %v1581_v10, %v24055_v38  ;;  %17593 = vmatprep.mubr.f32.mxu1 %v1712_v42 }
 0x4c5   :  { %v1720_v50 = vand.u32 4294901760, %v24059_v28  ;;  %20061 = vmatpush3.bf16.msra.mxu1 %v23734_v63  ;;  %v27641_v63 = vld [vmem:[#allocation63_spill] sm:$0xff] }
 0x4c6   :  { %20063 = vmatprep.subr.bf16.mxu1 %v23736_v47 }
 0x4c7   :  { %v1721_v44 = vsub.f32 %v24059_v28, %v1720_v50 }
 0x4c9   :  { %v1722_v51 = vand.u32 4294901760, %v1721_v44  ;;  %20065 = vmatpush3.bf16.msra.mxu1 %v23736_v47  ;;  %v27642_v47 = vld [vmem:[#allocation64_spill] sm:$0xff] }
 0x4ca   :  { %20067 = vmatprep.subr.bf16.mxu1 %v23748_v16 }
 0x4cb   :  { %17594 = vmatmul.mubr.f32.gmra.mrb[6].mxu1 %v1722_v51  ;;  %v27684_v51 = vld [vmem:[#allocation35_spill] sm:$0xff] }
 0x4cc   :  { %17628 = vmatprep.mubr.f32.mxu1 %v23963_v49 }
 0x4cd   :  { %20069 = vmatpush3.bf16.msra.mxu1 %v23748_v16  ;;  %v27643_v16 = vld [vmem:[#allocation65_spill] sm:$0xff] }
 0x4ce   :  { %20071 = vmatprep.subr.bf16.mxu1 %v23762_v24 }
 0x4d1   :  { %20073 = vmatpush3.bf16.msra.mxu1 %v23762_v24  ;;  %v27645_v24 = vld [vmem:[#allocation36_spill] sm:$0xff] }
 0x4d2   :  { %20075 = vmatprep.subr.bf16.mxu1 %v23778_v31 }
 0x4d5   :  { %20077 = vmatpush3.bf16.msra.mxu1 %v23778_v31  ;;  %v27646_v31 = vld [vmem:[#allocation28_spill] sm:$0xff] }
 0x4d6   :  { %20079 = vmatprep.subr.bf16.mxu1 %v23784_v45 }
 0x4d9   :  { %20081 = vmatpush3.bf16.msra.mxu1 %v23784_v45  ;;  %v27644_v45 = vld [vmem:[#allocation27_spill] sm:$0xff] }
 0x4da   :  { %20083 = vmatprep.subr.bf16.mxu1 %v23782_v41 }
 0x4dc   :  { %17629 = vmatmul.mubr.f32.vlgmr.msra.gmra.mrb[4].mxu1 %v24009_v30 }
 0x4dd   :  { %17631 = vmatprep.mubr.f32.mxu1 %v24042_v61  ;;  %20085 = vmatpush3.bf16.msra.mxu1 %v23782_v41  ;;  %v27647_v41 = vld [vmem:[#allocation55_spill] sm:$0xff] }
 0x4de   :  { %20087 = vmatprep.subr.bf16.mxu1 %v23788_v4 }
 0x4e0   :  { %17632 = vmatmul.mubr.f32.gmra.mrb[6].mxu1 %v24055_v38 }
 0x4e1   :  { %20089 = vmatpush3.bf16.msra.mxu1 %v23788_v4  ;;  %17666 = vmatprep.mubr.f32.mxu1 %v23974_v53  ;;  %v27648_v4 = vld [vmem:[#allocation38_spill] sm:$0xff] }
 0x4e2   :  { %20091 = vmatprep.subr.bf16.mxu1 %v23792_v62  ;;  %v27651_v53 = vld [vmem:[#allocation30_spill] sm:$0xff] }
 0x4e5   :  { %20093 = vmatpush3.bf16.msra.mxu1 %v23792_v62  ;;  %v27649_v62 = vld [vmem:[#allocation29_spill] sm:$0xff] }
 0x4e6   :  { %20095 = vmatprep.subr.bf16.mxu1 %v23796_v6 }
 0x4e9   :  { %20097 = vmatpush3.bf16.msra.mxu1 %v23796_v6  ;;  %v27650_v6 = vld [vmem:[#allocation40_spill] sm:$0xff] }
 0x4ea   :  { %20099 = vmatprep.subr.bf16.mxu1 %v27640_v5 }
 0x4ed   :  { %20101 = vmatpush3.bf16.msra.mxu1 %v27640_v5 }
 0x4ee   :  { %20103 = vmatprep.subr.bf16.mxu1 %v27641_v63 }
 0x4f1   :  { %20105 = vmatpush3.bf16.msra.mxu1 %v27641_v63 }
 0x4f2   :  { %20107 = vmatprep.subr.bf16.mxu1 %v27642_v47 }
 0x4f5   :  { %20109 = vmatpush3.bf16.msra.mxu1 %v27642_v47  ;;  %v27686_v47 = vld [vmem:[#allocation39_spill] sm:$0xff] }
 0x4f6   :  { %20111 = vmatprep.subr.bf16.mxu1 %v27643_v16 }
 0x4f9   :  { %20113 = vmatpush3.bf16.msra.mxu1 %v27643_v16 }
 0x4fa   :  { %20115 = vmatprep.subr.bf16.mxu1 %v27644_v45 }
 0x4fc   :  { %17667 = vmatmul.mubr.f32.vlgmr.msra.gmra.mrb[4].mxu1 %v24023_v18  ;;  %v27665_v18 = vand.u32 4294901760, %v27664_v9  ;;  %v24224_v9 = vld [vmem:[#allocation8] sm:$0xff] }
 0x4fd   :  { %17669 = vmatprep.mubr.f32.mxu1 %v24046_v13  ;;  %20117 = vmatpush3.bf16.msra.mxu1 %v27644_v45  ;;  %v27682_v13 = vld [vmem:[#allocation61_spill] sm:$0xff] }
 0x4fe   :  { %20119 = vmatprep.subr.bf16.mxu1 %v27645_v24  ;;  %v20158_v60 = vpack.c.bf16 %v27667_v0, %v27665_v18  ;;  %v27683_v35 = vand.u32 4294901760, %v27682_v13  ;;  %v2475_v18 = vand.u32 4294901760, %v24220_v58  ;;  %v24228_v0 = vld [vmem:[#allocation8 + $0x8] sm:$0xff] }
 0x4ff   :  { %v27350_v55 = vand.u32 4294901760, %v24228_v0 }
 0x500   :  { %17670 = vmatmul.mubr.f32.gmra.mrb[6].mxu1 %v24059_v28  ;;  %v20174_v57 = vpack.c.bf16 %v27683_v35, %v27681_v19  ;;  %v27341_v19 = vand.u32 4294901760, %v24272_v23  ;;  %v24281_v35 = vld [vmem:[#allocation8 + $0x28] sm:$0xff] }
 0x501   :  { %20121 = vmatpush3.bf16.msra.mxu1 %v27645_v24  ;;  %17704 = vmatprep.mubr.f32.mxu1 %v1690_v39  ;;  %v27652_v39 = vld [vmem:[#allocation43_spill] sm:$0xff] }
 0x502   :  { %20123 = vmatprep.subr.bf16.mxu1 %v27646_v31  ;;  %v27653_v43 = vand.u32 4294901760, %v27652_v39 }
 0x504   :  { %v20146_v20 = vpack.c.bf16 %v27655_v12, %v27653_v43 }
 0x505   :  { %20125 = vmatpush3.bf16.msra.mxu1 %v27646_v31 }
 0x506   :  { %20127 = vmatprep.subr.bf16.mxu1 %v27647_v41 }
 0x509   :  { %20129 = vmatpush3.bf16.msra.mxu1 %v27647_v41 }
 0x50a   :  { %20131 = vmatprep.subr.bf16.mxu1 %v27648_v4 }
 0x50d   :  { %20133 = vmatpush3.bf16.msra.mxu1 %v27648_v4 }
 0x50e   :  { %20135 = vmatprep.subr.bf16.mxu1 %v27649_v62 }
 0x511   :  { %20137 = vmatpush3.bf16.msra.mxu1 %v27649_v62 }
 0x512   :  { %20139 = vmatprep.subr.bf16.mxu1 %v27650_v6 }
 0x515   :  { %20141 = vmatpush3.bf16.msra.mxu1 %v27650_v6 }
 0x516   :  { %20143 = vmatprep.subr.bf16.mxu1 %v27651_v53 }
 0x519   :  { %20145 = vmatpush3.bf16.msra.mxu1 %v27651_v53 }
 0x51a   :  { %20147 = vmatprep.subr.bf16.mxu1 %v20146_v20 }
 0x51c   :  { %17705 = vmatmul.mubr.f32.vlgmr.msra.gmra.mrb[4].mxu1 %v1700_v40  ;;  %v27672_v40 = vld [vmem:[#allocation21_spill] sm:$0xff] }
 0x51d   :  { %17707 = vmatprep.mubr.f32.mxu1 %v1710_v29  ;;  %20149 = vmatpush3.bf16.msra.mxu1 %v20146_v20  ;;  %v27673_v26 = vand.u32 4294901760, %v27672_v40  ;;  %v24248_v40 = vld [vmem:[#allocation8 + $0x10] sm:$0xff] }
 0x51e   :  { %20151 = vmatprep.subr.bf16.mxu1 %v20150_v22 }
 0x51f   :  { %v20166_v48 = vpack.c.bf16 %v27675_v52, %v27673_v26  ;;  %v27345_v26 = vand.u32 4294901760, %v24244_v15  ;;  %v24253_v52 = vld [vmem:[#allocation8 + $0x18] sm:$0xff] }
 0x520   :  { %17708 = vmatmul.mubr.f32.gmra.mrb[6].mxu1 %v1720_v50  ;;  %v27342_v14 = vand.u32 4294901760, %v24253_v52 }
 0x521   :  { %20153 = vmatpush3.bf16.msra.mxu1 %v20150_v22  ;;  %17742 = vmatprep.mubr.f32.mxu1 %v23963_v49 }
 0x522   :  { %20155 = vmatprep.subr.bf16.mxu1 %v20154_v46 }
 0x525   :  { %20157 = vmatpush3.bf16.msra.mxu1 %v20154_v46  ;;  %v24222_v46 = vld [vmem:[#allocation7 + $0x8] sm:$0xff] }
 0x526   :  { %20159 = vmatprep.subr.bf16.mxu1 %v20158_v60  ;;  %v27352_v33 = vand.u32 4294901760, %v24222_v46 }
 0x528   :  { %v24236_v56 = vpack.c.bf16 %v27352_v33, %v2475_v18 }
 0x529   :  { %20161 = vmatpush3.bf16.msra.mxu1 %v20158_v60  ;;  %v27351_v60 = vand.u32 4294901760, %v24224_v9 }
 0x52a   :  { %20163 = vmatprep.subr.bf16.mxu1 %v20162_v59  ;;  %27692 = vst [vmem:[#allocation51_spill] sm:$0xff] %v24236_v56  ;;  %20211 = vmatprep.subr.bf16.mxu0 %v24236_v56 }
 0x52b   :  { %v24242_v27 = vpack.c.bf16 %v27350_v55, %v27351_v60  ;;  %20213 = vmatpush3.bf16.msra.mxu0 %v24236_v56 }
 0x52d   :  { %20165 = vmatpush3.bf16.msra.mxu1 %v20162_v59  ;;  %27693 = vst [vmem:[#allocation53_spill] sm:$0xff] %v24242_v27  ;;  %v24246_v59 = vld [vmem:[#allocation7 + $0x18] sm:$0xff] }
 0x52e   :  { %20167 = vmatprep.subr.bf16.mxu1 %v20166_v48  ;;  %v27344_v11 = vand.u32 4294901760, %v24246_v59 }
 0x530   :  { %v24264_v7 = vpack.c.bf16 %v27344_v11, %v27345_v26  ;;  %v24386_v11 = vld [vmem:[#allocation8 + $0x70] sm:$0xff]  ;;  %v24388_v26 = vld [vmem:[#allocation8 + $0x78] sm:$0xff] }
 0x531   :  { %20169 = vmatpush3.bf16.msra.mxu1 %v20166_v48  ;;  %v27343_v48 = vand.u32 4294901760, %v24248_v40  ;;  %v27362_v60 = vand.u32 4294901760, %v24386_v11 }
 0x532   :  { %20171 = vmatprep.subr.bf16.mxu1 %v20170_v36  ;;  %27694 = vst [vmem:[#allocation34_spill] sm:$0xff] %v24264_v7  ;;  %20215 = vmatprep.subr.bf16.mxu0 %v24264_v7 }
 0x533   :  { %v24270_v1 = vpack.c.bf16 %v27342_v14, %v27343_v48  ;;  %20217 = vmatpush3.bf16.msra.mxu0 %v24264_v7  ;;  %v24384_v48 = vld [vmem:[#allocation7 + $0x78] sm:$0xff] }
 0x535   :  { %20173 = vmatpush3.bf16.msra.mxu1 %v20170_v36  ;;  %27695 = vst [vmem:[#allocation42_spill] sm:$0xff] %v24270_v1  ;;  %v24274_v36 = vld [vmem:[#allocation7 + $0x28] sm:$0xff] }
 0x536   :  { %20175 = vmatprep.subr.bf16.mxu1 %v20174_v57  ;;  %v27338_v13 = vand.u32 4294901760, %v24274_v36 }
 0x539   :  { %20177 = vmatpush3.bf16.msra.mxu1 %v20174_v57  ;;  %v27337_v57 = vand.u32 4294901760, %v24276_v54 }
 0x53a   :  { %20179 = vmatprep.subr.bf16.mxu1 %v27644_v45 }
 0x53c   :  { %17743 = vmatmul.mubr.f32.vlgmr.msra.gmra.mrb[4].mxu1 %v24009_v30 }
 0x53d   :  { %17745 = vmatprep.mubr.f32.mxu1 %v24042_v61  ;;  %20181 = vmatpush3.bf16.msra.mxu1 %v27644_v45 }
 0x53e   :  { %20183 = vmatprep.subr.bf16.mxu1 %v27645_v24 }
 0x540   :  { %17746 = vmatmul.mubr.f32.gmra.mrb[6].mxu1 %v24055_v38 }
 0x541   :  { %20185 = vmatpush3.bf16.msra.mxu1 %v27645_v24  ;;  %17780 = vmatprep.mubr.f32.mxu1 %v23963_v49  ;;  %v15969_v49 = vld [vmem:[%s27181_s8 + $0x1] ss:$0 sm:$0xff]  ;;  %v27688_v24 = vld [vmem:[#allocation41_spill] sm:$0xff] }
 0x542   :  { %20187 = vmatprep.subr.bf16.mxu1 %v27646_v31 }
 0x545   :  { %20189 = vmatpush3.bf16.msra.mxu1 %v27646_v31 }
 0x546   :  { %20191 = vmatprep.subr.bf16.mxu1 %v27647_v41 }
 0x549   :  { %20193 = vmatpush3.bf16.msra.mxu1 %v27647_v41  ;;  %v27690_v41 = vld [vmem:[#allocation26_spill] sm:$0xff] }
 0x54a   :  { %20195 = vmatprep.subr.bf16.mxu1 %v27648_v4 }
 0x54d   :  { %20197 = vmatpush3.bf16.msra.mxu1 %v27648_v4 }
 0x54e   :  { %20199 = vmatprep.subr.bf16.mxu1 %v27649_v62 }
 0x551   :  { %20201 = vmatpush3.bf16.msra.mxu1 %v27649_v62 }
 0x552   :  { %20203 = vmatprep.subr.bf16.mxu1 %v27650_v6 }
 0x555   :  { %20205 = vmatpush3.bf16.msra.mxu1 %v27650_v6 }
 0x556   :  { %20207 = vmatprep.subr.bf16.mxu1 %v27651_v53 }
 0x559   :  { %20209 = vmatpush3.bf16.msra.mxu1 %v27651_v53 }
 0x55a   :  { %20403 = vmatprep.subr.bf16.mxu1 %v24242_v27 }
 0x55c   :  { %17781 = vmatmul.mubr.f32.vlgmr.msra.gmra.mrb[4].mxu1 %v24009_v30 }
 0x55d   :  { %17783 = vmatprep.mubr.f32.mxu1 %v24042_v61  ;;  %20405 = vmatpush3.bf16.msra.mxu1 %v24242_v27 }
 0x55e   :  { %20407 = vmatprep.subr.bf16.mxu1 %v24270_v1 }
 0x560   :  { %17784 = vmatmul.mubr.f32.gmra.mrb[6].mxu1 %v24055_v38 }
 0x561   :  { %20409 = vmatpush3.bf16.msra.mxu1 %v24270_v1 }
 0x62f   :  { %v17782_v29 = vpop.f32.mrb[4].mxu1 }
 0x630   :  { %v21754_v10 = vadd.f32 %v17782_v29, %v15969_v49  ;;  %v2355_v37 = vpop.f32.mrb[5].mxu1  ;;  %v24286_v29 = vld [vmem:[#allocation7 + $0x38] sm:$0xff] }
 0x631   :  { %v21755_v42 = vadd.f32 %v15969_v49, %v2355_v37 }
 0x632   :  { %v2378_v28 = vmax.f32 %v21754_v10, 0.0  ;;  %v27336_v10 = vand.u32 4294901760, %v24281_v35 }
 0x633   :  { %v2377_v50 = vmax.f32 %v21755_v42, 0.0  ;;  %v17785_v44 = vpop.f32.mrb[6].mxu1  ;;  %v27334_v42 = vand.u32 4294901760, %v24286_v29 }
 0x634   :  { %v24185_v5 = vadd.f32 %v2378_v28, %v27684_v51  ;;  %v21756_v63 = vadd.f32 %v17785_v44, %v15969_v49  ;;  %v2367_v30 = vpop.f32.mrb[7].mxu1  ;;  %v24293_v28 = vld [vmem:[#allocation8 + $0x30] sm:$0xff]  ;;  %v24297_v44 = vld [vmem:[#allocation7 + $0x40] sm:$0xff]  ;;  %v24304_v51 = vpack.c.bf16 %v27338_v13, %v27341_v19 }
 0x635   :  { %v24188_v61 = vadd.f32 %v2377_v50, %v27686_v47  ;;  %v21757_v38 = vadd.f32 %v15969_v49, %v2367_v30  ;;  %v24284_v49 = vld [vmem:[#allocation7 + $0x30] sm:$0xff]  ;;  %v24295_v50 = vld [vmem:[#allocation8 + $0x38] sm:$0xff]  ;;  %v24308_v47 = vld [vmem:[#allocation7 + $0x48] sm:$0xff] }
 0x636   :  { %27685 = vst [vmem:[#allocation49_spill] sm:$0xff] %v24185_v5  ;;  %v2380_v16 = vmax.f32 %v21756_v63, 0.0  ;;  %2389 = vadd.xlane.f32.xlu1 %v24185_v5  ;;  %v27335_v37 = vand.u32 4294901760, %v24284_v49  ;;  %27696 = vst [vmem:[#allocation47_spill] sm:$0xff] %v24304_v51  ;;  %v27333_v63 = vand.u32 4294901760, %v24293_v28  ;;  %v27332_v30 = vand.u32 4294901760, %v24295_v50  ;;  %20219 = vmatprep.subr.bf16.mxu0 %v24304_v51 }
 0x637   :  { %27687 = vst [vmem:[#allocation37_spill] sm:$0xff] %v24188_v61  ;;  %v2379_v45 = vmax.f32 %v21757_v38, 0.0  ;;  %2387 = vadd.xlane.f32.xlu0 %v24188_v61  ;;  %v27340_v38 = vand.u32 4294901760, %v24297_v44  ;;  %20221 = vmatpush3.bf16.msra.mxu0 %v24304_v51  ;;  %v24366_v13 = vld [vmem:[#allocation7 + $0x70] sm:$0xff]  ;;  %v27726_v51 = vand.u32 4294901760, %v24274_v36 }
 0x638   :  { %v24193_v31 = vadd.f32 %v2380_v16, %v27688_v24  ;;  %v24311_v16 = vld [vmem:[#allocation8 + $0x40] sm:$0xff]  ;;  %v24319_v24 = vpack.c.bf16 %v27336_v10, %v27337_v57  ;;  %v24364_v57 = vld [vmem:[#allocation8 + $0x68] sm:$0xff] }
 0x639   :  { %v24196_v4 = vadd.f32 %v2379_v45, %v27690_v41  ;;  %v24313_v45 = vld [vmem:[#allocation8 + $0x48] sm:$0xff]  ;;  %v24325_v41 = vpack.c.bf16 %v27334_v42, %v27335_v37  ;;  %v24362_v10 = vld [vmem:[#allocation8 + $0x60] sm:$0xff] }
 0x63a   :  { %27689 = vst [vmem:[#allocation44_spill] sm:$0xff] %v24193_v31  ;;  %2393 = vadd.xlane.f32.xlu1 %v24193_v31  ;;  %27697 = vst [vmem:[#allocation52_spill] sm:$0xff] %v24319_v24  ;;  %20411 = vmatprep.subr.bf16.mxu1 %v24319_v24  ;;  %v27360_v14 = vand.u32 4294901760, %v24362_v10 }
 0x63b   :  { %27691 = vst [vmem:[#allocation50_spill] sm:$0xff] %v24196_v4  ;;  %2391 = vadd.xlane.f32.xlu0 %v24196_v4  ;;  %27698 = vst [vmem:[#allocation54_spill] sm:$0xff] %v24325_v41  ;;  %20413 = vmatpush3.bf16.msra.mxu1 %v24319_v24 }
 0x63c   :  { %20223 = vmatprep.subr.bf16.mxu0 %v24325_v41 }
 0x63d   :  { %20225 = vmatpush3.bf16.msra.mxu0 %v24325_v41  ;;  %v27725_v41 = vand.u32 4294901760, %v24272_v23 }
 0x63f   :  { %v24509_v24 = vsub.f32 %v24272_v23, %v27725_v41  ;;  %v27727_v41 = vand.u32 4294901760, %v24276_v54 }
 0x641   :  { %v27380_v23 = vand.u32 4294901760, %v24509_v24 }
 0x6c3   :  { %v2390_v62 = vpop.xlane.xlu1 %2389 }
 0x6c4   :  { %v2396_v6 = vmul.f32 0.0078125, %v2390_v62  ;;  %v2388_v53 = vpop.xlane.xlu0 %2387  ;;  %v27339_v62 = vand.u32 4294901760, %v24308_v47 }
 0x6c5   :  { %v2395_v39 = vmul.f32 0.0078125, %v2388_v53  ;;  %v24329_v53 = vld [vmem:[#allocation7 + $0x50] sm:$0xff] }
 0x6c6   :  { %v24201_v43 = vsub.f32 %v24185_v5, %v2396_v6  ;;  %v27349_v6 = vand.u32 4294901760, %v24311_v16 }
 0x6c7   :  { %v2394_v17 = vpop.xlane.xlu1 %2393  ;;  %v24204_v12 = vsub.f32 %v24188_v61, %v2395_v39  ;;  %v24331_v39 = vld [vmem:[#allocation7 + $0x58] sm:$0xff] }
 0x6c8   :  { %v2398_v20 = vmul.f32 0.0078125, %v2394_v17  ;;  %v2392_v32 = vpop.xlane.xlu0 %2391  ;;  %v2404_v21 = vmul.f32 %v24201_v43, %v24201_v43  ;;  %v24333_v17 = vld [vmem:[#allocation8 + $0x50] sm:$0xff] }
 0x6c9   :  { %v2397_v8 = vmul.f32 0.0078125, %v2392_v32  ;;  %v2403_v34 = vmul.f32 %v24204_v12, %v24204_v12  ;;  %v27346_v32 = vand.u32 4294901760, %v24313_v45 }
 0x6ca   :  { %2409 = vadd.xlane.f32.xlu1 %v2404_v21  ;;  %v24211_v22 = vsub.f32 %v24193_v31, %v2398_v20  ;;  %v24340_v20 = vpack.c.bf16 %v27332_v30, %v27333_v63  ;;  %v27348_v21 = vand.u32 4294901760, %v24329_v53  ;;  %v24357_v30 = vpack.c.bf16 %v27339_v62, %v27340_v38 }
 0x6cb   :  { %2407 = vadd.xlane.f32.xlu0 %v2403_v34  ;;  %v24214_v3 = vsub.f32 %v24196_v4, %v2397_v8  ;;  %v27347_v8 = vand.u32 4294901760, %v24331_v39  ;;  %v24345_v34 = vld [vmem:[#allocation8 + $0x58] sm:$0xff]  ;;  %v27354_v63 = vand.u32 4294901760, %v24333_v17  ;;  %v24374_v62 = vpack.c.bf16 %v27346_v32, %v27349_v6 }
 0x6cc   :  { %v2406_v2 = vmul.f32 %v24211_v22, %v24211_v22  ;;  %27699 = vst [vmem:[#allocation56_spill] sm:$0xff] %v24340_v20  ;;  %27700 = vst [vmem:[#allocation62_spill] sm:$0xff] %v24357_v30  ;;  %v27353_v42 = vand.u32 4294901760, %v24345_v34  ;;  %20415 = vmatprep.subr.bf16.mxu1 %v24340_v20  ;;  %v27358_v6 = vand.u32 4294901760, %v24384_v48  ;;  %20227 = vmatprep.subr.bf16.mxu0 %v24357_v30  ;;  %v27718_v4 = vand.u32 4294901760, %v24253_v52 }
 0x6cd   :  { %v2405_v25 = vmul.f32 %v24214_v3, %v24214_v3  ;;  %27701 = vst [vmem:[#allocation63_spill] sm:$0xff] %v24374_v62  ;;  %v24380_v38 = vpack.c.bf16 %v27347_v8, %v27348_v21  ;;  %v27357_v8 = vand.u32 4294901760, %v24364_v57  ;;  %v27359_v21 = vand.u32 4294901760, %v24366_v13  ;;  %20417 = vmatpush3.bf16.msra.mxu1 %v24340_v20  ;;  %20229 = vmatpush3.bf16.msra.mxu0 %v24357_v30 }
 0x6ce   :  { %2413 = vadd.xlane.f32.xlu1 %v2406_v2  ;;  %v24347_v2 = vld [vmem:[#allocation7 + $0x60] sm:$0xff]  ;;  %v24395_v32 = vpack.c.bf16 %v27353_v42, %v27354_v63  ;;  %v24411_v42 = vsub.f32 %v24220_v58, %v2475_v18  ;;  %v27709_v58 = vand.u32 4294901760, %v24224_v9  ;;  %20419 = vmatprep.subr.bf16.mxu1 %v24374_v62  ;;  %v24476_v31 = vsub.f32 %v24253_v52, %v27718_v4 }
 0x6cf   :  { %2411 = vadd.xlane.f32.xlu0 %v2405_v25  ;;  %v24349_v25 = vld [vmem:[#allocation7 + $0x68] sm:$0xff]  ;;  %v27356_v37 = vand.u32 4294901760, %v24347_v2  ;;  %27702 = vst [vmem:[#allocation64_spill] sm:$0xff] %v24380_v38  ;;  %v24418_v63 = vpack.c.bf16 %v27357_v8, %v27360_v14  ;;  %v27710_v8 = vand.u32 4294901760, %v24388_v26  ;;  %20231 = vmatprep.subr.bf16.mxu0 %v24380_v38 }
 0x6d0   :  { %v27355_v19 = vand.u32 4294901760, %v24349_v25  ;;  %27703 = vst [vmem:[#allocation65_spill] sm:$0xff] %v24395_v32  ;;  %v24434_v18 = vsub.f32 %v24224_v9, %v27709_v58  ;;  %v27713_v9 = vand.u32 4294901760, %v24244_v15  ;;  %v27381_v5 = vand.u32 4294901760, %v24476_v31 }
 0x6d1   :  { %27705 = vst [vmem:[#allocation36_spill] sm:$0xff] %v24418_v63  ;;  %20421 = vmatpush3.bf16.msra.mxu1 %v24374_v62  ;;  %20233 = vmatpush3.bf16.msra.mxu0 %v24380_v38 }
 0x6d2   :  { %v24404_v55 = vpack.c.bf16 %v27355_v19, %v27356_v37  ;;  %v24424_v19 = vpack.c.bf16 %v27358_v6, %v27359_v21  ;;  %v27707_v37 = vand.u32 4294901760, %v24222_v46  ;;  %v24442_v6 = vpack.c.bf16 %v27710_v8, %v27362_v60  ;;  %20423 = vmatprep.subr.bf16.mxu1 %v24395_v32 }
 0x6d3   :  { %v24453_v58 = vsub.f32 %v24244_v15, %v27713_v9  ;;  %v27714_v8 = vand.u32 4294901760, %v24246_v59  ;;  %v27716_v21 = vand.u32 4294901760, %v24248_v40 }
 0x6d4   :  { %27704 = vst [vmem:[#allocation27_spill] sm:$0xff] %v24404_v55  ;;  %27706 = vst [vmem:[#allocation28_spill] sm:$0xff] %v24424_v19  ;;  %v24429_v33 = vsub.f32 %v24222_v46, %v27707_v37  ;;  %v27712_v46 = vand.u32 4294901760, %v24228_v0  ;;  %20235 = vmatprep.subr.bf16.mxu0 %v24404_v55 }
 0x6d5   :  { %27711 = vst [vmem:[#allocation38_spill] sm:$0xff] %v24442_v6  ;;  %v24461_v60 = vsub.f32 %v24246_v59, %v27714_v8  ;;  %v27722_v61 = vand.u32 4294901760, %v24453_v58  ;;  %20425 = vmatpush3.bf16.msra.mxu1 %v24395_v32  ;;  %20237 = vmatpush3.bf16.msra.mxu0 %v24404_v55 }
 0x6d6   :  { %27708 = vst [vmem:[#allocation55_spill] sm:$0xff] %v24429_v33  ;;  %v24448_v37 = vsub.f32 %v24228_v0, %v27712_v46  ;;  %v24466_v0 = vsub.f32 %v24248_v40, %v27716_v21  ;;  %v27717_v46 = vand.u32 4294901760, %v24411_v42  ;;  %v27719_v59 = vand.u32 4294901760, %v24429_v33  ;;  %20427 = vmatprep.subr.bf16.mxu1 %v24418_v63  ;;  %20239 = vmatprep.subr.bf16.mxu0 %v24424_v19 }
 0x6d7   :  { %27715 = vst [vmem:[#allocation29_spill] sm:$0xff] %v24461_v60  ;;  %v27720_v21 = vand.u32 4294901760, %v24434_v18  ;;  %v27723_v9 = vand.u32 4294901760, %v24461_v60 }
 0x6d8   :  { %v2599_v15 = vsub.f32 %v24411_v42, %v27717_v46  ;;  %v2606_v40 = vsub.f32 %v24429_v33, %v27719_v59  ;;  %v27721_v52 = vand.u32 4294901760, %v24448_v37  ;;  %v2613_v59 = vsub.f32 %v24453_v58, %v27722_v61 }
 0x6d9   :  { %v3392_v8 = vsub.f32 %v24434_v18, %v27720_v21  ;;  %v2620_v62 = vsub.f32 %v24461_v60, %v27723_v9  ;;  %v3413_v61 = vsub.f32 %v24476_v31, %v27381_v5  ;;  %20429 = vmatpush3.bf16.msra.mxu1 %v24418_v63  ;;  %20241 = vmatpush3.bf16.msra.mxu0 %v24424_v19 }
 0x6da   :  { %v2600_v4 = vand.u32 4294901760, %v2599_v15  ;;  %v3399_v14 = vsub.f32 %v24448_v37, %v27721_v52  ;;  %v2607_v21 = vand.u32 4294901760, %v2606_v40  ;;  %v27724_v15 = vand.u32 4294901760, %v24466_v0  ;;  %20431 = vmatprep.subr.bf16.mxu1 %v24442_v6 }
 0x6db   :  { %v3393_v46 = vand.u32 4294901760, %v3392_v8  ;;  %v2614_v52 = vand.u32 4294901760, %v2613_v59  ;;  %v2621_v9 = vand.u32 4294901760, %v2620_v62 }
 0x6dc   :  { %v3406_v30 = vsub.f32 %v24466_v0, %v27724_v15  ;;  %v3400_v20 = vand.u32 4294901760, %v3399_v14  ;;  %v24512_v40 = vpack.c.bf16 %v2607_v21, %v2600_v4  ;;  %v24517_v14 = vsub.f32 %v24274_v36, %v27726_v51 }
 0x6dd   :  { %v3414_v15 = vand.u32 4294901760, %v3413_v61  ;;  %v24527_v4 = vsub.f32 %v24276_v54, %v27727_v41  ;;  %v27728_v51 = vand.u32 4294901760, %v24281_v35  ;;  %v2627_v54 = vsub.f32 %v24509_v24, %v27380_v23  ;;  %20433 = vmatpush3.bf16.msra.mxu1 %v24442_v6 }
 0x6de   :  { %v3407_v8 = vand.u32 4294901760, %v3406_v30  ;;  %v24521_v59 = vpack.c.bf16 %v3400_v20, %v3393_v46  ;;  %v24530_v30 = vpack.c.bf16 %v2621_v9, %v2614_v52  ;;  %v27378_v36 = vand.u32 4294901760, %v24517_v14  ;;  %20243 = vmatprep.subr.bf16.mxu0 %v24512_v40 }
 0x6df   :  { %v24536_v62 = vsub.f32 %v24281_v35, %v27728_v51  ;;  %v27729_v20 = vand.u32 4294901760, %v24284_v49  ;;  %v27379_v52 = vand.u32 4294901760, %v24527_v4  ;;  %v27730_v61 = vand.u32 4294901760, %v24286_v29 }
 0x6e0   :  { %v24543_v21 = vpack.c.bf16 %v3414_v15, %v3407_v8  ;;  %v2634_v35 = vsub.f32 %v24517_v14, %v27378_v36  ;;  %v27732_v15 = vand.u32 4294901760, %v24293_v28  ;;  %20435 = vmatprep.subr.bf16.mxu1 %v24521_v59  ;;  %v27742_v6 = vand.u32 4294901760, %v24313_v45 }
 0x6e1   :  { %v24541_v46 = vsub.f32 %v24284_v49, %v27729_v20  ;;  %v24552_v9 = vsub.f32 %v24286_v29, %v27730_v61  ;;  %v27382_v49 = vand.u32 4294901760, %v24536_v62  ;;  %v2628_v29 = vand.u32 4294901760, %v2627_v54 }
 0x6e2   :  { %v24563_v41 = vsub.f32 %v24293_v28, %v27732_v15  ;;  %v3420_v51 = vsub.f32 %v24527_v4, %v27379_v52  ;;  %v27734_v61 = vand.u32 4294901760, %v24295_v50  ;;  %v2635_v28 = vand.u32 4294901760, %v2634_v35 }
 0x6e3   :  { %27731 = vst [vmem:[#allocation40_spill] sm:$0xff] %v24552_v9  ;;  %v27385_v8 = vand.u32 4294901760, %v24541_v46  ;;  %v27386_v20 = vand.u32 4294901760, %v24552_v9  ;;  %v3427_v15 = vsub.f32 %v24536_v62, %v27382_v49 }
 0x6e4   :  { %27733 = vst [vmem:[#allocation30_spill] sm:$0xff] %v24563_v41  ;;  %v24574_v36 = vsub.f32 %v24295_v50, %v27734_v61  ;;  %v27387_v52 = vand.u32 4294901760, %v24563_v41  ;;  %v3421_v23 = vand.u32 4294901760, %v3420_v51  ;;  %v27736_v61 = vand.u32 4294901760, %v24297_v44 }
 0x6e5   :  { %v2641_v54 = vsub.f32 %v24541_v46, %v27385_v8  ;;  %v2648_v5 = vsub.f32 %v24552_v9, %v27386_v20  ;;  %v24594_v49 = vpack.c.bf16 %v2635_v28, %v2628_v29  ;;  %v3428_v63 = vand.u32 4294901760, %v3427_v15 }
 0x6e6   :  { %27735 = vst [vmem:[#allocation43_spill] sm:$0xff] %v24574_v36  ;;  %v27390_v50 = vand.u32 4294901760, %v24574_v36  ;;  %v24591_v35 = vsub.f32 %v24297_v44, %v27736_v61  ;;  %v3434_v51 = vsub.f32 %v24563_v41, %v27387_v52  ;;  %v27738_v29 = vand.u32 4294901760, %v24308_v47 }
 0x6e7   :  { %v2642_v8 = vand.u32 4294901760, %v2641_v54  ;;  %v2649_v20 = vand.u32 4294901760, %v2648_v5  ;;  %v24611_v15 = vpack.c.bf16 %v3428_v63, %v3421_v23  ;;  %v27740_v52 = vand.u32 4294901760, %v24311_v16 }
 0x6e8   :  { %27737 = vst [vmem:[#allocation31_spill] sm:$0xff] %v24591_v35  ;;  %v3441_v44 = vsub.f32 %v24574_v36, %v27390_v50  ;;  %v24608_v28 = vsub.f32 %v24308_v47, %v27738_v29  ;;  %v3435_v54 = vand.u32 4294901760, %v3434_v51  ;;  %v24621_v50 = vsub.f32 %v24313_v45, %v27742_v6 }
 0x6e9   :  { %v24616_v5 = vsub.f32 %v24311_v16, %v27740_v52  ;;  %v24623_v61 = vpack.c.bf16 %v2649_v20, %v2642_v8  ;;  %v27744_v47 = vand.u32 4294901760, %v24591_v35  ;;  %v27745_v16 = vand.u32 4294901760, %v24329_v53 }
 0x6ea   :  { %27739 = vst [vmem:[#allocation45_spill] sm:$0xff] %v24608_v28  ;;  %27743 = vst [vmem:[#allocation46_spill] sm:$0xff] %v24621_v50  ;;  %v3442_v19 = vand.u32 4294901760, %v3441_v44  ;;  %v27393_v63 = vand.u32 4294901760, %v24608_v28  ;;  %v27747_v45 = vand.u32 4294901760, %v24331_v39 }
 0x6eb   :  { %27741 = vst [vmem:[#allocation32_spill] sm:$0xff] %v24616_v5  ;;  %v2655_v29 = vsub.f32 %v24591_v35, %v27744_v47  ;;  %v27394_v23 = vand.u32 4294901760, %v24616_v5  ;;  %v24634_v52 = vsub.f32 %v24329_v53, %v27745_v16  ;;  %v27749_v47 = vand.u32 4294901760, %v24333_v17 }
 0x6ec   :  { %v24639_v6 = vsub.f32 %v24331_v39, %v27747_v45  ;;  %v24641_v8 = vpack.c.bf16 %v3442_v19, %v3435_v54  ;;  %v2662_v44 = vsub.f32 %v24608_v28, %v27393_v63  ;;  %v27751_v16 = vand.u32 4294901760, %v24621_v50 }
 0x6ed   :  { %27746 = vst [vmem:[#allocation33_spill] sm:$0xff] %v24634_v52  ;;  %v2656_v20 = vand.u32 4294901760, %v2655_v29  ;;  %v24649_v51 = vsub.f32 %v24333_v17, %v27749_v47  ;;  %v3448_v53 = vsub.f32 %v24616_v5, %v27394_v23  ;;  %v27401_v19 = vand.u32 4294901760, %v24634_v52 }
 0x6ee   :  { %27748 = vst [vmem:[#allocation48_spill] sm:$0xff] %v24639_v6  ;;  %v3455_v39 = vsub.f32 %v24621_v50, %v27751_v16  ;;  %v27404_v54 = vand.u32 4294901760, %v24639_v6  ;;  %v2663_v29 = vand.u32 4294901760, %v2662_v44  ;;  %v27752_v63 = vand.u32 4294901760, %v24345_v34 }
 0x6ef   :  { %27750 = vst [vmem:[#allocation20_spill] sm:$0xff] %v24649_v51  ;;  %v27754_v47 = vand.u32 4294901760, %v24347_v2  ;;  %v3449_v55 = vand.u32 4294901760, %v3448_v53  ;;  %v2669_v16 = vsub.f32 %v24634_v52, %v27401_v19  ;;  %v27757_v19 = vand.u32 4294901760, %v24349_v25 }
 0x6f0   :  { %v24663_v17 = vsub.f32 %v24345_v34, %v27752_v63  ;;  %v3456_v32 = vand.u32 4294901760, %v3455_v39  ;;  %v2676_v44 = vsub.f32 %v24639_v6, %v27404_v54  ;;  %v24676_v45 = vpack.c.bf16 %v2663_v29, %v2656_v20 }
 0x6f1   :  { %v24668_v23 = vsub.f32 %v24347_v2, %v27754_v47  ;;  %v27756_v34 = vand.u32 4294901760, %v24649_v51  ;;  %v2670_v39 = vand.u32 4294901760, %v2669_v16  ;;  %v24688_v1 = vsub.f32 %v24349_v25, %v27757_v19 }
 0x6f2   :  { %27753 = vst [vmem:[#allocation22_spill] sm:$0xff] %v24663_v17  ;;  %v27406_v38 = vand.u32 4294901760, %v24663_v17  ;;  %v24683_v53 = vpack.c.bf16 %v3456_v32, %v3449_v55  ;;  %v2677_v47 = vand.u32 4294901760, %v2676_v44  ;;  %v27761_v25 = vand.u32 4294901760, %v24364_v57 }
 0x6f3   :  { %27755 = vst [vmem:[#allocation23_spill] sm:$0xff] %v24668_v23  ;;  %v3462_v63 = vsub.f32 %v24649_v51, %v27756_v34  ;;  %v27405_v2 = vand.u32 4294901760, %v24668_v23  ;;  %27758 = vst [vmem:[#allocation21_spill] sm:$0xff] %v24688_v1  ;;  %v27759_v34 = vand.u32 4294901760, %v24362_v10  ;;  %v27409_v16 = vand.u32 4294901760, %v24688_v1 }
 0x6f4   :  { %v3469_v20 = vsub.f32 %v24663_v17, %v27406_v38  ;;  %v24701_v32 = vpack.c.bf16 %v2677_v47, %v2670_v39  ;;  %v24707_v19 = vsub.f32 %v24364_v57, %v27761_v25  ;;  %v27763_v44 = vand.u32 4294901760, %v24366_v13 }
 0x6f5   :  { %v3463_v54 = vand.u32 4294901760, %v3462_v63  ;;  %v2683_v29 = vsub.f32 %v24668_v23, %v27405_v2  ;;  %v24699_v55 = vsub.f32 %v24362_v10, %v27759_v34  ;;  %v27765_v10 = vand.u32 4294901760, %v24384_v48 }
 0x6f6   :  { %27762 = vst [vmem:[#allocation58_spill] sm:$0xff] %v24707_v19  ;;  %v24712_v63 = vsub.f32 %v24366_v13, %v27763_v44  ;;  %v3470_v2 = vand.u32 4294901760, %v3469_v20  ;;  %v2690_v47 = vsub.f32 %v24688_v1, %v27409_v16  ;;  %v27413_v57 = vand.u32 4294901760, %v24707_v19 }
 0x6f7   :  { %27760 = vst [vmem:[#allocation57_spill] sm:$0xff] %v24699_v55  ;;  %v2684_v38 = vand.u32 4294901760, %v2683_v29  ;;  %v27410_v7 = vand.u32 4294901760, %v24699_v55  ;;  %v24718_v39 = vsub.f32 %v24384_v48, %v27765_v10  ;;  %v27767_v13 = vand.u32 4294901760, %v24386_v11 }
 0x6f8   :  { %27764 = vst [vmem:[#allocation59_spill] sm:$0xff] %v24712_v63  ;;  %v24730_v29 = vpack.c.bf16 %v3470_v2, %v3463_v54  ;;  %v27769_v44 = vand.u32 4294901760, %v24388_v26  ;;  %v2691_v16 = vand.u32 4294901760, %v2690_v47  ;;  %v3483_v34 = vsub.f32 %v24707_v19, %v27413_v57 }
 0x6f9   :  { %27766 = vst [vmem:[#allocation60_spill] sm:$0xff] %v24718_v39  ;;  %v24728_v20 = vsub.f32 %v24386_v11, %v27767_v13  ;;  %v3476_v48 = vsub.f32 %v24699_v55, %v27410_v7  ;;  %v27416_v25 = vand.u32 4294901760, %v24718_v39  ;;  %v27771_v11 = vand.u32 4294901760, %v24712_v63 }
 0x6fa   :  { %v24739_v10 = vsub.f32 %v24388_v26, %v27769_v44  ;;  %v24754_v26 = vpack.c.bf16 %v24429_v33, %v24411_v42  ;;  %v24756_v47 = vpack.c.bf16 %v2691_v16, %v2684_v38  ;;  %v3484_v44 = vand.u32 4294901760, %v3483_v34 }
 0x6fb   :  { %27768 = vst [vmem:[#allocation61_spill] sm:$0xff] %v24728_v20  ;;  %v2697_v54 = vsub.f32 %v24712_v63, %v27771_v11  ;;  %v27419_v2 = vand.u32 4294901760, %v24728_v20  ;;  %v3477_v13 = vand.u32 4294901760, %v3476_v48  ;;  %v2704_v7 = vsub.f32 %v24718_v39, %v27416_v25 }
 0x6fc   :  { %27770 = vst [vmem:[#allocation35_spill] sm:$0xff] %v24739_v10  ;;  %v27418_v27 = vand.u32 4294901760, %v24739_v10  ;;  %v24766_v25 = vpack.c.bf16 %v24448_v37, %v24434_v18  ;;  %v24770_v33 = vpack.c.bf16 %v24461_v60, %v24453_v58  ;;  %v24776_v34 = vpack.c.bf16 %v24476_v31, %v24466_v0 }
 0x6fd   :  { %v2698_v57 = vand.u32 4294901760, %v2697_v54  ;;  %v3490_v11 = vsub.f32 %v24728_v20, %v27419_v2  ;;  %v2705_v56 = vand.u32 4294901760, %v2704_v7  ;;  %v24772_v38 = vpack.c.bf16 %v3484_v44, %v3477_v13 }
 0x6fe   :  { %v3497_v48 = vsub.f32 %v24739_v10, %v27418_v27  ;;  %v24780_v7 = vpack.c.bf16 %v24517_v14, %v24509_v24  ;;  %v24786_v2 = vpack.c.bf16 %v24536_v62, %v24527_v4  ;;  %v24792_v13 = vpack.c.bf16 %v24552_v9, %v24541_v46 }
 0x6ff   :  { %v3491_v16 = vand.u32 4294901760, %v3490_v11  ;;  %v24782_v54 = vpack.c.bf16 %v2705_v56, %v2698_v57  ;;  %v24796_v44 = vpack.c.bf16 %v24574_v36, %v24563_v41  ;;  %v24800_v11 = vpack.c.bf16 %v24608_v28, %v24591_v35 }
 0x700   :  { %v3498_v27 = vand.u32 4294901760, %v3497_v48  ;;  %v24804_v56 = vpack.c.bf16 %v24621_v50, %v24616_v5  ;;  %v24812_v57 = vpack.c.bf16 %v24663_v17, %v24649_v51  ;;  %v24816_v48 = vpack.c.bf16 %v24688_v1, %v24668_v23 }
 0x701   :  { %v24824_v50 = vpack.c.bf16 %v24718_v39, %v24712_v63 }
 0x702   :  { %v24788_v60 = vpack.c.bf16 %v3498_v27, %v3491_v16  ;;  %v24808_v27 = vpack.c.bf16 %v24639_v6, %v24634_v52  ;;  %v24820_v16 = vpack.c.bf16 %v24707_v19, %v24699_v55  ;;  %v24828_v6 = vpack.c.bf16 %v24739_v10, %v24728_v20  ;;  %v15970_v10 = vld [vmem:[%s27182_s9] ss:$0 sm:$0xff] }
 0x757   :  { %v2410_v52 = vpop.xlane.xlu1 %2409 }
 0x758   :  { %v2416_v5 = vmul.f32 0.0078125, %v2410_v52  ;;  %v2408_v17 = vpop.xlane.xlu0 %2407 }
 0x759   :  { %v2415_v51 = vmul.f32 0.0078125, %v2408_v17 }
 0x75a   :  { %v2420_v28 = vadd.f32 1e-05, %v2416_v5 }
 0x75b   :  { %v2419_v35 = vadd.f32 1e-05, %v2415_v51  ;;  %v2414_v1 = vpop.xlane.xlu1 %2413 }
 0x75c   :  { %22127 = vrsqrt.f32 %v2420_v28  ;;  %v2418_v23 = vmul.f32 0.0078125, %v2414_v1  ;;  %v2412_v36 = vpop.xlane.xlu0 %2411  ;;  %v15971_v28 = vld [vmem:[%s27183_s10] ss:$0 sm:$0xff] }
 0x75d   :  { %22129 = vrsqrt.f32 %v2419_v35  ;;  %v2417_v19 = vmul.f32 0.0078125, %v2412_v36 }
 0x75e   :  { %v2422_v55 = vadd.f32 1e-05, %v2418_v23 }
 0x75f   :  { %v2421_v41 = vadd.f32 1e-05, %v2417_v19 }
 0x760   :  { %22131 = vrsqrt.f32 %v2422_v55 }
 0x761   :  { %22133 = vrsqrt.f32 %v2421_v41 }
 0x766   :  { %v22128_v39 = vpop.eup %22127 }
 0x767   :  { %v22130_v52 = vpop.eup %22129  ;;  %v2428_v17 = vmul.f32 %v22128_v39, %v24201_v43 }
 0x768   :  { %v2427_v1 = vmul.f32 %v22130_v52, %v24204_v12 }
 0x769   :  { %v2438_v35 = vmul.f32 %v15970_v10, %v2428_v17 }
 0x76a   :  { %v22132_v36 = vpop.eup %22131  ;;  %v2437_v5 = vmul.f32 %v15970_v10, %v2427_v1 }
 0x76b   :  { %v22134_v23 = vpop.eup %22133  ;;  %v2448_v51 = vadd.f32 %v15971_v28, %v2438_v35  ;;  %v2430_v41 = vmul.f32 %v22132_v36, %v24211_v22 }
 0x76c   :  { %v2447_v55 = vadd.f32 %v15971_v28, %v2437_v5  ;;  %v2429_v19 = vmul.f32 %v22134_v23, %v24214_v3 }
 0x76d   :  { %v24840_v20 = vand.u32 4294901760, %v2448_v51  ;;  %v2440_v63 = vmul.f32 %v15970_v10, %v2430_v41 }
 0x76e   :  { %v24842_v43 = vand.u32 4294901760, %v2447_v55  ;;  %v2439_v39 = vmul.f32 %v15970_v10, %v2429_v19 }
 0x76f   :  { %v24845_v9 = vsub.f32 %v2448_v51, %v24840_v20  ;;  %v2450_v12 = vadd.f32 %v15971_v28, %v2440_v63 }
 0x770   :  { %v2449_v52 = vadd.f32 %v15971_v28, %v2439_v39  ;;  %v24848_v17 = vsub.f32 %v2447_v55, %v24842_v43 }
 0x771   :  { %v24850_v1 = vand.u32 4294901760, %v2450_v12  ;;  %v24853_v22 = vand.u32 4294901760, %v24845_v9 }
 0x772   :  { %v24855_v3 = vand.u32 4294901760, %v2449_v52  ;;  %v24858_v35 = vand.u32 4294901760, %v24848_v17 }
 0x773   :  { %v2568_v10 = vsub.f32 %v24845_v9, %v24853_v22  ;;  %v24863_v36 = vsub.f32 %v2450_v12, %v24850_v1 }
 0x774   :  { %v2558_v63 = vsub.f32 %v24848_v17, %v24858_v35  ;;  %v24868_v28 = vsub.f32 %v2449_v52, %v24855_v3  ;;  %v27805_v52 = vld [vmem:[#allocation30_spill] sm:$0xff] }
 0x775   :  { %v24871_v5 = vand.u32 4294901760, %v24863_v36  ;;  %v24878_v41 = vand.u32 4294901760, %v2568_v10  ;;  %v27807_v10 = vld [vmem:[#allocation43_spill] sm:$0xff] }
 0x776   :  { %v24873_v23 = vand.u32 4294901760, %v2558_v63  ;;  %v24876_v51 = vand.u32 4294901760, %v24868_v28 }
 0x777   :  { %v2588_v55 = vsub.f32 %v24863_v36, %v24871_v5 }
 0x778   :  { %17818 = vmatprep.mubr.f32.mxu0 %v24873_v23  ;;  %18046 = vmatprep.mubr.f32.mxu1 %v24873_v23  ;;  %v2578_v19 = vsub.f32 %v24868_v28, %v24876_v51 }
 0x779   :  { %17819 = vmatmul.mubr.f32.vlgmr.msra.gmra.mrb[4].mxu0 %v24878_v41  ;;  %18047 = vmatmul.mubr.f32.vlgmr.msra.gmra.mrb[8].mxu1 %v24878_v41  ;;  %v24894_v12 = vand.u32 4294901760, %v2588_v55  ;;  %v27809_v55 = vld [vmem:[#allocation31_spill] sm:$0xff] }
 0x77a   :  { %20245 = vmatpush3.bf16.msra.mxu0 %v24512_v40  ;;  %20437 = vmatpush3.bf16.msra.mxu1 %v24521_v59  ;;  %v24890_v39 = vand.u32 4294901760, %v2578_v19  ;;  %v27774_v40 = vld [vmem:[#allocation34_spill] sm:$0xff]  ;;  %v27810_v19 = vand.u32 4294901760, %v27809_v55  ;;  %v27835_v55 = vld [vmem:[#allocation60_spill] sm:$0xff] }
 0x77b   :  { %20247 = vmatprep.subr.bf16.mxu0 %v24530_v30  ;;  %20439 = vmatprep.subr.bf16.mxu1 %v24543_v21  ;;  %v27775_v59 = vld [vmem:[#allocation42_spill] sm:$0xff] }
 0x77c   :  { %17821 = vmatprep.mubr.f32.mxu0 %v24890_v39  ;;  %18049 = vmatprep.mubr.f32.mxu1 %v24890_v39 }
 0x77d   :  { %17822 = vmatmul.mubr.f32.gmra.mrb[6].mxu0 %v24894_v12  ;;  %18050 = vmatmul.mubr.f32.gmra.mrb[10].mxu1 %v24894_v12 }
 0x77e   :  { %20249 = vmatpush3.bf16.msra.mxu0 %v24530_v30  ;;  %20441 = vmatpush3.bf16.msra.mxu1 %v24543_v21  ;;  %v27776_v30 = vld [vmem:[#allocation47_spill] sm:$0xff]  ;;  %v27777_v21 = vld [vmem:[#allocation52_spill] sm:$0xff] }
 0x77f   :  { %17856 = vmatprep.mubr.f32.mxu0 %v24842_v43  ;;  %18084 = vmatprep.mubr.f32.mxu1 %v24842_v43 }
 0x780   :  { %20251 = vmatprep.subr.bf16.mxu0 %v24594_v49  ;;  %20443 = vmatprep.subr.bf16.mxu1 %v24611_v15 }
 0x782   :  { %20253 = vmatpush3.bf16.msra.mxu0 %v24594_v49  ;;  %20445 = vmatpush3.bf16.msra.mxu1 %v24611_v15  ;;  %v27778_v49 = vld [vmem:[#allocation54_spill] sm:$0xff]  ;;  %v27781_v15 = vld [vmem:[#allocation63_spill] sm:$0xff] }
 0x783   :  { %20255 = vmatprep.subr.bf16.mxu0 %v24623_v61  ;;  %20447 = vmatprep.subr.bf16.mxu1 %v24641_v8 }
 0x786   :  { %20257 = vmatpush3.bf16.msra.mxu0 %v24623_v61  ;;  %20449 = vmatpush3.bf16.msra.mxu1 %v24641_v8  ;;  %v27780_v61 = vld [vmem:[#allocation62_spill] sm:$0xff]  ;;  %v27783_v8 = vld [vmem:[#allocation65_spill] sm:$0xff] }
 0x787   :  { %20259 = vmatprep.subr.bf16.mxu0 %v24676_v45  ;;  %20451 = vmatprep.subr.bf16.mxu1 %v24683_v53 }
 0x78a   :  { %20261 = vmatpush3.bf16.msra.mxu0 %v24676_v45  ;;  %20453 = vmatpush3.bf16.msra.mxu1 %v24683_v53  ;;  %v27784_v45 = vld [vmem:[#allocation27_spill] sm:$0xff]  ;;  %v27785_v53 = vld [vmem:[#allocation36_spill] sm:$0xff] }
 0x78b   :  { %20263 = vmatprep.subr.bf16.mxu0 %v24701_v32  ;;  %20455 = vmatprep.subr.bf16.mxu1 %v24730_v29 }
 0x78e   :  { %20265 = vmatpush3.bf16.msra.mxu0 %v24701_v32  ;;  %20457 = vmatpush3.bf16.msra.mxu1 %v24730_v29  ;;  %v27786_v32 = vld [vmem:[#allocation28_spill] sm:$0xff]  ;;  %v27787_v29 = vand.u32 4294901760, %v24411_v42 }
 0x78f   :  { %20267 = vmatprep.subr.bf16.mxu0 %v24756_v47  ;;  %20459 = vmatprep.subr.bf16.mxu1 %v24772_v38 }
 0x792   :  { %20269 = vmatpush3.bf16.msra.mxu0 %v24756_v47  ;;  %20461 = vmatpush3.bf16.msra.mxu1 %v24772_v38  ;;  %v27790_v47 = vld [vmem:[#allocation38_spill] sm:$0xff]  ;;  %v27791_v38 = vand.u32 4294901760, %v24434_v18  ;;  %v27797_v18 = vand.u32 4294901760, %v24476_v31  ;;  %v27800_v31 = vand.u32 4294901760, %v24527_v4  ;;  %v27806_v4 = vand.u32 4294901760, %v27805_v52 }
 0x793   :  { %20271 = vmatprep.subr.bf16.mxu0 %v24782_v54  ;;  %20463 = vmatprep.subr.bf16.mxu1 %v24788_v60  ;;  %v27831_v52 = vld [vmem:[#allocation58_spill] sm:$0xff] }
 0x796   :  { %20273 = vmatpush3.bf16.msra.mxu0 %v24782_v54  ;;  %20465 = vmatpush3.bf16.msra.mxu1 %v24788_v60  ;;  %v27773_v60 = vld [vmem:[#allocation53_spill] sm:$0xff]  ;;  %v27793_v54 = vand.u32 4294901760, %v24453_v58  ;;  %v27799_v58 = vand.u32 4294901760, %v24517_v14  ;;  %v27803_v14 = vld [vmem:[#allocation40_spill] sm:$0xff] }
 0x797   :  { %20275 = vmatprep.subr.bf16.mxu0 %v24754_v26  ;;  %20467 = vmatprep.subr.bf16.mxu1 %v24766_v25 }
 0x799   :  { %17857 = vmatmul.mubr.f32.vlgmr.msra.gmra.mrb[4].mxu0 %v24840_v20  ;;  %18085 = vmatmul.mubr.f32.vlgmr.msra.gmra.mrb[8].mxu1 %v24840_v20 }
 0x79a   :  { %17859 = vmatprep.mubr.f32.mxu0 %v24855_v3  ;;  %20277 = vmatpush3.bf16.msra.mxu0 %v24754_v26 }
 0x79b   :  { %18087 = vmatprep.mubr.f32.mxu1 %v24855_v3  ;;  %20469 = vmatpush3.bf16.msra.mxu1 %v24766_v25  ;;  %v27788_v25 = vld [vmem:[#allocation55_spill] sm:$0xff] }
 0x79c   :  { %20279 = vmatprep.subr.bf16.mxu0 %v24770_v33  ;;  %20471 = vmatprep.subr.bf16.mxu1 %v24776_v34 }
 0x79d   :  { %17860 = vmatmul.mubr.f32.gmra.mrb[6].mxu0 %v24850_v1  ;;  %18088 = vmatmul.mubr.f32.gmra.mrb[10].mxu1 %v24850_v1 }
 0x79e   :  { %20281 = vmatpush3.bf16.msra.mxu0 %v24770_v33  ;;  %17894 = vmatprep.mubr.f32.mxu0 %v24848_v17  ;;  %v27772_v33 = vld [vmem:[#allocation51_spill] sm:$0xff] }
 0x79f   :  { %20473 = vmatpush3.bf16.msra.mxu1 %v24776_v34  ;;  %18122 = vmatprep.mubr.f32.mxu1 %v24848_v17  ;;  %v27792_v34 = vand.u32 4294901760, %v24448_v37  ;;  %v27798_v37 = vand.u32 4294901760, %v24509_v24  ;;  %v27802_v24 = vand.u32 4294901760, %v24541_v46 }
 0x7a0   :  { %20283 = vmatprep.subr.bf16.mxu0 %v24780_v7  ;;  %20475 = vmatprep.subr.bf16.mxu1 %v24786_v2 }
 0x7a2   :  { %20285 = vmatpush3.bf16.msra.mxu0 %v24780_v7  ;;  %v20530_v7 = vpack.c.bf16 %v27792_v34, %v27791_v38  ;;  %v27815_v38 = vld [vmem:[#allocation46_spill] sm:$0xff] }
 0x7a3   :  { %20477 = vmatpush3.bf16.msra.mxu1 %v24786_v2  ;;  %20287 = vmatprep.subr.bf16.mxu0 %v24792_v13  ;;  %v27789_v2 = vand.u32 4294901760, %v27788_v25  ;;  %v27816_v34 = vand.u32 4294901760, %v27815_v38 }
 0x7a4   :  { %20479 = vmatprep.subr.bf16.mxu1 %v24796_v44 }
 0x7a5   :  { %v20338_v26 = vpack.c.bf16 %v27789_v2, %v27787_v29  ;;  %v27811_v29 = vld [vmem:[#allocation45_spill] sm:$0xff] }
 0x7a6   :  { %20289 = vmatpush3.bf16.msra.mxu0 %v24792_v13  ;;  %v27794_v13 = vld [vmem:[#allocation29_spill] sm:$0xff]  ;;  %v27812_v25 = vand.u32 4294901760, %v27811_v29 }
 0x7a7   :  { %20481 = vmatpush3.bf16.msra.mxu1 %v24796_v44  ;;  %20291 = vmatprep.subr.bf16.mxu0 %v24800_v11  ;;  %v27795_v42 = vand.u32 4294901760, %v27794_v13 }
 0x7a8   :  { %20483 = vmatprep.subr.bf16.mxu1 %v24804_v56  ;;  %v20354_v2 = vpack.c.bf16 %v27812_v25, %v27810_v19  ;;  %v27836_v19 = vand.u32 4294901760, %v27835_v55  ;;  %v27837_v25 = vld [vmem:[#allocation61_spill] sm:$0xff] }
 0x7a9   :  { %v20342_v44 = vpack.c.bf16 %v27795_v42, %v27793_v54  ;;  %v27817_v54 = vld [vmem:[#allocation33_spill] sm:$0xff]  ;;  %v27819_v42 = vld [vmem:[#allocation48_spill] sm:$0xff] }
 0x7aa   :  { %20293 = vmatpush3.bf16.msra.mxu0 %v24800_v11  ;;  %v27796_v11 = vand.u32 4294901760, %v24466_v0  ;;  %v27801_v0 = vand.u32 4294901760, %v24536_v62  ;;  %v27808_v62 = vand.u32 4294901760, %v27807_v10  ;;  %v27818_v13 = vand.u32 4294901760, %v27817_v54 }
 0x7ab   :  { %20485 = vmatpush3.bf16.msra.mxu1 %v24804_v56  ;;  %20295 = vmatprep.subr.bf16.mxu0 %v24808_v27 }
 0x7ac   :  { %20487 = vmatprep.subr.bf16.mxu1 %v24812_v57  ;;  %v20534_v56 = vpack.c.bf16 %v27797_v18, %v27796_v11  ;;  %v20542_v63 = vpack.c.bf16 %v27808_v62, %v27806_v4  ;;  %v27821_v18 = vld [vmem:[#allocation20_spill] sm:$0xff]  ;;  %v27832_v4 = vand.u32 4294901760, %v27831_v52  ;;  %v27833_v62 = vld [vmem:[#allocation59_spill] sm:$0xff] }
 0x7ae   :  { %20297 = vmatpush3.bf16.msra.mxu0 %v24808_v27  ;;  %v20346_v27 = vpack.c.bf16 %v27799_v58, %v27798_v37  ;;  %v27823_v37 = vld [vmem:[#allocation22_spill] sm:$0xff] }
 0x7af   :  { %20489 = vmatpush3.bf16.msra.mxu1 %v24812_v57  ;;  %20299 = vmatprep.subr.bf16.mxu0 %v24816_v48  ;;  %v20538_v57 = vpack.c.bf16 %v27801_v0, %v27800_v31  ;;  %v27824_v58 = vand.u32 4294901760, %v27823_v37  ;;  %v27825_v31 = vld [vmem:[#allocation23_spill] sm:$0xff] }
 0x7b0   :  { %20491 = vmatprep.subr.bf16.mxu1 %v24820_v16  ;;  %v27826_v0 = vand.u32 4294901760, %v27825_v31  ;;  %v4048_v37 = vld [vmem:[#allocation10 + $0x58] sm:$0xff] }
 0x7b2   :  { %20301 = vmatpush3.bf16.msra.mxu0 %v24816_v48  ;;  %v27804_v48 = vand.u32 4294901760, %v27803_v14 }
 0x7b3   :  { %20493 = vmatpush3.bf16.msra.mxu1 %v24820_v16  ;;  %20303 = vmatprep.subr.bf16.mxu0 %v24824_v50 }
 0x7b4   :  { %20495 = vmatprep.subr.bf16.mxu1 %v24828_v6  ;;  %v20350_v16 = vpack.c.bf16 %v27804_v48, %v27802_v24  ;;  %v27829_v48 = vld [vmem:[#allocation57_spill] sm:$0xff] }
 0x7b6   :  { %20305 = vmatpush3.bf16.msra.mxu0 %v24824_v50  ;;  %v27779_v50 = vld [vmem:[#allocation56_spill] sm:$0xff] }
 0x7b7   :  { %20497 = vmatpush3.bf16.msra.mxu1 %v24828_v6  ;;  %20307 = vmatprep.subr.bf16.mxu0 %v27772_v33  ;;  %v27782_v6 = vld [vmem:[#allocation64_spill] sm:$0xff] }
 0x7b8   :  { %20499 = vmatprep.subr.bf16.mxu1 %v27773_v60 }
 0x7b9   :  { %17895 = vmatmul.mubr.f32.vlgmr.msra.gmra.mrb[4].mxu0 %v24845_v9 }
 0x7ba   :  { %18123 = vmatmul.mubr.f32.vlgmr.msra.gmra.mrb[8].mxu1 %v24845_v9  ;;  %17897 = vmatprep.mubr.f32.mxu0 %v24868_v28 }
 0x7bb   :  { %20309 = vmatpush3.bf16.msra.mxu0 %v27772_v33  ;;  %18125 = vmatprep.mubr.f32.mxu1 %v24868_v28 }
 0x7bc   :  { %20501 = vmatpush3.bf16.msra.mxu1 %v27773_v60  ;;  %20311 = vmatprep.subr.bf16.mxu0 %v27774_v40 }
 0x7bd   :  { %17898 = vmatmul.mubr.f32.gmra.mrb[6].mxu0 %v24863_v36  ;;  %20503 = vmatprep.subr.bf16.mxu1 %v27775_v59 }
 0x7be   :  { %18126 = vmatmul.mubr.f32.gmra.mrb[10].mxu1 %v24863_v36  ;;  %17932 = vmatprep.mubr.f32.mxu0 %v24858_v35 }
 0x7bf   :  { %20313 = vmatpush3.bf16.msra.mxu0 %v27774_v40  ;;  %18160 = vmatprep.mubr.f32.mxu1 %v24858_v35 }
 0x7c0   :  { %20505 = vmatpush3.bf16.msra.mxu1 %v27775_v59  ;;  %20315 = vmatprep.subr.bf16.mxu0 %v27776_v30 }
 0x7c1   :  { %20507 = vmatprep.subr.bf16.mxu1 %v27777_v21 }
 0x7c3   :  { %20317 = vmatpush3.bf16.msra.mxu0 %v27776_v30 }
 0x7c4   :  { %20509 = vmatpush3.bf16.msra.mxu1 %v27777_v21  ;;  %20319 = vmatprep.subr.bf16.mxu0 %v27778_v49 }
 0x7c5   :  { %20511 = vmatprep.subr.bf16.mxu1 %v27779_v50 }
 0x7c7   :  { %20321 = vmatpush3.bf16.msra.mxu0 %v27778_v49 }
 0x7c8   :  { %20513 = vmatpush3.bf16.msra.mxu1 %v27779_v50  ;;  %20323 = vmatprep.subr.bf16.mxu0 %v27780_v61 }
 0x7c9   :  { %20515 = vmatprep.subr.bf16.mxu1 %v27781_v15 }
 0x7cb   :  { %20325 = vmatpush3.bf16.msra.mxu0 %v27780_v61 }
 0x7cc   :  { %20517 = vmatpush3.bf16.msra.mxu1 %v27781_v15  ;;  %20327 = vmatprep.subr.bf16.mxu0 %v27782_v6 }
 0x7cd   :  { %20519 = vmatprep.subr.bf16.mxu1 %v27783_v8 }
 0x7cf   :  { %20329 = vmatpush3.bf16.msra.mxu0 %v27782_v6 }
 0x7d0   :  { %20521 = vmatpush3.bf16.msra.mxu1 %v27783_v8  ;;  %20331 = vmatprep.subr.bf16.mxu0 %v27784_v45 }
 0x7d1   :  { %20523 = vmatprep.subr.bf16.mxu1 %v27785_v53 }
 0x7d3   :  { %20333 = vmatpush3.bf16.msra.mxu0 %v27784_v45 }
 0x7d4   :  { %20525 = vmatpush3.bf16.msra.mxu1 %v27785_v53  ;;  %20335 = vmatprep.subr.bf16.mxu0 %v27786_v32 }
 0x7d5   :  { %20527 = vmatprep.subr.bf16.mxu1 %v27790_v47 }
 0x7d7   :  { %20337 = vmatpush3.bf16.msra.mxu0 %v27786_v32 }
 0x7d8   :  { %20529 = vmatpush3.bf16.msra.mxu1 %v27790_v47  ;;  %20339 = vmatprep.subr.bf16.mxu0 %v20338_v26 }
 0x7d9   :  { %20531 = vmatprep.subr.bf16.mxu1 %v20530_v7 }
 0x7da   :  { %17933 = vmatmul.mubr.f32.vlgmr.msra.gmra.mrb[4].mxu0 %v24853_v22 }
 0x7db   :  { %18161 = vmatmul.mubr.f32.vlgmr.msra.gmra.mrb[8].mxu1 %v24853_v22  ;;  %17935 = vmatprep.mubr.f32.mxu0 %v24876_v51 }
 0x7dc   :  { %20341 = vmatpush3.bf16.msra.mxu0 %v20338_v26  ;;  %18163 = vmatprep.mubr.f32.mxu1 %v24876_v51  ;;  %v27813_v26 = vld [vmem:[#allocation32_spill] sm:$0xff] }
 0x7dd   :  { %20533 = vmatpush3.bf16.msra.mxu1 %v20530_v7  ;;  %20343 = vmatprep.subr.bf16.mxu0 %v20342_v44  ;;  %v27814_v46 = vand.u32 4294901760, %v27813_v26  ;;  %v27839_v26 = vld [vmem:[#allocation35_spill] sm:$0xff] }
 0x7de   :  { %17936 = vmatmul.mubr.f32.gmra.mrb[6].mxu0 %v24871_v5  ;;  %20535 = vmatprep.subr.bf16.mxu1 %v20534_v56 }
 0x7df   :  { %18164 = vmatmul.mubr.f32.gmra.mrb[10].mxu1 %v24871_v5  ;;  %17970 = vmatprep.mubr.f32.mxu0 %v24842_v43  ;;  %v20546_v7 = vpack.c.bf16 %v27816_v34, %v27814_v46  ;;  %v27840_v46 = vand.u32 4294901760, %v27839_v26  ;;  %v4043_v34 = vld [vmem:[#allocation10 + $0x30] sm:$0xff] }
 0x7e0   :  { %20345 = vmatpush3.bf16.msra.mxu0 %v20342_v44  ;;  %18198 = vmatprep.mubr.f32.mxu1 %v24842_v43  ;;  %v27820_v44 = vand.u32 4294901760, %v27819_v42  ;;  %v4046_v42 = vld [vmem:[#allocation10 + $0x48] sm:$0xff] }
 0x7e1   :  { %20537 = vmatpush3.bf16.msra.mxu1 %v20534_v56  ;;  %20347 = vmatprep.subr.bf16.mxu0 %v20346_v27  ;;  %v27822_v56 = vand.u32 4294901760, %v27821_v18  ;;  %v4088_v18 = vand.u32 4294901760, %v4046_v42 }
 0x7e2   :  { %20539 = vmatprep.subr.bf16.mxu1 %v20538_v57  ;;  %v20358_v11 = vpack.c.bf16 %v27820_v44, %v27818_v13  ;;  %v4045_v13 = vld [vmem:[#allocation10 + $0x40] sm:$0xff] }
 0x7e4   :  { %20349 = vmatpush3.bf16.msra.mxu0 %v20346_v27  ;;  %v20550_v27 = vpack.c.bf16 %v27824_v58, %v27822_v56  ;;  %v4047_v56 = vld [vmem:[#allocation10 + $0x50] sm:$0xff]  ;;  %v25141_v58 = vld [vmem:[#allocation10 + $0x60] sm:$0xff] }
 0x7e5   :  { %20541 = vmatpush3.bf16.msra.mxu1 %v20538_v57  ;;  %20351 = vmatprep.subr.bf16.mxu0 %v20350_v16  ;;  %v27827_v57 = vld [vmem:[#allocation21_spill] sm:$0xff] }
 0x7e6   :  { %20543 = vmatprep.subr.bf16.mxu1 %v20542_v63  ;;  %v27828_v24 = vand.u32 4294901760, %v27827_v57  ;;  %v4091_v57 = vand.u32 4294901760, %v4047_v56 }
 0x7e8   :  { %20353 = vmatpush3.bf16.msra.mxu0 %v20350_v16  ;;  %v20362_v14 = vpack.c.bf16 %v27828_v24, %v27826_v0  ;;  %v27830_v16 = vand.u32 4294901760, %v27829_v48  ;;  %v4094_v24 = vand.u32 4294901760, %v4048_v37 }
 0x7e9   :  { %20545 = vmatpush3.bf16.msra.mxu1 %v20542_v63  ;;  %20355 = vmatprep.subr.bf16.mxu0 %v20354_v2  ;;  %v27834_v63 = vand.u32 4294901760, %v27833_v62  ;;  %v25162_v62 = vld [vmem:[#allocation10 + $0x78] sm:$0xff] }
 0x7ea   :  { %20547 = vmatprep.subr.bf16.mxu1 %v20546_v7  ;;  %v20554_v10 = vpack.c.bf16 %v27832_v4, %v27830_v16  ;;  %v25158_v4 = vpack.c.bf16 %v4094_v24, %v4091_v57 }
 0x7eb   :  { %v20366_v29 = vpack.c.bf16 %v27836_v19, %v27834_v63 }
 0x7ec   :  { %20357 = vmatpush3.bf16.msra.mxu0 %v20354_v2  ;;  %v27838_v2 = vand.u32 4294901760, %v27837_v25  ;;  %v4106_v25 = vand.u32 4294901760, %v25162_v62 }
 0x7ed   :  { %20549 = vmatpush3.bf16.msra.mxu1 %v20546_v7  ;;  %20359 = vmatprep.subr.bf16.mxu0 %v20358_v11  ;;  %v4044_v7 = vld [vmem:[#allocation10 + $0x38] sm:$0xff] }
 0x7ee   :  { %20551 = vmatprep.subr.bf16.mxu1 %v20550_v27  ;;  %v20558_v38 = vpack.c.bf16 %v27840_v46, %v27838_v2  ;;  %v4082_v54 = vand.u32 4294901760, %v4044_v7 }
 0x7f0   :  { %20361 = vmatpush3.bf16.msra.mxu0 %v20358_v11  ;;  %v4085_v11 = vand.u32 4294901760, %v4045_v13 }
 0x7f1   :  { %20553 = vmatpush3.bf16.msra.mxu1 %v20550_v27  ;;  %20363 = vmatprep.subr.bf16.mxu0 %v20362_v14  ;;  %v25143_v27 = vld [vmem:[#allocation10 + $0x68] sm:$0xff] }
 0x7f2   :  { %20555 = vmatprep.subr.bf16.mxu1 %v20554_v10  ;;  %v4100_v48 = vand.u32 4294901760, %v25143_v27 }
 0x7f4   :  { %20365 = vmatpush3.bf16.msra.mxu0 %v20362_v14  ;;  %v4097_v14 = vand.u32 4294901760, %v25141_v58 }
 0x7f5   :  { %20557 = vmatpush3.bf16.msra.mxu1 %v20554_v10  ;;  %20367 = vmatprep.subr.bf16.mxu0 %v20366_v29  ;;  %v25160_v10 = vld [vmem:[#allocation10 + $0x70] sm:$0xff] }
 0x7f6   :  { %20559 = vmatprep.subr.bf16.mxu1 %v20558_v38  ;;  %v25172_v19 = vpack.c.bf16 %v4100_v48, %v4097_v14 }
 0x7f8   :  { %20369 = vmatpush3.bf16.msra.mxu0 %v20366_v29  ;;  %v4103_v29 = vand.u32 4294901760, %v25160_v10 }
 0x7f9   :  { %20561 = vmatpush3.bf16.msra.mxu1 %v20558_v38  ;;  %20371 = vmatprep.subr.bf16.mxu0 %v27772_v33 }
 0x7fa   :  { %20563 = vmatprep.subr.bf16.mxu1 %v27773_v60 }
 0x7fb   :  { %17971 = vmatmul.mubr.f32.vlgmr.msra.gmra.mrb[4].mxu0 %v24840_v20 }
 0x7fc   :  { %18199 = vmatmul.mubr.f32.vlgmr.msra.gmra.mrb[8].mxu1 %v24840_v20  ;;  %17973 = vmatprep.mubr.f32.mxu0 %v24855_v3 }
 0x7fd   :  { %20373 = vmatpush3.bf16.msra.mxu0 %v27772_v33  ;;  %18201 = vmatprep.mubr.f32.mxu1 %v24855_v3  ;;  %v4037_v33 = vld [vmem:[#allocation10] sm:$0xff] }
 0x7fe   :  { %20565 = vmatpush3.bf16.msra.mxu1 %v27773_v60  ;;  %20375 = vmatprep.subr.bf16.mxu0 %v27774_v40  ;;  %v4038_v60 = vld [vmem:[#allocation10 + $0x8] sm:$0xff] }
 0x7ff   :  { %17974 = vmatmul.mubr.f32.gmra.mrb[6].mxu0 %v24850_v1  ;;  %20567 = vmatprep.subr.bf16.mxu1 %v27775_v59 }
 0x800   :  { %18202 = vmatmul.mubr.f32.gmra.mrb[10].mxu1 %v24850_v1  ;;  %18008 = vmatprep.mubr.f32.mxu0 %v24842_v43 }
 0x801   :  { %20377 = vmatpush3.bf16.msra.mxu0 %v27774_v40  ;;  %18236 = vmatprep.mubr.f32.mxu1 %v24842_v43  ;;  %v4061_v40 = vand.u32 4294901760, %v4037_v33 }
 0x802   :  { %20569 = vmatpush3.bf16.msra.mxu1 %v27775_v59  ;;  %20379 = vmatprep.subr.bf16.mxu0 %v27776_v30  ;;  %v4064_v59 = vand.u32 4294901760, %v4038_v60 }
 0x803   :  { %20571 = vmatprep.subr.bf16.mxu1 %v27777_v21  ;;  %v25145_v31 = vsub.f32 %v4037_v33, %v4061_v40 }
 0x804   :  { %v25147_v0 = vsub.f32 %v4038_v60, %v4064_v59 }
 0x805   :  { %20381 = vmatpush3.bf16.msra.mxu0 %v27776_v30  ;;  %v4039_v30 = vld [vmem:[#allocation10 + $0x10] sm:$0xff]  ;;  %v4184_v16 = vand.u32 4294901760, %v25145_v31 }
 0x806   :  { %20573 = vmatpush3.bf16.msra.mxu1 %v27777_v21  ;;  %20383 = vmatprep.subr.bf16.mxu0 %v27778_v49  ;;  %v4040_v21 = vld [vmem:[#allocation10 + $0x18] sm:$0xff]  ;;  %v4191_v52 = vand.u32 4294901760, %v25147_v0 }
 0x807   :  { %20575 = vmatprep.subr.bf16.mxu1 %v27779_v50  ;;  %v4185_v2 = vsub.f32 %v25145_v31, %v4184_v16 }
 0x808   :  { %v4192_v26 = vsub.f32 %v25147_v0, %v4191_v52 }
 0x809   :  { %20385 = vmatpush3.bf16.msra.mxu0 %v27778_v49  ;;  %v25117_v49 = vpack.c.bf16 %v4064_v59, %v4061_v40  ;;  %v25192_v59 = vsub.f32 %v4044_v7, %v4082_v54 }
 0x80a   :  { %20577 = vmatpush3.bf16.msra.mxu1 %v27779_v50  ;;  %20387 = vmatprep.subr.bf16.mxu0 %v27780_v61  ;;  %v4067_v50 = vand.u32 4294901760, %v4039_v30 }
 0x80b   :  { %20579 = vmatprep.subr.bf16.mxu1 %v27781_v15 }
 0x80c   :  { %v25164_v63 = vsub.f32 %v4039_v30, %v4067_v50  ;;  %v25199_v30 = vpack.c.bf16 %v4106_v25, %v4103_v29 }
 0x80d   :  { %20389 = vmatpush3.bf16.msra.mxu0 %v27780_v61  ;;  %v4070_v61 = vand.u32 4294901760, %v4040_v21 }
 0x80e   :  { %20581 = vmatpush3.bf16.msra.mxu1 %v27781_v15  ;;  %20391 = vmatprep.subr.bf16.mxu0 %v27782_v6  ;;  %v4041_v15 = vld [vmem:[#allocation10 + $0x20] sm:$0xff]  ;;  %v27441_v46 = vand.u32 4294901760, %v25164_v63 }
 0x80f   :  { %20583 = vmatprep.subr.bf16.mxu1 %v27783_v8  ;;  %v25166_v55 = vsub.f32 %v4040_v21, %v4070_v61  ;;  %v4186_v21 = vand.u32 4294901760, %v4185_v2 }
 0x811   :  { %20393 = vmatpush3.bf16.msra.mxu0 %v27782_v6  ;;  %v4042_v6 = vld [vmem:[#allocation10 + $0x28] sm:$0xff]  ;;  %v27440_v38 = vand.u32 4294901760, %v25166_v55 }
 0x812   :  { %20585 = vmatpush3.bf16.msra.mxu1 %v27783_v8  ;;  %20395 = vmatprep.subr.bf16.mxu0 %v27784_v45  ;;  %v25123_v8 = vpack.c.bf16 %v4070_v61, %v4067_v50  ;;  %v4193_v50 = vand.u32 4294901760, %v4192_v26  ;;  %v4199_v61 = vsub.f32 %v25164_v63, %v27441_v46 }
 0x813   :  { %20587 = vmatprep.subr.bf16.mxu1 %v27785_v53 }
 0x814   :  { %v20626_v7 = vpack.c.bf16 %v4193_v50, %v4186_v21  ;;  %v4200_v2 = vand.u32 4294901760, %v4199_v61  ;;  %v25235_v50 = vsub.f32 %v4048_v37, %v4094_v24 }
 0x815   :  { %20397 = vmatpush3.bf16.msra.mxu0 %v27784_v45  ;;  %v4073_v45 = vand.u32 4294901760, %v4041_v15 }
 0x816   :  { %20589 = vmatpush3.bf16.msra.mxu1 %v27785_v53  ;;  %20399 = vmatprep.subr.bf16.mxu0 %v27786_v32  ;;  %v4076_v53 = vand.u32 4294901760, %v4042_v6 }
 0x817   :  { %20591 = vmatprep.subr.bf16.mxu1 %v27790_v47  ;;  %v25186_v33 = vsub.f32 %v4041_v15, %v4073_v45  ;;  %v4206_v15 = vsub.f32 %v25166_v55, %v27440_v38 }
 0x818   :  { %v25188_v60 = vsub.f32 %v4042_v6, %v4076_v53 }
 0x819   :  { %20401 = vmatpush3.bf16.msra.mxu0 %v27786_v32  ;;  %v25131_v32 = vpack.c.bf16 %v4076_v53, %v4073_v45  ;;  %v27444_v6 = vand.u32 4294901760, %v25186_v33  ;;  %v4207_v26 = vand.u32 4294901760, %v4206_v15 }
 0x81a   :  { %20593 = vmatpush3.bf16.msra.mxu1 %v27790_v47  ;;  %20595 = vmatprep.subr.bf16.mxu0 %v25117_v49  ;;  %v4079_v47 = vand.u32 4294901760, %v4043_v34  ;;  %v27442_v45 = vand.u32 4294901760, %v25188_v60 }
 0x81b   :  { %v4213_v38 = vsub.f32 %v25186_v33, %v27444_v6  ;;  %v20630_v61 = vpack.c.bf16 %v4207_v26, %v4200_v2 }
 0x81c   :  { %18009 = vmatmul.mubr.f32.vlgmr.msra.gmra.mrb[4].mxu0 %v24840_v20  ;;  %v25138_v44 = vpack.c.bf16 %v4082_v54, %v4079_v47  ;;  %v25190_v40 = vsub.f32 %v4043_v34, %v4079_v47  ;;  %v27445_v34 = vand.u32 4294901760, %v25192_v59  ;;  %v25213_v47 = vsub.f32 %v4045_v13, %v4085_v11 }
 0x81d   :  { %18237 = vmatmul.mubr.f32.vlgmr.msra.gmra.mrb[8].mxu1 %v24840_v20  ;;  %18011 = vmatprep.mubr.f32.mxu0 %v24855_v3  ;;  %v25215_v54 = vsub.f32 %v4046_v42, %v4088_v18  ;;  %v4220_v46 = vsub.f32 %v25188_v60, %v27442_v45  ;;  %v4214_v15 = vand.u32 4294901760, %v4213_v38 }
 0x81e   :  { %18239 = vmatprep.mubr.f32.mxu1 %v24855_v3  ;;  %20597 = vmatpush3.bf16.msra.mxu0 %v25117_v49  ;;  %v27443_v53 = vand.u32 4294901760, %v25190_v40  ;;  %v4234_v13 = vsub.f32 %v25192_v59, %v27445_v34  ;;  %v4240_v42 = vand.u32 4294901760, %v25213_v47 }
 0x81f   :  { %20599 = vmatprep.subr.bf16.mxu0 %v25123_v8  ;;  %v4221_v45 = vand.u32 4294901760, %v4220_v46 }
 0x820   :  { %18012 = vmatmul.mubr.f32.gmra.mrb[6].mxu0 %v24850_v1  ;;  %v4227_v21 = vsub.f32 %v25190_v40, %v27443_v53  ;;  %v4235_v6 = vand.u32 4294901760, %v4234_v13  ;;  %v4241_v34 = vsub.f32 %v25213_v47, %v4240_v42 }
 0x821   :  { %18240 = vmatmul.mubr.f32.gmra.mrb[10].mxu1 %v24850_v1  ;;  %18274 = vmatprep.mubr.f32.mxu0 %v24873_v23  ;;  %v25150_v23 = vpack.c.bf16 %v4088_v18, %v4085_v11  ;;  %v4247_v11 = vand.u32 4294901760, %v25215_v54  ;;  %v25233_v18 = vsub.f32 %v4047_v56, %v4091_v57  ;;  %v4261_v57 = vand.u32 4294901760, %v25235_v50 }
 0x822   :  { %20601 = vmatpush3.bf16.msra.mxu0 %v25123_v8  ;;  %v4228_v53 = vand.u32 4294901760, %v4227_v21  ;;  %v20634_v24 = vpack.c.bf16 %v4221_v45, %v4214_v15  ;;  %v4242_v38 = vand.u32 4294901760, %v4241_v34 }
 0x823   :  { %20603 = vmatprep.subr.bf16.mxu0 %v25131_v32  ;;  %v4248_v56 = vsub.f32 %v25215_v54, %v4247_v11  ;;  %v4254_v37 = vand.u32 4294901760, %v25233_v18 }
 0x824   :  { %v20638_v46 = vpack.c.bf16 %v4235_v6, %v4228_v53 }
 0x825   :  { %v4255_v45 = vsub.f32 %v25233_v18, %v4254_v37 }
 0x826   :  { %20605 = vmatpush3.bf16.msra.mxu0 %v25131_v32 }
 0x827   :  { %20607 = vmatprep.subr.bf16.mxu0 %v25138_v44  ;;  %v4256_v53 = vand.u32 4294901760, %v4255_v45  ;;  %v20666_v45 = vpack.c.bf16 %v25188_v60, %v25186_v33 }
 0x82a   :  { %20609 = vmatpush3.bf16.msra.mxu0 %v25138_v44 }
 0x82b   :  { %20611 = vmatprep.subr.bf16.mxu0 %v25150_v23 }
 0x82e   :  { %20613 = vmatpush3.bf16.msra.mxu0 %v25150_v23 }
 0x82f   :  { %20615 = vmatprep.subr.bf16.mxu0 %v25158_v4 }
 0x832   :  { %20617 = vmatpush3.bf16.msra.mxu0 %v25158_v4 }
 0x833   :  { %20619 = vmatprep.subr.bf16.mxu0 %v25172_v19 }
 0x836   :  { %20621 = vmatpush3.bf16.msra.mxu0 %v25172_v19 }
 0x837   :  { %20623 = vmatprep.subr.bf16.mxu0 %v25199_v30 }
 0x83a   :  { %20625 = vmatpush3.bf16.msra.mxu0 %v25199_v30 }
 0x83b   :  { %20627 = vmatprep.subr.bf16.mxu0 %v20626_v7 }
 0x83d   :  { %18275 = vmatmul.mubr.f32.vlgmr.msra.gmra.mrb[8].mxu0 %v24878_v41  ;;  %v25250_v41 = vsub.f32 %v25141_v58, %v4097_v14  ;;  %v4262_v58 = vsub.f32 %v25235_v50, %v4261_v57 }
 0x83e   :  { %18277 = vmatprep.mubr.f32.mxu0 %v24890_v39  ;;  %20629 = vmatpush3.bf16.msra.mxu0 %v20626_v7  ;;  %v25255_v39 = vsub.f32 %v25143_v27, %v4100_v48  ;;  %v4249_v7 = vand.u32 4294901760, %v4248_v56  ;;  %v25275_v48 = vsub.f32 %v25162_v62, %v4106_v25 }
 0x83f   :  { %20631 = vmatprep.subr.bf16.mxu0 %v20630_v61  ;;  %v4268_v27 = vand.u32 4294901760, %v25250_v41  ;;  %v4263_v34 = vand.u32 4294901760, %v4262_v58  ;;  %v20670_v58 = vpack.c.bf16 %v25192_v59, %v25190_v40 }
 0x840   :  { %v4275_v14 = vand.u32 4294901760, %v25255_v39  ;;  %v20642_v6 = vpack.c.bf16 %v4249_v7, %v4242_v38  ;;  %v20658_v38 = vpack.c.bf16 %v25147_v0, %v25145_v31  ;;  %v20662_v7 = vpack.c.bf16 %v25166_v55, %v25164_v63 }
 0x841   :  { %18278 = vmatmul.mubr.f32.gmra.mrb[10].mxu0 %v24894_v12  ;;  %v25270_v12 = vsub.f32 %v25160_v10, %v4103_v29  ;;  %v4269_v2 = vsub.f32 %v25250_v41, %v4268_v27  ;;  %v4289_v29 = vand.u32 4294901760, %v25275_v48  ;;  %v20646_v62 = vpack.c.bf16 %v4263_v34, %v4256_v53 }
 0x842   :  { %20633 = vmatpush3.bf16.msra.mxu0 %v20630_v61  ;;  %18312 = vmatprep.mubr.f32.mxu0 %v24842_v43  ;;  %v4276_v26 = vsub.f32 %v25255_v39, %v4275_v14  ;;  %v20678_v53 = vpack.c.bf16 %v25235_v50, %v25233_v18  ;;  %v20682_v34 = vpack.c.bf16 %v25255_v39, %v25250_v41  ;;  %v27844_v31 = vand.u32 4294901760, %v25188_v60 }
 0x843   :  { %20635 = vmatprep.subr.bf16.mxu0 %v20634_v24  ;;  %v4282_v10 = vand.u32 4294901760, %v25270_v12  ;;  %v4270_v25 = vand.u32 4294901760, %v4269_v2  ;;  %v4290_v61 = vsub.f32 %v25275_v48, %v4289_v29  ;;  %v27843_v2 = vand.u32 4294901760, %v25186_v33 }
 0x844   :  { %v4277_v21 = vand.u32 4294901760, %v4276_v26 }
 0x845   :  { %v4283_v13 = vsub.f32 %v25270_v12, %v4282_v10  ;;  %v20730_v0 = vpack.c.bf16 %v27844_v31, %v27843_v2 }
 0x846   :  { %20637 = vmatpush3.bf16.msra.mxu0 %v20634_v24  ;;  %v20650_v15 = vpack.c.bf16 %v4277_v21, %v4270_v25  ;;  %v4291_v24 = vand.u32 4294901760, %v4290_v61 }
 0x847   :  { %20639 = vmatprep.subr.bf16.mxu0 %v20638_v46  ;;  %v4284_v56 = vand.u32 4294901760, %v4283_v13 }
 0x84a   :  { %20641 = vmatpush3.bf16.msra.mxu0 %v20638_v46  ;;  %v20654_v46 = vpack.c.bf16 %v4291_v24, %v4284_v56 }
 0x84b   :  { %20643 = vmatprep.subr.bf16.mxu0 %v20642_v6 }
 0x84e   :  { %20645 = vmatpush3.bf16.msra.mxu0 %v20642_v6  ;;  %v20674_v6 = vpack.c.bf16 %v25215_v54, %v25213_v47 }
 0x84f   :  { %20647 = vmatprep.subr.bf16.mxu0 %v20646_v62 }
 0x852   :  { %20649 = vmatpush3.bf16.msra.mxu0 %v20646_v62 }
 0x853   :  { %20651 = vmatprep.subr.bf16.mxu0 %v20650_v15 }
 0x856   :  { %20653 = vmatpush3.bf16.msra.mxu0 %v20650_v15 }
 0x857   :  { %20655 = vmatprep.subr.bf16.mxu0 %v20654_v46 }
 0x85a   :  { %20657 = vmatpush3.bf16.msra.mxu0 %v20654_v46 }
 0x85b   :  { %20659 = vmatprep.subr.bf16.mxu0 %v20658_v38 }
 0x85d   :  { %18313 = vmatmul.mubr.f32.vlgmr.msra.gmra.mrb[8].mxu0 %v24840_v20 }
 0x85e   :  { %18315 = vmatprep.mubr.f32.mxu0 %v24855_v3  ;;  %20661 = vmatpush3.bf16.msra.mxu0 %v20658_v38 }
 0x85f   :  { %20663 = vmatprep.subr.bf16.mxu0 %v20662_v7 }
 0x861   :  { %18316 = vmatmul.mubr.f32.gmra.mrb[10].mxu0 %v24850_v1 }
 0x862   :  { %20665 = vmatpush3.bf16.msra.mxu0 %v20662_v7  ;;  %18350 = vmatprep.mubr.f32.mxu0 %v24848_v17  ;;  %v20686_v17 = vpack.c.bf16 %v25275_v48, %v25270_v12 }
 0x863   :  { %20667 = vmatprep.subr.bf16.mxu0 %v20666_v45 }
 0x866   :  { %20669 = vmatpush3.bf16.msra.mxu0 %v20666_v45 }
 0x867   :  { %20671 = vmatprep.subr.bf16.mxu0 %v20670_v58 }
 0x86a   :  { %20673 = vmatpush3.bf16.msra.mxu0 %v20670_v58 }
 0x86b   :  { %20675 = vmatprep.subr.bf16.mxu0 %v20674_v6 }
 0x86e   :  { %20677 = vmatpush3.bf16.msra.mxu0 %v20674_v6  ;;  %v15974_v6 = vld [vmem:[%s27189_s16] ss:$0 sm:$0xff] }
 0x86f   :  { %20679 = vmatprep.subr.bf16.mxu0 %v20678_v53 }
 0x872   :  { %20681 = vmatpush3.bf16.msra.mxu0 %v20678_v53 }
 0x873   :  { %20683 = vmatprep.subr.bf16.mxu0 %v20682_v34 }
 0x876   :  { %20685 = vmatpush3.bf16.msra.mxu0 %v20682_v34 }
 0x877   :  { %20687 = vmatprep.subr.bf16.mxu0 %v20686_v17 }
 0x87a   :  { %20689 = vmatpush3.bf16.msra.mxu0 %v20686_v17 }
 0x87b   :  { %20691 = vmatprep.subr.bf16.mxu0 %v25117_v49 }
 0x87d   :  { %18351 = vmatmul.mubr.f32.vlgmr.msra.gmra.mrb[8].mxu0 %v24845_v9  ;;  %v20722_v9 = vpack.c.bf16 %v4191_v52, %v4184_v16  ;;  %v27845_v16 = vand.u32 4294901760, %v25190_v40  ;;  %v27846_v52 = vand.u32 4294901760, %v25192_v59 }
 0x87e   :  { %18353 = vmatprep.mubr.f32.mxu0 %v24868_v28  ;;  %20693 = vmatpush3.bf16.msra.mxu0 %v25117_v49 }
 0x87f   :  { %20695 = vmatprep.subr.bf16.mxu0 %v25123_v8 }
 0x881   :  { %18354 = vmatmul.mubr.f32.gmra.mrb[10].mxu0 %v24863_v36  ;;  %v27842_v36 = vand.u32 4294901760, %v25166_v55  ;;  %v20750_v55 = vpack.c.bf16 %v4289_v29, %v4282_v10 }
 0x882   :  { %20697 = vmatpush3.bf16.msra.mxu0 %v25123_v8  ;;  %18388 = vmatprep.mubr.f32.mxu0 %v24858_v35  ;;  %v27841_v35 = vand.u32 4294901760, %v25164_v63  ;;  %v20746_v63 = vpack.c.bf16 %v4275_v14, %v4268_v27 }
 0x883   :  { %20699 = vmatprep.subr.bf16.mxu0 %v25131_v32 }
 0x884   :  { %v20726_v28 = vpack.c.bf16 %v27842_v36, %v27841_v35 }
 0x886   :  { %20701 = vmatpush3.bf16.msra.mxu0 %v25131_v32 }
 0x887   :  { %20703 = vmatprep.subr.bf16.mxu0 %v25138_v44 }
 0x88a   :  { %20705 = vmatpush3.bf16.msra.mxu0 %v25138_v44 }
 0x88b   :  { %20707 = vmatprep.subr.bf16.mxu0 %v25150_v23 }
 0x88e   :  { %20709 = vmatpush3.bf16.msra.mxu0 %v25150_v23 }
 0x88f   :  { %20711 = vmatprep.subr.bf16.mxu0 %v25158_v4 }
 0x892   :  { %20713 = vmatpush3.bf16.msra.mxu0 %v25158_v4 }
 0x893   :  { %20715 = vmatprep.subr.bf16.mxu0 %v25172_v19 }
 0x896   :  { %20717 = vmatpush3.bf16.msra.mxu0 %v25172_v19 }
 0x897   :  { %20719 = vmatprep.subr.bf16.mxu0 %v25199_v30 }
 0x89a   :  { %20721 = vmatpush3.bf16.msra.mxu0 %v25199_v30 }
 0x89b   :  { %20723 = vmatprep.subr.bf16.mxu0 %v20722_v9 }
 0x89d   :  { %18389 = vmatmul.mubr.f32.vlgmr.msra.gmra.mrb[8].mxu0 %v24853_v22  ;;  %v20734_v22 = vpack.c.bf16 %v27846_v52, %v27845_v16 }
 0x89e   :  { %18391 = vmatprep.mubr.f32.mxu0 %v24876_v51  ;;  %20725 = vmatpush3.bf16.msra.mxu0 %v20722_v9  ;;  %v20738_v51 = vpack.c.bf16 %v4247_v11, %v4240_v42 }
 0x89f   :  { %20727 = vmatprep.subr.bf16.mxu0 %v20726_v28 }
 0x8a1   :  { %18392 = vmatmul.mubr.f32.gmra.mrb[10].mxu0 %v24871_v5  ;;  %v20742_v5 = vpack.c.bf16 %v4261_v57, %v4254_v37 }
 0x8a2   :  { %20729 = vmatpush3.bf16.msra.mxu0 %v20726_v28  ;;  %18426 = vmatprep.mubr.f32.mxu0 %v24842_v43 }
 0x8a3   :  { %20731 = vmatprep.subr.bf16.mxu0 %v20730_v0 }
 0x8a6   :  { %20733 = vmatpush3.bf16.msra.mxu0 %v20730_v0 }
 0x8a7   :  { %20735 = vmatprep.subr.bf16.mxu0 %v20734_v22 }
 0x8aa   :  { %20737 = vmatpush3.bf16.msra.mxu0 %v20734_v22 }
 0x8ab   :  { %20739 = vmatprep.subr.bf16.mxu0 %v20738_v51 }
 0x8ae   :  { %20741 = vmatpush3.bf16.msra.mxu0 %v20738_v51 }
 0x8af   :  { %20743 = vmatprep.subr.bf16.mxu0 %v20742_v5 }
 0x8b2   :  { %20745 = vmatpush3.bf16.msra.mxu0 %v20742_v5 }
 0x8b3   :  { %20747 = vmatprep.subr.bf16.mxu0 %v20746_v63 }
 0x8b6   :  { %20749 = vmatpush3.bf16.msra.mxu0 %v20746_v63 }
 0x8b7   :  { %20751 = vmatprep.subr.bf16.mxu0 %v20750_v55 }
 0x8ba   :  { %20753 = vmatpush3.bf16.msra.mxu0 %v20750_v55 }
 0x8bb   :  { %20755 = vmatprep.subr.bf16.mxu0 %v25117_v49 }
 0x8bd   :  { %18427 = vmatmul.mubr.f32.vlgmr.msra.gmra.mrb[8].mxu0 %v24840_v20 }
 0x8be   :  { %18429 = vmatprep.mubr.f32.mxu0 %v24855_v3  ;;  %20757 = vmatpush3.bf16.msra.mxu0 %v25117_v49  ;;  %v15973_v49 = vld [vmem:[%s27187_s14] ss:$0 sm:$0xff] }
 0x8bf   :  { %20759 = vmatprep.subr.bf16.mxu0 %v25123_v8 }
 0x8c1   :  { %18430 = vmatmul.mubr.f32.gmra.mrb[10].mxu0 %v24850_v1 }
 0x8c2   :  { %20761 = vmatpush3.bf16.msra.mxu0 %v25123_v8  ;;  %18464 = vmatprep.mubr.f32.mxu0 %v24842_v43  ;;  %v15972_v43 = vld [vmem:[%s27185_s12] ss:$0 sm:$0xff] }
 0x8c3   :  { %20763 = vmatprep.subr.bf16.mxu0 %v25131_v32 }
 0x8c6   :  { %20765 = vmatpush3.bf16.msra.mxu0 %v25131_v32 }
 0x8c7   :  { %20767 = vmatprep.subr.bf16.mxu0 %v25138_v44 }
 0x8ca   :  { %20769 = vmatpush3.bf16.msra.mxu0 %v25138_v44 }
 0x8cb   :  { %20771 = vmatprep.subr.bf16.mxu0 %v25150_v23 }
 0x8ce   :  { %20773 = vmatpush3.bf16.msra.mxu0 %v25150_v23 }
 0x8cf   :  { %20775 = vmatprep.subr.bf16.mxu0 %v25158_v4 }
 0x8d2   :  { %20777 = vmatpush3.bf16.msra.mxu0 %v25158_v4 }
 0x8d3   :  { %20779 = vmatprep.subr.bf16.mxu0 %v25172_v19 }
 0x8d6   :  { %20781 = vmatpush3.bf16.msra.mxu0 %v25172_v19 }
 0x8d7   :  { %20783 = vmatprep.subr.bf16.mxu0 %v25199_v30 }
 0x8da   :  { %20785 = vmatpush3.bf16.msra.mxu0 %v25199_v30 }
 0x8dd   :  { %18465 = vmatmul.mubr.f32.vlgmr.msra.gmra.mrb[8].mxu0 %v24840_v20 }
 0x8de   :  { %18467 = vmatprep.mubr.f32.mxu0 %v24855_v3 }
 0x8e1   :  { %18468 = vmatmul.mubr.f32.gmra.mrb[10].mxu0 %v24850_v1 }
 0x8ef   :  { %v18010_v8 = vpop.f32.mrb[4].mxu0 }
 0x8f0   :  { %v25396_v32 = vadd.f32 %v18010_v8, %v15972_v43  ;;  %v18238_v44 = vpop.f32.mrb[8].mxu1  ;;  %v3222_v23 = vpop.f32.mrb[5].mxu0 }
 0x8f1   :  { %v25398_v4 = vadd.f32 %v18238_v44, %v15973_v49  ;;  %v25400_v20 = vadd.f32 %v15972_v43, %v3222_v23  ;;  %v4015_v3 = vpop.f32.mrb[9].mxu1 }
 0x8f2   :  { %v4838_v1 = vsel %vm4833_vm7, %v25396_v32, 0  ;;  %v25404_v19 = vadd.f32 %v15973_v49, %v4015_v3  ;;  %v4830_v3 = vld [vmem:[%s27497_s6] sm:$0x1]  ;;  %s22412_s6 = smov 96  }
 0x8f3   :  { %v4923_v33 = vand.u32 4294901760, %v4838_v1  ;;  %v4844_v60 = vsel %vm4833_vm7, %v25398_v4, 0  ;;  %v4835_v40 = vsel %vm4833_vm7, %v25400_v20, 0  ;;  %v18013_v59 = vpop.f32.mrb[6].mxu0  ;;  %vm4831_vm8 = vcmp.gt.f32.partialorder %v4830_v3, 0.0 }
 0x8f4   :  { %v4850_v30 = vand.u32 4294901760, %v4844_v60  ;;  %v4913_v47 = vand.u32 4294901760, %v4835_v40  ;;  %v4841_v54 = vsel %vm4833_vm7, %v25404_v19, 0  ;;  %v25412_v42 = vadd.f32 %v18013_v59, %v15972_v43  ;;  %v18241_v11 = vpop.f32.mrb[10].mxu1  ;;  %v3234_v18 = vpop.f32.mrb[7].mxu0 }
 0x8f5   :  { %v4924_v50 = vsub.f32 %v4838_v1, %v4923_v33  ;;  %v4847_v37 = vand.u32 4294901760, %v4841_v54  ;;  %v25414_v57 = vadd.f32 %v18241_v11, %v15973_v49  ;;  %v25416_v41 = vadd.f32 %v15972_v43, %v3234_v18  ;;  %v4027_v39 = vpop.f32.mrb[11].mxu1 }
 0x8f6   :  { %v4942_v27 = vsub.f32 %v4844_v60, %v4850_v30  ;;  %v25418_v14 = vadd.f32 %v15973_v49, %v4027_v39  ;;  %v4914_v12 = vsub.f32 %v4835_v40, %v4913_v47  ;;  %v27847_v1 = vmov -1e+30   ;;  %v27848_v60 = vld [vmem:[#allocation24_spill] sm:$0xff] }
 0x8f7   :  { %v4925_v48 = vand.u32 4294901760, %v4924_v50  ;;  %v20786_v26 = vpack.c.bf16 %v4850_v30, %v4847_v37  ;;  %v4935_v10 = vsub.f32 %v4841_v54, %v4847_v37 }
 0x8f8   :  { %v4915_v29 = vand.u32 4294901760, %v4914_v12  ;;  %v4943_v21 = vand.u32 4294901760, %v4942_v27 }
 0x8f9   :  { %20787 = vmatprep.subr.bf16.mxu1 %v20786_v26  ;;  %v4936_v25 = vand.u32 4294901760, %v4935_v10  ;;  %v4926_v13 = vsub.f32 %v4924_v50, %v4925_v48  ;;  %v20794_v45 = vpack.c.bf16 %v4942_v27, %v4935_v10 }
 0x8fa   :  { %20789 = vmatpush3.bf16.xpose.msra.mxu1 %v20786_v26  ;;  %v4916_v62 = vsub.f32 %v4914_v12, %v4915_v29  ;;  %v4944_v56 = vsub.f32 %v4942_v27, %v4943_v21 }
 0x8fb   :  { %v4937_v15 = vsub.f32 %v4935_v10, %v4936_v25  ;;  %v4927_v38 = vand.u32 4294901760, %v4926_v13  ;;  %v20802_v58 = vpack.c.bf16 %v4943_v21, %v4936_v25 }
 0x8fc   :  { %v4917_v61 = vand.u32 4294901760, %v4916_v62  ;;  %v4945_v46 = vand.u32 4294901760, %v4944_v56 }
 0x8fd   :  { %v4938_v24 = vand.u32 4294901760, %v4937_v15 }
 0x8fe   :  { %18474 = vmatprep.mubr.f32.mxu1 %v4917_v61 }
 0x8ff   :  { %v20790_v7 = vpack.c.bf16 %v4945_v46, %v4938_v24 }
 0x901   :  { %18475 = vmatmul.mubr.f32.vlgmr.msra.gmra.mrb[12].mxu1 %v4927_v38  ;;  %20791 = vmatprep.subr.bf16.mxu1 %v20790_v7 }
 0x902   :  { %18481 = vmatprep.mubr.f32.mxu1 %v4913_v47  ;;  %20793 = vmatpush3.bf16.xpose.msra.mxu1 %v20790_v7 }
 0x903   :  { %20795 = vmatprep.subr.bf16.mxu1 %v20794_v45 }
 0x909   :  { %18482 = vmatmul.mubr.f32.vlgmr.msra.gmra.mrb[12].mxu1 %v4923_v33 }
 0x90a   :  { %20797 = vmatpush3.bf16.xpose.msra.mxu1 %v20794_v45  ;;  %18488 = vmatprep.mubr.f32.mxu1 %v4914_v12 }
 0x90b   :  { %20799 = vmatprep.subr.bf16.mxu1 %v20786_v26 }
 0x911   :  { %18489 = vmatmul.mubr.f32.vlgmr.msra.gmra.mrb[12].mxu1 %v4924_v50 }
 0x912   :  { %20801 = vmatpush3.bf16.xpose.msra.mxu1 %v20786_v26  ;;  %18495 = vmatprep.mubr.f32.mxu1 %v4915_v29 }
 0x913   :  { %20803 = vmatprep.subr.bf16.mxu1 %v20802_v58 }
 0x919   :  { %18496 = vmatmul.mubr.f32.vlgmr.msra.gmra.mrb[12].mxu1 %v4925_v48 }
 0x91a   :  { %20805 = vmatpush3.bf16.xpose.msra.mxu1 %v20802_v58  ;;  %18502 = vmatprep.mubr.f32.mxu1 %v4913_v47 }
 0x91b   :  { %20807 = vmatprep.subr.bf16.mxu1 %v20786_v26 }
 0x921   :  { %18503 = vmatmul.mubr.f32.vlgmr.msra.gmra.mrb[12].mxu1 %v4923_v33 }
 0x922   :  { %20809 = vmatpush3.bf16.xpose.msra.mxu1 %v20786_v26  ;;  %18509 = vmatprep.mubr.f32.mxu1 %v4913_v47 }
 0x929   :  { %18510 = vmatmul.mubr.f32.vlgmr.msra.gmra.mrb[12].mxu1 %v4923_v33  ;;  %v4832_v33 = vsel %vm4831_vm8, 0.0, %v27847_v1 }
 0x92a   :  { %v25448_v40 = vrot.slane %v4832_v33, %v27848_v60 }
 0x9b0   :  { %v18466_v53 = vpop.f32.mrb[8].mxu0 }
 0x9b1   :  { %v25423_v34 = vadd.f32 %v18466_v53, %v15974_v6  ;;  %v4808_v17 = vpop.f32.mrb[9].mxu0 }
 0x9b2   :  { %v25425_v9 = vadd.f32 %v15974_v6, %v4808_v17 }
 0x9b3   :  { %v5391_v35 = vand.u32 4294901760, %v25423_v34 }
 0x9b4   :  { %v5388_v36 = vand.u32 4294901760, %v25425_v9  ;;  %v18469_v28 = vpop.f32.mrb[10].mxu0 }
 0x9b5   :  { %v25429_v2 = vadd.f32 %v18469_v28, %v15974_v6  ;;  %v4820_v31 = vpop.f32.mrb[11].mxu0  ;;  %v5483_v0 = vsub.f32 %v25423_v34, %v5391_v35 }
 0x9b6   :  { %v25432_v16 = vpack.c.bf16 %v5391_v35, %v5388_v36  ;;  %v25434_v52 = vadd.f32 %v15974_v6, %v4820_v31  ;;  %v5476_v22 = vsub.f32 %v25425_v9, %v5388_v36 }
 0x9b7   :  { %v5484_v51 = vand.u32 4294901760, %v5483_v0 }
 0x9b8   :  { %20811 = vmatprep.subr.bf16.mxu1 %v25432_v16  ;;  %v5477_v5 = vand.u32 4294901760, %v5476_v22  ;;  %v25438_v63 = vpack.c.bf16 %v5483_v0, %v5476_v22 }
 0x9b9   :  { %20813 = vmatpush3.bf16.msra.mxu1 %v25432_v16  ;;  %v5485_v55 = vsub.f32 %v5483_v0, %v5484_v51 }
 0x9ba   :  { %v5478_v43 = vsub.f32 %v5476_v22, %v5477_v5  ;;  %v25441_v49 = vpack.c.bf16 %v5484_v51, %v5477_v5 }
 0x9bb   :  { %v5486_v8 = vand.u32 4294901760, %v5485_v55 }
 0x9bc   :  { %v5479_v44 = vand.u32 4294901760, %v5478_v43 }
 0x9be   :  { %v20814_v23 = vpack.c.bf16 %v5486_v8, %v5479_v44 }
 0x9c0   :  { %20815 = vmatprep.subr.bf16.mxu1 %v20814_v23 }
 0x9fc   :  { %v18511_v59 = vpop.f32.mrb[12].mxu1 }
 0x9fd   :  { %v5349_v30 = vmul.f32 0.17677669, %v18511_v59  ;;  %v5338_v47 = vpop.f32.mrb[13].mxu1 }
 0x9fe   :  { %v5348_v54 = vmul.f32 0.17677669, %v5338_v47 }
 0x9ff   :  { %v5357_v11 = vadd.f32 %v25448_v40, %v5349_v30 }
 0xa00   :  { %v5356_v18 = vadd.f32 %v25448_v40, %v5348_v54 }
 0xa01   :  { %v5362_v50 = vsel %vm5358_vm9, %v5357_v11, -inf }
 0xa02   :  { %5363 = vmax.xlane.f32.xlu1 %v5362_v50  ;;  %v5359_v37 = vsel %vm5358_vm9, %v5356_v18, -inf }
 0xa03   :  { %5360 = vmax.xlane.f32.xlu0 %v5359_v37 }
 0xa8f   :  { %v5364_v39 = vpop.xlane.xlu1 %5363 }
 0xa90   :  { %v5366_v27 = vsub.f32 %v5357_v11, %v5364_v39  ;;  %v5361_v12 = vpop.xlane.xlu0 %5360 }
 0xa91   :  { %v5365_v48 = vsub.f32 %v5356_v18, %v5361_v12 }
 0xa92   :  { %v5369_v26 = vmul.f32 1.442695, %v5366_v27 }
 0xa93   :  { %v5367_v10 = vmul.f32 1.442695, %v5365_v48 }
 0xa94   :  { %22135 = vpow2.f32 %v5369_v26 }
 0xa95   :  { %22137 = vpow2.f32 %v5367_v10 }
 0xa9e   :  { %v22136_v29 = vpop.eup %22135 }
 0xa9f   :  { %v22138_v62 = vpop.eup %22137  ;;  %v5374_v25 = vsel %vm5358_vm9, %v22136_v29, 0.0 }
 0xaa0   :  { %5375 = vadd.xlane.f32.xlu1 %v5374_v25  ;;  %v5371_v21 = vsel %vm5358_vm9, %v22138_v62, 0.0 }
 0xaa1   :  { %5372 = vadd.xlane.f32.xlu0 %v5371_v21 }
 0xab1   :  { %5895 = vrot.lane.b32.xlu1 %v25398_v4, %s22412_s6 }
 0xab5   :  { %5889 = vrot.lane.b32.xlu1 %v25400_v20, %s22412_s6 }
 0xab7   :  { %5893 = vrot.lane.b32.xlu0 %v25404_v19, %s22412_s6 }
 0xabb   :  { %5891 = vrot.lane.b32.xlu0 %v25396_v32, %s22412_s6 }
 0xb2d   :  { %v5376_v13 = vpop.xlane.xlu1 %5375 }
 0xb2e   :  { %22139 = vrcp.f32 %v5376_v13  ;;  %v5373_v61 = vpop.xlane.xlu0 %5372 }
 0xb2f   :  { %22141 = vrcp.f32 %v5373_v61 }
 0xb31   :  { %v5896_v22 = vpop.permute.xlu1 %5895 }
 0xb32   :  { %v5894_v51 = vpop.permute.xlu0 %5893  ;;  %v5903_v55 = vsel %vm4833_vm7, %v5896_v22, 0 }
 0xb33   :  { %v5901_v43 = vsel %vm4833_vm7, %v5894_v51, 0  ;;  %v5909_v44 = vand.u32 4294901760, %v5903_v55 }
 0xb35   :  { %v5890_v5 = vpop.permute.xlu1 %5889  ;;  %v6001_v3 = vsub.f32 %v5903_v55, %v5909_v44 }
 0xb36   :  { %v5897_v8 = vsel %vm4833_vm7, %v5890_v5, 0  ;;  %v5892_v33 = vpop.permute.xlu0 %5891 }
 0xb37   :  { %v5899_v59 = vsel %vm4833_vm7, %v5892_v33, 0  ;;  %v6002_v30 = vand.u32 4294901760, %v6001_v3 }
 0xb38   :  { %v22140_v15 = vpop.eup %22139  ;;  %v5982_v11 = vand.u32 4294901760, %v5899_v59 }
 0xb39   :  { %v22142_v56 = vpop.eup %22141  ;;  %v5380_v24 = vmul.f32 %v22140_v15, %v22136_v29  ;;  %v6003_v50 = vsub.f32 %v6001_v3, %v6002_v30 }
 0xb3a   :  { %v5378_v46 = vmul.f32 %v22142_v56, %v22138_v62  ;;  %v5983_v39 = vsub.f32 %v5899_v59, %v5982_v11 }
 0xb3b   :  { %v5385_v38 = vsel %vm5358_vm9, %v5380_v24, 0  ;;  %v6004_v12 = vand.u32 4294901760, %v6003_v50 }
 0xb3c   :  { %v5382_v7 = vsel %vm5358_vm9, %v5378_v46, 0  ;;  %v5464_v45 = vand.u32 4294901760, %v5385_v38  ;;  %v5984_v48 = vand.u32 4294901760, %v5983_v39 }
 0xb3d   :  { %v5454_v58 = vand.u32 4294901760, %v5382_v7 }
 0xb3e   :  { %v5465_v6 = vsub.f32 %v5385_v38, %v5464_v45  ;;  %v5985_v29 = vsub.f32 %v5983_v39, %v5984_v48 }
 0xb3f   :  { %v5455_v53 = vsub.f32 %v5382_v7, %v5454_v58 }
 0xb40   :  { %v5466_v17 = vand.u32 4294901760, %v5465_v6  ;;  %v5986_v62 = vand.u32 4294901760, %v5985_v29 }
 0xb41   :  { %v5456_v35 = vand.u32 4294901760, %v5455_v53 }
 0xb42   :  { %v5467_v36 = vsub.f32 %v5465_v6, %v5466_v17 }
 0xb43   :  { %v5457_v28 = vsub.f32 %v5455_v53, %v5456_v35 }
 0xb44   :  { %v5468_v0 = vand.u32 4294901760, %v5467_v36 }
 0xb45   :  { %v5458_v31 = vand.u32 4294901760, %v5457_v28 }
 0xb47   :  { %18516 = vmatprep.mubr.f32.mxu1 %v5458_v31 }
 0xb48   :  { %18517 = vmatmul.mubr.f32.vlgmr.msra.gmra.mrb[14].mxu1 %v5468_v0 }
 0xb49   :  { %20817 = vmatpush3.bf16.msra.mxu1 %v20814_v23  ;;  %18523 = vmatprep.mubr.f32.mxu1 %v5454_v58  ;;  %v5972_v23 = vand.u32 4294901760, %v5897_v8 }
 0xb4a   :  { %20819 = vmatprep.subr.bf16.mxu1 %v25438_v63 }
 0xb4b   :  { %v5973_v60 = vsub.f32 %v5897_v8, %v5972_v23 }
 0xb4d   :  { %v5974_v54 = vand.u32 4294901760, %v5973_v60 }
 0xb50   :  { %18524 = vmatmul.mubr.f32.vlgmr.msra.gmra.mrb[14].mxu1 %v5464_v45 }
 0xb51   :  { %20821 = vmatpush3.bf16.msra.mxu1 %v25438_v63  ;;  %18530 = vmatprep.mubr.f32.mxu1 %v5455_v53  ;;  %v5906_v63 = vand.u32 4294901760, %v5901_v43 }
 0xb52   :  { %20823 = vmatprep.subr.bf16.mxu1 %v25432_v16 }
 0xb53   :  { %v5994_v1 = vsub.f32 %v5901_v43, %v5906_v63  ;;  %v20834_v18 = vpack.c.bf16 %v5909_v44, %v5906_v63 }
 0xb55   :  { %v5995_v47 = vand.u32 4294901760, %v5994_v1  ;;  %v20842_v25 = vpack.c.bf16 %v6001_v3, %v5994_v1 }
 0xb57   :  { %v5996_v37 = vsub.f32 %v5994_v1, %v5995_v47 }
 0xb58   :  { %18531 = vmatmul.mubr.f32.vlgmr.msra.gmra.mrb[14].mxu1 %v5465_v6 }
 0xb59   :  { %20825 = vmatpush3.bf16.msra.mxu1 %v25432_v16  ;;  %18537 = vmatprep.mubr.f32.mxu1 %v5456_v35  ;;  %v5997_v27 = vand.u32 4294901760, %v5996_v37 }
 0xb5a   :  { %20827 = vmatprep.subr.bf16.mxu1 %v25441_v49 }
 0xb5b   :  { %v20838_v10 = vpack.c.bf16 %v6004_v12, %v5997_v27 }
 0xb60   :  { %18538 = vmatmul.mubr.f32.vlgmr.msra.gmra.mrb[14].mxu1 %v5466_v17 }
 0xb61   :  { %20829 = vmatpush3.bf16.msra.mxu1 %v25441_v49  ;;  %18544 = vmatprep.mubr.f32.mxu1 %v5454_v58  ;;  %v5975_v49 = vsub.f32 %v5973_v60, %v5974_v54 }
 0xb62   :  { %20831 = vmatprep.subr.bf16.mxu1 %v25432_v16 }
 0xb63   :  { %v5976_v26 = vand.u32 4294901760, %v5975_v49 }
 0xb68   :  { %18545 = vmatmul.mubr.f32.vlgmr.msra.gmra.mrb[14].mxu1 %v5464_v45 }
 0xb69   :  { %20833 = vmatpush3.bf16.msra.mxu1 %v25432_v16  ;;  %18551 = vmatprep.mubr.f32.mxu1 %v5454_v58  ;;  %v20850_v16 = vpack.c.bf16 %v6002_v30, %v5995_v47 }
 0xb6a   :  { %20835 = vmatprep.subr.bf16.mxu1 %v20834_v18 }
 0xb70   :  { %18552 = vmatmul.mubr.f32.vlgmr.msra.gmra.mrb[14].mxu1 %v5464_v45 }
 0xb71   :  { %18558 = vmatprep.mubr.f32.mxu1 %v5976_v26 }
 0xb72   :  { %20837 = vmatpush3.bf16.xpose.msra.mxu1 %v20834_v18 }
 0xb73   :  { %20839 = vmatprep.subr.bf16.mxu1 %v20838_v10 }
 0xb79   :  { %18559 = vmatmul.mubr.f32.vlgmr.msra.gmra.mrb[16].mxu1 %v5986_v62 }
 0xb7a   :  { %20841 = vmatpush3.bf16.xpose.msra.mxu1 %v20838_v10  ;;  %18565 = vmatprep.mubr.f32.mxu1 %v5972_v23 }
 0xb7b   :  { %20843 = vmatprep.subr.bf16.mxu1 %v20842_v25 }
 0xb81   :  { %18566 = vmatmul.mubr.f32.vlgmr.msra.gmra.mrb[16].mxu1 %v5982_v11 }
 0xb82   :  { %20845 = vmatpush3.bf16.xpose.msra.mxu1 %v20842_v25  ;;  %18572 = vmatprep.mubr.f32.mxu1 %v5973_v60 }
 0xb83   :  { %20847 = vmatprep.subr.bf16.mxu1 %v20834_v18 }
 0xb89   :  { %18573 = vmatmul.mubr.f32.vlgmr.msra.gmra.mrb[16].mxu1 %v5983_v39 }
 0xb8a   :  { %20849 = vmatpush3.bf16.xpose.msra.mxu1 %v20834_v18  ;;  %18579 = vmatprep.mubr.f32.mxu1 %v5974_v54 }
 0xb8b   :  { %20851 = vmatprep.subr.bf16.mxu1 %v20850_v16 }
 0xb91   :  { %18580 = vmatmul.mubr.f32.vlgmr.msra.gmra.mrb[16].mxu1 %v5984_v48 }
 0xb92   :  { %20853 = vmatpush3.bf16.xpose.msra.mxu1 %v20850_v16  ;;  %18586 = vmatprep.mubr.f32.mxu1 %v5972_v23 }
 0xb93   :  { %20855 = vmatprep.subr.bf16.mxu1 %v20834_v18 }
 0xb99   :  { %18587 = vmatmul.mubr.f32.vlgmr.msra.gmra.mrb[16].mxu1 %v5982_v11 }
 0xb9a   :  { %20857 = vmatpush3.bf16.xpose.msra.mxu1 %v20834_v18  ;;  %18593 = vmatprep.mubr.f32.mxu1 %v5972_v23 }
 0xba1   :  { %18594 = vmatmul.mubr.f32.vlgmr.msra.gmra.mrb[16].mxu1 %v5982_v11 }
 0xc43   :  { %v25478_v21 = vpop.f32.mrb[14].mxu1 }
 0xc44   :  { %v25480_v13 = vpop.f32.mrb[15].mxu1 }
 0xc74   :  { %v18595_v61 = vpop.f32.mrb[16].mxu1 }
 0xc75   :  { %v6408_v15 = vmul.f32 0.17677669, %v18595_v61  ;;  %v6397_v56 = vpop.f32.mrb[17].mxu1 }
 0xc76   :  { %v6407_v24 = vmul.f32 0.17677669, %v6397_v56 }
 0xc77   :  { %v6410_v46 = vadd.f32 %v6408_v15, %v25448_v40 }
 0xc78   :  { %v6409_v38 = vadd.f32 %v6407_v24, %v25448_v40 }
 0xc79   :  { %v6414_v7 = vsel %vm5358_vm9, %v6410_v46, -inf }
 0xc7a   :  { %6415 = vmax.xlane.f32.xlu0 %v6414_v7  ;;  %v6411_v45 = vsel %vm5358_vm9, %v6409_v38, -inf }
 0xc7b   :  { %6412 = vmax.xlane.f32.xlu1 %v6411_v45 }
 0xd07   :  { %v6416_v58 = vpop.xlane.xlu0 %6415 }
 0xd08   :  { %v6418_v6 = vsub.f32 %v6410_v46, %v6416_v58  ;;  %v6413_v53 = vpop.xlane.xlu1 %6412 }
 0xd09   :  { %v6417_v17 = vsub.f32 %v6409_v38, %v6413_v53 }
 0xd0a   :  { %v6421_v35 = vmul.f32 1.442695, %v6418_v6 }
 0xd0b   :  { %v6419_v36 = vmul.f32 1.442695, %v6417_v17 }
 0xd0c   :  { %22143 = vpow2.f32 %v6421_v35 }
 0xd0d   :  { %22145 = vpow2.f32 %v6419_v36 }
 0xd16   :  { %v22144_v28 = vpop.eup %22143 }
 0xd17   :  { %v22146_v31 = vpop.eup %22145  ;;  %v6426_v0 = vsel %vm5358_vm9, %v22144_v28, 0.0 }
 0xd18   :  { %6427 = vadd.xlane.f32.xlu1 %v6426_v0  ;;  %v6423_v22 = vsel %vm5358_vm9, %v22146_v31, 0.0 }
 0xd19   :  { %6424 = vadd.xlane.f32.xlu0 %v6423_v22 }
 0xd29   :  { %6437 = vrot.lane.b32.xlu1 %v25423_v34, %s22412_s6 }
 0xd2d   :  { %6953 = vrot.lane.b32.xlu1 %v25404_v19, %s22413_s1 }
 0xd2f   :  { %6435 = vrot.lane.b32.xlu0 %v25425_v9, %s22412_s6 }
 0xd31   :  { %6949 = vrot.lane.b32.xlu1 %v25400_v20, %s22413_s1 }
 0xd33   :  { %6955 = vrot.lane.b32.xlu0 %v25398_v4, %s22413_s1 }
 0xd35   :  { %8011 = vrot.lane.b32.xlu1 %v25404_v19, %s22414_s28 }
 0xd37   :  { %6951 = vrot.lane.b32.xlu0 %v25396_v32, %s22413_s1 }
 0xd39   :  { %8007 = vrot.lane.b32.xlu1 %v25400_v20, %s22414_s28 }
 0xd3b   :  { %8013 = vrot.lane.b32.xlu0 %v25398_v4, %s22414_s28 }
 0xd3f   :  { %8009 = vrot.lane.b32.xlu0 %v25396_v32, %s22414_s28 }
 0xda5   :  { %v6428_v51 = vpop.xlane.xlu1 %6427 }
 0xda6   :  { %22147 = vrcp.f32 %v6428_v51  ;;  %v6425_v5 = vpop.xlane.xlu0 %6424 }
 0xda7   :  { %22149 = vrcp.f32 %v6425_v5 }
 0xda9   :  { %v6438_v55 = vpop.permute.xlu1 %6437 }
 0xdaa   :  { %v6451_v43 = vand.u32 4294901760, %v6438_v55  ;;  %v6436_v8 = vpop.permute.xlu0 %6435 }
 0xdab   :  { %v6448_v19 = vand.u32 4294901760, %v6436_v8 }
 0xdac   :  { %v25508_v44 = vsub.f32 %v6438_v55, %v6451_v43 }
 0xdad   :  { %v25510_v63 = vpack.c.bf16 %v6451_v43, %v6448_v19  ;;  %v25512_v23 = vsub.f32 %v6436_v8, %v6448_v19  ;;  %v25514_v20 = vpop.permute.xlu1 %6953 }
 0xdae   :  { %v6544_v4 = vand.u32 4294901760, %v25508_v44  ;;  %v25517_v3 = vpop.permute.xlu0 %6955 }
 0xdaf   :  { %v6537_v32 = vand.u32 4294901760, %v25512_v23  ;;  %20859 = vmatprep.subr.bf16.mxu1 %v25510_v63 }
 0xdb0   :  { %v22148_v1 = vpop.eup %22147  ;;  %v6545_v33 = vsub.f32 %v25508_v44, %v6544_v4  ;;  %20861 = vmatpush3.bf16.msra.mxu1 %v25510_v63 }
 0xdb1   :  { %v22150_v60 = vpop.eup %22149  ;;  %v6432_v59 = vmul.f32 %v22148_v1, %v22144_v28  ;;  %v6538_v30 = vsub.f32 %v25512_v23, %v6537_v32  ;;  %v25528_v47 = vpop.permute.xlu1 %6949 }
 0xdb2   :  { %v6430_v54 = vmul.f32 %v22150_v60, %v22146_v31  ;;  %v25530_v11 = vpop.permute.xlu0 %6951  ;;  %v6546_v50 = vand.u32 4294901760, %v6545_v33 }
 0xdb3   :  { %v6539_v18 = vand.u32 4294901760, %v6538_v30  ;;  %v6445_v27 = vsel %vm5358_vm9, %v6432_v59, 0 }
 0xdb4   :  { %v6442_v37 = vsel %vm5358_vm9, %v6430_v54, 0  ;;  %v25539_v16 = vand.u32 4294901760, %v6445_v27 }
 0xdb5   :  { %v8012_v39 = vpop.permute.xlu1 %8011  ;;  %v25533_v49 = vand.u32 4294901760, %v6442_v37  ;;  %v20862_v26 = vpack.c.bf16 %v6546_v50, %v6539_v18  ;;  %v20866_v50 = vpack.c.bf16 %v25508_v44, %v25512_v23  ;;  %v9108_v44 = vsel %vm4833_vm7, %v25418_v14, 0 }
 0xdb6   :  { %v8019_v12 = vsel %vm4833_vm7, %v8012_v39, 0  ;;  %v8014_v48 = vpop.permute.xlu0 %8013  ;;  %v6525_v36 = vsub.f32 %v6445_v27, %v25539_v16  ;;  %v20874_v39 = vpack.c.bf16 %v6544_v4, %v6537_v32  ;;  %v6961_v27 = vsel %vm4833_vm7, %v25514_v20, 0 }
 0xdb7   :  { %v8024_v10 = vand.u32 4294901760, %v8019_v12  ;;  %v8021_v29 = vsel %vm4833_vm7, %v8014_v48, 0  ;;  %v6515_v62 = vsub.f32 %v6442_v37, %v25533_v49  ;;  %20863 = vmatprep.subr.bf16.mxu1 %v20862_v26  ;;  %v6957_v23 = vsel %vm4833_vm7, %v25528_v47, 0 }
 0xdb8   :  { %v8027_v25 = vand.u32 4294901760, %v8021_v29  ;;  %v6526_v5 = vand.u32 4294901760, %v6525_v36  ;;  %v6966_v20 = vand.u32 4294901760, %v6961_v27  ;;  %v9102_v32 = vsel %vm4833_vm7, %v25416_v41, 0 }
 0xdb9   :  { %v25541_v61 = vsub.f32 %v8019_v12, %v8024_v10  ;;  %v8008_v15 = vpop.permute.xlu1 %8007  ;;  %v6516_v56 = vand.u32 4294901760, %v6515_v62  ;;  %v6963_v12 = vsel %vm4833_vm7, %v25517_v3, 0  ;;  %v25597_v47 = vand.u32 4294901760, %v9102_v32 }
 0xdba   :  { %v25543_v24 = vpack.c.bf16 %v8027_v25, %v8024_v10  ;;  %v8119_v46 = vsub.f32 %v8021_v29, %v8027_v25  ;;  %v8015_v38 = vsel %vm4833_vm7, %v8008_v15, 0  ;;  %v8010_v7 = vpop.permute.xlu0 %8009  ;;  %v6527_v19 = vsub.f32 %v6525_v36, %v6526_v5 }
 0xdbb   :  { %v8113_v45 = vand.u32 4294901760, %v25541_v61  ;;  %v25547_v58 = vand.u32 4294901760, %v8015_v38  ;;  %v8017_v6 = vsel %vm4833_vm7, %v8010_v7, 0  ;;  %v6517_v53 = vsub.f32 %v6515_v62, %v6516_v56 }
 0xdbc   :  { %v8120_v17 = vand.u32 4294901760, %v8119_v46  ;;  %v25550_v35 = vand.u32 4294901760, %v8017_v6  ;;  %20931 = vmatprep.subr.bf16.mxu0 %v25543_v24  ;;  %v6528_v59 = vand.u32 4294901760, %v6527_v19  ;;  %v20938_v37 = vpack.c.bf16 %v8119_v46, %v25541_v61 }
 0xdbd   :  { %v8114_v28 = vsub.f32 %v25541_v61, %v8113_v45  ;;  %v8091_v31 = vsub.f32 %v8015_v38, %v25547_v58  ;;  %20933 = vmatpush3.bf16.xpose.msra.mxu0 %v25543_v24  ;;  %v6518_v0 = vand.u32 4294901760, %v6517_v53  ;;  %v6969_v4 = vand.u32 4294901760, %v6963_v12 }
 0xdbe   :  { %v8121_v22 = vsub.f32 %v8119_v46, %v8120_v17  ;;  %v25558_v51 = vsub.f32 %v8017_v6, %v25550_v35  ;;  %v20946_v48 = vpack.c.bf16 %v8120_v17, %v8113_v45  ;;  %v9114_v10 = vand.u32 4294901760, %v9108_v44 }
 0xdbf   :  { %v8092_v55 = vand.u32 4294901760, %v8091_v31  ;;  %18600 = vmatprep.mubr.f32.mxu1 %v6518_v0  ;;  %v8115_v43 = vand.u32 4294901760, %v8114_v28  ;;  %v25590_v29 = vand.u32 4294901760, %v6957_v23  ;;  %v25594_v25 = vsub.f32 %v6963_v12, %v6969_v4 }
 0xdc0   :  { %v8102_v8 = vand.u32 4294901760, %v25558_v51  ;;  %v8122_v1 = vand.u32 4294901760, %v8121_v22  ;;  %18601 = vmatmul.mubr.f32.vlgmr.msra.gmra.mrb[18].mxu1 %v6528_v59  ;;  %v25602_v15 = vsub.f32 %v9108_v44, %v9114_v10  ;;  %v6959_v46 = vsel %vm4833_vm7, %v25530_v11, 0 }
 0xdc1   :  { %v8093_v33 = vsub.f32 %v8091_v31, %v8092_v55  ;;  %20865 = vmatpush3.bf16.msra.mxu1 %v20862_v26  ;;  %18607 = vmatprep.mubr.f32.mxu1 %v25533_v49  ;;  %v9111_v26 = vsel %vm4833_vm7, %v25414_v57, 0  ;;  %v7062_v7 = vand.u32 4294901760, %v25594_v25  ;;  %v9105_v45 = vsel %vm4833_vm7, %v25412_v42, 0 }
 0xdc2   :  { %v8103_v60 = vsub.f32 %v25558_v51, %v8102_v8  ;;  %v20934_v30 = vpack.c.bf16 %v8122_v1, %v8115_v43  ;;  %20867 = vmatprep.subr.bf16.mxu1 %v20866_v50  ;;  %v9117_v3 = vand.u32 4294901760, %v9111_v26  ;;  %v25616_v6 = vsub.f32 %v9102_v32, %v25597_v47 }
 0xdc3   :  { %v8094_v54 = vand.u32 4294901760, %v8093_v33  ;;  %v25619_v17 = vand.u32 4294901760, %v6959_v46  ;;  %v9203_v11 = vand.u32 4294901760, %v25602_v15  ;;  %v25623_v28 = vpack.c.bf16 %v6969_v4, %v6966_v20 }
 0xdc4   :  { %v8104_v18 = vand.u32 4294901760, %v8103_v60  ;;  %20935 = vmatprep.subr.bf16.mxu0 %v20934_v30  ;;  %v25600_v61 = vsub.f32 %v9111_v26, %v9117_v3  ;;  %v7063_v22 = vsub.f32 %v25594_v25, %v7062_v7 }
 0xdc5   :  { %18726 = vmatprep.mubr.f32.mxu0 %v8094_v54 }
 0xdc6   :  { %18727 = vmatmul.mubr.f32.vlgmr.msra.gmra.mrb[12].mxu0 %v8104_v18  ;;  %v7064_v1 = vand.u32 4294901760, %v7063_v22 }
 0xdc7   :  { %20937 = vmatpush3.bf16.xpose.msra.mxu0 %v20934_v30  ;;  %18733 = vmatprep.mubr.f32.mxu0 %v25547_v58 }
 0xdc8   :  { %20939 = vmatprep.subr.bf16.mxu0 %v20938_v37  ;;  %18608 = vmatmul.mubr.f32.vlgmr.msra.gmra.mrb[18].mxu1 %v25539_v16 }
 0xdc9   :  { %20869 = vmatpush3.bf16.msra.mxu1 %v20866_v50  ;;  %18614 = vmatprep.mubr.f32.mxu1 %v6515_v62  ;;  %v25592_v62 = vsub.f32 %v6961_v27, %v6966_v20 }
 0xdca   :  { %20871 = vmatprep.subr.bf16.mxu1 %v25510_v63 }
 0xdcb   :  { %v7055_v38 = vand.u32 4294901760, %v25592_v62 }
 0xdcd   :  { %v7056_v0 = vsub.f32 %v25592_v62, %v7055_v38 }
 0xdce   :  { %18734 = vmatmul.mubr.f32.vlgmr.msra.gmra.mrb[12].mxu0 %v25550_v35 }
 0xdcf   :  { %20941 = vmatpush3.bf16.xpose.msra.mxu0 %v20938_v37  ;;  %18740 = vmatprep.mubr.f32.mxu0 %v8091_v31  ;;  %v25626_v31 = vand.u32 4294901760, %v9105_v45  ;;  %v7057_v19 = vand.u32 4294901760, %v7056_v0 }
 0xdd0   :  { %20943 = vmatprep.subr.bf16.mxu0 %v25543_v24  ;;  %18615 = vmatmul.mubr.f32.vlgmr.msra.gmra.mrb[18].mxu1 %v6525_v36  ;;  %v9210_v36 = vand.u32 4294901760, %v25600_v61 }
 0xdd1   :  { %20873 = vmatpush3.bf16.msra.mxu1 %v25510_v63  ;;  %18621 = vmatprep.mubr.f32.mxu1 %v6516_v56  ;;  %v25605_v56 = vsub.f32 %v6957_v23, %v25590_v29  ;;  %v20886_v18 = vpack.c.bf16 %v7064_v1, %v7057_v19 }
 0xdd2   :  { %20875 = vmatprep.subr.bf16.mxu1 %v20874_v39  ;;  %v20994_v26 = vpack.c.bf16 %v9210_v36, %v9203_v11 }
 0xdd3   :  { %v7034_v53 = vand.u32 4294901760, %v25605_v56 }
 0xdd5   :  { %v7035_v43 = vsub.f32 %v25605_v56, %v7034_v53 }
 0xdd6   :  { %18741 = vmatmul.mubr.f32.vlgmr.msra.gmra.mrb[12].mxu0 %v25558_v51  ;;  %v25636_v51 = vpack.c.bf16 %v9117_v3, %v9114_v10 }
 0xdd7   :  { %20945 = vmatpush3.bf16.xpose.msra.mxu0 %v25543_v24  ;;  %18747 = vmatprep.mubr.f32.mxu0 %v8092_v55  ;;  %v7043_v55 = vsub.f32 %v6959_v46, %v25619_v17  ;;  %v7036_v59 = vand.u32 4294901760, %v7035_v43 }
 0xdd8   :  { %20947 = vmatprep.subr.bf16.mxu0 %v20946_v48  ;;  %18622 = vmatmul.mubr.f32.vlgmr.msra.gmra.mrb[18].mxu1 %v6526_v5  ;;  %v9182_v5 = vand.u32 4294901760, %v25616_v6 }
 0xdd9   :  { %20877 = vmatpush3.bf16.msra.mxu1 %v20874_v39  ;;  %18628 = vmatprep.mubr.f32.mxu1 %v25533_v49  ;;  %v7044_v60 = vand.u32 4294901760, %v7043_v55 }
 0xdda   :  { %20879 = vmatprep.subr.bf16.mxu1 %v25510_v63  ;;  %v9183_v33 = vsub.f32 %v25616_v6, %v9182_v5 }
 0xdde   :  { %18748 = vmatmul.mubr.f32.vlgmr.msra.gmra.mrb[12].mxu0 %v8102_v8  ;;  %v9191_v8 = vsub.f32 %v9105_v45, %v25626_v31 }
 0xddf   :  { %20949 = vmatpush3.bf16.xpose.msra.mxu0 %v20946_v48  ;;  %18754 = vmatprep.mubr.f32.mxu0 %v25547_v58  ;;  %v20898_v48 = vpack.c.bf16 %v7062_v7, %v7055_v38 }
 0xde0   :  { %20951 = vmatprep.subr.bf16.mxu0 %v25543_v24  ;;  %18629 = vmatmul.mubr.f32.vlgmr.msra.gmra.mrb[18].mxu1 %v25539_v16  ;;  %v9192_v50 = vand.u32 4294901760, %v9191_v8 }
 0xde1   :  { %20881 = vmatpush3.bf16.msra.mxu1 %v25510_v63  ;;  %18635 = vmatprep.mubr.f32.mxu1 %v25533_v49  ;;  %v9204_v63 = vsub.f32 %v25602_v15, %v9203_v11  ;;  %v9211_v49 = vsub.f32 %v25600_v61, %v9210_v36  ;;  %v27849_v36 = vld [vmem:[#allocation25_spill] sm:$0xff] }
 0xde2   :  { %20883 = vmatprep.subr.bf16.mxu1 %v25623_v28  ;;  %v9193_v39 = vsub.f32 %v9191_v8, %v9192_v50 }
 0xde3   :  { %v9205_v30 = vand.u32 4294901760, %v9204_v63  ;;  %v9212_v54 = vand.u32 4294901760, %v9211_v49 }
 0xde4   :  { %v9194_v12 = vand.u32 4294901760, %v9193_v39 }
 0xde5   :  { %v20982_v37 = vpack.c.bf16 %v9212_v54, %v9205_v30 }
 0xde6   :  { %18755 = vmatmul.mubr.f32.vlgmr.msra.gmra.mrb[12].mxu0 %v25550_v35 }
 0xde7   :  { %20953 = vmatpush3.bf16.xpose.msra.mxu0 %v25543_v24  ;;  %18761 = vmatprep.mubr.f32.mxu0 %v25547_v58  ;;  %v9184_v24 = vand.u32 4294901760, %v9183_v33  ;;  %v7045_v58 = vsub.f32 %v7043_v55, %v7044_v60 }
 0xde8   :  { %20979 = vmatprep.subr.bf16.mxu0 %v25636_v51  ;;  %18636 = vmatmul.mubr.f32.vlgmr.msra.gmra.mrb[18].mxu1 %v25539_v16  ;;  %v20890_v16 = vpack.c.bf16 %v25594_v25, %v25592_v62 }
 0xde9   :  { %18642 = vmatprep.mubr.f32.mxu1 %v7036_v59  ;;  %v7046_v27 = vand.u32 4294901760, %v7045_v58 }
 0xdea   :  { %20885 = vmatpush3.bf16.xpose.msra.mxu1 %v25623_v28 }
 0xdeb   :  { %20887 = vmatprep.subr.bf16.mxu1 %v20886_v18 }
 0xdee   :  { %18762 = vmatmul.mubr.f32.vlgmr.msra.gmra.mrb[12].mxu0 %v25550_v35  ;;  %v20986_v35 = vpack.c.bf16 %v25600_v61, %v25602_v15 }
 0xdef   :  { %20981 = vmatpush3.bf16.xpose.msra.mxu0 %v25636_v51  ;;  %18810 = vmatprep.mubr.f32.mxu0 %v9184_v24 }
 0xdf0   :  { %20983 = vmatprep.subr.bf16.mxu0 %v20982_v37 }
 0xdf1   :  { %18643 = vmatmul.mubr.f32.vlgmr.msra.gmra.mrb[20].mxu1 %v7046_v27 }
 0xdf2   :  { %20889 = vmatpush3.bf16.xpose.msra.mxu1 %v20886_v18  ;;  %18649 = vmatprep.mubr.f32.mxu1 %v25590_v29 }
 0xdf3   :  { %20891 = vmatprep.subr.bf16.mxu1 %v20890_v16 }
 0xdf6   :  { %18811 = vmatmul.mubr.f32.vlgmr.msra.gmra.mrb[14].mxu0 %v9194_v12 }
 0xdf7   :  { %20985 = vmatpush3.bf16.xpose.msra.mxu0 %v20982_v37  ;;  %18817 = vmatprep.mubr.f32.mxu0 %v25597_v47 }
 0xdf8   :  { %20987 = vmatprep.subr.bf16.mxu0 %v20986_v35 }
 0xdf9   :  { %18650 = vmatmul.mubr.f32.vlgmr.msra.gmra.mrb[20].mxu1 %v25619_v17 }
 0xdfa   :  { %20893 = vmatpush3.bf16.xpose.msra.mxu1 %v20890_v16  ;;  %18656 = vmatprep.mubr.f32.mxu1 %v25605_v56 }
 0xdfb   :  { %20895 = vmatprep.subr.bf16.mxu1 %v25623_v28 }
 0xdfe   :  { %18818 = vmatmul.mubr.f32.vlgmr.msra.gmra.mrb[14].mxu0 %v25626_v31 }
 0xdff   :  { %20989 = vmatpush3.bf16.xpose.msra.mxu0 %v20986_v35  ;;  %18824 = vmatprep.mubr.f32.mxu0 %v25616_v6 }
 0xe00   :  { %20991 = vmatprep.subr.bf16.mxu0 %v25636_v51 }
 0xe01   :  { %18657 = vmatmul.mubr.f32.vlgmr.msra.gmra.mrb[20].mxu1 %v7043_v55 }
 0xe02   :  { %20897 = vmatpush3.bf16.xpose.msra.mxu1 %v25623_v28  ;;  %18663 = vmatprep.mubr.f32.mxu1 %v7034_v53 }
 0xe03   :  { %20899 = vmatprep.subr.bf16.mxu1 %v20898_v48 }
 0xe06   :  { %18825 = vmatmul.mubr.f32.vlgmr.msra.gmra.mrb[14].mxu0 %v9191_v8 }
 0xe07   :  { %20993 = vmatpush3.bf16.xpose.msra.mxu0 %v25636_v51  ;;  %18831 = vmatprep.mubr.f32.mxu0 %v9182_v5 }
 0xe08   :  { %20995 = vmatprep.subr.bf16.mxu0 %v20994_v26 }
 0xe09   :  { %18664 = vmatmul.mubr.f32.vlgmr.msra.gmra.mrb[20].mxu1 %v7044_v60 }
 0xe0a   :  { %20901 = vmatpush3.bf16.xpose.msra.mxu1 %v20898_v48  ;;  %18670 = vmatprep.mubr.f32.mxu1 %v25590_v29 }
 0xe0b   :  { %20903 = vmatprep.subr.bf16.mxu1 %v25623_v28 }
 0xe0e   :  { %18832 = vmatmul.mubr.f32.vlgmr.msra.gmra.mrb[14].mxu0 %v9192_v50 }
 0xe0f   :  { %20997 = vmatpush3.bf16.xpose.msra.mxu0 %v20994_v26  ;;  %18838 = vmatprep.mubr.f32.mxu0 %v25597_v47 }
 0xe10   :  { %20999 = vmatprep.subr.bf16.mxu0 %v25636_v51 }
 0xe11   :  { %18671 = vmatmul.mubr.f32.vlgmr.msra.gmra.mrb[20].mxu1 %v25619_v17 }
 0xe12   :  { %20905 = vmatpush3.bf16.xpose.msra.mxu1 %v25623_v28  ;;  %18677 = vmatprep.mubr.f32.mxu1 %v25590_v29 }
 0xe16   :  { %18839 = vmatmul.mubr.f32.vlgmr.msra.gmra.mrb[14].mxu0 %v25626_v31 }
 0xe17   :  { %21001 = vmatpush3.bf16.xpose.msra.mxu0 %v25636_v51  ;;  %18845 = vmatprep.mubr.f32.mxu0 %v25597_v47 }
 0xe19   :  { %18678 = vmatmul.mubr.f32.vlgmr.msra.gmra.mrb[20].mxu1 %v25619_v17 }
 0xe1e   :  { %18846 = vmatmul.mubr.f32.vlgmr.msra.gmra.mrb[14].mxu0 %v25626_v31 }
 0xebb   :  { %v25696_v44 = vpop.f32.mrb[18].mxu1 }
 0xebc   :  { %v25698_v23 = vpop.f32.mrb[19].mxu1 }
 0xec1   :  { %v18763_v20 = vpop.f32.mrb[12].mxu0 }
 0xec2   :  { %v8515_v4 = vpop.f32.mrb[13].mxu0  ;;  %v8526_v62 = vmul.f32 0.17677669, %v18763_v20 }
 0xec3   :  { %v8525_v32 = vmul.f32 0.17677669, %v8515_v4 }
 0xec4   :  { %v8528_v6 = vadd.f32 %v8526_v62, %v25448_v40 }
 0xec5   :  { %v8527_v38 = vadd.f32 %v8525_v32, %v25448_v40 }
 0xec6   :  { %v8532_v11 = vsel %vm5358_vm9, %v8528_v6, -inf }
 0xec7   :  { %v8529_v53 = vsel %vm5358_vm9, %v8527_v38, -inf }
 0xeec   :  { %v18679_v3 = vpop.f32.mrb[20].mxu1 }
 0xeed   :  { %v7468_v10 = vmul.f32 0.17677669, %v18679_v3  ;;  %v7457_v29 = vpop.f32.mrb[21].mxu1 }
 0xeee   :  { %v7467_v25 = vmul.f32 0.17677669, %v7457_v29 }
 0xeef   :  { %v7470_v15 = vadd.f32 %v7468_v10, %v25448_v40 }
 0xef0   :  { %v7469_v56 = vadd.f32 %v7467_v25, %v25448_v40 }
 0xef1   :  { %v18847_v61 = vpop.f32.mrb[14].mxu0  ;;  %v7474_v46 = vsel %vm5358_vm9, %v7470_v15, -inf }
 0xef2   :  { %v9605_v47 = vpop.f32.mrb[15].mxu0  ;;  %7475 = vmax.xlane.f32.xlu0 %v7474_v46  ;;  %v7471_v45 = vsel %vm5358_vm9, %v7469_v56, -inf  ;;  %v9616_v17 = vmul.f32 0.17677669, %v18847_v61 }
 0xef3   :  { %v9615_v7 = vmul.f32 0.17677669, %v9605_v47  ;;  %7472 = vmax.xlane.f32.xlu1 %v7471_v45 }
 0xef4   :  { %v9624_v0 = vadd.f32 %v27849_v36, %v9616_v17 }
 0xef5   :  { %v9623_v28 = vadd.f32 %v27849_v36, %v9615_v7 }
 0xef6   :  { %8530 = vmax.xlane.f32.xlu0 %v8529_v53  ;;  %v9628_v22 = vsel %vm5358_vm9, %v9624_v0, -inf }
 0xef7   :  { %8533 = vmax.xlane.f32.xlu1 %v8532_v11  ;;  %v9625_v31 = vsel %vm5358_vm9, %v9623_v28, -inf }
 0xefb   :  { %9626 = vmax.xlane.f32.xlu1 %v9625_v31 }
 0xeff   :  { %9629 = vmax.xlane.f32.xlu1 %v9628_v22 }
 0xf10   :  { %7495 = vrot.lane.b32.xlu1 %v25423_v34, %s22413_s1 }
 0xf7f   :  { %v7476_v40 = vpop.xlane.xlu0 %7475 }
 0xf80   :  { %v7478_v51 = vsub.f32 %v7470_v15, %v7476_v40  ;;  %v7473_v5 = vpop.xlane.xlu1 %7472 }
 0xf81   :  { %v7477_v55 = vsub.f32 %v7469_v56, %v7473_v5 }
 0xf82   :  { %v7481_v43 = vmul.f32 1.442695, %v7478_v51 }
 0xf83   :  { %v7479_v63 = vmul.f32 1.442695, %v7477_v55  ;;  %v8531_v49 = vpop.xlane.xlu0 %8530 }
 0xf84   :  { %22151 = vpow2.f32 %v7481_v43  ;;  %v8535_v8 = vsub.f32 %v8527_v38, %v8531_v49  ;;  %v8534_v18 = vpop.xlane.xlu1 %8533 }
 0xf85   :  { %22153 = vpow2.f32 %v7479_v63  ;;  %v8536_v24 = vsub.f32 %v8528_v6, %v8534_v18 }
 0xf86   :  { %v8537_v19 = vmul.f32 1.442695, %v8535_v8 }
 0xf87   :  { %v8539_v37 = vmul.f32 1.442695, %v8536_v24 }
 0xf88   :  { %22155 = vpow2.f32 %v8537_v19  ;;  %v9627_v50 = vpop.xlane.xlu1 %9626 }
 0xf89   :  { %v9631_v58 = vsub.f32 %v9623_v28, %v9627_v50  ;;  %22157 = vpow2.f32 %v8539_v37 }
 0xf8b   :  { %v9633_v39 = vmul.f32 1.442695, %v9631_v58 }
 0xf8c   :  { %v9630_v35 = vpop.xlane.xlu1 %9629 }
 0xf8d   :  { %22159 = vpow2.f32 %v9633_v39  ;;  %v9632_v48 = vsub.f32 %v9624_v0, %v9630_v35 }
 0xf8e   :  { %v22152_v1 = vpop.eup %22151 }
 0xf8f   :  { %v7486_v33 = vsel %vm5358_vm9, %v22152_v1, 0.0  ;;  %v22154_v60 = vpop.eup %22153  ;;  %v9635_v26 = vmul.f32 1.442695, %v9632_v48 }
 0xf90   :  { %7487 = vadd.xlane.f32.xlu0 %v7486_v33  ;;  %v7483_v54 = vsel %vm5358_vm9, %v22154_v60, 0.0  ;;  %v7496_v3 = vpop.permute.xlu1 %7495 }
 0xf91   :  { %22161 = vpow2.f32 %v9635_v26  ;;  %v7509_v10 = vand.u32 4294901760, %v7496_v3 }
 0xf92   :  { %v25715_v59 = vpop.eup %22155 }
 0xf93   :  { %v8541_v30 = vsel %vm5358_vm9, %v25715_v59, 0.0  ;;  %v25724_v27 = vpop.eup %22157  ;;  %v7601_v29 = vsub.f32 %v7496_v3, %v7509_v10 }
 0xf94   :  { %8542 = vadd.xlane.f32.xlu1 %v8541_v30  ;;  %7484 = vadd.xlane.f32.xlu0 %v7483_v54  ;;  %v8544_v12 = vsel %vm5358_vm9, %v25724_v27, 0.0 }
 0xf95   :  { %v7602_v25 = vand.u32 4294901760, %v7601_v29 }
 0xf97   :  { %v25726_v16 = vpop.eup %22159  ;;  %v7603_v38 = vsub.f32 %v7601_v29, %v7602_v25 }
 0xf99   :  { %v7604_v31 = vand.u32 4294901760, %v7603_v38 }
 0xf9b   :  { %v25738_v20 = vpop.eup %22161 }
 0xf9c   :  { %v9640_v4 = vsel %vm5358_vm9, %v25738_v20, 0.0 }
 0xfa5   :  { %8553 = vrot.lane.b32.xlu1 %v25423_v34, %s22414_s28  ;;  %v9637_v34 = vsel %vm5358_vm9, %v25726_v16, 0.0 }
 0xfaa   :  { %7493 = vrot.lane.b32.xlu0 %v25425_v9, %s22413_s1 }
 0xfc9   :  { %8545 = vadd.xlane.f32.xlu0 %v8544_v12  ;;  %9638 = vadd.xlane.f32.xlu1 %v9637_v34 }
 0xfda   :  { %10161 = vrot.lane.b32.xlu1 %v25414_v57, %s22412_s6 }
 0xfde   :  { %10155 = vrot.lane.b32.xlu1 %v25416_v41, %s22412_s6 }
 0xfdf   :  { %8551 = vrot.lane.b32.xlu0 %v25425_v9, %s22414_s28 }
 0xffe   :  { %9641 = vadd.xlane.f32.xlu0 %v9640_v4 }
0x1014   :  { %10159 = vrot.lane.b32.xlu0 %v25418_v14, %s22412_s6 }
0x1018   :  { %10157 = vrot.lane.b32.xlu0 %v25412_v42, %s22412_s6 }
0x101d   :  { %v7488_v32 = vpop.xlane.xlu0 %7487 }
0x101e   :  { %22163 = vrcp.f32 %v7488_v32 }
0x1021   :  { %v7485_v9 = vpop.xlane.xlu0 %7484 }
0x1022   :  { %22165 = vrcp.f32 %v7485_v9 }
0x1025   :  { %v7494_v62 = vpop.permute.xlu0 %7493 }
0x1026   :  { %v7506_v61 = vand.u32 4294901760, %v7494_v62 }
0x1028   :  { %v22164_v15 = vpop.eup %22163  ;;  %v20906_v47 = vpack.c.bf16 %v7509_v10, %v7506_v61  ;;  %v7594_v56 = vsub.f32 %v7494_v62, %v7506_v61 }
0x1029   :  { %v7492_v46 = vmul.f32 %v22164_v15, %v22152_v1  ;;  %v8543_v1 = vpop.xlane.xlu1 %8542 }
0x102a   :  { %v7595_v7 = vand.u32 4294901760, %v7594_v56  ;;  %20907 = vmatprep.subr.bf16.mxu1 %v20906_v47  ;;  %v20914_v33 = vpack.c.bf16 %v7601_v29, %v7594_v56  ;;  %22167 = vrcp.f32 %v8543_v1 }
0x102b   :  { %20909 = vmatpush3.bf16.msra.mxu1 %v20906_v47  ;;  %v7503_v45 = vsel %vm5358_vm9, %v7492_v46, 0 }
0x102c   :  { %v22166_v6 = vpop.eup %22165  ;;  %v7596_v53 = vsub.f32 %v7594_v56, %v7595_v7  ;;  %v25747_v17 = vand.u32 4294901760, %v7503_v45  ;;  %v20922_v54 = vpack.c.bf16 %v7602_v25, %v7595_v7 }
0x102d   :  { %v7490_v11 = vmul.f32 %v22166_v6, %v22154_v60  ;;  %v8554_v50 = vpop.permute.xlu1 %8553 }
0x102e   :  { %v7597_v28 = vand.u32 4294901760, %v7596_v53  ;;  %v7583_v0 = vsub.f32 %v7503_v45, %v25747_v17  ;;  %v8567_v58 = vand.u32 4294901760, %v8554_v50 }
0x102f   :  { %v7500_v22 = vsel %vm5358_vm9, %v7490_v11, 0 }
0x1030   :  { %v20910_v40 = vpack.c.bf16 %v7604_v31, %v7597_v28  ;;  %v7572_v51 = vand.u32 4294901760, %v7500_v22  ;;  %v7584_v5 = vand.u32 4294901760, %v7583_v0  ;;  %v8659_v12 = vsub.f32 %v8554_v50, %v8567_v58 }
0x1031   :  { %v9657_v31 = vand.u32 4294901760, %v25429_v2 }
0x1032   :  { %20911 = vmatprep.subr.bf16.mxu1 %v20910_v40  ;;  %v7573_v55 = vsub.f32 %v7500_v22, %v7572_v51  ;;  %v7585_v63 = vsub.f32 %v7583_v0, %v7584_v5  ;;  %v8660_v35 = vand.u32 4294901760, %v8659_v12 }
0x1034   :  { %v7574_v43 = vand.u32 4294901760, %v7573_v55  ;;  %v7586_v19 = vand.u32 4294901760, %v7585_v63  ;;  %v22168_v60 = vpop.eup %22167  ;;  %v8661_v32 = vsub.f32 %v8659_v12, %v8660_v35 }
0x1035   :  { %v8548_v30 = vmul.f32 %v22168_v60, %v25715_v59 }
0x1036   :  { %v7575_v49 = vsub.f32 %v7573_v55, %v7574_v43  ;;  %v8662_v15 = vand.u32 4294901760, %v8661_v32 }
0x1037   :  { %v8558_v18 = vsel %vm5358_vm9, %v8548_v30, 0 }
0x1038   :  { %v7576_v8 = vand.u32 4294901760, %v7575_v49  ;;  %v25754_v24 = vand.u32 4294901760, %v8558_v18 }
0x103a   :  { %18684 = vmatprep.mubr.f32.mxu1 %v7576_v8  ;;  %v8631_v39 = vsub.f32 %v8558_v18, %v25754_v24 }
0x103b   :  { %18685 = vmatmul.mubr.f32.vlgmr.msra.gmra.mrb[22].mxu1 %v7586_v19 }
0x103c   :  { %20913 = vmatpush3.bf16.msra.mxu1 %v20910_v40  ;;  %18691 = vmatprep.mubr.f32.mxu1 %v7572_v51  ;;  %v8632_v34 = vand.u32 4294901760, %v8631_v39 }
0x103d   :  { %20915 = vmatprep.subr.bf16.mxu1 %v20914_v33 }
0x103e   :  { %v8633_v3 = vsub.f32 %v8631_v39, %v8632_v34 }
0x1040   :  { %v8634_v25 = vand.u32 4294901760, %v8633_v3 }
0x1043   :  { %18692 = vmatmul.mubr.f32.vlgmr.msra.gmra.mrb[22].mxu1 %v25747_v17 }
0x1044   :  { %20917 = vmatpush3.bf16.msra.mxu1 %v20914_v33  ;;  %18698 = vmatprep.mubr.f32.mxu1 %v7573_v55 }
0x1045   :  { %20919 = vmatprep.subr.bf16.mxu1 %v20906_v47 }
0x104b   :  { %18699 = vmatmul.mubr.f32.vlgmr.msra.gmra.mrb[22].mxu1 %v7583_v0  ;;  %v9654_v0 = vand.u32 4294901760, %v25434_v52 }
0x104c   :  { %20921 = vmatpush3.bf16.msra.mxu1 %v20906_v47  ;;  %18705 = vmatprep.mubr.f32.mxu1 %v7574_v43 }
0x104d   :  { %20923 = vmatprep.subr.bf16.mxu1 %v20922_v54  ;;  %v25772_v8 = vpack.c.bf16 %v9657_v31, %v9654_v0 }
0x1053   :  { %18706 = vmatmul.mubr.f32.vlgmr.msra.gmra.mrb[22].mxu1 %v7584_v5  ;;  %v9749_v5 = vsub.f32 %v25429_v2, %v9657_v31 }
0x1054   :  { %20925 = vmatpush3.bf16.msra.mxu1 %v20922_v54  ;;  %18712 = vmatprep.mubr.f32.mxu1 %v7572_v51 }
0x1055   :  { %20927 = vmatprep.subr.bf16.mxu1 %v20906_v47  ;;  %v9750_v63 = vand.u32 4294901760, %v9749_v5 }
0x1056   :  { %v8546_v37 = vpop.xlane.xlu0 %8545  ;;  %v9639_v53 = vpop.xlane.xlu1 %9638 }
0x1057   :  { %22169 = vrcp.f32 %v8546_v37  ;;  %v9751_v1 = vsub.f32 %v9749_v5, %v9750_v63 }
0x1058   :  { %22171 = vrcp.f32 %v9639_v53 }
0x1059   :  { %v9752_v30 = vand.u32 4294901760, %v9751_v1 }
0x105a   :  { %v8552_v59 = vpop.permute.xlu0 %8551 }
0x105b   :  { %v8564_v48 = vand.u32 4294901760, %v8552_v59  ;;  %18713 = vmatmul.mubr.f32.vlgmr.msra.gmra.mrb[22].mxu1 %v25747_v17 }
0x105c   :  { %20929 = vmatpush3.bf16.msra.mxu1 %v20906_v47  ;;  %18719 = vmatprep.mubr.f32.mxu1 %v7572_v51  ;;  %v9742_v51 = vsub.f32 %v25434_v52, %v9654_v0 }
0x105d   :  { %v20954_v26 = vpack.c.bf16 %v8567_v58, %v8564_v48  ;;  %v8652_v4 = vsub.f32 %v8552_v59, %v8564_v48 }
0x105e   :  { %v9743_v43 = vand.u32 4294901760, %v9742_v51 }
0x105f   :  { %v8653_v10 = vand.u32 4294901760, %v8652_v4  ;;  %20955 = vmatprep.subr.bf16.mxu1 %v20954_v26  ;;  %v20962_v11 = vpack.c.bf16 %v8659_v12, %v8652_v4 }
0x1060   :  { %v9744_v19 = vsub.f32 %v9742_v51, %v9743_v43 }
0x1061   :  { %v22170_v9 = vpop.eup %22169  ;;  %v8654_v29 = vsub.f32 %v8652_v4, %v8653_v10  ;;  %v20970_v28 = vpack.c.bf16 %v8660_v35, %v8653_v10  ;;  %v21010_v35 = vpack.c.bf16 %v9749_v5, %v9742_v51 }
0x1062   :  { %v8550_v62 = vmul.f32 %v22170_v9, %v25724_v27  ;;  %v22172_v27 = vpop.eup %22171  ;;  %v9745_v60 = vand.u32 4294901760, %v9744_v19 }
0x1063   :  { %18720 = vmatmul.mubr.f32.vlgmr.msra.gmra.mrb[22].mxu1 %v25747_v17  ;;  %v8655_v61 = vand.u32 4294901760, %v8654_v29  ;;  %v9644_v17 = vmul.f32 %v22172_v27, %v25726_v16 }
0x1064   :  { %20957 = vmatpush3.bf16.msra.mxu1 %v20954_v26  ;;  %18768 = vmatprep.mubr.f32.mxu1 %v8634_v25  ;;  %v8561_v47 = vsel %vm5358_vm9, %v8550_v62, 0  ;;  %v21006_v58 = vpack.c.bf16 %v9752_v30, %v9745_v60 }
0x1065   :  { %v20958_v56 = vpack.c.bf16 %v8662_v15, %v8655_v61  ;;  %v8640_v46 = vand.u32 4294901760, %v8561_v47  ;;  %v9648_v22 = vsel %vm5358_vm9, %v9644_v17, 0 }
0x1066   :  { %v25766_v40 = vand.u32 4294901760, %v9648_v22 }
0x1067   :  { %20959 = vmatprep.subr.bf16.mxu1 %v20958_v56  ;;  %v8641_v38 = vsub.f32 %v8561_v47, %v8640_v46 }
0x1068   :  { %v9721_v16 = vsub.f32 %v9648_v22, %v25766_v40 }
0x1069   :  { %v8642_v7 = vand.u32 4294901760, %v8641_v38 }
0x106a   :  { %v9722_v49 = vand.u32 4294901760, %v9721_v16 }
0x106b   :  { %v8643_v45 = vsub.f32 %v8641_v38, %v8642_v7 }
0x106c   :  { %v9723_v33 = vsub.f32 %v9721_v16, %v9722_v49 }
0x106d   :  { %v8644_v6 = vand.u32 4294901760, %v8643_v45 }
0x106e   :  { %v9724_v18 = vand.u32 4294901760, %v9723_v33 }
0x106f   :  { %18769 = vmatmul.mubr.f32.vlgmr.msra.gmra.mrb[24].mxu1 %v8644_v6 }
0x1070   :  { %20961 = vmatpush3.bf16.msra.mxu1 %v20958_v56  ;;  %18775 = vmatprep.mubr.f32.mxu1 %v25754_v24 }
0x1071   :  { %20963 = vmatprep.subr.bf16.mxu1 %v20962_v11 }
0x1077   :  { %18776 = vmatmul.mubr.f32.vlgmr.msra.gmra.mrb[24].mxu1 %v8640_v46 }
0x1078   :  { %20965 = vmatpush3.bf16.msra.mxu1 %v20962_v11  ;;  %18782 = vmatprep.mubr.f32.mxu1 %v8631_v39 }
0x1079   :  { %20967 = vmatprep.subr.bf16.mxu1 %v20954_v26 }
0x107f   :  { %18783 = vmatmul.mubr.f32.vlgmr.msra.gmra.mrb[24].mxu1 %v8641_v38 }
0x1080   :  { %20969 = vmatpush3.bf16.msra.mxu1 %v20954_v26  ;;  %18789 = vmatprep.mubr.f32.mxu1 %v8632_v34 }
0x1081   :  { %20971 = vmatprep.subr.bf16.mxu1 %v20970_v28 }
0x1087   :  { %18790 = vmatmul.mubr.f32.vlgmr.msra.gmra.mrb[24].mxu1 %v8642_v7 }
0x1088   :  { %20973 = vmatpush3.bf16.msra.mxu1 %v20970_v28  ;;  %18796 = vmatprep.mubr.f32.mxu1 %v25754_v24 }
0x1089   :  { %20975 = vmatprep.subr.bf16.mxu1 %v20954_v26 }
0x108b   :  { %v9642_v55 = vpop.xlane.xlu0 %9641 }
0x108c   :  { %22173 = vrcp.f32 %v9642_v55 }
0x108f   :  { %18797 = vmatmul.mubr.f32.vlgmr.msra.gmra.mrb[24].mxu1 %v8640_v46  ;;  %v10160_v48 = vpop.permute.xlu0 %10159 }
0x1090   :  { %20977 = vmatpush3.bf16.msra.mxu1 %v20954_v26  ;;  %18803 = vmatprep.mubr.f32.mxu1 %v25754_v24  ;;  %v21018_v26 = vpack.c.bf16 %v9750_v63, %v9743_v43  ;;  %v10167_v3 = vsel %vm4833_vm7, %v10160_v48, 0 }
0x1091   :  { %21003 = vmatprep.subr.bf16.mxu1 %v25772_v8  ;;  %v10172_v9 = vand.u32 4294901760, %v10167_v3 }
0x1093   :  { %v10260_v25 = vsub.f32 %v10167_v3, %v10172_v9  ;;  %v10158_v61 = vpop.permute.xlu0 %10157 }
0x1094   :  { %v10165_v56 = vsel %vm4833_vm7, %v10158_v61, 0 }
0x1095   :  { %v10248_v45 = vand.u32 4294901760, %v10165_v56 }
0x1096   :  { %v22174_v54 = vpop.eup %22173 }
0x1097   :  { %v9646_v50 = vmul.f32 %v22174_v54, %v25738_v20  ;;  %18804 = vmatmul.mubr.f32.vlgmr.msra.gmra.mrb[24].mxu1 %v8640_v46  ;;  %v10162_v20 = vpop.permute.xlu1 %10161  ;;  %v10261_v46 = vand.u32 4294901760, %v10260_v25  ;;  %v10249_v27 = vsub.f32 %v10165_v56, %v10248_v45 }
0x1098   :  { %21005 = vmatpush3.bf16.msra.mxu1 %v25772_v8  ;;  %18852 = vmatprep.mubr.f32.mxu1 %v9724_v18  ;;  %v10169_v32 = vsel %vm4833_vm7, %v10162_v20, 0 }
0x1099   :  { %21007 = vmatprep.subr.bf16.mxu1 %v21006_v58  ;;  %v9651_v37 = vsel %vm5358_vm9, %v9646_v50, 0  ;;  %v10175_v29 = vand.u32 4294901760, %v10169_v32  ;;  %v10262_v53 = vsub.f32 %v10260_v25, %v10261_v46  ;;  %v10250_v31 = vand.u32 4294901760, %v10249_v27 }
0x109a   :  { %v9730_v39 = vand.u32 4294901760, %v9651_v37 }
0x109b   :  { %v10156_v4 = vpop.permute.xlu1 %10155  ;;  %v10267_v15 = vsub.f32 %v10169_v32, %v10175_v29  ;;  %v21026_v6 = vpack.c.bf16 %v10175_v29, %v10172_v9  ;;  %v10263_v28 = vand.u32 4294901760, %v10262_v53  ;;  %v10251_v5 = vsub.f32 %v10249_v27, %v10250_v31 }
0x109c   :  { %v9731_v12 = vsub.f32 %v9651_v37, %v9730_v39  ;;  %v10163_v10 = vsel %vm4833_vm7, %v10156_v4, 0 }
0x109d   :  { %v10238_v62 = vand.u32 4294901760, %v10163_v10  ;;  %v10268_v38 = vand.u32 4294901760, %v10267_v15  ;;  %v21034_v55 = vpack.c.bf16 %v10267_v15, %v10260_v25 }
0x109e   :  { %v9732_v24 = vand.u32 4294901760, %v9731_v12 }
0x109f   :  { %v10239_v47 = vsub.f32 %v10163_v10, %v10238_v62  ;;  %v10269_v11 = vsub.f32 %v10267_v15, %v10268_v38 }
0x10a0   :  { %v9733_v59 = vsub.f32 %v9731_v12, %v9732_v24 }
0x10a1   :  { %v10240_v7 = vand.u32 4294901760, %v10239_v47  ;;  %v10270_v22 = vand.u32 4294901760, %v10269_v11 }
0x10a2   :  { %v9734_v34 = vand.u32 4294901760, %v9733_v59 }
0x10a3   :  { %v10241_v17 = vsub.f32 %v10239_v47, %v10240_v7  ;;  %v21030_v51 = vpack.c.bf16 %v10270_v22, %v10263_v28 }
0x10a4   :  { %18853 = vmatmul.mubr.f32.vlgmr.msra.gmra.mrb[26].mxu1 %v9734_v34 }
0x10a5   :  { %21009 = vmatpush3.bf16.msra.mxu1 %v21006_v58  ;;  %18859 = vmatprep.mubr.f32.mxu1 %v25766_v40  ;;  %v10242_v0 = vand.u32 4294901760, %v10241_v17 }
0x10a6   :  { %21011 = vmatprep.subr.bf16.mxu1 %v21010_v35 }
0x10ac   :  { %18860 = vmatmul.mubr.f32.vlgmr.msra.gmra.mrb[26].mxu1 %v9730_v39 }
0x10ad   :  { %21013 = vmatpush3.bf16.msra.mxu1 %v21010_v35  ;;  %18866 = vmatprep.mubr.f32.mxu1 %v9721_v16  ;;  %v10252_v16 = vand.u32 4294901760, %v10251_v5 }
0x10ae   :  { %21015 = vmatprep.subr.bf16.mxu1 %v25772_v8 }
0x10b4   :  { %18867 = vmatmul.mubr.f32.vlgmr.msra.gmra.mrb[26].mxu1 %v9731_v12 }
0x10b5   :  { %21017 = vmatpush3.bf16.msra.mxu1 %v25772_v8  ;;  %18873 = vmatprep.mubr.f32.mxu1 %v9722_v49 }
0x10b6   :  { %21019 = vmatprep.subr.bf16.mxu1 %v21018_v26 }
0x10bc   :  { %18874 = vmatmul.mubr.f32.vlgmr.msra.gmra.mrb[26].mxu1 %v9732_v24 }
0x10bd   :  { %21021 = vmatpush3.bf16.msra.mxu1 %v21018_v26  ;;  %18880 = vmatprep.mubr.f32.mxu1 %v25766_v40 }
0x10be   :  { %21023 = vmatprep.subr.bf16.mxu1 %v25772_v8 }
0x10c4   :  { %18881 = vmatmul.mubr.f32.vlgmr.msra.gmra.mrb[26].mxu1 %v9730_v39 }
0x10c5   :  { %21025 = vmatpush3.bf16.msra.mxu1 %v25772_v8  ;;  %18887 = vmatprep.mubr.f32.mxu1 %v25766_v40  ;;  %v21042_v40 = vpack.c.bf16 %v10268_v38, %v10261_v46 }
0x10c6   :  { %21027 = vmatprep.subr.bf16.mxu1 %v21026_v6 }
0x10cc   :  { %18888 = vmatmul.mubr.f32.vlgmr.msra.gmra.mrb[26].mxu1 %v9730_v39 }
0x10cd   :  { %18894 = vmatprep.mubr.f32.mxu1 %v10242_v0 }
0x10ce   :  { %21029 = vmatpush3.bf16.xpose.msra.mxu1 %v21026_v6 }
0x10cf   :  { %21031 = vmatprep.subr.bf16.mxu1 %v21030_v51 }
0x10d5   :  { %18895 = vmatmul.mubr.f32.vlgmr.msra.gmra.mrb[28].mxu1 %v10252_v16 }
0x10d6   :  { %21033 = vmatpush3.bf16.xpose.msra.mxu1 %v21030_v51  ;;  %18901 = vmatprep.mubr.f32.mxu1 %v10238_v62 }
0x10d7   :  { %21035 = vmatprep.subr.bf16.mxu1 %v21034_v55 }
0x10dd   :  { %18902 = vmatmul.mubr.f32.vlgmr.msra.gmra.mrb[28].mxu1 %v10248_v45 }
0x10de   :  { %21037 = vmatpush3.bf16.xpose.msra.mxu1 %v21034_v55  ;;  %18908 = vmatprep.mubr.f32.mxu1 %v10239_v47 }
0x10df   :  { %21039 = vmatprep.subr.bf16.mxu1 %v21026_v6 }
0x10e5   :  { %18909 = vmatmul.mubr.f32.vlgmr.msra.gmra.mrb[28].mxu1 %v10249_v27 }
0x10e6   :  { %21041 = vmatpush3.bf16.xpose.msra.mxu1 %v21026_v6  ;;  %18915 = vmatprep.mubr.f32.mxu1 %v10240_v7 }
0x10e7   :  { %21043 = vmatprep.subr.bf16.mxu1 %v21042_v40 }
0x10ed   :  { %18916 = vmatmul.mubr.f32.vlgmr.msra.gmra.mrb[28].mxu1 %v10250_v31 }
0x10ee   :  { %21045 = vmatpush3.bf16.xpose.msra.mxu1 %v21042_v40  ;;  %18922 = vmatprep.mubr.f32.mxu1 %v10238_v62 }
0x10ef   :  { %21047 = vmatprep.subr.bf16.mxu1 %v21026_v6 }
0x10f5   :  { %18923 = vmatmul.mubr.f32.vlgmr.msra.gmra.mrb[28].mxu1 %v10248_v45 }
0x10f6   :  { %21049 = vmatpush3.bf16.xpose.msra.mxu1 %v21026_v6  ;;  %18929 = vmatprep.mubr.f32.mxu1 %v10238_v62 }
0x10fd   :  { %18930 = vmatmul.mubr.f32.vlgmr.msra.gmra.mrb[28].mxu1 %v10248_v45 }
0x1136   :  { %v25790_v43 = vpop.f32.mrb[22].mxu1 }
0x1137   :  { %v25792_v63 = vpop.f32.mrb[23].mxu1 }
0x116a   :  { %v25794_v49 = vpop.f32.mrb[24].mxu1 }
0x116b   :  { %v25796_v8 = vpop.f32.mrb[25].mxu1 }
0x119f   :  { %v25798_v19 = vpop.f32.mrb[26].mxu1 }
0x11a0   :  { %v25800_v1 = vpop.f32.mrb[27].mxu1 }
0x11d0   :  { %v18931_v33 = vpop.f32.mrb[28].mxu1 }
0x11d1   :  { %v10674_v60 = vmul.f32 0.17677669, %v18931_v33  ;;  %v10663_v30 = vpop.f32.mrb[29].mxu1 }
0x11d2   :  { %v10673_v54 = vmul.f32 0.17677669, %v10663_v30 }
0x11d3   :  { %v10676_v18 = vadd.f32 %v10674_v60, %v27849_v36 }
0x11d4   :  { %v10675_v50 = vadd.f32 %v10673_v54, %v27849_v36 }
0x11d5   :  { %v10680_v58 = vsel %vm5358_vm9, %v10676_v18, -inf }
0x11d6   :  { %10681 = vmax.xlane.f32.xlu0 %v10680_v58  ;;  %v10677_v37 = vsel %vm5358_vm9, %v10675_v50, -inf }
0x11d7   :  { %10678 = vmax.xlane.f32.xlu1 %v10677_v37 }
0x1263   :  { %v10682_v39 = vpop.xlane.xlu0 %10681 }
0x1264   :  { %v10684_v12 = vsub.f32 %v10676_v18, %v10682_v39  ;;  %v10679_v24 = vpop.xlane.xlu1 %10678 }
0x1265   :  { %v10683_v59 = vsub.f32 %v10675_v50, %v10679_v24 }
0x1266   :  { %v10687_v34 = vmul.f32 1.442695, %v10684_v12 }
0x1267   :  { %v10685_v35 = vmul.f32 1.442695, %v10683_v59 }
0x1268   :  { %22175 = vpow2.f32 %v10687_v34 }
0x1269   :  { %22177 = vpow2.f32 %v10685_v35 }
0x1272   :  { %v22176_v20 = vpop.eup %22175 }
0x1273   :  { %v22178_v48 = vpop.eup %22177  ;;  %v10692_v26 = vsel %vm5358_vm9, %v22176_v20, 0.0 }
0x1274   :  { %10693 = vadd.xlane.f32.xlu1 %v10692_v26  ;;  %v10689_v4 = vsel %vm5358_vm9, %v22178_v48, 0.0 }
0x1275   :  { %10690 = vadd.xlane.f32.xlu0 %v10689_v4 }
0x1285   :  { %10703 = vrot.lane.b32.xlu1 %v25429_v2, %s22412_s6 }
0x1289   :  { %11219 = vrot.lane.b32.xlu1 %v25418_v14, %s22413_s1 }
0x128b   :  { %10701 = vrot.lane.b32.xlu0 %v25434_v52, %s22412_s6 }
0x128d   :  { %11215 = vrot.lane.b32.xlu1 %v25416_v41, %s22413_s1 }
0x128f   :  { %11221 = vrot.lane.b32.xlu0 %v25414_v57, %s22413_s1 }
0x1293   :  { %11217 = vrot.lane.b32.xlu0 %v25412_v42, %s22413_s1 }
0x1301   :  { %v10694_v3 = vpop.xlane.xlu1 %10693 }
0x1302   :  { %22179 = vrcp.f32 %v10694_v3  ;;  %v10691_v32 = vpop.xlane.xlu0 %10690 }
0x1303   :  { %22181 = vrcp.f32 %v10691_v32 }
0x1305   :  { %v10704_v10 = vpop.permute.xlu1 %10703 }
0x1306   :  { %v10717_v9 = vand.u32 4294901760, %v10704_v10  ;;  %v10702_v29 = vpop.permute.xlu0 %10701 }
0x1307   :  { %v10714_v62 = vand.u32 4294901760, %v10702_v29 }
0x1308   :  { %v10809_v25 = vsub.f32 %v10704_v10, %v10717_v9 }
0x1309   :  { %v25820_v61 = vpack.c.bf16 %v10717_v9, %v10714_v62  ;;  %v10802_v15 = vsub.f32 %v10702_v29, %v10714_v62  ;;  %v11220_v18 = vpop.permute.xlu1 %11219 }
0x130a   :  { %v10810_v47 = vand.u32 4294901760, %v10809_v25  ;;  %v11222_v50 = vpop.permute.xlu0 %11221  ;;  %v11227_v39 = vsel %vm4833_vm7, %v11220_v18, 0 }
0x130b   :  { %v10803_v56 = vand.u32 4294901760, %v10802_v15  ;;  %21051 = vmatprep.subr.bf16.mxu0 %v25820_v61  ;;  %v21058_v54 = vpack.c.bf16 %v10809_v25, %v10802_v15  ;;  %v11229_v12 = vsel %vm4833_vm7, %v11222_v50, 0  ;;  %v11232_v59 = vand.u32 4294901760, %v11227_v39 }
0x130c   :  { %v22180_v46 = vpop.eup %22179  ;;  %v10811_v38 = vsub.f32 %v10809_v25, %v10810_v47  ;;  %21053 = vmatpush3.bf16.msra.mxu0 %v25820_v61  ;;  %v11235_v34 = vand.u32 4294901760, %v11229_v12 }
0x130d   :  { %v22182_v7 = vpop.eup %22181  ;;  %v10698_v45 = vmul.f32 %v22180_v46, %v22176_v20  ;;  %v10804_v6 = vsub.f32 %v10802_v15, %v10803_v56  ;;  %v21066_v58 = vpack.c.bf16 %v10810_v47, %v10803_v56  ;;  %v11216_v37 = vpop.permute.xlu1 %11215  ;;  %v11320_v20 = vsub.f32 %v11227_v39, %v11232_v59 }
0x130e   :  { %v10696_v53 = vmul.f32 %v22182_v7, %v22178_v48  ;;  %v10812_v27 = vand.u32 4294901760, %v10811_v38  ;;  %v11223_v24 = vsel %vm4833_vm7, %v11216_v37, 0  ;;  %v11327_v48 = vsub.f32 %v11229_v12, %v11235_v34  ;;  %v11218_v26 = vpop.permute.xlu0 %11217 }
0x130f   :  { %v10805_v11 = vand.u32 4294901760, %v10804_v6  ;;  %v10711_v31 = vsel %vm5358_vm9, %v10698_v45, 0  ;;  %v11298_v35 = vand.u32 4294901760, %v11223_v24  ;;  %v11225_v3 = vsel %vm4833_vm7, %v11218_v26, 0 }
0x1310   :  { %v10708_v17 = vsel %vm5358_vm9, %v10696_v53, 0  ;;  %v10790_v22 = vand.u32 4294901760, %v10711_v31  ;;  %v11321_v32 = vand.u32 4294901760, %v11320_v20  ;;  %v11328_v10 = vand.u32 4294901760, %v11327_v48 }
0x1311   :  { %v10780_v28 = vand.u32 4294901760, %v10708_v17  ;;  %v21054_v0 = vpack.c.bf16 %v10812_v27, %v10805_v11  ;;  %v11299_v4 = vsub.f32 %v11223_v24, %v11298_v35  ;;  %v11308_v29 = vand.u32 4294901760, %v11225_v3 }
0x1312   :  { %v10791_v5 = vsub.f32 %v10711_v31, %v10790_v22  ;;  %v21074_v62 = vpack.c.bf16 %v11235_v34, %v11232_v59  ;;  %v11322_v25 = vsub.f32 %v11320_v20, %v11321_v32  ;;  %v11329_v15 = vsub.f32 %v11327_v48, %v11328_v10 }
0x1313   :  { %v10781_v51 = vsub.f32 %v10708_v17, %v10780_v28  ;;  %21055 = vmatprep.subr.bf16.mxu0 %v21054_v0  ;;  %v11300_v9 = vand.u32 4294901760, %v11299_v4  ;;  %v11309_v47 = vsub.f32 %v11225_v3, %v11308_v29  ;;  %v21082_v27 = vpack.c.bf16 %v11327_v48, %v11320_v20 }
0x1314   :  { %v10792_v55 = vand.u32 4294901760, %v10791_v5  ;;  %v11323_v46 = vand.u32 4294901760, %v11322_v25  ;;  %v11330_v38 = vand.u32 4294901760, %v11329_v15 }
0x1315   :  { %v10782_v16 = vand.u32 4294901760, %v10781_v51  ;;  %v11301_v56 = vsub.f32 %v11299_v4, %v11300_v9  ;;  %v11310_v7 = vand.u32 4294901760, %v11309_v47 }
0x1316   :  { %v10793_v33 = vsub.f32 %v10791_v5, %v10792_v55  ;;  %v21078_v6 = vpack.c.bf16 %v11330_v38, %v11323_v46 }
0x1317   :  { %v10783_v40 = vsub.f32 %v10781_v51, %v10782_v16  ;;  %v11302_v45 = vand.u32 4294901760, %v11301_v56  ;;  %v11311_v53 = vsub.f32 %v11309_v47, %v11310_v7 }
0x1318   :  { %v10794_v30 = vand.u32 4294901760, %v10793_v33 }
0x1319   :  { %v10784_v60 = vand.u32 4294901760, %v10783_v40  ;;  %v11312_v11 = vand.u32 4294901760, %v11311_v53 }
0x131b   :  { %18936 = vmatprep.mubr.f32.mxu0 %v10784_v60 }
0x131c   :  { %18937 = vmatmul.mubr.f32.vlgmr.msra.gmra.mrb[16].mxu0 %v10794_v30 }
0x131d   :  { %21057 = vmatpush3.bf16.msra.mxu0 %v21054_v0  ;;  %18943 = vmatprep.mubr.f32.mxu0 %v10780_v28 }
0x131e   :  { %21059 = vmatprep.subr.bf16.mxu0 %v21058_v54 }
0x1324   :  { %18944 = vmatmul.mubr.f32.vlgmr.msra.gmra.mrb[16].mxu0 %v10790_v22 }
0x1325   :  { %21061 = vmatpush3.bf16.msra.mxu0 %v21058_v54  ;;  %18950 = vmatprep.mubr.f32.mxu0 %v10781_v51 }
0x1326   :  { %21063 = vmatprep.subr.bf16.mxu0 %v25820_v61 }
0x132c   :  { %18951 = vmatmul.mubr.f32.vlgmr.msra.gmra.mrb[16].mxu0 %v10791_v5 }
0x132d   :  { %21065 = vmatpush3.bf16.msra.mxu0 %v25820_v61  ;;  %18957 = vmatprep.mubr.f32.mxu0 %v10782_v16 }
0x132e   :  { %21067 = vmatprep.subr.bf16.mxu0 %v21066_v58 }
0x1334   :  { %18958 = vmatmul.mubr.f32.vlgmr.msra.gmra.mrb[16].mxu0 %v10792_v55 }
0x1335   :  { %21069 = vmatpush3.bf16.msra.mxu0 %v21066_v58  ;;  %18964 = vmatprep.mubr.f32.mxu0 %v10780_v28 }
0x1336   :  { %21071 = vmatprep.subr.bf16.mxu0 %v25820_v61 }
0x133c   :  { %18965 = vmatmul.mubr.f32.vlgmr.msra.gmra.mrb[16].mxu0 %v10790_v22 }
0x133d   :  { %21073 = vmatpush3.bf16.msra.mxu0 %v25820_v61  ;;  %18971 = vmatprep.mubr.f32.mxu0 %v10780_v28  ;;  %v21090_v61 = vpack.c.bf16 %v11328_v10, %v11321_v32 }
0x133e   :  { %21075 = vmatprep.subr.bf16.mxu0 %v21074_v62 }
0x1344   :  { %18972 = vmatmul.mubr.f32.vlgmr.msra.gmra.mrb[16].mxu0 %v10790_v22 }
0x1345   :  { %18978 = vmatprep.mubr.f32.mxu0 %v11302_v45 }
0x1346   :  { %21077 = vmatpush3.bf16.xpose.msra.mxu0 %v21074_v62 }
0x1347   :  { %21079 = vmatprep.subr.bf16.mxu0 %v21078_v6 }
0x134d   :  { %18979 = vmatmul.mubr.f32.vlgmr.msra.gmra.mrb[18].mxu0 %v11312_v11 }
0x134e   :  { %21081 = vmatpush3.bf16.xpose.msra.mxu0 %v21078_v6  ;;  %18985 = vmatprep.mubr.f32.mxu0 %v11298_v35 }
0x134f   :  { %21083 = vmatprep.subr.bf16.mxu0 %v21082_v27 }
0x1355   :  { %18986 = vmatmul.mubr.f32.vlgmr.msra.gmra.mrb[18].mxu0 %v11308_v29 }
0x1356   :  { %21085 = vmatpush3.bf16.xpose.msra.mxu0 %v21082_v27  ;;  %18992 = vmatprep.mubr.f32.mxu0 %v11299_v4 }
0x1357   :  { %21087 = vmatprep.subr.bf16.mxu0 %v21074_v62 }
0x135d   :  { %18993 = vmatmul.mubr.f32.vlgmr.msra.gmra.mrb[18].mxu0 %v11309_v47 }
0x135e   :  { %21089 = vmatpush3.bf16.xpose.msra.mxu0 %v21074_v62  ;;  %18999 = vmatprep.mubr.f32.mxu0 %v11300_v9 }
0x135f   :  { %21091 = vmatprep.subr.bf16.mxu0 %v21090_v61 }
0x1365   :  { %19000 = vmatmul.mubr.f32.vlgmr.msra.gmra.mrb[18].mxu0 %v11310_v7 }
0x1366   :  { %21093 = vmatpush3.bf16.xpose.msra.mxu0 %v21090_v61  ;;  %19006 = vmatprep.mubr.f32.mxu0 %v11298_v35 }
0x1367   :  { %21095 = vmatprep.subr.bf16.mxu0 %v21074_v62 }
0x136d   :  { %19007 = vmatmul.mubr.f32.vlgmr.msra.gmra.mrb[18].mxu0 %v11308_v29 }
0x136e   :  { %21097 = vmatpush3.bf16.xpose.msra.mxu0 %v21074_v62  ;;  %19013 = vmatprep.mubr.f32.mxu0 %v11298_v35 }
0x1375   :  { %19014 = vmatmul.mubr.f32.vlgmr.msra.gmra.mrb[18].mxu0 %v11308_v29 }
0x1417   :  { %v25834_v17 = vpop.f32.mrb[16].mxu0 }
0x1418   :  { %v25836_v28 = vpop.f32.mrb[17].mxu0 }
0x1448   :  { %v19015_v31 = vpop.f32.mrb[18].mxu0 }
0x1449   :  { %v11734_v0 = vmul.f32 0.17677669, %v19015_v31  ;;  %v11723_v22 = vpop.f32.mrb[19].mxu0 }
0x144a   :  { %v11733_v51 = vmul.f32 0.17677669, %v11723_v22 }
0x144b   :  { %v11736_v5 = vadd.f32 %v11734_v0, %v27849_v36 }
0x144c   :  { %v11735_v16 = vadd.f32 %v11733_v51, %v27849_v36 }
0x144d   :  { %v11740_v55 = vsel %vm5358_vm9, %v11736_v5, -inf }
0x144e   :  { %11741 = vmax.xlane.f32.xlu0 %v11740_v55  ;;  %v11737_v40 = vsel %vm5358_vm9, %v11735_v16, -inf }
0x144f   :  { %11738 = vmax.xlane.f32.xlu1 %v11737_v40 }
0x14db   :  { %v11742_v33 = vpop.xlane.xlu0 %11741 }
0x14dc   :  { %v11744_v60 = vsub.f32 %v11736_v5, %v11742_v33  ;;  %v11739_v30 = vpop.xlane.xlu1 %11738 }
0x14dd   :  { %v11743_v54 = vsub.f32 %v11735_v16, %v11739_v30 }
0x14de   :  { %v11747_v18 = vmul.f32 1.442695, %v11744_v60 }
0x14df   :  { %v11745_v50 = vmul.f32 1.442695, %v11743_v54 }
0x14e0   :  { %22183 = vpow2.f32 %v11747_v18 }
0x14e1   :  { %22185 = vpow2.f32 %v11745_v50 }
0x14ea   :  { %v22184_v58 = vpop.eup %22183 }
0x14eb   :  { %v22186_v37 = vpop.eup %22185  ;;  %v11752_v39 = vsel %vm5358_vm9, %v22184_v58, 0.0 }
0x14ec   :  { %11753 = vadd.xlane.f32.xlu1 %v11752_v39  ;;  %v11749_v12 = vsel %vm5358_vm9, %v22186_v37, 0.0 }
0x14ed   :  { %11750 = vadd.xlane.f32.xlu0 %v11749_v12 }
0x14fd   :  { %11761 = vrot.lane.b32.xlu1 %v25429_v2, %s22413_s1 }
0x1501   :  { %12277 = vrot.lane.b32.xlu1 %v25418_v14, %s22414_s28 }
0x1503   :  { %11759 = vrot.lane.b32.xlu0 %v25434_v52, %s22413_s1 }
0x1505   :  { %12273 = vrot.lane.b32.xlu1 %v25416_v41, %s22414_s28 }
0x1507   :  { %12279 = vrot.lane.b32.xlu0 %v25414_v57, %s22414_s28 }
0x150b   :  { %12275 = vrot.lane.b32.xlu0 %v25412_v42, %s22414_s28 }
0x1579   :  { %v11754_v24 = vpop.xlane.xlu1 %11753 }
0x157a   :  { %22187 = vrcp.f32 %v11754_v24  ;;  %v11751_v59 = vpop.xlane.xlu0 %11750 }
0x157b   :  { %22189 = vrcp.f32 %v11751_v59 }
0x157d   :  { %v11762_v34 = vpop.permute.xlu1 %11761 }
0x157e   :  { %v11775_v35 = vand.u32 4294901760, %v11762_v34  ;;  %v11760_v20 = vpop.permute.xlu0 %11759 }
0x157f   :  { %v11772_v14 = vand.u32 4294901760, %v11760_v20 }
0x1580   :  { %v11867_v48 = vsub.f32 %v11762_v34, %v11775_v35 }
0x1581   :  { %v25856_v26 = vpack.c.bf16 %v11775_v35, %v11772_v14  ;;  %v11860_v4 = vsub.f32 %v11760_v20, %v11772_v14  ;;  %v12278_v22 = vpop.permute.xlu1 %12277 }
0x1582   :  { %v11868_v3 = vand.u32 4294901760, %v11867_v48  ;;  %v12280_v51 = vpop.permute.xlu0 %12279  ;;  %v12285_v55 = vsel %vm4833_vm7, %v12278_v22, 0 }
0x1583   :  { %v11861_v41 = vand.u32 4294901760, %v11860_v4  ;;  %21099 = vmatprep.subr.bf16.mxu1 %v25856_v26  ;;  %v21106_v0 = vpack.c.bf16 %v11867_v48, %v11860_v4  ;;  %v12287_v40 = vsel %vm4833_vm7, %v12280_v51, 0  ;;  %v12290_v60 = vand.u32 4294901760, %v12285_v55 }
0x1584   :  { %v22188_v57 = vpop.eup %22187  ;;  %v11869_v32 = vsub.f32 %v11867_v48, %v11868_v3  ;;  %21101 = vmatpush3.bf16.msra.mxu1 %v25856_v26  ;;  %v12293_v30 = vand.u32 4294901760, %v12287_v40 }
0x1585   :  { %v22190_v42 = vpop.eup %22189  ;;  %v11758_v10 = vmul.f32 %v22188_v57, %v22184_v58  ;;  %v11862_v9 = vsub.f32 %v11860_v4, %v11861_v41  ;;  %v21114_v5 = vpack.c.bf16 %v11868_v3, %v11861_v41  ;;  %v12274_v16 = vpop.permute.xlu1 %12273  ;;  %v12378_v18 = vsub.f32 %v12285_v55, %v12290_v60 }
0x1586   :  { %v11756_v29 = vmul.f32 %v22190_v42, %v22186_v37  ;;  %v11870_v25 = vand.u32 4294901760, %v11869_v32  ;;  %v12281_v33 = vsel %vm4833_vm7, %v12274_v16, 0  ;;  %v12385_v50 = vsub.f32 %v12287_v40, %v12293_v30  ;;  %v12276_v58 = vpop.permute.xlu0 %12275 }
0x1587   :  { %v11863_v62 = vand.u32 4294901760, %v11862_v9  ;;  %v11769_v56 = vsel %vm5358_vm9, %v11758_v10, 0  ;;  %v12356_v54 = vand.u32 4294901760, %v12281_v33  ;;  %v12283_v39 = vsel %vm4833_vm7, %v12276_v58, 0 }
0x1588   :  { %v11766_v15 = vsel %vm5358_vm9, %v11756_v29, 0  ;;  %v11848_v38 = vand.u32 4294901760, %v11769_v56  ;;  %v12379_v12 = vand.u32 4294901760, %v12378_v18  ;;  %v12386_v24 = vand.u32 4294901760, %v12385_v50 }
0x1589   :  { %v11838_v47 = vand.u32 4294901760, %v11766_v15  ;;  %v21102_v46 = vpack.c.bf16 %v11870_v25, %v11863_v62  ;;  %v12357_v37 = vsub.f32 %v12281_v33, %v12356_v54  ;;  %v12366_v34 = vand.u32 4294901760, %v12283_v39 }
0x158a   :  { %v11849_v45 = vsub.f32 %v11769_v56, %v11848_v38  ;;  %v21122_v35 = vpack.c.bf16 %v12293_v30, %v12290_v60  ;;  %v12380_v20 = vsub.f32 %v12378_v18, %v12379_v12  ;;  %v12387_v14 = vsub.f32 %v12385_v50, %v12386_v24 }
0x158b   :  { %v11839_v7 = vsub.f32 %v11766_v15, %v11838_v47  ;;  %21103 = vmatprep.subr.bf16.mxu1 %v21102_v46  ;;  %v12358_v59 = vand.u32 4294901760, %v12357_v37  ;;  %v12367_v48 = vsub.f32 %v12283_v39, %v12366_v34  ;;  %v21130_v29 = vpack.c.bf16 %v12385_v50, %v12378_v18 }
0x158c   :  { %v11850_v53 = vand.u32 4294901760, %v11849_v45  ;;  %v12381_v3 = vand.u32 4294901760, %v12380_v20  ;;  %v12388_v41 = vand.u32 4294901760, %v12387_v14 }
0x158d   :  { %v11840_v6 = vand.u32 4294901760, %v11839_v7  ;;  %v12359_v4 = vsub.f32 %v12357_v37, %v12358_v59  ;;  %v12368_v57 = vand.u32 4294901760, %v12367_v48 }
0x158e   :  { %v11851_v27 = vsub.f32 %v11849_v45, %v11850_v53  ;;  %v21126_v42 = vpack.c.bf16 %v12388_v41, %v12381_v3 }
0x158f   :  { %v11841_v11 = vsub.f32 %v11839_v7, %v11840_v6  ;;  %v12360_v32 = vand.u32 4294901760, %v12359_v4  ;;  %v12369_v10 = vsub.f32 %v12367_v48, %v12368_v57 }
0x1590   :  { %v11852_v31 = vand.u32 4294901760, %v11851_v27 }
0x1591   :  { %v11842_v61 = vand.u32 4294901760, %v11841_v11  ;;  %v12370_v9 = vand.u32 4294901760, %v12369_v10 }
0x1593   :  { %19020 = vmatprep.mubr.f32.mxu1 %v11842_v61 }
0x1594   :  { %19021 = vmatmul.mubr.f32.vlgmr.msra.gmra.mrb[30].mxu1 %v11852_v31 }
0x1595   :  { %21105 = vmatpush3.bf16.msra.mxu1 %v21102_v46  ;;  %19027 = vmatprep.mubr.f32.mxu1 %v11838_v47 }
0x1596   :  { %21107 = vmatprep.subr.bf16.mxu1 %v21106_v0 }
0x159c   :  { %19028 = vmatmul.mubr.f32.vlgmr.msra.gmra.mrb[30].mxu1 %v11848_v38 }
0x159d   :  { %21109 = vmatpush3.bf16.msra.mxu1 %v21106_v0  ;;  %19034 = vmatprep.mubr.f32.mxu1 %v11839_v7 }
0x159e   :  { %21111 = vmatprep.subr.bf16.mxu1 %v25856_v26 }
0x15a4   :  { %19035 = vmatmul.mubr.f32.vlgmr.msra.gmra.mrb[30].mxu1 %v11849_v45 }
0x15a5   :  { %21113 = vmatpush3.bf16.msra.mxu1 %v25856_v26  ;;  %19041 = vmatprep.mubr.f32.mxu1 %v11840_v6 }
0x15a6   :  { %21115 = vmatprep.subr.bf16.mxu1 %v21114_v5 }
0x15ac   :  { %19042 = vmatmul.mubr.f32.vlgmr.msra.gmra.mrb[30].mxu1 %v11850_v53 }
0x15ad   :  { %21117 = vmatpush3.bf16.msra.mxu1 %v21114_v5  ;;  %19048 = vmatprep.mubr.f32.mxu1 %v11838_v47 }
0x15ae   :  { %21119 = vmatprep.subr.bf16.mxu1 %v25856_v26 }
0x15b4   :  { %19049 = vmatmul.mubr.f32.vlgmr.msra.gmra.mrb[30].mxu1 %v11848_v38 }
0x15b5   :  { %21121 = vmatpush3.bf16.msra.mxu1 %v25856_v26  ;;  %19055 = vmatprep.mubr.f32.mxu1 %v11838_v47  ;;  %v21138_v26 = vpack.c.bf16 %v12386_v24, %v12379_v12 }
0x15b6   :  { %21123 = vmatprep.subr.bf16.mxu1 %v21122_v35 }
0x15bc   :  { %19056 = vmatmul.mubr.f32.vlgmr.msra.gmra.mrb[30].mxu1 %v11848_v38 }
0x15bd   :  { %19062 = vmatprep.mubr.f32.mxu1 %v12360_v32 }
0x15be   :  { %21125 = vmatpush3.bf16.xpose.msra.mxu1 %v21122_v35 }
0x15bf   :  { %21127 = vmatprep.subr.bf16.mxu1 %v21126_v42 }
0x15c5   :  { %19063 = vmatmul.mubr.f32.vlgmr.msra.gmra.mrb[32].mxu1 %v12370_v9 }
0x15c6   :  { %21129 = vmatpush3.bf16.xpose.msra.mxu1 %v21126_v42  ;;  %19069 = vmatprep.mubr.f32.mxu1 %v12356_v54 }
0x15c7   :  { %21131 = vmatprep.subr.bf16.mxu1 %v21130_v29 }
0x15cd   :  { %19070 = vmatmul.mubr.f32.vlgmr.msra.gmra.mrb[32].mxu1 %v12366_v34 }
0x15ce   :  { %21133 = vmatpush3.bf16.xpose.msra.mxu1 %v21130_v29  ;;  %19076 = vmatprep.mubr.f32.mxu1 %v12357_v37 }
0x15cf   :  { %21135 = vmatprep.subr.bf16.mxu1 %v21122_v35 }
0x15d5   :  { %19077 = vmatmul.mubr.f32.vlgmr.msra.gmra.mrb[32].mxu1 %v12367_v48 }
0x15d6   :  { %21137 = vmatpush3.bf16.xpose.msra.mxu1 %v21122_v35  ;;  %19083 = vmatprep.mubr.f32.mxu1 %v12358_v59 }
0x15d7   :  { %21139 = vmatprep.subr.bf16.mxu1 %v21138_v26 }
0x15dd   :  { %19084 = vmatmul.mubr.f32.vlgmr.msra.gmra.mrb[32].mxu1 %v12368_v57 }
0x15de   :  { %21141 = vmatpush3.bf16.xpose.msra.mxu1 %v21138_v26  ;;  %19090 = vmatprep.mubr.f32.mxu1 %v12356_v54 }
0x15df   :  { %21143 = vmatprep.subr.bf16.mxu1 %v21122_v35 }
0x15e5   :  { %19091 = vmatmul.mubr.f32.vlgmr.msra.gmra.mrb[32].mxu1 %v12366_v34 }
0x15e6   :  { %21145 = vmatpush3.bf16.xpose.msra.mxu1 %v21122_v35  ;;  %19097 = vmatprep.mubr.f32.mxu1 %v12356_v54 }
0x15ed   :  { %19098 = vmatmul.mubr.f32.vlgmr.msra.gmra.mrb[32].mxu1 %v12366_v34 }
0x168f   :  { %v19057_v62 = vpop.f32.mrb[30].mxu1 }
0x1690   :  { %v12263_v25 = vpop.f32.mrb[31].mxu1 }
0x16c0   :  { %v19099_v15 = vpop.f32.mrb[32].mxu1 }
0x16c1   :  { %v12792_v47 = vmul.f32 0.17677669, %v19099_v15  ;;  %v12781_v56 = vpop.f32.mrb[33].mxu1 }
0x16c2   :  { %v12791_v46 = vmul.f32 0.17677669, %v12781_v56 }
0x16c3   :  { %v12794_v38 = vadd.f32 %v12792_v47, %v27849_v36 }
0x16c4   :  { %v12793_v7 = vadd.f32 %v12791_v46, %v27849_v36 }
0x16c5   :  { %v12798_v45 = vsel %vm5358_vm9, %v12794_v38, -inf }
0x16c6   :  { %12799 = vmax.xlane.f32.xlu0 %v12798_v45  ;;  %v12795_v6 = vsel %vm5358_vm9, %v12793_v7, -inf }
0x16c7   :  { %12796 = vmax.xlane.f32.xlu1 %v12795_v6 }
0x1753   :  { %v12800_v53 = vpop.xlane.xlu0 %12799 }
0x1754   :  { %v12802_v11 = vsub.f32 %v12794_v38, %v12800_v53  ;;  %v12797_v27 = vpop.xlane.xlu1 %12796  ;;  %v25932_v53 = vld [vmem:[#allocation11] sm:$0xff] }
0x1755   :  { %v12801_v61 = vsub.f32 %v12793_v7, %v12797_v27  ;;  %v13378_v27 = vand.u32 4294901760, %v25932_v53 }
0x1756   :  { %v12805_v31 = vmul.f32 1.442695, %v12802_v11  ;;  %v25934_v11 = vld [vmem:[#allocation11 + $0x8] sm:$0xff] }
0x1757   :  { %v12803_v0 = vmul.f32 1.442695, %v12801_v61 }
0x1758   :  { %22191 = vpow2.f32 %v12805_v31 }
0x1759   :  { %22193 = vpow2.f32 %v12803_v0 }
0x1762   :  { %v22192_v22 = vpop.eup %22191 }
0x1763   :  { %v22194_v51 = vpop.eup %22193  ;;  %v12810_v5 = vsel %vm5358_vm9, %v22192_v22, 0.0 }
0x1764   :  { %12811 = vadd.xlane.f32.xlu1 %v12810_v5  ;;  %v12807_v36 = vsel %vm5358_vm9, %v22194_v51, 0.0 }
0x1765   :  { %12808 = vadd.xlane.f32.xlu0 %v12807_v36 }
0x1775   :  { %12819 = vrot.lane.b32.xlu1 %v25429_v2, %s22414_s28 }
0x1779   :  { %9067 = vrot.lane.b32.xlu1 %v25698_v23, %s22414_s28 }
0x177b   :  { %12817 = vrot.lane.b32.xlu0 %v25434_v52, %s22414_s28 }
0x177d   :  { %9075 = vrot.lane.b32.xlu1 %v25792_v63, %s22413_s1 }
0x177f   :  { %9069 = vrot.lane.b32.xlu0 %v25696_v44, %s22414_s28 }
0x1781   :  { %9083 = vrot.lane.b32.xlu1 %v25796_v8, %s22412_s6 }
0x1783   :  { %9077 = vrot.lane.b32.xlu0 %v25790_v43, %s22413_s1 }
0x1785   :  { %13333 = vrot.lane.b32.xlu1 %v25836_v28, %s22414_s28 }
0x1787   :  { %9085 = vrot.lane.b32.xlu0 %v25794_v49, %s22412_s6 }
0x1789   :  { %13341 = vrot.lane.b32.xlu1 %v12263_v25, %s22413_s1 }
0x178b   :  { %13335 = vrot.lane.b32.xlu0 %v25834_v17, %s22414_s28 }
0x178f   :  { %13343 = vrot.lane.b32.xlu0 %v19057_v62, %s22413_s1 }
0x17f1   :  { %v12812_v2 = vpop.xlane.xlu1 %12811 }
0x17f2   :  { %22195 = vrcp.f32 %v12812_v2  ;;  %v12809_v52 = vpop.xlane.xlu0 %12808 }
0x17f3   :  { %22197 = vrcp.f32 %v12809_v52  ;;  %v13365_v52 = vld [vmem:[#allocation11 + $0x20] sm:$0xff] }
0x17f5   :  { %v12820_v44 = vpop.permute.xlu1 %12819 }
0x17f6   :  { %v12833_v23 = vand.u32 4294901760, %v12820_v44  ;;  %v12818_v43 = vpop.permute.xlu0 %12817 }
0x17f7   :  { %v12830_v63 = vand.u32 4294901760, %v12818_v43 }
0x17f8   :  { %v12925_v8 = vsub.f32 %v12820_v44, %v12833_v23  ;;  %v13366_v44 = vld [vmem:[#allocation11 + $0x28] sm:$0xff] }
0x17f9   :  { %v25898_v28 = vpack.c.bf16 %v12833_v23, %v12830_v63  ;;  %v12918_v16 = vsub.f32 %v12818_v43, %v12830_v63  ;;  %v9068_v49 = vpop.permute.xlu1 %9067  ;;  %v13390_v43 = vand.u32 4294901760, %v13365_v52  ;;  %v13393_v63 = vand.u32 4294901760, %v13366_v44 }
0x17fa   :  { %v12926_v55 = vand.u32 4294901760, %v12925_v8  ;;  %v25900_v40 = vpop.permute.xlu0 %9069 }
0x17fb   :  { %v12919_v33 = vand.u32 4294901760, %v12918_v16  ;;  %21147 = vmatprep.subr.bf16.mxu0 %v25898_v28  ;;  %v21154_v38 = vpack.c.bf16 %v12925_v8, %v12918_v16 }
0x17fc   :  { %v22196_v17 = vpop.eup %22195  ;;  %v12927_v60 = vsub.f32 %v12925_v8, %v12926_v55  ;;  %21149 = vmatpush3.bf16.msra.mxu0 %v25898_v28 }
0x17fd   :  { %v22198_v30 = vpop.eup %22197  ;;  %v12816_v54 = vmul.f32 %v22196_v17, %v22192_v22  ;;  %v12920_v18 = vsub.f32 %v12918_v16, %v12919_v33  ;;  %v9076_v50 = vpop.permute.xlu1 %9075  ;;  %v25949_v22 = vld [vmem:[#allocation11 + $0x10] sm:$0xff]  ;;  %v13368_v16 = vld [vmem:[#allocation11 + $0x38] sm:$0xff]  ;;  %v25972_v17 = vld [vmem:[#allocation11 + $0x40] sm:$0xff] }
0x17fe   :  { %v12814_v58 = vmul.f32 %v22198_v30, %v22194_v51  ;;  %v25904_v37 = vpop.permute.xlu0 %9077  ;;  %v12928_v39 = vand.u32 4294901760, %v12927_v60  ;;  %v25951_v51 = vld [vmem:[#allocation11 + $0x18] sm:$0xff]  ;;  %v13384_v5 = vand.u32 4294901760, %v25949_v22  ;;  %v25974_v60 = vld [vmem:[#allocation11 + $0x48] sm:$0xff] }
0x17ff   :  { %v12921_v12 = vand.u32 4294901760, %v12920_v18  ;;  %v12827_v24 = vsel %vm5358_vm9, %v12816_v54, 0  ;;  %v13387_v36 = vand.u32 4294901760, %v25951_v51  ;;  %v13402_v54 = vand.u32 4294901760, %v25972_v17 }
0x1800   :  { %v12824_v59 = vsel %vm5358_vm9, %v12814_v58, 0  ;;  %v25908_v34 = vand.u32 4294901760, %v12827_v24  ;;  %v13405_v18 = vand.u32 4294901760, %v25974_v60  ;;  %v25984_v58 = vld [vmem:[#allocation11 + $0x58] sm:$0xff] }
0x1801   :  { %v9084_v35 = vpop.permute.xlu1 %9083  ;;  %v21150_v20 = vpack.c.bf16 %v12928_v39, %v12921_v12  ;;  %v12896_v14 = vand.u32 4294901760, %v12824_v59  ;;  %v25965_v23 = vpack.c.bf16 %v13387_v36, %v13384_v5  ;;  %v9090_v39 = vsel %vm4833_vm7, %v25478_v21, %v25900_v40  ;;  %v26003_v40 = vld [vmem:[#allocation11 + $0x60] sm:$0xff] }
0x1802   :  { %v25910_v48 = vpop.permute.xlu0 %9085  ;;  %v12907_v4 = vsub.f32 %v12827_v24, %v25908_v34  ;;  %v9093_v12 = vsel %vm9091_vm10, %v9090_v39, %v25904_v37  ;;  %v25997_v24 = vpack.c.bf16 %v13405_v18, %v13402_v54 }
0x1803   :  { %21151 = vmatprep.subr.bf16.mxu0 %v21150_v20  ;;  %v12897_v3 = vsub.f32 %v12824_v59, %v12896_v14  ;;  %v9096_v21 = vsel %vm9094_vm11, %v9093_v12, %v25910_v48 }
0x1804   :  { %v12908_v41 = vand.u32 4294901760, %v12907_v4  ;;  %v26008_v37 = vand.u32 4294901760, %v9096_v21 }
0x1805   :  { %v13334_v57 = vpop.permute.xlu1 %13333  ;;  %v12898_v32 = vand.u32 4294901760, %v12897_v3 }
0x1806   :  { %v13336_v42 = vpop.permute.xlu0 %13335  ;;  %v12909_v10 = vsub.f32 %v12907_v4, %v12908_v41  ;;  %v13355_v29 = vsel %vm4833_vm7, %v25800_v1, %v13334_v57  ;;  %v9089_v1 = vsel %vm4833_vm7, %v25480_v13, %v9068_v49  ;;  %v13381_v13 = vand.u32 4294901760, %v25934_v11 }
0x1807   :  { %v12899_v9 = vsub.f32 %v12897_v3, %v12898_v32  ;;  %v13356_v25 = vsel %vm4833_vm7, %v25798_v19, %v13336_v42  ;;  %v21162_v19 = vpack.c.bf16 %v12926_v55, %v12919_v33  ;;  %v9092_v7 = vsel %vm9091_vm10, %v9089_v1, %v9076_v50  ;;  %v25982_v50 = vld [vmem:[#allocation11 + $0x50] sm:$0xff] }
0x1808   :  { %v12910_v56 = vand.u32 4294901760, %v12909_v10  ;;  %v9095_v45 = vsel %vm9094_vm11, %v9092_v7, %v9084_v35  ;;  %v25946_v31 = vpack.c.bf16 %v13381_v13, %v13378_v27  ;;  %v25970_v49 = vpack.c.bf16 %v13393_v63, %v13390_v43  ;;  %v26005_v35 = vld [vmem:[#allocation11 + $0x68] sm:$0xff] }
0x1809   :  { %v13342_v26 = vpop.permute.xlu1 %13341  ;;  %v12900_v62 = vand.u32 4294901760, %v12899_v9  ;;  %v25930_v6 = vand.u32 4294901760, %v9095_v45  ;;  %v13399_v33 = vand.u32 4294901760, %v13368_v16  ;;  %v13408_v59 = vand.u32 4294901760, %v25982_v50 }
0x180a   :  { %v25918_v15 = vsel %vm9091_vm10, %v13355_v29, %v13342_v26  ;;  %v13344_v47 = vpop.permute.xlu0 %13343  ;;  %v13417_v48 = vand.u32 4294901760, %v26005_v35 }
0x180b   :  { %v25921_v46 = vsel %vm9091_vm10, %v13356_v25, %v13344_v47  ;;  %19104 = vmatprep.mubr.f32.mxu0 %v12900_v62  ;;  %v25940_v61 = vsub.f32 %v9095_v45, %v25930_v6  ;;  %v26054_v62 = vsub.f32 %v25932_v53, %v13378_v27  ;;  %v26059_v25 = vsub.f32 %v25934_v11, %v13381_v13 }
0x180c   :  { %19105 = vmatmul.mubr.f32.vlgmr.msra.gmra.mrb[20].mxu0 %v12910_v56  ;;  %v26064_v47 = vsub.f32 %v25949_v22, %v13384_v5  ;;  %v26069_v56 = vsub.f32 %v25951_v51, %v13387_v36  ;;  %v26077_v7 = vsub.f32 %v13368_v16, %v13399_v33 }
0x180d   :  { %21153 = vmatpush3.bf16.msra.mxu0 %v21150_v20  ;;  %19111 = vmatprep.mubr.f32.mxu0 %v12896_v14  ;;  %v13460_v0 = vand.u32 4294901760, %v25940_v61  ;;  %v13501_v45 = vand.u32 4294901760, %v26054_v62  ;;  %v13508_v53 = vand.u32 4294901760, %v26059_v25 }
0x180e   :  { %21155 = vmatprep.subr.bf16.mxu0 %v21154_v38  ;;  %v13515_v11 = vand.u32 4294901760, %v26064_v47  ;;  %v13522_v27 = vand.u32 4294901760, %v26069_v56  ;;  %v13550_v5 = vand.u32 4294901760, %v26077_v7 }
0x180f   :  { %v13461_v2 = vsub.f32 %v25940_v61, %v13460_v0  ;;  %v13502_v36 = vsub.f32 %v26054_v62, %v13501_v45 }
0x1810   :  { %v13551_v39 = vsub.f32 %v26077_v7, %v13550_v5 }
0x1811   :  { %v13462_v8 = vand.u32 4294901760, %v13461_v2  ;;  %v13509_v2 = vsub.f32 %v26059_v25, %v13508_v53 }
0x1814   :  { %19112 = vmatmul.mubr.f32.vlgmr.msra.gmra.mrb[20].mxu0 %v25908_v34 }
0x1815   :  { %21157 = vmatpush3.bf16.msra.mxu0 %v21154_v38  ;;  %19118 = vmatprep.mubr.f32.mxu0 %v12897_v3  ;;  %v26021_v3 = vld [vmem:[#allocation11 + $0x78] sm:$0xff]  ;;  %v26071_v38 = vsub.f32 %v13365_v52, %v13390_v43  ;;  %v13516_v52 = vsub.f32 %v26064_v47, %v13515_v11 }
0x1816   :  { %21159 = vmatprep.subr.bf16.mxu0 %v25898_v28  ;;  %v13423_v42 = vand.u32 4294901760, %v26021_v3 }
0x1817   :  { %v13529_v13 = vand.u32 4294901760, %v26071_v38  ;;  %v13517_v16 = vand.u32 4294901760, %v13516_v52 }
0x1819   :  { %v13530_v43 = vsub.f32 %v26071_v38, %v13529_v13 }
0x181c   :  { %19119 = vmatmul.mubr.f32.vlgmr.msra.gmra.mrb[20].mxu0 %v12907_v4  ;;  %v26019_v4 = vld [vmem:[#allocation11 + $0x70] sm:$0xff] }
0x181d   :  { %21161 = vmatpush3.bf16.msra.mxu0 %v25898_v28  ;;  %19125 = vmatprep.mubr.f32.mxu0 %v12898_v32  ;;  %v13420_v32 = vand.u32 4294901760, %v26019_v4 }
0x181e   :  { %21163 = vmatprep.subr.bf16.mxu0 %v21162_v19 }
0x181f   :  { %v26043_v9 = vpack.c.bf16 %v13423_v42, %v13420_v32 }
0x1824   :  { %19126 = vmatmul.mubr.f32.vlgmr.msra.gmra.mrb[20].mxu0 %v12908_v41  ;;  %v26025_v41 = vsub.f32 %v9096_v21, %v26008_v37 }
0x1825   :  { %21165 = vmatpush3.bf16.msra.mxu0 %v21162_v19  ;;  %19132 = vmatprep.mubr.f32.mxu0 %v12896_v14  ;;  %v26073_v19 = vsub.f32 %v13366_v44, %v13393_v63  ;;  %v13523_v44 = vsub.f32 %v26069_v56, %v13522_v27 }
0x1826   :  { %21167 = vmatprep.subr.bf16.mxu0 %v25898_v28  ;;  %v13470_v10 = vand.u32 4294901760, %v26025_v41 }
0x1827   :  { %v27446_v22 = vand.u32 4294901760, %v26073_v19 }
0x1828   :  { %v13471_v29 = vsub.f32 %v26025_v41, %v13470_v10 }
0x1829   :  { %v13537_v63 = vsub.f32 %v26073_v19, %v27446_v22 }
0x182a   :  { %v13472_v26 = vand.u32 4294901760, %v13471_v29  ;;  %v13531_v29 = vand.u32 4294901760, %v13530_v43  ;;  %v26119_v43 = vsub.f32 %v25974_v60, %v13405_v18 }
0x182c   :  { %19133 = vmatmul.mubr.f32.vlgmr.msra.gmra.mrb[20].mxu0 %v25908_v34 }
0x182d   :  { %21169 = vmatpush3.bf16.msra.mxu0 %v25898_v28  ;;  %19139 = vmatprep.mubr.f32.mxu0 %v12896_v14  ;;  %v13367_v28 = vld [vmem:[#allocation11 + $0x30] sm:$0xff]  ;;  %v13414_v14 = vand.u32 4294901760, %v26003_v40 }
0x182e   :  { %21171 = vmatprep.subr.bf16.mxu0 %v25946_v31  ;;  %v13396_v55 = vand.u32 4294901760, %v13367_v28 }
0x182f   :  { %v26032_v57 = vpack.c.bf16 %v13417_v48, %v13414_v14 }
0x1830   :  { %v25978_v30 = vpack.c.bf16 %v13399_v33, %v13396_v55  ;;  %v26075_v1 = vsub.f32 %v13367_v28, %v13396_v55  ;;  %v13510_v28 = vand.u32 4294901760, %v13509_v2  ;;  %v13524_v55 = vand.u32 4294901760, %v13523_v44 }
0x1831   :  { %v13552_v2 = vand.u32 4294901760, %v13551_v39  ;;  %v26114_v44 = vsub.f32 %v25972_v17, %v13402_v54  ;;  %v26132_v17 = vsub.f32 %v25982_v50, %v13408_v59  ;;  %v26149_v50 = vsub.f32 %v26005_v35, %v13417_v48 }
0x1832   :  { %v13543_v51 = vand.u32 4294901760, %v26075_v1  ;;  %v21206_v21 = vpack.c.bf16 %v13524_v55, %v13517_v16 }
0x1833   :  { %v13571_v16 = vand.u32 4294901760, %v26132_v17 }
0x1834   :  { %19140 = vmatmul.mubr.f32.vlgmr.msra.gmra.mrb[20].mxu0 %v25908_v34  ;;  %v13411_v34 = vand.u32 4294901760, %v25984_v58  ;;  %v13544_v33 = vsub.f32 %v26075_v1, %v13543_v51 }
0x1835   :  { %21173 = vmatpush3.bf16.msra.mxu0 %v25946_v31  ;;  %19174 = vmatprep.mubr.f32.mxu0 %v13462_v8  ;;  %v13503_v8 = vand.u32 4294901760, %v13502_v36 }
0x1836   :  { %21175 = vmatprep.subr.bf16.mxu0 %v25965_v23  ;;  %v26015_v20 = vpack.c.bf16 %v13411_v34, %v13408_v59  ;;  %v13545_v36 = vand.u32 4294901760, %v13544_v33  ;;  %v26137_v60 = vsub.f32 %v25984_v58, %v13411_v34  ;;  %v26144_v33 = vsub.f32 %v26003_v40, %v13414_v14 }
0x1837   :  { %v21202_v12 = vpack.c.bf16 %v13510_v28, %v13503_v8  ;;  %v13564_v8 = vand.u32 4294901760, %v26119_v43  ;;  %v13572_v58 = vsub.f32 %v26132_v17, %v13571_v16 }
0x1838   :  { %v21214_v52 = vpack.c.bf16 %v13552_v2, %v13545_v36  ;;  %v13578_v55 = vand.u32 4294901760, %v26137_v60  ;;  %v13585_v39 = vand.u32 4294901760, %v26144_v33 }
0x1839   :  { %21177 = vmatpush3.bf16.msra.mxu0 %v25965_v23  ;;  %v13565_v28 = vsub.f32 %v26119_v43, %v13564_v8  ;;  %v13573_v40 = vand.u32 4294901760, %v13572_v58  ;;  %v21234_v58 = vpack.c.bf16 %v26059_v25, %v26054_v62  ;;  %v27850_v62 = vand.u32 4294901760, %v26073_v19 }
0x183a   :  { %21179 = vmatprep.subr.bf16.mxu0 %v25970_v49  ;;  %v13579_v34 = vsub.f32 %v26137_v60, %v13578_v55  ;;  %v13586_v35 = vsub.f32 %v26144_v33, %v13585_v39 }
0x183b   :  { %v13566_v18 = vand.u32 4294901760, %v13565_v28  ;;  %v21306_v25 = vpack.c.bf16 %v27850_v62, %v13529_v13 }
0x183c   :  { %v13580_v14 = vand.u32 4294901760, %v13579_v34  ;;  %v13587_v36 = vand.u32 4294901760, %v13586_v35  ;;  %v21250_v34 = vpack.c.bf16 %v26119_v43, %v26114_v44 }
0x183d   :  { %21181 = vmatpush3.bf16.msra.mxu0 %v25970_v49 }
0x183e   :  { %21183 = vmatprep.subr.bf16.mxu0 %v25978_v30 }
0x1841   :  { %21185 = vmatpush3.bf16.msra.mxu0 %v25978_v30 }
0x1842   :  { %21187 = vmatprep.subr.bf16.mxu0 %v25997_v24 }
0x1845   :  { %21189 = vmatpush3.bf16.msra.mxu0 %v25997_v24 }
0x1846   :  { %21191 = vmatprep.subr.bf16.mxu0 %v26015_v20 }
0x1849   :  { %21193 = vmatpush3.bf16.msra.mxu0 %v26015_v20 }
0x184a   :  { %21195 = vmatprep.subr.bf16.mxu0 %v26032_v57 }
0x184d   :  { %21197 = vmatpush3.bf16.msra.mxu0 %v26032_v57 }
0x184e   :  { %21199 = vmatprep.subr.bf16.mxu0 %v26043_v9 }
0x1851   :  { %21201 = vmatpush3.bf16.msra.mxu0 %v26043_v9 }
0x1852   :  { %21203 = vmatprep.subr.bf16.mxu0 %v21202_v12 }
0x1854   :  { %19175 = vmatmul.mubr.f32.vlgmr.msra.gmra.mrb[22].mxu0 %v13472_v26  ;;  %v13538_v26 = vand.u32 4294901760, %v13537_v63  ;;  %v13557_v63 = vand.u32 4294901760, %v26114_v44 }
0x1855   :  { %21205 = vmatpush3.bf16.msra.mxu0 %v21202_v12  ;;  %v13592_v12 = vand.u32 4294901760, %v26149_v50 }
0x1856   :  { %21207 = vmatprep.subr.bf16.mxu0 %v21206_v21  ;;  %v21210_v22 = vpack.c.bf16 %v13538_v26, %v13531_v29  ;;  %v26168_v29 = vsub.f32 %v26019_v4, %v13420_v32  ;;  %v26173_v26 = vsub.f32 %v26021_v3, %v13423_v42 }
0x1857   :  { %v13593_v48 = vsub.f32 %v26149_v50, %v13592_v12 }
0x1858   :  { %v27447_v28 = vand.u32 4294901760, %v26173_v26  ;;  %v21262_v35 = vpack.c.bf16 %v26173_v26, %v26168_v29 }
0x1859   :  { %21209 = vmatpush3.bf16.msra.mxu0 %v21206_v21  ;;  %v21222_v21 = vpack.c.bf16 %v13580_v14, %v13573_v40  ;;  %v13594_v2 = vand.u32 4294901760, %v13593_v48  ;;  %v21254_v40 = vpack.c.bf16 %v26137_v60, %v26132_v17  ;;  %v21258_v14 = vpack.c.bf16 %v26149_v50, %v26144_v33 }
0x185a   :  { %21211 = vmatprep.subr.bf16.mxu0 %v21210_v22  ;;  %v13607_v3 = vsub.f32 %v26173_v26, %v27447_v28 }
0x185c   :  { %v13608_v42 = vand.u32 4294901760, %v13607_v3 }
0x185d   :  { %21213 = vmatpush3.bf16.msra.mxu0 %v21210_v22  ;;  %v13558_v22 = vsub.f32 %v26114_v44, %v13557_v63 }
0x185e   :  { %21215 = vmatprep.subr.bf16.mxu0 %v21214_v52 }
0x185f   :  { %v13559_v54 = vand.u32 4294901760, %v13558_v22  ;;  %v27448_v22 = vand.u32 4294901760, %v26168_v29 }
0x1861   :  { %21217 = vmatpush3.bf16.msra.mxu0 %v21214_v52  ;;  %v21218_v59 = vpack.c.bf16 %v13566_v18, %v13559_v54  ;;  %v21226_v18 = vpack.c.bf16 %v13594_v2, %v13587_v36  ;;  %v13600_v4 = vsub.f32 %v26168_v29, %v27448_v22 }
0x1863   :  { %21219 = vmatprep.subr.bf16.mxu0 %v21218_v59  ;;  %v13601_v32 = vand.u32 4294901760, %v13600_v4 }
0x1865   :  { %21221 = vmatpush3.bf16.msra.mxu0 %v21218_v59  ;;  %v21230_v59 = vpack.c.bf16 %v13608_v42, %v13601_v32 }
0x1866   :  { %21223 = vmatprep.subr.bf16.mxu0 %v21222_v21 }
0x1869   :  { %21225 = vmatpush3.bf16.msra.mxu0 %v21222_v21 }
0x186a   :  { %21227 = vmatprep.subr.bf16.mxu0 %v21226_v18 }
0x186d   :  { %21229 = vmatpush3.bf16.msra.mxu0 %v21226_v18 }
0x186e   :  { %21231 = vmatprep.subr.bf16.mxu0 %v21230_v59 }
0x1871   :  { %21233 = vmatpush3.bf16.msra.mxu0 %v21230_v59 }
0x1872   :  { %21235 = vmatprep.subr.bf16.mxu0 %v21234_v58 }
0x1907   :  { %v19141_v52 = vpop.f32.mrb[20].mxu0 }
0x1908   :  { %13351 = vrot.lane.b32.xlu0 %v19141_v52, %s22412_s6  ;;  %v13321_v54 = vpop.f32.mrb[21].mxu0 }
0x1909   :  { %13349 = vrot.lane.b32.xlu1 %v13321_v54, %s22412_s6 }
0x197a   :  { %v13352_v48 = vpop.permute.xlu0 %13351 }
0x197b   :  { %v13360_v21 = vsel %vm9094_vm11, %v25921_v46, %v13352_v48  ;;  %v13350_v36 = vpop.permute.xlu1 %13349  ;;  %v21238_v46 = vpack.c.bf16 %v26069_v56, %v26064_v47  ;;  %v21310_v47 = vpack.c.bf16 %v13550_v5, %v13543_v51  ;;  %v21322_v56 = vpack.c.bf16 %v13592_v12, %v13585_v39  ;;  %v14230_v48 = vld [vmem:[#allocation13 + $0x10] sm:$0xff] }
0x197c   :  { %v26197_v2 = vand.u32 4294901760, %v13360_v21  ;;  %v13359_v52 = vsel %vm9094_vm11, %v25918_v15, %v13350_v36  ;;  %v21242_v15 = vpack.c.bf16 %v26073_v19, %v26071_v38  ;;  %v27851_v38 = vand.u32 4294901760, %v26168_v29 }
0x197d   :  { %v26201_v54 = vand.u32 4294901760, %v13359_v52  ;;  %v27852_v19 = vand.u32 4294901760, %v26173_v26  ;;  %v14258_v36 = vand.u32 4294901760, %v14230_v48 }
0x197e   :  { %v13489_v18 = vsub.f32 %v13360_v21, %v26197_v2  ;;  %v14231_v21 = vld [vmem:[#allocation13 + $0x18] sm:$0xff] }
0x197f   :  { %v13479_v4 = vsub.f32 %v13359_v52, %v26201_v54 }
0x1980   :  { %v13490_v3 = vand.u32 4294901760, %v13489_v18 }
0x1981   :  { %v13480_v32 = vand.u32 4294901760, %v13479_v4 }
0x1982   :  { %v13491_v42 = vsub.f32 %v13489_v18, %v13490_v3 }
0x1983   :  { %v13481_v59 = vsub.f32 %v13479_v4, %v13480_v32 }
0x1984   :  { %v13492_v22 = vand.u32 4294901760, %v13491_v42  ;;  %v14234_v42 = vld [vmem:[#allocation13 + $0x30] sm:$0xff] }
0x1985   :  { %v13482_v28 = vand.u32 4294901760, %v13481_v59  ;;  %v14235_v59 = vld [vmem:[#allocation13 + $0x38] sm:$0xff] }
0x1987   :  { %19177 = vmatprep.mubr.f32.mxu0 %v13482_v28 }
0x1988   :  { %19178 = vmatmul.mubr.f32.gmra.mrb[24].mxu0 %v13492_v22  ;;  %v21246_v22 = vpack.c.bf16 %v26077_v7, %v26075_v1  ;;  %v21326_v1 = vpack.c.bf16 %v27852_v19, %v27851_v38 }
0x1989   :  { %19212 = vmatprep.mubr.f32.mxu0 %v25930_v6 }
0x198c   :  { %19213 = vmatmul.mubr.f32.vlgmr.msra.gmra.mrb[22].mxu0 %v26008_v37 }
0x198d   :  { %21237 = vmatpush3.bf16.msra.mxu0 %v21234_v58  ;;  %19215 = vmatprep.mubr.f32.mxu0 %v26201_v54  ;;  %v14228_v58 = vld [vmem:[#allocation13] sm:$0xff] }
0x198e   :  { %21239 = vmatprep.subr.bf16.mxu0 %v21238_v46 }
0x1990   :  { %19216 = vmatmul.mubr.f32.gmra.mrb[24].mxu0 %v26197_v2 }
0x1991   :  { %21241 = vmatpush3.bf16.msra.mxu0 %v21238_v46  ;;  %19250 = vmatprep.mubr.f32.mxu0 %v25940_v61  ;;  %v21298_v61 = vpack.c.bf16 %v13508_v53, %v13501_v45  ;;  %v14270_v46 = vand.u32 4294901760, %v14234_v42 }
0x1992   :  { %21243 = vmatprep.subr.bf16.mxu0 %v21242_v15 }
0x1995   :  { %21245 = vmatpush3.bf16.msra.mxu0 %v21242_v15  ;;  %v14273_v15 = vand.u32 4294901760, %v14235_v59 }
0x1996   :  { %21247 = vmatprep.subr.bf16.mxu0 %v21246_v22 }
0x1999   :  { %21249 = vmatpush3.bf16.msra.mxu0 %v21246_v22  ;;  %v26344_v22 = vpack.c.bf16 %v14273_v15, %v14270_v46 }
0x199a   :  { %21251 = vmatprep.subr.bf16.mxu0 %v21250_v34 }
0x199d   :  { %21253 = vmatpush3.bf16.msra.mxu0 %v21250_v34  ;;  %v14229_v34 = vld [vmem:[#allocation13 + $0x8] sm:$0xff] }
0x199e   :  { %21255 = vmatprep.subr.bf16.mxu0 %v21254_v40 }
0x19a1   :  { %21257 = vmatpush3.bf16.msra.mxu0 %v21254_v40  ;;  %v14252_v40 = vand.u32 4294901760, %v14228_v58 }
0x19a2   :  { %21259 = vmatprep.subr.bf16.mxu0 %v21258_v14 }
0x19a5   :  { %21261 = vmatpush3.bf16.msra.mxu0 %v21258_v14  ;;  %v14255_v14 = vand.u32 4294901760, %v14229_v34 }
0x19a6   :  { %21263 = vmatprep.subr.bf16.mxu0 %v21262_v35 }
0x19a9   :  { %21265 = vmatpush3.bf16.msra.mxu0 %v21262_v35  ;;  %v26332_v35 = vpack.c.bf16 %v14255_v14, %v14252_v40 }
0x19aa   :  { %21267 = vmatprep.subr.bf16.mxu0 %v25946_v31 }
0x19ab   :  { %21363 = vmatprep.subr.bf16.mxu1 %v26332_v35 }
0x19ac   :  { %19251 = vmatmul.mubr.f32.vlgmr.msra.gmra.mrb[22].mxu0 %v26025_v41  ;;  %v21314_v41 = vpack.c.bf16 %v13564_v8, %v13557_v63  ;;  %21365 = vmatpush3.bf16.msra.mxu1 %v26332_v35 }
0x19ad   :  { %19253 = vmatprep.mubr.f32.mxu0 %v13479_v4  ;;  %21269 = vmatpush3.bf16.msra.mxu0 %v25946_v31 }
0x19ae   :  { %21271 = vmatprep.subr.bf16.mxu0 %v25965_v23 }
0x19b0   :  { %19254 = vmatmul.mubr.f32.gmra.mrb[24].mxu0 %v13489_v18  ;;  %v14233_v18 = vld [vmem:[#allocation13 + $0x28] sm:$0xff] }
0x19b1   :  { %21273 = vmatpush3.bf16.msra.mxu0 %v25965_v23  ;;  %19288 = vmatprep.mubr.f32.mxu0 %v13460_v0  ;;  %v21302_v0 = vpack.c.bf16 %v13522_v27, %v13515_v11  ;;  %v27856_v11 = vld [vmem:[#allocation50_spill] sm:$0xff] }
0x19b2   :  { %21275 = vmatprep.subr.bf16.mxu0 %v25970_v49 }
0x19b5   :  { %21277 = vmatpush3.bf16.msra.mxu0 %v25970_v49 }
0x19b6   :  { %21279 = vmatprep.subr.bf16.mxu0 %v25978_v30 }
0x19b9   :  { %21281 = vmatpush3.bf16.msra.mxu0 %v25978_v30 }
0x19ba   :  { %21283 = vmatprep.subr.bf16.mxu0 %v25997_v24 }
0x19bd   :  { %21285 = vmatpush3.bf16.msra.mxu0 %v25997_v24 }
0x19be   :  { %21287 = vmatprep.subr.bf16.mxu0 %v26015_v20 }
0x19c1   :  { %21289 = vmatpush3.bf16.msra.mxu0 %v26015_v20 }
0x19c2   :  { %21291 = vmatprep.subr.bf16.mxu0 %v26032_v57 }
0x19c5   :  { %21293 = vmatpush3.bf16.msra.mxu0 %v26032_v57 }
0x19c6   :  { %21295 = vmatprep.subr.bf16.mxu0 %v26043_v9 }
0x19c9   :  { %21297 = vmatpush3.bf16.msra.mxu0 %v26043_v9 }
0x19ca   :  { %21299 = vmatprep.subr.bf16.mxu0 %v21298_v61 }
0x19cc   :  { %19289 = vmatmul.mubr.f32.vlgmr.msra.gmra.mrb[22].mxu0 %v13470_v10  ;;  %v21318_v10 = vpack.c.bf16 %v13578_v55, %v13571_v16 }
0x19cd   :  { %19291 = vmatprep.mubr.f32.mxu0 %v13480_v32  ;;  %21301 = vmatpush3.bf16.msra.mxu0 %v21298_v61  ;;  %v26346_v61 = vld [vmem:[#allocation13 + $0x40] sm:$0xff] }
0x19ce   :  { %21303 = vmatprep.subr.bf16.mxu0 %v21302_v0  ;;  %v14276_v62 = vand.u32 4294901760, %v26346_v61 }
0x19d0   :  { %19292 = vmatmul.mubr.f32.gmra.mrb[24].mxu0 %v13490_v3  ;;  %v14267_v3 = vand.u32 4294901760, %v14233_v18 }
0x19d1   :  { %21305 = vmatpush3.bf16.msra.mxu0 %v21302_v0  ;;  %19326 = vmatprep.mubr.f32.mxu0 %v25930_v6  ;;  %v26348_v0 = vld [vmem:[#allocation13 + $0x48] sm:$0xff] }
0x19d2   :  { %21307 = vmatprep.subr.bf16.mxu0 %v21306_v25 }
0x19d5   :  { %21309 = vmatpush3.bf16.msra.mxu0 %v21306_v25  ;;  %v14279_v25 = vand.u32 4294901760, %v26348_v0 }
0x19d6   :  { %21311 = vmatprep.subr.bf16.mxu0 %v21310_v47 }
0x19d9   :  { %21313 = vmatpush3.bf16.msra.mxu0 %v21310_v47  ;;  %v26354_v47 = vpack.c.bf16 %v14279_v25, %v14276_v62 }
0x19da   :  { %21315 = vmatprep.subr.bf16.mxu0 %v21314_v41 }
0x19dd   :  { %21317 = vmatpush3.bf16.msra.mxu0 %v21314_v41  ;;  %v26356_v41 = vld [vmem:[#allocation13 + $0x50] sm:$0xff] }
0x19de   :  { %21319 = vmatprep.subr.bf16.mxu0 %v21318_v10  ;;  %v14282_v38 = vand.u32 4294901760, %v26356_v41 }
0x19e1   :  { %21321 = vmatpush3.bf16.msra.mxu0 %v21318_v10  ;;  %v26358_v10 = vld [vmem:[#allocation13 + $0x58] sm:$0xff] }
0x19e2   :  { %21323 = vmatprep.subr.bf16.mxu0 %v21322_v56  ;;  %v14285_v19 = vand.u32 4294901760, %v26358_v10 }
0x19e5   :  { %21325 = vmatpush3.bf16.msra.mxu0 %v21322_v56  ;;  %v26360_v56 = vld [vmem:[#allocation13 + $0x60] sm:$0xff] }
0x19e6   :  { %21327 = vmatprep.subr.bf16.mxu0 %v21326_v1 }
0x19e9   :  { %21329 = vmatpush3.bf16.msra.mxu0 %v21326_v1  ;;  %v26364_v1 = vld [vmem:[#allocation13 + $0x68] sm:$0xff] }
0x19ea   :  { %21331 = vmatprep.subr.bf16.mxu0 %v25946_v31 }
0x19ec   :  { %19327 = vmatmul.mubr.f32.vlgmr.msra.gmra.mrb[22].mxu0 %v26008_v37 }
0x19ed   :  { %19329 = vmatprep.mubr.f32.mxu0 %v26201_v54  ;;  %21333 = vmatpush3.bf16.msra.mxu0 %v25946_v31  ;;  %v15976_v31 = vld [vmem:[%s27191_s18] ss:$0 sm:$0xff] }
0x19ee   :  { %21335 = vmatprep.subr.bf16.mxu0 %v25965_v23 }
0x19f0   :  { %19330 = vmatmul.mubr.f32.gmra.mrb[24].mxu0 %v26197_v2 }
0x19f1   :  { %21337 = vmatpush3.bf16.msra.mxu0 %v25965_v23  ;;  %19364 = vmatprep.mubr.f32.mxu0 %v25930_v6  ;;  %v27853_v23 = vld [vmem:[#allocation49_spill] sm:$0xff] }
0x19f2   :  { %21339 = vmatprep.subr.bf16.mxu0 %v25970_v49 }
0x19f5   :  { %21341 = vmatpush3.bf16.msra.mxu0 %v25970_v49 }
0x19f6   :  { %21343 = vmatprep.subr.bf16.mxu0 %v25978_v30 }
0x19f9   :  { %21345 = vmatpush3.bf16.msra.mxu0 %v25978_v30 }
0x19fa   :  { %21347 = vmatprep.subr.bf16.mxu0 %v25997_v24 }
0x19fd   :  { %21349 = vmatpush3.bf16.msra.mxu0 %v25997_v24  ;;  %v27854_v24 = vld [vmem:[#allocation37_spill] sm:$0xff] }
0x19fe   :  { %21351 = vmatprep.subr.bf16.mxu0 %v26015_v20 }
0x1a01   :  { %21353 = vmatpush3.bf16.msra.mxu0 %v26015_v20 }
0x1a02   :  { %21355 = vmatprep.subr.bf16.mxu0 %v26032_v57 }
0x1a05   :  { %21357 = vmatpush3.bf16.msra.mxu0 %v26032_v57 }
0x1a06   :  { %21359 = vmatprep.subr.bf16.mxu0 %v26043_v9 }
0x1a09   :  { %21361 = vmatpush3.bf16.msra.mxu0 %v26043_v9 }
0x1a0c   :  { %19365 = vmatmul.mubr.f32.vlgmr.msra.gmra.mrb[22].mxu0 %v26008_v37  ;;  %v27855_v37 = vld [vmem:[#allocation44_spill] sm:$0xff] }
0x1a0d   :  { %19367 = vmatprep.mubr.f32.mxu0 %v26201_v54  ;;  %v14232_v54 = vld [vmem:[#allocation13 + $0x20] sm:$0xff] }
0x1a0e   :  { %v14264_v4 = vand.u32 4294901760, %v14232_v54 }
0x1a10   :  { %19368 = vmatmul.mubr.f32.gmra.mrb[24].mxu0 %v26197_v2  ;;  %v14261_v2 = vand.u32 4294901760, %v14231_v21  ;;  %v26340_v32 = vpack.c.bf16 %v14267_v3, %v14264_v4 }
0x1a12   :  { %v26336_v52 = vpack.c.bf16 %v14261_v2, %v14258_v36 }
0x1a14   :  { %21367 = vmatprep.subr.bf16.mxu1 %v26336_v52 }
0x1a15   :  { %21369 = vmatpush3.bf16.msra.mxu1 %v26336_v52 }
0x1a16   :  { %21371 = vmatprep.subr.bf16.mxu1 %v26340_v32 }
0x1a19   :  { %21373 = vmatpush3.bf16.msra.mxu1 %v26340_v32 }
0x1a1a   :  { %21375 = vmatprep.subr.bf16.mxu1 %v26344_v22 }
0x1a1d   :  { %21377 = vmatpush3.bf16.msra.mxu1 %v26344_v22 }
0x1a1e   :  { %21379 = vmatprep.subr.bf16.mxu1 %v26354_v47 }
0x1a21   :  { %21381 = vmatpush3.bf16.msra.mxu1 %v26354_v47 }
0x1adf   :  { %v19366_v6 = vpop.f32.mrb[22].mxu0 }
0x1ae0   :  { %v14148_v49 = vadd.f32 %v19366_v6, %v27853_v23  ;;  %v14125_v30 = vpop.f32.mrb[23].mxu0  ;;  %v14288_v6 = vand.u32 4294901760, %v26360_v56  ;;  %v26369_v23 = vld [vmem:[#allocation13 + $0x78] sm:$0xff] }
0x1ae1   :  { %v14147_v20 = vadd.f32 %v14125_v30, %v27854_v24  ;;  %v26378_v30 = vpack.c.bf16 %v14285_v19, %v14282_v38 }
0x1ae2   :  { %v26298_v57 = vadd.f32 %v15976_v31, %v14148_v49  ;;  %v14291_v49 = vand.u32 4294901760, %v26364_v1 }
0x1ae3   :  { %v26300_v7 = vadd.f32 %v15976_v31, %v14147_v20  ;;  %v19369_v9 = vpop.f32.mrb[24].mxu0  ;;  %21383 = vmatprep.subr.bf16.mxu1 %v26378_v30 }
0x1ae4   :  { %v14150_v45 = vadd.f32 %v19369_v9, %v27855_v37  ;;  %14166 = vadd.xlane.f32.xlu0 %v26298_v57  ;;  %v14137_v53 = vpop.f32.mrb[25].mxu0  ;;  %v26384_v24 = vpack.c.bf16 %v14291_v49, %v14288_v6  ;;  %v14297_v9 = vand.u32 4294901760, %v26369_v23  ;;  %21385 = vmatpush3.bf16.msra.mxu1 %v26378_v30 }
0x1ae5   :  { %v14149_v27 = vadd.f32 %v14137_v53, %v27856_v11  ;;  %14164 = vadd.xlane.f32.xlu1 %v26300_v7  ;;  %v26399_v53 = vsub.f32 %v14229_v34, %v14255_v14 }
0x1ae6   :  { %v26306_v13 = vadd.f32 %v15976_v31, %v14150_v45  ;;  %21387 = vmatprep.subr.bf16.mxu1 %v26384_v24  ;;  %v26397_v45 = vsub.f32 %v14228_v58, %v14252_v40  ;;  %v26428_v58 = vsub.f32 %v14233_v18, %v14267_v3 }
0x1ae7   :  { %v26308_v51 = vadd.f32 %v15976_v31, %v14149_v27  ;;  %v26367_v31 = vld [vmem:[#allocation13 + $0x70] sm:$0xff]  ;;  %v27463_v27 = vand.u32 4294901760, %v26399_v53 }
0x1ae8   :  { %v14294_v20 = vand.u32 4294901760, %v26367_v31  ;;  %v27464_v11 = vand.u32 4294901760, %v26397_v45  ;;  %21389 = vmatpush3.bf16.msra.mxu1 %v26384_v24 }
0x1ae9   :  { %14170 = vadd.xlane.f32.xlu1 %v26306_v13  ;;  %14168 = vadd.xlane.f32.xlu0 %v26308_v51 }
0x1aea   :  { %v26395_v37 = vpack.c.bf16 %v14297_v9, %v14294_v20 }
0x1aec   :  { %21391 = vmatprep.subr.bf16.mxu1 %v26395_v37 }
0x1aed   :  { %21393 = vmatpush3.bf16.msra.mxu1 %v26395_v37 }
0x1b71   :  { %v14167_v5 = vpop.xlane.xlu0 %14166 }
0x1b72   :  { %v14173_v44 = vmul.f32 0.0078125, %v14167_v5  ;;  %v14165_v43 = vpop.xlane.xlu1 %14164  ;;  %v14376_v5 = vsub.f32 %v26397_v45, %v27464_v11 }
0x1b73   :  { %v14172_v63 = vmul.f32 0.0078125, %v14165_v43  ;;  %v26411_v43 = vsub.f32 %v14230_v48, %v14258_v36  ;;  %v27459_v48 = vand.u32 4294901760, %v26428_v58 }
0x1b74   :  { %v26313_v8 = vsub.f32 %v26298_v57, %v14173_v44  ;;  %v14383_v44 = vsub.f32 %v26399_v53, %v27463_v27 }
0x1b75   :  { %v26316_v17 = vsub.f32 %v26300_v7, %v14172_v63  ;;  %v26413_v63 = vsub.f32 %v14231_v21, %v14261_v2  ;;  %v26438_v2 = vsub.f32 %v14234_v42, %v14270_v46  ;;  %v14411_v18 = vsub.f32 %v26428_v58, %v27459_v48 }
0x1b76   :  { %v14171_v60 = vpop.xlane.xlu1 %14170  ;;  %v14169_v16 = vpop.xlane.xlu0 %14168  ;;  %v14181_v55 = vmul.f32 %v26313_v8, %v26313_v8  ;;  %v26457_v46 = vsub.f32 %v26348_v0, %v14279_v25  ;;  %v26474_v0 = vsub.f32 %v26356_v41, %v14282_v38  ;;  %v26491_v41 = vsub.f32 %v26360_v56, %v14288_v6 }
0x1b77   :  { %v14175_v33 = vmul.f32 0.0078125, %v14171_v60  ;;  %v14174_v50 = vmul.f32 0.0078125, %v14169_v16  ;;  %v14180_v39 = vmul.f32 %v26316_v17, %v26316_v17  ;;  %v14377_v60 = vand.u32 4294901760, %v14376_v5 }
0x1b78   :  { %14186 = vadd.xlane.f32.xlu1 %v14181_v55  ;;  %v14384_v16 = vand.u32 4294901760, %v14383_v44  ;;  %v27462_v55 = vand.u32 4294901760, %v26411_v43  ;;  %v27458_v3 = vand.u32 4294901760, %v26438_v2  ;;  %v14412_v44 = vand.u32 4294901760, %v14411_v18 }
0x1b79   :  { %v26323_v12 = vsub.f32 %v26306_v13, %v14175_v33  ;;  %v26326_v29 = vsub.f32 %v26308_v51, %v14174_v50  ;;  %14184 = vadd.xlane.f32.xlu0 %v14180_v39  ;;  %v27461_v33 = vand.u32 4294901760, %v26413_v63 }
0x1b7a   :  { %v26418_v50 = vpack.c.bf16 %v14384_v16, %v14377_v60  ;;  %v14390_v39 = vsub.f32 %v26411_v43, %v27462_v55  ;;  %v14418_v60 = vsub.f32 %v26438_v2, %v27458_v3  ;;  %v15977_v55 = vld [vmem:[%s27192_s19] ss:$0 sm:$0xff] }
0x1b7b   :  { %v14183_v26 = vmul.f32 %v26323_v12, %v26323_v12  ;;  %v14182_v28 = vmul.f32 %v26326_v29, %v26326_v29 }
0x1b7c   :  { %21395 = vmatprep.subr.bf16.mxu1 %v26418_v50  ;;  %v14391_v34 = vand.u32 4294901760, %v14390_v39  ;;  %v14419_v16 = vand.u32 4294901760, %v14418_v60 }
0x1b7d   :  { %14190 = vadd.xlane.f32.xlu1 %v14183_v26  ;;  %14188 = vadd.xlane.f32.xlu0 %v14182_v28  ;;  %v14397_v26 = vsub.f32 %v26413_v63, %v27461_v33  ;;  %v26426_v28 = vsub.f32 %v14232_v54, %v14264_v4  ;;  %v26440_v54 = vsub.f32 %v14235_v59, %v14273_v15 }
0x1b7e   :  { %v26454_v59 = vsub.f32 %v26346_v61, %v14276_v62  ;;  %v26479_v62 = vsub.f32 %v26358_v10, %v14285_v19  ;;  %v26496_v10 = vsub.f32 %v26364_v1, %v14291_v49  ;;  %v26512_v1 = vsub.f32 %v26367_v31, %v14294_v20 }
0x1b7f   :  { %v14398_v40 = vand.u32 4294901760, %v14397_v26  ;;  %v27460_v14 = vand.u32 4294901760, %v26426_v28  ;;  %v27457_v5 = vand.u32 4294901760, %v26440_v54  ;;  %v26517_v49 = vsub.f32 %v26369_v23, %v14297_v9 }
0x1b80   :  { %v27456_v26 = vand.u32 4294901760, %v26454_v59 }
0x1b81   :  { %v26433_v21 = vpack.c.bf16 %v14398_v40, %v14391_v34  ;;  %v14404_v36 = vsub.f32 %v26426_v28, %v27460_v14  ;;  %v14425_v42 = vsub.f32 %v26440_v54, %v27457_v5  ;;  %v27455_v34 = vand.u32 4294901760, %v26457_v46 }
0x1b83   :  { %v14405_v4 = vand.u32 4294901760, %v14404_v36  ;;  %v14426_v39 = vand.u32 4294901760, %v14425_v42  ;;  %v14432_v36 = vsub.f32 %v26454_v59, %v27456_v26  ;;  %v14439_v61 = vsub.f32 %v26457_v46, %v27455_v34 }
0x1b85   :  { %v26459_v15 = vpack.c.bf16 %v14412_v44, %v14405_v4  ;;  %v26463_v40 = vpack.c.bf16 %v14426_v39, %v14419_v16  ;;  %v14433_v25 = vand.u32 4294901760, %v14432_v36  ;;  %v14440_v18 = vand.u32 4294901760, %v14439_v61 }
0x1b86   :  { %v27454_v4 = vand.u32 4294901760, %v26474_v0  ;;  %v27453_v44 = vand.u32 4294901760, %v26479_v62  ;;  %v27449_v16 = vand.u32 4294901760, %v26491_v41  ;;  %v27452_v39 = vand.u32 4294901760, %v26496_v10 }
0x1b87   :  { %v26483_v60 = vpack.c.bf16 %v14440_v18, %v14433_v25 }
0x1b88   :  { %v14446_v42 = vsub.f32 %v26474_v0, %v27454_v4  ;;  %v14453_v38 = vsub.f32 %v26479_v62, %v27453_v44  ;;  %v14460_v56 = vsub.f32 %v26491_v41, %v27449_v16  ;;  %v14467_v6 = vsub.f32 %v26496_v10, %v27452_v39 }
0x1b8a   :  { %v14447_v19 = vand.u32 4294901760, %v14446_v42  ;;  %v14454_v36 = vand.u32 4294901760, %v14453_v38  ;;  %v14461_v25 = vand.u32 4294901760, %v14460_v56  ;;  %v14468_v18 = vand.u32 4294901760, %v14467_v6 }
0x1b8b   :  { %v27451_v42 = vand.u32 4294901760, %v26512_v1  ;;  %v27450_v38 = vand.u32 4294901760, %v26517_v49  ;;  %v26539_v56 = vpack.c.bf16 %v26413_v63, %v26411_v43  ;;  %v26543_v6 = vpack.c.bf16 %v26428_v58, %v26426_v28 }
0x1b8c   :  { %v26519_v61 = vpack.c.bf16 %v14454_v36, %v14447_v19  ;;  %v26523_v16 = vpack.c.bf16 %v14468_v18, %v14461_v25  ;;  %v26535_v36 = vpack.c.bf16 %v26399_v53, %v26397_v45  ;;  %v26547_v25 = vpack.c.bf16 %v26440_v54, %v26438_v2 }
0x1b8d   :  { %v14474_v31 = vsub.f32 %v26512_v1, %v27451_v42  ;;  %v14481_v20 = vsub.f32 %v26517_v49, %v27450_v38  ;;  %v26551_v18 = vpack.c.bf16 %v26457_v46, %v26454_v59 }
0x1b8f   :  { %v14475_v23 = vand.u32 4294901760, %v14474_v31  ;;  %v14482_v9 = vand.u32 4294901760, %v14481_v20  ;;  %v26555_v31 = vpack.c.bf16 %v26479_v62, %v26474_v0  ;;  %v26559_v20 = vpack.c.bf16 %v26496_v10, %v26491_v41 }
0x1b91   :  { %v26531_v19 = vpack.c.bf16 %v14482_v9, %v14475_v23  ;;  %v26563_v23 = vpack.c.bf16 %v26517_v49, %v26512_v1 }
0x1c05   :  { %v14187_v9 = vpop.xlane.xlu1 %14186 }
0x1c06   :  { %v14193_v38 = vmul.f32 0.0078125, %v14187_v9  ;;  %v14185_v42 = vpop.xlane.xlu0 %14184 }
0x1c07   :  { %v14192_v39 = vmul.f32 0.0078125, %v14185_v42 }
0x1c08   :  { %v14197_v44 = vadd.f32 1e-05, %v14193_v38 }
0x1c09   :  { %v14196_v4 = vadd.f32 1e-05, %v14192_v39 }
0x1c0a   :  { %22199 = vrsqrt.f32 %v14197_v44  ;;  %v14191_v34 = vpop.xlane.xlu1 %14190  ;;  %v14189_v26 = vpop.xlane.xlu0 %14188 }
0x1c0b   :  { %22201 = vrsqrt.f32 %v14196_v4  ;;  %v14195_v5 = vmul.f32 0.0078125, %v14191_v34  ;;  %v14194_v3 = vmul.f32 0.0078125, %v14189_v26  ;;  %v15978_v4 = vld [vmem:[%s27193_s20] ss:$0 sm:$0xff] }
0x1c0d   :  { %v14199_v48 = vadd.f32 1e-05, %v14195_v5  ;;  %v14198_v14 = vadd.f32 1e-05, %v14194_v3 }
0x1c0f   :  { %22203 = vrsqrt.f32 %v14199_v48 }
0x1c10   :  { %22205 = vrsqrt.f32 %v14198_v14 }
0x1c14   :  { %v22200_v33 = vpop.eup %22199 }
0x1c15   :  { %v22202_v9 = vpop.eup %22201  ;;  %v14205_v42 = vmul.f32 %v22200_v33, %v26313_v8 }
0x1c16   :  { %v14204_v39 = vmul.f32 %v22202_v9, %v26316_v17 }
0x1c17   :  { %v14215_v34 = vmul.f32 %v15977_v55, %v14205_v42 }
0x1c18   :  { %v14214_v26 = vmul.f32 %v15977_v55, %v14204_v39 }
0x1c19   :  { %v22204_v5 = vpop.eup %22203  ;;  %v14225_v3 = vadd.f32 %v15978_v4, %v14215_v34 }
0x1c1a   :  { %v22206_v48 = vpop.eup %22205  ;;  %v14207_v14 = vmul.f32 %v22204_v5, %v26323_v12  ;;  %v14224_v44 = vadd.f32 %v15978_v4, %v14214_v26 }
0x1c1b   :  { %v14206_v38 = vmul.f32 %v22206_v48, %v26326_v29  ;;  %v26575_v27 = vand.u32 4294901760, %v14225_v3 }
0x1c1c   :  { %v26577_v11 = vand.u32 4294901760, %v14224_v44  ;;  %v14217_v8 = vmul.f32 %v15977_v55, %v14207_v14 }
0x1c1d   :  { %v26580_v17 = vsub.f32 %v14225_v3, %v26575_v27  ;;  %v14216_v33 = vmul.f32 %v15977_v55, %v14206_v38 }
0x1c1e   :  { %v26583_v9 = vsub.f32 %v14224_v44, %v26577_v11  ;;  %v14227_v42 = vadd.f32 %v15978_v4, %v14217_v8 }
0x1c1f   :  { %v14344_v39 = vand.u32 4294901760, %v26580_v17  ;;  %v14226_v34 = vadd.f32 %v15978_v4, %v14216_v33 }
0x1c20   :  { %v14334_v12 = vand.u32 4294901760, %v26583_v9  ;;  %v26587_v26 = vand.u32 4294901760, %v14227_v42 }
0x1c21   :  { %v14345_v29 = vsub.f32 %v26580_v17, %v14344_v39  ;;  %v26592_v5 = vand.u32 4294901760, %v14226_v34 }
0x1c22   :  { %v14335_v3 = vsub.f32 %v26583_v9, %v14334_v12  ;;  %v26596_v55 = vsub.f32 %v14227_v42, %v26587_v26 }
0x1c23   :  { %v26599_v48 = vsub.f32 %v14226_v34, %v26592_v5  ;;  %v14346_v44 = vand.u32 4294901760, %v14345_v29 }
0x1c24   :  { %v14336_v14 = vand.u32 4294901760, %v14335_v3  ;;  %v14364_v4 = vand.u32 4294901760, %v26596_v55 }
0x1c25   :  { %v14354_v38 = vand.u32 4294901760, %v26599_v48 }
0x1c26   :  { %19402 = vmatprep.mubr.f32.mxu1 %v14336_v14  ;;  %v14365_v8 = vsub.f32 %v26596_v55, %v14364_v4 }
0x1c27   :  { %19403 = vmatmul.mubr.f32.vlgmr.msra.gmra.mrb[34].mxu1 %v14346_v44  ;;  %v14355_v33 = vsub.f32 %v26599_v48, %v14354_v38  ;;  %v15099_v44 = vld [vmem:[#allocation13 + $0x88] sm:$0xff] }
0x1c28   :  { %21397 = vmatpush3.bf16.msra.mxu1 %v26418_v50  ;;  %v14366_v42 = vand.u32 4294901760, %v14365_v8  ;;  %v27857_v50 = vand.u32 4294901760, %v26397_v45  ;;  %v27861_v45 = vand.u32 4294901760, %v26426_v28  ;;  %v27866_v28 = vand.u32 4294901760, %v26457_v46 }
0x1c29   :  { %v14356_v34 = vand.u32 4294901760, %v14355_v33  ;;  %21399 = vmatprep.subr.bf16.mxu1 %v26433_v21  ;;  %v27872_v46 = vand.u32 4294901760, %v26517_v49  ;;  %v15126_v8 = vand.u32 4294901760, %v15099_v44 }
0x1c2b   :  { %19405 = vmatprep.mubr.f32.mxu1 %v14356_v34  ;;  %v15101_v34 = vld [vmem:[#allocation13 + $0x98] sm:$0xff] }
0x1c2c   :  { %19406 = vmatmul.mubr.f32.gmra.mrb[36].mxu1 %v14366_v42  ;;  %v15100_v42 = vld [vmem:[#allocation13 + $0x90] sm:$0xff] }
0x1c2d   :  { %21401 = vmatpush3.bf16.msra.mxu1 %v26433_v21  ;;  %19440 = vmatprep.mubr.f32.mxu1 %v26577_v11  ;;  %v27858_v21 = vand.u32 4294901760, %v26399_v53  ;;  %v27862_v53 = vand.u32 4294901760, %v26428_v58 }
0x1c2e   :  { %21403 = vmatprep.subr.bf16.mxu1 %v26459_v15 }
0x1c31   :  { %21405 = vmatpush3.bf16.msra.mxu1 %v26459_v15  ;;  %v21490_v15 = vpack.c.bf16 %v27858_v21, %v27857_v50  ;;  %v15129_v50 = vand.u32 4294901760, %v15100_v42  ;;  %v15132_v21 = vand.u32 4294901760, %v15101_v34 }
0x1c32   :  { %21407 = vmatprep.subr.bf16.mxu1 %v26463_v40 }
0x1c35   :  { %21409 = vmatpush3.bf16.msra.mxu1 %v26463_v40  ;;  %v27859_v40 = vand.u32 4294901760, %v26411_v43  ;;  %v27863_v43 = vand.u32 4294901760, %v26438_v2  ;;  %v27869_v2 = vand.u32 4294901760, %v26491_v41 }
0x1c36   :  { %21411 = vmatprep.subr.bf16.mxu1 %v26483_v60 }
0x1c39   :  { %21413 = vmatpush3.bf16.msra.mxu1 %v26483_v60  ;;  %v27860_v60 = vand.u32 4294901760, %v26413_v63  ;;  %v27864_v63 = vand.u32 4294901760, %v26440_v54  ;;  %v27870_v54 = vand.u32 4294901760, %v26496_v10 }
0x1c3a   :  { %21415 = vmatprep.subr.bf16.mxu1 %v26519_v61 }
0x1c3d   :  { %21417 = vmatpush3.bf16.msra.mxu1 %v26519_v61  ;;  %v21498_v61 = vpack.c.bf16 %v27862_v53, %v27861_v45 }
0x1c3e   :  { %21419 = vmatprep.subr.bf16.mxu1 %v26523_v16 }
0x1c41   :  { %21421 = vmatpush3.bf16.msra.mxu1 %v26523_v16  ;;  %v21494_v16 = vpack.c.bf16 %v27860_v60, %v27859_v40  ;;  %v15102_v40 = vld [vmem:[#allocation13 + $0xa0] sm:$0xff]  ;;  %v15103_v60 = vld [vmem:[#allocation13 + $0xa8] sm:$0xff] }
0x1c42   :  { %21423 = vmatprep.subr.bf16.mxu1 %v26531_v19  ;;  %v15138_v45 = vand.u32 4294901760, %v15103_v60 }
0x1c45   :  { %21425 = vmatpush3.bf16.msra.mxu1 %v26531_v19  ;;  %v21502_v19 = vpack.c.bf16 %v27864_v63, %v27863_v43  ;;  %v15105_v43 = vld [vmem:[#allocation13 + $0xb8] sm:$0xff] }
0x1c46   :  { %21427 = vmatprep.subr.bf16.mxu1 %v26535_v36 }
0x1c48   :  { %19441 = vmatmul.mubr.f32.vlgmr.msra.gmra.mrb[34].mxu1 %v26575_v27 }
0x1c49   :  { %19443 = vmatprep.mubr.f32.mxu1 %v26592_v5  ;;  %21429 = vmatpush3.bf16.msra.mxu1 %v26535_v36  ;;  %v27865_v36 = vand.u32 4294901760, %v26454_v59  ;;  %v27871_v59 = vand.u32 4294901760, %v26512_v1 }
0x1c4a   :  { %21431 = vmatprep.subr.bf16.mxu1 %v26539_v56 }
0x1c4b   :  { %v21506_v58 = vpack.c.bf16 %v27866_v28, %v27865_v36  ;;  %v26779_v28 = vld [vmem:[#allocation13 + $0xc0] sm:$0xff] }
0x1c4c   :  { %19444 = vmatmul.mubr.f32.gmra.mrb[36].mxu1 %v26587_v26 }
0x1c4d   :  { %21433 = vmatpush3.bf16.msra.mxu1 %v26539_v56  ;;  %19478 = vmatprep.mubr.f32.mxu1 %v26583_v9  ;;  %v27867_v56 = vand.u32 4294901760, %v26474_v0 }
0x1c4e   :  { %21435 = vmatprep.subr.bf16.mxu1 %v26543_v6 }
0x1c51   :  { %21437 = vmatpush3.bf16.msra.mxu1 %v26543_v6  ;;  %v27868_v6 = vand.u32 4294901760, %v26479_v62 }
0x1c52   :  { %21439 = vmatprep.subr.bf16.mxu1 %v26547_v25 }
0x1c55   :  { %21441 = vmatpush3.bf16.msra.mxu1 %v26547_v25  ;;  %v21510_v25 = vpack.c.bf16 %v27868_v6, %v27867_v56  ;;  %v15147_v56 = vand.u32 4294901760, %v26779_v28 }
0x1c56   :  { %21443 = vmatprep.subr.bf16.mxu1 %v26551_v18 }
0x1c59   :  { %21445 = vmatpush3.bf16.msra.mxu1 %v26551_v18  ;;  %v21514_v18 = vpack.c.bf16 %v27870_v54, %v27869_v2  ;;  %v26789_v2 = vld [vmem:[#allocation13 + $0xd0] sm:$0xff]  ;;  %v26791_v54 = vld [vmem:[#allocation13 + $0xd8] sm:$0xff] }
0x1c5a   :  { %21447 = vmatprep.subr.bf16.mxu1 %v26555_v31 }
0x1c5d   :  { %21449 = vmatpush3.bf16.msra.mxu1 %v26555_v31  ;;  %v21518_v31 = vpack.c.bf16 %v27872_v46, %v27871_v59  ;;  %v15153_v59 = vand.u32 4294901760, %v26789_v2  ;;  %v15156_v46 = vand.u32 4294901760, %v26791_v54 }
0x1c5e   :  { %21451 = vmatprep.subr.bf16.mxu1 %v26559_v20 }
0x1c61   :  { %21453 = vmatpush3.bf16.msra.mxu1 %v26559_v20 }
0x1c62   :  { %21455 = vmatprep.subr.bf16.mxu1 %v26563_v23 }
0x1c65   :  { %21457 = vmatpush3.bf16.msra.mxu1 %v26563_v23 }
0x1c66   :  { %21459 = vmatprep.subr.bf16.mxu1 %v26332_v35 }
0x1c68   :  { %19479 = vmatmul.mubr.f32.vlgmr.msra.gmra.mrb[34].mxu1 %v26580_v17 }
0x1c69   :  { %19481 = vmatprep.mubr.f32.mxu1 %v26599_v48  ;;  %21461 = vmatpush3.bf16.msra.mxu1 %v26332_v35 }
0x1c6a   :  { %21463 = vmatprep.subr.bf16.mxu1 %v26336_v52 }
0x1c6c   :  { %19482 = vmatmul.mubr.f32.gmra.mrb[36].mxu1 %v26596_v55 }
0x1c6d   :  { %21465 = vmatpush3.bf16.msra.mxu1 %v26336_v52  ;;  %19516 = vmatprep.mubr.f32.mxu1 %v14334_v12 }
0x1c6e   :  { %21467 = vmatprep.subr.bf16.mxu1 %v26340_v32 }
0x1c71   :  { %21469 = vmatpush3.bf16.msra.mxu1 %v26340_v32 }
0x1c72   :  { %21471 = vmatprep.subr.bf16.mxu1 %v26344_v22 }
0x1c75   :  { %21473 = vmatpush3.bf16.msra.mxu1 %v26344_v22 }
0x1c76   :  { %21475 = vmatprep.subr.bf16.mxu1 %v26354_v47 }
0x1c79   :  { %21477 = vmatpush3.bf16.msra.mxu1 %v26354_v47 }
0x1c7a   :  { %21479 = vmatprep.subr.bf16.mxu1 %v26378_v30 }
0x1c7d   :  { %21481 = vmatpush3.bf16.msra.mxu1 %v26378_v30 }
0x1c7e   :  { %21483 = vmatprep.subr.bf16.mxu1 %v26384_v24 }
0x1c81   :  { %21485 = vmatpush3.bf16.msra.mxu1 %v26384_v24 }
0x1c82   :  { %21487 = vmatprep.subr.bf16.mxu1 %v26395_v37 }
0x1c85   :  { %21489 = vmatpush3.bf16.msra.mxu1 %v26395_v37 }
0x1c86   :  { %21491 = vmatprep.subr.bf16.mxu1 %v21490_v15 }
0x1c88   :  { %19517 = vmatmul.mubr.f32.vlgmr.msra.gmra.mrb[34].mxu1 %v14344_v39 }
0x1c89   :  { %19519 = vmatprep.mubr.f32.mxu1 %v14354_v38  ;;  %21493 = vmatpush3.bf16.msra.mxu1 %v21490_v15  ;;  %v26769_v15 = vpack.c.bf16 %v15132_v21, %v15129_v50 }
0x1c8a   :  { %21495 = vmatprep.subr.bf16.mxu1 %v21494_v16 }
0x1c8c   :  { %19520 = vmatmul.mubr.f32.gmra.mrb[36].mxu1 %v14364_v4  ;;  %v15098_v4 = vld [vmem:[#allocation13 + $0x80] sm:$0xff] }
0x1c8d   :  { %21497 = vmatpush3.bf16.msra.mxu1 %v21494_v16  ;;  %19554 = vmatprep.mubr.f32.mxu1 %v26577_v11  ;;  %v15123_v38 = vand.u32 4294901760, %v15098_v4  ;;  %v15135_v16 = vand.u32 4294901760, %v15102_v40 }
0x1c8e   :  { %21499 = vmatprep.subr.bf16.mxu1 %v21498_v61 }
0x1c8f   :  { %v26765_v33 = vpack.c.bf16 %v15126_v8, %v15123_v38  ;;  %v26773_v53 = vpack.c.bf16 %v15138_v45, %v15135_v16 }
0x1c91   :  { %21501 = vmatpush3.bf16.msra.mxu1 %v21498_v61  ;;  %21555 = vmatprep.subr.bf16.mxu0 %v26765_v33  ;;  %v15104_v61 = vld [vmem:[#allocation13 + $0xb0] sm:$0xff] }
0x1c92   :  { %21503 = vmatprep.subr.bf16.mxu1 %v21502_v19  ;;  %21557 = vmatpush3.bf16.msra.mxu0 %v26765_v33  ;;  %v15141_v63 = vand.u32 4294901760, %v15104_v61 }
0x1c93   :  { %21559 = vmatprep.subr.bf16.mxu0 %v26769_v15 }
0x1c95   :  { %21505 = vmatpush3.bf16.msra.mxu1 %v21502_v19  ;;  %v15144_v19 = vand.u32 4294901760, %v15105_v43 }
0x1c96   :  { %21507 = vmatprep.subr.bf16.mxu1 %v21506_v58  ;;  %21561 = vmatpush3.bf16.msra.mxu0 %v26769_v15 }
0x1c97   :  { %21563 = vmatprep.subr.bf16.mxu0 %v26773_v53  ;;  %v26777_v36 = vpack.c.bf16 %v15144_v19, %v15141_v63 }
0x1c99   :  { %21509 = vmatpush3.bf16.msra.mxu1 %v21506_v58  ;;  %v26781_v58 = vld [vmem:[#allocation13 + $0xc8] sm:$0xff] }
0x1c9a   :  { %21511 = vmatprep.subr.bf16.mxu1 %v21510_v25  ;;  %21565 = vmatpush3.bf16.msra.mxu0 %v26773_v53  ;;  %v15150_v6 = vand.u32 4294901760, %v26781_v58 }
0x1c9b   :  { %21567 = vmatprep.subr.bf16.mxu0 %v26777_v36 }
0x1c9d   :  { %21513 = vmatpush3.bf16.msra.mxu1 %v21510_v25  ;;  %v26787_v25 = vpack.c.bf16 %v15150_v6, %v15147_v56 }
0x1c9e   :  { %21515 = vmatprep.subr.bf16.mxu1 %v21514_v18  ;;  %21569 = vmatpush3.bf16.msra.mxu0 %v26777_v36 }
0x1c9f   :  { %21571 = vmatprep.subr.bf16.mxu0 %v26787_v25 }
0x1ca1   :  { %21517 = vmatpush3.bf16.msra.mxu1 %v21514_v18  ;;  %v26793_v18 = vld [vmem:[#allocation13 + $0xe0] sm:$0xff] }
0x1ca2   :  { %21519 = vmatprep.subr.bf16.mxu1 %v21518_v31  ;;  %21573 = vmatpush3.bf16.msra.mxu0 %v26787_v25 }
0x1ca5   :  { %21521 = vmatpush3.bf16.msra.mxu1 %v21518_v31  ;;  %v26798_v31 = vld [vmem:[#allocation13 + $0xe8] sm:$0xff] }
0x1ca6   :  { %21523 = vmatprep.subr.bf16.mxu1 %v26332_v35 }
0x1ca8   :  { %19555 = vmatmul.mubr.f32.vlgmr.msra.gmra.mrb[34].mxu1 %v26575_v27 }
0x1ca9   :  { %19557 = vmatprep.mubr.f32.mxu1 %v26592_v5  ;;  %21525 = vmatpush3.bf16.msra.mxu1 %v26332_v35  ;;  %v15979_v35 = vld [vmem:[%s27195_s22] ss:$0 sm:$0xff] }
0x1caa   :  { %21527 = vmatprep.subr.bf16.mxu1 %v26336_v52 }
0x1cac   :  { %19558 = vmatmul.mubr.f32.gmra.mrb[36].mxu1 %v26587_v26 }
0x1cad   :  { %21529 = vmatpush3.bf16.msra.mxu1 %v26336_v52  ;;  %19592 = vmatprep.mubr.f32.mxu1 %v26577_v11 }
0x1cae   :  { %21531 = vmatprep.subr.bf16.mxu1 %v26340_v32 }
0x1cb1   :  { %21533 = vmatpush3.bf16.msra.mxu1 %v26340_v32 }
0x1cb2   :  { %21535 = vmatprep.subr.bf16.mxu1 %v26344_v22 }
0x1cb5   :  { %21537 = vmatpush3.bf16.msra.mxu1 %v26344_v22 }
0x1cb6   :  { %21539 = vmatprep.subr.bf16.mxu1 %v26354_v47 }
0x1cb9   :  { %21541 = vmatpush3.bf16.msra.mxu1 %v26354_v47 }
0x1cba   :  { %21543 = vmatprep.subr.bf16.mxu1 %v26378_v30 }
0x1cbd   :  { %21545 = vmatpush3.bf16.msra.mxu1 %v26378_v30 }
0x1cbe   :  { %21547 = vmatprep.subr.bf16.mxu1 %v26384_v24 }
0x1cc1   :  { %21549 = vmatpush3.bf16.msra.mxu1 %v26384_v24 }
0x1cc2   :  { %21551 = vmatprep.subr.bf16.mxu1 %v26395_v37 }
0x1cc5   :  { %21553 = vmatpush3.bf16.msra.mxu1 %v26395_v37 }
0x1cc8   :  { %19593 = vmatmul.mubr.f32.vlgmr.msra.gmra.mrb[34].mxu1 %v26575_v27 }
0x1cc9   :  { %19595 = vmatprep.mubr.f32.mxu1 %v26592_v5 }
0x1ccc   :  { %19596 = vmatmul.mubr.f32.gmra.mrb[36].mxu1 %v26587_v26 }
0x1d9b   :  { %v19594_v52 = vpop.f32.mrb[34].mxu1 }
0x1d9c   :  { %v21770_v32 = vadd.f32 %v19594_v52, %v15979_v35  ;;  %v14999_v22 = vpop.f32.mrb[35].mxu1  ;;  %v26801_v52 = vld [vmem:[#allocation13 + $0xf0] sm:$0xff] }
0x1d9d   :  { %v21771_v47 = vadd.f32 %v15979_v35, %v14999_v22  ;;  %v15162_v22 = vand.u32 4294901760, %v26798_v31 }
0x1d9e   :  { %v15022_v30 = vmax.f32 %v21770_v32, 0.0  ;;  %v26803_v32 = vld [vmem:[#allocation13 + $0xf8] sm:$0xff] }
0x1d9f   :  { %v15021_v24 = vmax.f32 %v21771_v47, 0.0  ;;  %v19597_v11 = vpop.f32.mrb[36].mxu1  ;;  %v26807_v47 = vpack.c.bf16 %v15156_v46, %v15153_v59 }
0x1da0   :  { %v26730_v0 = vadd.f32 %v15022_v30, %v26298_v57  ;;  %v21772_v37 = vadd.f32 %v19597_v11, %v15979_v35  ;;  %v15011_v27 = vpop.f32.mrb[37].mxu1  ;;  %v15165_v30 = vand.u32 4294901760, %v26801_v52 }
0x1da1   :  { %v26733_v62 = vadd.f32 %v15021_v24, %v26300_v7  ;;  %v21773_v41 = vadd.f32 %v15979_v35, %v15011_v27  ;;  %v15159_v35 = vand.u32 4294901760, %v26793_v18  ;;  %v15168_v24 = vand.u32 4294901760, %v26803_v32  ;;  %21575 = vmatprep.subr.bf16.mxu0 %v26807_v47 }
0x1da2   :  { %v15024_v10 = vmax.f32 %v21772_v37, 0.0  ;;  %15035 = vadd.xlane.f32.xlu1 %v26730_v0  ;;  %21577 = vmatpush3.bf16.msra.mxu0 %v26807_v47  ;;  %v26826_v27 = vsub.f32 %v15098_v4, %v15123_v38  ;;  %v26857_v4 = vsub.f32 %v15103_v60, %v15138_v45 }
0x1da3   :  { %v15023_v1 = vmax.f32 %v21773_v41, 0.0  ;;  %15033 = vadd.xlane.f32.xlu0 %v26733_v62  ;;  %v26815_v11 = vpack.c.bf16 %v15162_v22, %v15159_v35  ;;  %v26824_v37 = vpack.c.bf16 %v15168_v24, %v15165_v30  ;;  %v26828_v41 = vsub.f32 %v15099_v44, %v15126_v8 }
0x1da4   :  { %v26738_v49 = vadd.f32 %v15024_v10, %v26306_v13  ;;  %v27480_v10 = vand.u32 4294901760, %v26826_v27 }
0x1da5   :  { %v26741_v20 = vadd.f32 %v15023_v1, %v26308_v51  ;;  %21579 = vmatprep.subr.bf16.mxu0 %v26815_v11  ;;  %v27479_v1 = vand.u32 4294901760, %v26828_v41 }
0x1da6   :  { %15039 = vadd.xlane.f32.xlu1 %v26738_v49  ;;  %21581 = vmatpush3.bf16.msra.mxu0 %v26815_v11 }
0x1da7   :  { %15037 = vadd.xlane.f32.xlu0 %v26741_v20  ;;  %21583 = vmatprep.subr.bf16.mxu0 %v26824_v37 }
0x1daa   :  { %21585 = vmatpush3.bf16.msra.mxu0 %v26824_v37 }
0x1e2f   :  { %v15036_v57 = vpop.xlane.xlu1 %15035 }
0x1e30   :  { %v15042_v7 = vmul.f32 0.0078125, %v15036_v57  ;;  %v15034_v23 = vpop.xlane.xlu0 %15033  ;;  %v15247_v57 = vsub.f32 %v26826_v27, %v27480_v10 }
0x1e31   :  { %v15041_v17 = vmul.f32 0.0078125, %v15034_v23  ;;  %v26840_v23 = vsub.f32 %v15100_v42, %v15129_v50  ;;  %v27475_v42 = vand.u32 4294901760, %v26857_v4 }
0x1e32   :  { %v26746_v9 = vsub.f32 %v26730_v0, %v15042_v7  ;;  %v15254_v7 = vsub.f32 %v26828_v41, %v27479_v1 }
0x1e33   :  { %v26749_v39 = vsub.f32 %v26733_v62, %v15041_v17  ;;  %v15040_v12 = vpop.xlane.xlu1 %15039  ;;  %v26842_v17 = vsub.f32 %v15101_v34, %v15132_v21  ;;  %v26867_v21 = vsub.f32 %v15104_v61, %v15141_v63  ;;  %v15282_v60 = vsub.f32 %v26857_v4, %v27475_v42 }
0x1e34   :  { %v15044_v13 = vmul.f32 0.0078125, %v15040_v12  ;;  %v15038_v26 = vpop.xlane.xlu0 %15037  ;;  %v15050_v51 = vmul.f32 %v26746_v9, %v26746_v9  ;;  %v15248_v12 = vand.u32 4294901760, %v15247_v57  ;;  %v26886_v63 = vsub.f32 %v26781_v58, %v15150_v6 }
0x1e35   :  { %v15043_v29 = vmul.f32 0.0078125, %v15038_v26  ;;  %v15049_v5 = vmul.f32 %v26749_v39, %v26749_v39  ;;  %v27478_v26 = vand.u32 4294901760, %v26840_v23  ;;  %v27474_v45 = vand.u32 4294901760, %v26867_v21 }
0x1e36   :  { %v26756_v3 = vsub.f32 %v26738_v49, %v15044_v13  ;;  %15055 = vadd.xlane.f32.xlu1 %v15050_v51  ;;  %v15255_v13 = vand.u32 4294901760, %v15254_v7  ;;  %v27477_v51 = vand.u32 4294901760, %v26842_v17  ;;  %v15283_v7 = vand.u32 4294901760, %v15282_v60 }
0x1e37   :  { %v26759_v55 = vsub.f32 %v26741_v20, %v15043_v29  ;;  %15053 = vadd.xlane.f32.xlu0 %v15049_v5  ;;  %v15261_v5 = vsub.f32 %v26840_v23, %v27478_v26  ;;  %v26901_v58 = vsub.f32 %v26789_v2, %v15153_v59  ;;  %v26916_v2 = vsub.f32 %v26793_v18, %v15159_v35  ;;  %v15982_v26 = vld [vmem:[%s27192_s19 + $0x1] ss:$0 sm:$0xff] }
0x1e38   :  { %v15052_v48 = vmul.f32 %v26756_v3, %v26756_v3  ;;  %v26847_v29 = vpack.c.bf16 %v15255_v13, %v15248_v12  ;;  %v15289_v12 = vsub.f32 %v26867_v21, %v27474_v45 }
0x1e39   :  { %v15051_v14 = vmul.f32 %v26759_v55, %v26759_v55  ;;  %v15262_v44 = vand.u32 4294901760, %v15261_v5 }
0x1e3a   :  { %15059 = vadd.xlane.f32.xlu1 %v15052_v48  ;;  %v15268_v48 = vsub.f32 %v26842_v17, %v27477_v51  ;;  %21587 = vmatprep.subr.bf16.mxu0 %v26847_v29  ;;  %v15290_v13 = vand.u32 4294901760, %v15289_v12 }
0x1e3b   :  { %15057 = vadd.xlane.f32.xlu0 %v15051_v14  ;;  %v26855_v14 = vsub.f32 %v15102_v40, %v15135_v16  ;;  %v26869_v40 = vsub.f32 %v15105_v43, %v15144_v19  ;;  %v26883_v43 = vsub.f32 %v26779_v28, %v15147_v56  ;;  %v26904_v56 = vsub.f32 %v26791_v54, %v15156_v46 }
0x1e3c   :  { %v15269_v38 = vand.u32 4294901760, %v15268_v48  ;;  %v26921_v54 = vsub.f32 %v26798_v31, %v15162_v22  ;;  %v26937_v31 = vsub.f32 %v26801_v52, %v15165_v30  ;;  %v26942_v22 = vsub.f32 %v26803_v32, %v15168_v24 }
0x1e3d   :  { %v27476_v8 = vand.u32 4294901760, %v26855_v14  ;;  %v27473_v57 = vand.u32 4294901760, %v26869_v40  ;;  %v27472_v48 = vand.u32 4294901760, %v26883_v43 }
0x1e3e   :  { %v26862_v34 = vpack.c.bf16 %v15269_v38, %v15262_v44  ;;  %v27471_v44 = vand.u32 4294901760, %v26886_v63 }
0x1e3f   :  { %v15275_v50 = vsub.f32 %v26855_v14, %v27476_v8  ;;  %v15296_v61 = vsub.f32 %v26869_v40, %v27473_v57 }
0x1e40   :  { %v15310_v28 = vsub.f32 %v26886_v63, %v27471_v44 }
0x1e41   :  { %v15276_v16 = vand.u32 4294901760, %v15275_v50  ;;  %v15297_v5 = vand.u32 4294901760, %v15296_v61  ;;  %v15303_v50 = vsub.f32 %v26883_v43, %v27472_v48 }
0x1e42   :  { %v15311_v60 = vand.u32 4294901760, %v15310_v28 }
0x1e43   :  { %v26888_v19 = vpack.c.bf16 %v15283_v7, %v15276_v16  ;;  %v26892_v38 = vpack.c.bf16 %v15297_v5, %v15290_v13  ;;  %v15304_v6 = vand.u32 4294901760, %v15303_v50  ;;  %v27470_v16 = vand.u32 4294901760, %v26901_v58 }
0x1e44   :  { %v27469_v7 = vand.u32 4294901760, %v26904_v56  ;;  %v27465_v13 = vand.u32 4294901760, %v26916_v2  ;;  %v27468_v5 = vand.u32 4294901760, %v26921_v54 }
0x1e45   :  { %v26908_v12 = vpack.c.bf16 %v15311_v60, %v15304_v6  ;;  %v15317_v61 = vsub.f32 %v26901_v58, %v27470_v16 }
0x1e46   :  { %v15324_v59 = vsub.f32 %v26904_v56, %v27469_v7  ;;  %v15331_v18 = vsub.f32 %v26916_v2, %v27465_v13  ;;  %v15338_v35 = vsub.f32 %v26921_v54, %v27468_v5 }
0x1e47   :  { %v15318_v46 = vand.u32 4294901760, %v15317_v61  ;;  %v27467_v61 = vand.u32 4294901760, %v26937_v31 }
0x1e48   :  { %v15325_v50 = vand.u32 4294901760, %v15324_v59  ;;  %v15332_v6 = vand.u32 4294901760, %v15331_v18  ;;  %v15339_v60 = vand.u32 4294901760, %v15338_v35  ;;  %v27466_v59 = vand.u32 4294901760, %v26942_v22 }
0x1e49   :  { %v15345_v52 = vsub.f32 %v26937_v31, %v27467_v61  ;;  %v26964_v18 = vpack.c.bf16 %v26842_v17, %v26840_v23  ;;  %v26968_v35 = vpack.c.bf16 %v26857_v4, %v26855_v14 }
0x1e4a   :  { %v26944_v28 = vpack.c.bf16 %v15325_v50, %v15318_v46  ;;  %v26948_v13 = vpack.c.bf16 %v15339_v60, %v15332_v6  ;;  %v15352_v30 = vsub.f32 %v26942_v22, %v27466_v59  ;;  %v26960_v50 = vpack.c.bf16 %v26828_v41, %v26826_v27 }
0x1e4b   :  { %v15346_v32 = vand.u32 4294901760, %v15345_v52  ;;  %v26972_v6 = vpack.c.bf16 %v26869_v40, %v26867_v21  ;;  %v26976_v60 = vpack.c.bf16 %v26886_v63, %v26883_v43  ;;  %v26980_v52 = vpack.c.bf16 %v26904_v56, %v26901_v58 }
0x1e4c   :  { %v15353_v24 = vand.u32 4294901760, %v15352_v30  ;;  %v26984_v30 = vpack.c.bf16 %v26921_v54, %v26916_v2 }
0x1e4e   :  { %v26956_v46 = vpack.c.bf16 %v15353_v24, %v15346_v32  ;;  %v26988_v32 = vpack.c.bf16 %v26942_v22, %v26937_v31 }
0x1ec3   :  { %v15056_v24 = vpop.xlane.xlu1 %15055 }
0x1ec4   :  { %v15062_v59 = vmul.f32 0.0078125, %v15056_v24  ;;  %v15054_v61 = vpop.xlane.xlu0 %15053 }
0x1ec5   :  { %v15061_v5 = vmul.f32 0.0078125, %v15054_v61 }
0x1ec6   :  { %v15066_v7 = vadd.f32 1e-05, %v15062_v59 }
0x1ec7   :  { %v15065_v16 = vadd.f32 1e-05, %v15061_v5  ;;  %v15060_v44 = vpop.xlane.xlu1 %15059 }
0x1ec8   :  { %22207 = vrsqrt.f32 %v15066_v7  ;;  %v15064_v48 = vmul.f32 0.0078125, %v15060_v44  ;;  %v15058_v57 = vpop.xlane.xlu0 %15057  ;;  %v15983_v44 = vld [vmem:[%s27193_s20 + $0x1] ss:$0 sm:$0xff] }
0x1ec9   :  { %22209 = vrsqrt.f32 %v15065_v16  ;;  %v15063_v45 = vmul.f32 0.0078125, %v15058_v57 }
0x1eca   :  { %v15068_v42 = vadd.f32 1e-05, %v15064_v48 }
0x1ecb   :  { %v15067_v8 = vadd.f32 1e-05, %v15063_v45 }
0x1ecc   :  { %22211 = vrsqrt.f32 %v15068_v42 }
0x1ecd   :  { %22213 = vrsqrt.f32 %v15067_v8 }
0x1ed2   :  { %v22208_v51 = vpop.eup %22207 }
0x1ed3   :  { %v22210_v24 = vpop.eup %22209  ;;  %v15074_v61 = vmul.f32 %v22208_v51, %v26746_v9 }
0x1ed4   :  { %v15073_v5 = vmul.f32 %v22210_v24, %v26749_v39 }
0x1ed5   :  { %v15084_v16 = vmul.f32 %v15982_v26, %v15074_v61 }
0x1ed6   :  { %v22212_v57 = vpop.eup %22211  ;;  %v15083_v48 = vmul.f32 %v15982_v26, %v15073_v5 }
0x1ed7   :  { %v22214_v45 = vpop.eup %22213  ;;  %v15076_v8 = vmul.f32 %v22212_v57, %v26756_v3  ;;  %v15094_v42 = vadd.f32 %v15983_v44, %v15084_v16 }
0x1ed8   :  { %v15075_v7 = vmul.f32 %v22214_v45, %v26759_v55  ;;  %v15093_v59 = vadd.f32 %v15983_v44, %v15083_v48 }
0x1ed9   :  { %v27000_v1 = vand.u32 4294901760, %v15094_v42  ;;  %v15086_v10 = vmul.f32 %v15982_v26, %v15076_v8 }
0x1eda   :  { %v27002_v9 = vand.u32 4294901760, %v15093_v59  ;;  %v15085_v39 = vmul.f32 %v15982_v26, %v15075_v7 }
0x1edb   :  { %v27005_v51 = vsub.f32 %v15094_v42, %v27000_v1  ;;  %v15096_v24 = vadd.f32 %v15983_v44, %v15086_v10 }
0x1edc   :  { %v27008_v61 = vsub.f32 %v15093_v59, %v27002_v9  ;;  %v15095_v5 = vadd.f32 %v15983_v44, %v15085_v39 }
0x1edd   :  { %v15215_v3 = vand.u32 4294901760, %v27005_v51  ;;  %v27011_v16 = vand.u32 4294901760, %v15096_v24 }
0x1ede   :  { %v15205_v55 = vand.u32 4294901760, %v27008_v61  ;;  %v27014_v57 = vand.u32 4294901760, %v15095_v5 }
0x1edf   :  { %v15216_v26 = vsub.f32 %v27005_v51, %v15215_v3  ;;  %v27020_v48 = vsub.f32 %v15096_v24, %v27011_v16 }
0x1ee0   :  { %v15206_v10 = vsub.f32 %v27008_v61, %v15205_v55  ;;  %v27024_v45 = vsub.f32 %v15095_v5, %v27014_v57 }
0x1ee1   :  { %v15235_v44 = vand.u32 4294901760, %v27020_v48  ;;  %v15217_v7 = vand.u32 4294901760, %v15216_v26 }
0x1ee2   :  { %v15207_v8 = vand.u32 4294901760, %v15206_v10  ;;  %v15225_v42 = vand.u32 4294901760, %v27024_v45 }
0x1ee3   :  { %v15236_v59 = vsub.f32 %v27020_v48, %v15235_v44 }
0x1ee4   :  { %19630 = vmatprep.mubr.f32.mxu0 %v15207_v8  ;;  %v15226_v39 = vsub.f32 %v27024_v45, %v15225_v42 }
0x1ee5   :  { %19631 = vmatmul.mubr.f32.vlgmr.msra.gmra.mrb[26].mxu0 %v15217_v7  ;;  %v15237_v5 = vand.u32 4294901760, %v15236_v59 }
0x1ee6   :  { %21589 = vmatpush3.bf16.msra.mxu0 %v26847_v29  ;;  %v15227_v24 = vand.u32 4294901760, %v15226_v39  ;;  %v27873_v29 = vand.u32 4294901760, %v26826_v27  ;;  %v27877_v27 = vand.u32 4294901760, %v26855_v14  ;;  %v27882_v14 = vand.u32 4294901760, %v26886_v63 }
0x1ee7   :  { %21591 = vmatprep.subr.bf16.mxu0 %v26862_v34  ;;  %v27888_v63 = vand.u32 4294901760, %v26942_v22 }
0x1ee8   :  { %19633 = vmatprep.mubr.f32.mxu0 %v15227_v24 }
0x1ee9   :  { %19634 = vmatmul.mubr.f32.gmra.mrb[28].mxu0 %v15237_v5 }
0x1eea   :  { %21593 = vmatpush3.bf16.msra.mxu0 %v26862_v34  ;;  %19668 = vmatprep.mubr.f32.mxu0 %v27002_v9  ;;  %v27874_v34 = vand.u32 4294901760, %v26828_v41  ;;  %v27878_v41 = vand.u32 4294901760, %v26857_v4 }
0x1eeb   :  { %21595 = vmatprep.subr.bf16.mxu0 %v26888_v19 }
0x1eee   :  { %21597 = vmatpush3.bf16.msra.mxu0 %v26888_v19  ;;  %v21682_v19 = vpack.c.bf16 %v27874_v34, %v27873_v29 }
0x1eef   :  { %21599 = vmatprep.subr.bf16.mxu0 %v26892_v38 }
0x1ef2   :  { %21601 = vmatpush3.bf16.msra.mxu0 %v26892_v38  ;;  %v27875_v38 = vand.u32 4294901760, %v26840_v23  ;;  %v27879_v23 = vand.u32 4294901760, %v26867_v21  ;;  %v27885_v21 = vand.u32 4294901760, %v26916_v2 }
0x1ef3   :  { %21603 = vmatprep.subr.bf16.mxu0 %v26908_v12 }
0x1ef6   :  { %21605 = vmatpush3.bf16.msra.mxu0 %v26908_v12  ;;  %v27876_v12 = vand.u32 4294901760, %v26842_v17  ;;  %v27880_v17 = vand.u32 4294901760, %v26869_v40  ;;  %v27886_v40 = vand.u32 4294901760, %v26921_v54 }
0x1ef7   :  { %21607 = vmatprep.subr.bf16.mxu0 %v26944_v28 }
0x1efa   :  { %21609 = vmatpush3.bf16.msra.mxu0 %v26944_v28  ;;  %v21690_v28 = vpack.c.bf16 %v27878_v41, %v27877_v27 }
0x1efb   :  { %21611 = vmatprep.subr.bf16.mxu0 %v26948_v13 }
0x1efe   :  { %21613 = vmatpush3.bf16.msra.mxu0 %v26948_v13  ;;  %v21686_v13 = vpack.c.bf16 %v27876_v12, %v27875_v38 }
0x1eff   :  { %21615 = vmatprep.subr.bf16.mxu0 %v26956_v46 }
0x1f02   :  { %21617 = vmatpush3.bf16.msra.mxu0 %v26956_v46  ;;  %v21694_v46 = vpack.c.bf16 %v27880_v17, %v27879_v23 }
0x1f03   :  { %21619 = vmatprep.subr.bf16.mxu0 %v26960_v50 }
0x1f05   :  { %19669 = vmatmul.mubr.f32.vlgmr.msra.gmra.mrb[26].mxu0 %v27000_v1 }
0x1f06   :  { %19671 = vmatprep.mubr.f32.mxu0 %v27014_v57  ;;  %21621 = vmatpush3.bf16.msra.mxu0 %v26960_v50  ;;  %v27881_v50 = vand.u32 4294901760, %v26883_v43  ;;  %v27887_v43 = vand.u32 4294901760, %v26937_v31 }
0x1f07   :  { %21623 = vmatprep.subr.bf16.mxu0 %v26964_v18 }
0x1f08   :  { %v21698_v4 = vpack.c.bf16 %v27882_v14, %v27881_v50 }
0x1f09   :  { %19672 = vmatmul.mubr.f32.gmra.mrb[28].mxu0 %v27011_v16 }
0x1f0a   :  { %21625 = vmatpush3.bf16.msra.mxu0 %v26964_v18  ;;  %19706 = vmatprep.mubr.f32.mxu0 %v27008_v61  ;;  %v27883_v18 = vand.u32 4294901760, %v26901_v58 }
0x1f0b   :  { %21627 = vmatprep.subr.bf16.mxu0 %v26968_v35 }
0x1f0e   :  { %21629 = vmatpush3.bf16.msra.mxu0 %v26968_v35  ;;  %v27884_v35 = vand.u32 4294901760, %v26904_v56 }
0x1f0f   :  { %21631 = vmatprep.subr.bf16.mxu0 %v26972_v6 }
0x1f12   :  { %21633 = vmatpush3.bf16.msra.mxu0 %v26972_v6  ;;  %v21702_v6 = vpack.c.bf16 %v27884_v35, %v27883_v18 }
0x1f13   :  { %21635 = vmatprep.subr.bf16.mxu0 %v26976_v60 }
0x1f16   :  { %21637 = vmatpush3.bf16.msra.mxu0 %v26976_v60  ;;  %v21706_v60 = vpack.c.bf16 %v27886_v40, %v27885_v21 }
0x1f17   :  { %21639 = vmatprep.subr.bf16.mxu0 %v26980_v52 }
0x1f1a   :  { %21641 = vmatpush3.bf16.msra.mxu0 %v26980_v52  ;;  %v21710_v52 = vpack.c.bf16 %v27888_v63, %v27887_v43 }
0x1f1b   :  { %21643 = vmatprep.subr.bf16.mxu0 %v26984_v30 }
0x1f1e   :  { %21645 = vmatpush3.bf16.msra.mxu0 %v26984_v30 }
0x1f1f   :  { %21647 = vmatprep.subr.bf16.mxu0 %v26988_v32 }
0x1f22   :  { %21649 = vmatpush3.bf16.msra.mxu0 %v26988_v32 }
0x1f23   :  { %21651 = vmatprep.subr.bf16.mxu0 %v26765_v33 }
0x1f25   :  { %19707 = vmatmul.mubr.f32.vlgmr.msra.gmra.mrb[26].mxu0 %v27005_v51 }
0x1f26   :  { %19709 = vmatprep.mubr.f32.mxu0 %v27024_v45  ;;  %21653 = vmatpush3.bf16.msra.mxu0 %v26765_v33 }
0x1f27   :  { %21655 = vmatprep.subr.bf16.mxu0 %v26769_v15 }
0x1f29   :  { %19710 = vmatmul.mubr.f32.gmra.mrb[28].mxu0 %v27020_v48 }
0x1f2a   :  { %21657 = vmatpush3.bf16.msra.mxu0 %v26769_v15  ;;  %19744 = vmatprep.mubr.f32.mxu0 %v15205_v55 }
0x1f2b   :  { %21659 = vmatprep.subr.bf16.mxu0 %v26773_v53 }
0x1f2e   :  { %21661 = vmatpush3.bf16.msra.mxu0 %v26773_v53 }
0x1f2f   :  { %21663 = vmatprep.subr.bf16.mxu0 %v26777_v36 }
0x1f32   :  { %21665 = vmatpush3.bf16.msra.mxu0 %v26777_v36 }
0x1f33   :  { %21667 = vmatprep.subr.bf16.mxu0 %v26787_v25 }
0x1f36   :  { %21669 = vmatpush3.bf16.msra.mxu0 %v26787_v25 }
0x1f37   :  { %21671 = vmatprep.subr.bf16.mxu0 %v26807_v47 }
0x1f3a   :  { %21673 = vmatpush3.bf16.msra.mxu0 %v26807_v47 }
0x1f3b   :  { %21675 = vmatprep.subr.bf16.mxu0 %v26815_v11 }
0x1f3e   :  { %21677 = vmatpush3.bf16.msra.mxu0 %v26815_v11 }
0x1f3f   :  { %21679 = vmatprep.subr.bf16.mxu0 %v26824_v37 }
0x1f42   :  { %21681 = vmatpush3.bf16.msra.mxu0 %v26824_v37 }
0x1f43   :  { %21683 = vmatprep.subr.bf16.mxu0 %v21682_v19 }
0x1f45   :  { %19745 = vmatmul.mubr.f32.vlgmr.msra.gmra.mrb[26].mxu0 %v15215_v3 }
0x1f46   :  { %19747 = vmatprep.mubr.f32.mxu0 %v15225_v42  ;;  %21685 = vmatpush3.bf16.msra.mxu0 %v21682_v19 }
0x1f47   :  { %21687 = vmatprep.subr.bf16.mxu0 %v21686_v13 }
0x1f49   :  { %19748 = vmatmul.mubr.f32.gmra.mrb[28].mxu0 %v15235_v44 }
0x1f4a   :  { %21689 = vmatpush3.bf16.msra.mxu0 %v21686_v13  ;;  %19782 = vmatprep.mubr.f32.mxu0 %v27002_v9 }
0x1f4b   :  { %21691 = vmatprep.subr.bf16.mxu0 %v21690_v28 }
0x1f4e   :  { %21693 = vmatpush3.bf16.msra.mxu0 %v21690_v28 }
0x1f4f   :  { %21695 = vmatprep.subr.bf16.mxu0 %v21694_v46 }
0x1f52   :  { %21697 = vmatpush3.bf16.msra.mxu0 %v21694_v46 }
0x1f53   :  { %21699 = vmatprep.subr.bf16.mxu0 %v21698_v4 }
0x1f56   :  { %21701 = vmatpush3.bf16.msra.mxu0 %v21698_v4 }
0x1f57   :  { %21703 = vmatprep.subr.bf16.mxu0 %v21702_v6 }
0x1f5a   :  { %21705 = vmatpush3.bf16.msra.mxu0 %v21702_v6 }
0x1f5b   :  { %21707 = vmatprep.subr.bf16.mxu0 %v21706_v60 }
0x1f5e   :  { %21709 = vmatpush3.bf16.msra.mxu0 %v21706_v60 }
0x1f5f   :  { %21711 = vmatprep.subr.bf16.mxu0 %v21710_v52 }
0x1f62   :  { %21713 = vmatpush3.bf16.msra.mxu0 %v21710_v52 }
0x1f63   :  { %21715 = vmatprep.subr.bf16.mxu0 %v26765_v33 }
0x1f65   :  { %19783 = vmatmul.mubr.f32.vlgmr.msra.gmra.mrb[26].mxu0 %v27000_v1 }
0x1f66   :  { %19785 = vmatprep.mubr.f32.mxu0 %v27014_v57  ;;  %21717 = vmatpush3.bf16.msra.mxu0 %v26765_v33  ;;  %v15985_v33 = vld [vmem:[%s27195_s22 + $0x1] ss:$0 sm:$0xff]  ;;  %s22369_s22 = scalar_lea.vmem %s15910_s26, 512 }
0x1f67   :  { %21719 = vmatprep.subr.bf16.mxu0 %v26769_v15  ;;  %p22370_p0 = scmp.ne.s32.totalorder %s15910_s26, %s22369_s22  ;;  %p22375_p2 = scmp.lt.s32.totalorder %s22369_s22, %s22369_s22 }
0x1f69   :  { %19786 = vmatmul.mubr.f32.gmra.mrb[28].mxu0 %v27011_v16  ;;  %p22376_p3 = por %p22375_p2, %p22374_p1 }
0x1f6a   :  { %21721 = vmatpush3.bf16.msra.mxu0 %v26769_v15  ;;  %19820 = vmatprep.mubr.f32.mxu0 %v27002_v9 }
0x1f6b   :  { %21723 = vmatprep.subr.bf16.mxu0 %v26773_v53  ;;  %p22377_p4 = pnand %p22376_p3, %p22370_p0 }
0x1f6e   :  { %21725 = vmatpush3.bf16.msra.mxu0 %v26773_v53 }
0x1f6f   :  { %21727 = vmatprep.subr.bf16.mxu0 %v26777_v36 }
0x1f72   :  { %21729 = vmatpush3.bf16.msra.mxu0 %v26777_v36 }
0x1f73   :  { %21731 = vmatprep.subr.bf16.mxu0 %v26787_v25 }
0x1f76   :  { %21733 = vmatpush3.bf16.msra.mxu0 %v26787_v25 }
0x1f77   :  { %21735 = vmatprep.subr.bf16.mxu0 %v26807_v47 }
0x1f7a   :  { %21737 = vmatpush3.bf16.msra.mxu0 %v26807_v47 }
0x1f7b   :  { %21739 = vmatprep.subr.bf16.mxu0 %v26815_v11 }
0x1f7e   :  { %21741 = vmatpush3.bf16.msra.mxu0 %v26815_v11 }
0x1f7f   :  { %21743 = vmatprep.subr.bf16.mxu0 %v26824_v37 }
0x1f82   :  { %21745 = vmatpush3.bf16.msra.mxu0 %v26824_v37 }
0x1f85   :  { %19821 = vmatmul.mubr.f32.vlgmr.msra.gmra.mrb[26].mxu0 %v27000_v1 }
0x1f86   :  { %19823 = vmatprep.mubr.f32.mxu0 %v27014_v57 }
0x1f89   :  { %19824 = vmatmul.mubr.f32.gmra.mrb[28].mxu0 %v27011_v16 }
0x2058   :  { %v19822_v15 = vpop.f32.mrb[26].mxu0 }
0x2059   :  { %v21774_v53 = vadd.f32 %v19822_v15, %v15985_v33  ;;  %v15870_v36 = vpop.f32.mrb[27].mxu0 }
0x205a   :  { %v21775_v25 = vadd.f32 %v15985_v33, %v15870_v36 }
0x205b   :  { %v15893_v47 = vmax.f32 %v21774_v53, 0.0 }
0x205c   :  { %v15892_v11 = vmax.f32 %v21775_v25, 0.0  ;;  %v19825_v58 = vpop.f32.mrb[28].mxu0 }
0x205d   :  { %v15897_v56 = vadd.f32 %v15893_v47, %v26730_v0  ;;  %v21776_v37 = vadd.f32 %v19825_v58, %v15985_v33  ;;  %v15882_v2 = vpop.f32.mrb[29].mxu0 }
0x205e   :  { %v15896_v1 = vadd.f32 %v15892_v11, %v26733_v62  ;;  %v21777_v54 = vadd.f32 %v15985_v33, %v15882_v2 }
0x205f   :  { %15901 = vst [vmem:[#allocation14 + $0x8] sm:$0xff] %v15897_v56  ;;  %v15895_v31 = vmax.f32 %v21776_v37, 0.0 }
0x2060   :  { %15900 = vst [vmem:[#allocation14] sm:$0xff] %v15896_v1  ;;  %v15894_v22 = vmax.f32 %v21777_v54, 0.0 }
0x2061   :  { %v15899_v30 = vadd.f32 %v15895_v31, %v26738_v49 }
0x2062   :  { %v15898_v32 = vadd.f32 %v15894_v22, %v26741_v20 }
0x2063   :  { %15903 = vst [vmem:[#allocation14 + $0x18] sm:$0xff] %v15899_v30 }
0x2064   :  { %15902 = vst [vmem:[#allocation14 + $0x10] sm:$0xff] %v15898_v32 }
0x2065   :  { %22380 = shalt.err (!%p22377_p4)
}
0x2066   :  { %s27889_s10 = sld [smem:[#allocation74_spill]] }
0x206c   :  { %s22381_s11 = scalar_lea.hbm %s27889_s10, 512 }
0x206d   :  { %p22382_p5 = scmp.ne.s32.totalorder %s27889_s10, %s22381_s11  ;;  %p22385_p6 = scmp.lt.u32.totalorder %s22381_s11, %s27889_s10 }
0x206f   :  { %p22387_p7 = pnand %p22385_p6, %p22382_p5 }
0x2071   :  { %22390 = shalt.err (!%p22387_p7)
}
0x2072   :  { %15915 = dma.vmem_to_hbm [thread:$0]  %s15910_s26, 512, %s27889_s10, [#allocation4], %s22403_s3, %s22403_s3, %s22404_s0  }
0x2073   :  { %22399 = dma.done.wait [#allocation4], 512  }
0x2074   :  { %22400 = vsyncadd [#allocation4], 4294966784 }
0x2075   :  { %15919 = vsyncpa [#allocation3], 1 }
0x2076   :  { %15920 = vsyncpa [#allocation6], 1 }
0x2077   :  { %15921 = vsyncpa [#allocation9], 1 }
0x2078   :  { %15922 = vsyncpa [#allocation12], 1 }
0x2079   :  { %15923 = vsyncpa [#allocation4], 1 }

</bundles_post_ra>
